<compile_context>
chip_gen: v7x
topology: tpu7x:2x2x1
jax: 0.10.0
libtpu: 0.0.40
codegen_flags: <defaults>
</compile_context>

<pallas_src>
import functools

import numpy as np
import jax
import jax.numpy as jnp
from jax import lax
from jax.experimental import pallas as pl
from jax.experimental.pallas import tpu as pltpu

F32 = jnp.float32
BF16 = jnp.bfloat16
LANE = 128
M_TILE = 1024           # M=2048 slabs -> 2 parallel grid steps (v7x 2 TCs)

CFG = dict(N=2, H=64, W=64, in_ch=3, out_ch=3, num_filters=8, num_features=8,
           num_hyperpriors=8, hyper_filters=8, kernel_size=5)


# ----------------------------------------------------------------------------
# small helpers
# ----------------------------------------------------------------------------
def _round_up(x, m):
    return (x + m - 1) // m * m


def _tiles(m, tile=M_TILE):
    mp = _round_up(m, 8)
    if mp <= tile:
        return mp, mp
    return _round_up(m, tile), tile


def _pad2(a, mp, np_, val=0.0):
    return jnp.pad(a, ((0, mp - a.shape[0]), (0, np_ - a.shape[1])),
                   constant_values=val)


# ----------------------------------------------------------------------------
# in-kernel math helpers
# ----------------------------------------------------------------------------
def _sigmoid(v):
    # single EUP tanh instead of exp/add/divide
    return 0.5 * (jnp.tanh(0.5 * v) + 1.0)


def _norm_cdf(x):
    # Phi(x) via Abramowitz-Stegun 7.1.26 erf approximation (exp-only, TPU safe).
    z = x * 0.7071067811865476
    sgn = jnp.where(z >= 0.0, 1.0, -1.0)
    az = jnp.abs(z)
    t = 1.0 / (1.0 + 0.3275911 * az)
    poly = ((((1.061405429 * t - 1.453152027) * t + 1.421413741) * t
             - 0.284496736) * t + 0.254829592) * t
    erf = sgn * (1.0 - poly * jnp.exp(-az * az))
    return 0.5 * (1.0 + erf)


# ----------------------------------------------------------------------------
# fused Pallas kernels (row inputs first, broadcast inputs next, outputs last)
# ----------------------------------------------------------------------------
def _k_conv_gdn(inverse, x_ref, w_ref, b_ref, g_ref, beta_ref, o_ref):
    """conv + bias + (I)GDN fused: y * rsqrt(beta + (y*y)@gamma) (or * sqrt)."""
    y = jnp.dot(x_ref[...], w_ref[...], preferred_element_type=F32) + b_ref[...]
    norm = jnp.dot(y * y, g_ref[...], preferred_element_type=F32) + beta_ref[...]
    r = jnp.sqrt(norm) if inverse else lax.rsqrt(norm)
    o_ref[...] = (y * r).astype(o_ref.dtype)


def _k_conv_affine_couple(x_ref, code_ref, w_ref, b_ref, o_ref):
    """analysis head conv (merged loc|scale weight) + affine ANF coupling."""
    y = jnp.dot(x_ref[...], w_ref[...], preferred_element_type=F32) + b_ref[...]
    # loc in lanes [0,64), scale pre-act in lanes [64,128): realign via XLU roll.
    # TODO(synk): exact affine log-scale clamp of the unprovided ANF base class
    # is unknown; soft-clamp to (-1, 1) with tanh (== 2*sigmoid-1).
    s = jnp.tanh(0.5 * pltpu.roll(y, shift=64, axis=1))
    o_ref[...] = code_ref[...] * jnp.exp(s) + y


def _k_conv_recon_err(x_ref, xin_ref, w_ref, b_ref, rec_ref, err_ref):
    """last-synthesis conv, shared condition: x_hat = loc ; Y_error = x - loc."""
    y = jnp.dot(x_ref[...], w_ref[...], preferred_element_type=F32) + b_ref[...]
    rec_ref[...] = y
    err_ref[...] = xin_ref[...] - y


def _k_hyper_fused(code_ref, w1, b1, w2, b2, w3, b3, wt1, bt1, wt2, bt2,
                   wc, bc, loc_ref, scale_ref, yq_ref, ylik_ref, zlik_ref):
    """Whole hyper branch, VMEM resident:
       hyper-analysis (conv,ReLU,conv,ReLU,conv) -> EntropyBottleneck ->
       hyper-synthesis (deconv,ReLU,deconv,ReLU,deconv) -> GaussianConditional.
       Every conv was pre-lowered to a dense per-image matrix (tiny spatial)."""
    x = code_ref[...]                                         # (B, 128) f32
    t = jnp.maximum(jnp.dot(x, w1[...], preferred_element_type=F32) + b1[...], 0.0)
    t = jnp.maximum(jnp.dot(t, w2[...], preferred_element_type=F32) + b2[...], 0.0)
    z = jnp.dot(t, w3[...], preferred_element_type=F32) + b3[...]

    # EntropyBottleneck: TODO(synk): learned cumulative replaced by per-channel
    # logistic prior; quant_mode='noise' evaluated deterministically.
    zq = jnp.floor(z + 0.5)
    zinv = pl.reciprocal(scale_ref[...], approx=True)
    zl = loc_ref[...]
    zlik = _sigmoid((zq + 0.5 - zl) * zinv) - _sigmoid((zq - 0.5 - zl) * zinv)
    zlik_ref[...] = jnp.maximum(zlik, 1e-9)

    u = jnp.maximum(jnp.dot(zq, wt1[...], preferred_element_type=F32) + bt1[...], 0.0)
    u = jnp.maximum(jnp.dot(u, wt2[...], preferred_element_type=F32) + bt2[...], 0.0)
    cond = jnp.dot(u, wc[...], preferred_element_type=F32) + bc[...]

    nf = yq_ref.shape[-1]
    mean = cond[:, :nf]
    # TODO(synk): exact GaussianConditional scale lower bound unknown; 0.11.
    scale = jnp.maximum(cond[:, nf:], 0.11)
    v = jnp.floor(x - mean + 0.5)                # deterministic round (eval)
    yq_ref[...] = v + mean
    sinv = pl.reciprocal(scale, approx=True)
    ylik_ref[...] = jnp.maximum(
        _norm_cdf((v + 0.5) * sinv) - _norm_cdf((v - 0.5) * sinv), 1e-9)


# ----------------------------------------------------------------------------
# generic launcher: row-tiled inputs + broadcast operands, lane-dense outputs
# ----------------------------------------------------------------------------
def _launch(kernel, rows, bcasts, out_dtypes):
    """rows: 2-D (M, K_i) arrays tiled over M (dtype preserved);
       bcasts: full 2-D operands; out_dtypes: one dtype per (M,128) output."""
    m = rows[0].shape[0]
    mp, tm = _tiles(m)
    rows_p = [jnp.pad(a, ((0, mp - m), (0, 0))) for a in rows]
    in_specs = [pl.BlockSpec((tm, a.shape[1]), lambda i: (i, 0)) for a in rows_p]
    in_specs += [pl.BlockSpec(c.shape, lambda i: (0, 0)) for c in bcasts]
    out_shape = tuple(jax.ShapeDtypeStruct((mp, LANE), dt) for dt in out_dtypes)
    out_specs = tuple(pl.BlockSpec((tm, LANE), lambda i: (i, 0))
                      for _ in out_dtypes)
    single = len(out_dtypes) == 1
    res = pl.pallas_call(
        kernel,
        out_shape=out_shape[0] if single else out_shape,
        grid=(mp // tm,),
        in_specs=in_specs,
        out_specs=out_specs[0] if single else out_specs,
        compiler_params=pltpu.CompilerParams(
            dimension_semantics=("parallel",)),
    )(*rows_p, *bcasts)
    if single:
        return (res[:m],)
    return tuple(r[:m] for r in res)


# ----------------------------------------------------------------------------
# im2col via a single identity-kernel conv (one XLA op, tap-major channels)
# ----------------------------------------------------------------------------
def _patch_kernel(k, c, kp, dtype):
    ker = np.zeros((k, k, c, kp), np.float32)
    for dy in range(k):
        for dx in range(k):
            for ci in range(c):
                ker[dy, dx, ci, (dy * k + dx) * c + ci] = 1.0
    return jnp.asarray(ker, dtype)


def _conv_patches(x, k, stride):
    n, h, w_, c = x.shape
    pad = k // 2
    kp = _round_up(k * k * c, 16)                 # zero tail, no XLA pad pass
    ker = _patch_kernel(k, c, kp, x.dtype)
    p = lax.conv_general_dilated(
        x, ker, (stride, stride), [(pad, pad), (pad, pad)],
        dimension_numbers=('NHWC', 'HWIO', 'NHWC'))
    ho, wo = p.shape[1], p.shape[2]
    return p.reshape(n * ho * wo, kp), (n, ho, wo)


def _pixel_shuffle(y_ph, cout):
    """(N,H,W,4*cout) phase-major -> (N,2H,2W,cout)."""
    n, h, w_, _ = y_ph.shape
    y = y_ph.reshape(n, h, w_, 2, 2, cout)
    y = jnp.transpose(y, (0, 1, 3, 2, 4, 5))
    return y.reshape(n, 2 * h, 2 * w_, cout)


def _pixel_unshuffle(x):
    """(N,2H,2W,C) -> (N,H,W,4C) phase-major (matches sub-pixel weight order)."""
    n, h2, w2, c = x.shape
    x = x.reshape(n, h2 // 2, 2, w2 // 2, 2, c)
    x = jnp.transpose(x, (0, 1, 3, 2, 4, 5))
    return x.reshape(n, h2 // 2, w2 // 2, 4 * c)


# ----------------------------------------------------------------------------
# stage wrappers (one pallas_call each)
# ----------------------------------------------------------------------------
def conv_gdn(x, cp, stride):
    pr, (n, ho, wo) = _conv_patches(x, cp['k'], stride)
    (out,) = _launch(functools.partial(_k_conv_gdn, False), [pr],
                     [cp['w'], cp['b'], cp['g'], cp['beta']], (BF16,))
    return out[:, :cp['cout']].reshape(n, ho, wo, cp['cout'])


def convT_igdn(x, cp):
    """stride-2 ConvTranspose2d as 4-phase sub-pixel conv fused with IGDN."""
    pr, (n, h, w_) = _conv_patches(x, 3, 1)
    (out,) = _launch(functools.partial(_k_conv_gdn, True), [pr],
                     [cp['w'], cp['b'], cp['g'], cp['beta']], (BF16,))
    c4 = 4 * cp['cout']
    return _pixel_shuffle(out[:, :c4].reshape(n, h, w_, c4), cp['cout'])


# ----------------------------------------------------------------------------
# parameter packing (done once, outside jit)
# ----------------------------------------------------------------------------
def _subpixel_weight(w):
    """Equivalent-conv HWIO (5,5,Cin,Cout) stride-2 transposed-conv weights ->
    3x3 sub-pixel HWIO weights (3,3,Cin,4*Cout), channels phase-major
    (p = py*2+px, cout).  Matches zero-insertion + pt=k-1-pad, pb=pt+out_pad."""
    kh, kw, cin, cout = w.shape
    ws = jnp.zeros((3, 3, cin, 4, cout), F32)
    for py in range(2):
        for px in range(2):
            p = py * 2 + px
            for r in range(3):
                dy = 2 * r - py
                if not 0 <= dy < kh:
                    continue
                for s in range(3):
                    dx = 2 * s - px
                    if not 0 <= dx < kw:
                        continue
                    ws = ws.at[r, s, :, p, :].set(w[dy, dx])
    return ws.reshape(3, 3, cin, 4 * cout)


def pack_conv(w, b):
    kh, kw, cin, cout = w.shape
    K = kh * kw * cin
    Kp = _round_up(K, 16)
    return dict(k=kh, cout=cout,
                w=_pad2(w.reshape(K, cout), Kp, LANE).astype(BF16),
                b=jnp.pad(b, (0, LANE - cout)).reshape(1, LANE).astype(F32))


def pack_subpix(w, b):
    cout = w.shape[-1]
    ws = _subpixel_weight(w)                       # (3,3,cin,4*cout)
    K = 9 * w.shape[2]
    Kp = _round_up(K, 16)
    n4 = 4 * cout
    return dict(cout=cout,
                w=_pad2(ws.reshape(K, n4), Kp, LANE).astype(BF16),
                b=jnp.pad(jnp.tile(b, 4), (0, LANE - n4)).reshape(1, LANE).astype(F32))


def pack_gdn(g, beta, phases=1):
    if phases > 1:                                 # block-diag: per-phase (I)GDN
        g = jnp.kron(jnp.eye(phases, dtype=F32), g)
        beta = jnp.tile(beta, phases)
    C = g.shape[0]
    return dict(g=_pad2(g, LANE, LANE).astype(F32),
                beta=jnp.pad(beta, (0, LANE - C),
                             constant_values=1.0).reshape(1, LANE).astype(F32))


def pack_affine_head(w, b, chalf):
    """Merge the loc|scale halves into ONE (K,128) bf16 operand:
       loc weights in lanes [0,chalf), scale weights in lanes [64,64+chalf)."""
    kh, kw, cin, _ = w.shape
    K = kh * kw * cin
    Kp = _round_up(K, 16)
    wl = w[..., :chalf].reshape(K, chalf)
    ws = w[..., chalf:].reshape(K, chalf)
    wm = jnp.zeros((Kp, LANE), F32)
    wm = wm.at[:K, :chalf].set(wl).at[:K, 64:64 + chalf].set(ws)
    bm = jnp.zeros((LANE,), F32)
    bm = bm.at[:chalf].set(b[:chalf]).at[64:64 + chalf].set(b[chalf:])
    return dict(k=kh, chalf=chalf, w=wm.astype(BF16),
                b=bm.reshape(1, LANE).astype(F32))


def _lower_hyper(p):
    """Pre-lower every hyper-branch conv (tiny spatial) to a dense per-image
    matrix + flat bias so the whole branch runs in one fused kernel."""
    Cf = CFG['num_features']
    Ch = CFG['num_hyperpriors']
    hw_code = (CFG['H'] // 16, CFG['W'] // 16)      # spatial after analysis

    def lower_conv(w, in_hw, cin, stride):
        H, W = in_hw
        n = H * W * cin
        basis = jnp.eye(n, dtype=F32).reshape(n, H, W, cin)
        pad = w.shape[0] // 2
        out = lax.conv_general_dilated(
            basis, w, (stride, stride), [(pad, pad), (pad, pad)],
            dimension_numbers=('NHWC', 'HWIO', 'NHWC'))
        return out.reshape(n, -1), (out.shape[1], out.shape[2])

    def lower_convT(w, in_hw, cin):
        H, W = in_hw
        n = H * W * cin
        basis = jnp.eye(n, dtype=F32).reshape(n, H, W, cin)
        ws = _subpixel_weight(w)
        out = lax.conv_general_dilated(
            basis, ws, (1, 1), [(1, 1), (1, 1)],
            dimension_numbers=('NHWC', 'HWIO', 'NHWC'))
        out = _pixel_shuffle(out, w.shape[-1])
        return out.reshape(n, -1), (out.shape[1], out.shape[2])

    def bias_flat(b, hw):
        return jnp.tile(b, (hw[0] * hw[1],)).reshape(1, -1)

    ha = p['hyper_analysis']['conv']
    hs = p['hyper_synthesis']['conv']
    w1, b1 = ha[0]
    w2, b2 = ha[1]
    w3, b3 = ha[2]
    M1, hw1 = lower_conv(w1, hw_code, Cf, 1)
    M2, hw2 = lower_conv(w2, hw1, w1.shape[-1], 2)
    M3, hw3 = lower_conv(w3, hw2, w2.shape[-1], 2)

    wt1, bt1 = hs[0]
    wt2, bt2 = hs[1]
    wc, bc = hs[2]
    M4, hw4 = lower_convT(wt1, hw3, Ch)
    M5, hw5 = lower_convT(wt2, hw4, wt1.shape[-1])
    M6, hw6 = lower_conv(wc, hw5, wt2.shape[-1], 1)   # stride-1 convT head

    # reorder condition columns: mean (c<Cf) first 128, scale (c>=Cf) next 128,
    # both in the same (y, x, c) flat order as code.
    npix = hw6[0] * hw6[1]
    base = np.arange(npix)[:, None] * (2 * Cf)
    perm = np.concatenate([(base + np.arange(Cf)[None, :]).reshape(-1),
                           (base + Cf + np.arange(Cf)[None, :]).reshape(-1)])
    M6 = M6[:, perm]
    bcf = bias_flat(bc, hw6)[:, perm]

    eb = p['entropy_bottleneck']
    return dict(w1=M1, b1=bias_flat(b1, hw1), w2=M2, b2=bias_flat(b2, hw2),
                w3=M3, b3=bias_flat(b3, hw3), wt1=M4, bt1=bias_flat(bt1, hw4),
                wt2=M5, bt2=bias_flat(bt2, hw5), wc=M6, bc=bcf,
                eb_loc=eb['loc'].reshape(1, Ch).astype(F32),
                eb_scale=eb['scale'].reshape(1, Ch).astype(F32),
                z_hw=(int(hw3[0]), int(hw3[1])))


def prepare_params(p):
    """Pad / pack / lower / bf16-cast all weights once so the jitted forward
    carries only ready-to-use operands."""
    Cf = CFG['num_features']

    an = p['analysis0']
    a_stages = []
    for i in range(3):
        cp = pack_conv(*an['conv'][i])
        cp.update(pack_gdn(*an['gdn'][i]))
        a_stages.append(cp)

    sy = p['synthesis0']
    s_stages = []
    for i in range(3):
        cp = pack_subpix(*sy['conv'][i])
        cp.update(pack_gdn(*sy['gdn'][i], phases=4))
        s_stages.append(cp)

    return dict(
        analysis=dict(stages=a_stages, head=pack_affine_head(*an['conv'][3], Cf)),
        synthesis=dict(stages=s_stages, head=pack_subpix(*sy['conv'][3])),
        hyper=_lower_hyper(p))


# ----------------------------------------------------------------------------
# full forward (matches the ANF HyperPrior coder control flow, num_layers=1)
# ----------------------------------------------------------------------------
def forward(prep, x_nchw):
    N = x_nchw.shape[0]
    Cf = CFG['num_features']
    Ch = CFG['num_hyperpriors']

    x_f32 = jnp.transpose(x_nchw, (0, 2, 3, 1))               # NCHW -> NHWC
    x = x_f32.astype(BF16)                                    # bf16 conv path

    # ---- encode(): analysis0 = 3x(conv+GDN) + head conv fused with coupling --
    h = x
    for cp in prep['analysis']['stages']:
        h = conv_gdn(h, cp, stride=2)
    hd = prep['analysis']['head']
    pr, (n, ho, wo) = _conv_patches(h, hd['k'], 2)
    m = pr.shape[0]
    # init_code='gaussian' -> standard-normal code.
    # TODO(synk): reference samples fresh randn per call; fixed key here.
    code0 = jnp.pad(jax.random.normal(jax.random.PRNGKey(42), (m, Cf), F32),
                    ((0, 0), (0, LANE - Cf)))
    (code_rows,) = _launch(_k_conv_affine_couple, [pr, code0],
                           [hd['w'], hd['b']], (F32,))
    code = code_rows[:, :Cf].reshape(n, ho, wo, Cf)           # f32 (N,4,4,Cf)

    # ---- whole hyper branch in ONE fused kernel (VMEM resident) -------------
    hy = prep['hyper']
    ncode = ho * wo * Cf
    npad = _round_up(N, 8)
    code_flat = jnp.pad(code.reshape(N, ncode), ((0, npad - N), (0, 0)))
    yq, ylik, zlik = pl.pallas_call(
        _k_hyper_fused,
        out_shape=(jax.ShapeDtypeStruct((npad, ncode), F32),
                   jax.ShapeDtypeStruct((npad, ncode), F32),
                   jax.ShapeDtypeStruct((npad, Ch), F32)),
    )(code_flat, hy['w1'], hy['b1'], hy['w2'], hy['b2'], hy['w3'], hy['b3'],
      hy['wt1'], hy['bt1'], hy['wt2'], hy['bt2'], hy['wc'], hy['bc'],
      hy['eb_loc'], hy['eb_scale'])
    y_tilde = yq[:N].reshape(N, ho, wo, Cf)
    y_likelihood = ylik[:N].reshape(N, ho, wo, Cf)
    z_likelihood = zlik[:N].reshape(N, hy['z_hw'][0], hy['z_hw'][1], Ch)

    # ---- synthesis0: condition g_s(y_tilde) computed ONCE and shared between
    #      Y_error (encode coupling on x, s=0) and x_hat (decode from x=None) --
    v = y_tilde.astype(BF16)
    for cp in prep['synthesis']['stages']:
        v = convT_igdn(v, cp)
    sh = prep['synthesis']['head']
    pr, (n3, h3, w3) = _conv_patches(v, 3, 1)
    x_ph = _pixel_unshuffle(x_f32)                            # x in phase layout
    xin = jnp.pad(x_ph.reshape(-1, x_ph.shape[-1]),
                  ((0, 0), (0, LANE - x_ph.shape[-1])))
    rec, err = _launch(_k_conv_recon_err, [pr, xin], [sh['w'], sh['b']],
                       (F32, F32))
    c4 = 4 * sh['cout']
    x_hat = _pixel_shuffle(rec[:, :c4].reshape(n3, h3, w3, c4), sh['cout'])
    y_error = _pixel_shuffle(err[:, :c4].reshape(n3, h3, w3, c4), sh['cout'])
    # use_QE=False -> no DeQuantizationModule

    to_nchw = lambda a: jnp.transpose(a, (0, 3, 1, 2))
    return (to_nchw(x_hat),
            (to_nchw(y_likelihood), to_nchw(z_likelihood)),
            to_nchw(y_error))


# ----------------------------------------------------------------------------
# deterministic parameter init (synthetic — shapes follow the module __init__)
# ----------------------------------------------------------------------------
def init_params(key):
    keys = iter(jax.random.split(key, 40))

    def conv_p(cin, cout, k, wscale=0.05):
        kw_, kb_ = jax.random.split(next(keys))
        return (jax.random.normal(kw_, (k, k, cin, cout), F32) * wscale,
                jax.random.normal(kb_, (cout,), F32) * 0.01)

    def gdn_p(c):
        return (0.1 * jnp.eye(c, dtype=F32), jnp.ones((c,), F32))

    F = CFG['num_filters']
    Cf = CFG['num_features']
    Ch = CFG['num_hyperpriors']
    Hf = CFG['hyper_filters']
    k = CFG['kernel_size']

    return {
        'analysis0': dict(
            conv=[conv_p(CFG['in_ch'], F, k), conv_p(F, F, k), conv_p(F, F, k),
                  conv_p(F, 2 * Cf, k)],          # affine head -> 2*num_features
            gdn=[gdn_p(F), gdn_p(F), gdn_p(F)]),
        'synthesis0': dict(
            conv=[conv_p(Cf, F, k), conv_p(F, F, k), conv_p(F, F, k),
                  conv_p(F, CFG['out_ch'], k)],   # last layer non-affine
            gdn=[gdn_p(F), gdn_p(F), gdn_p(F)]),
        'hyper_analysis': dict(
            conv=[conv_p(Cf, Hf, 3), conv_p(Hf, Hf, 5), conv_p(Hf, Ch, 5)]),
        'hyper_synthesis': dict(
            conv=[conv_p(Ch, Hf, 5), conv_p(Hf, Hf * 3 // 2, 5),
                  conv_p(Hf * 3 // 2, 2 * Cf, 3)]),
        'entropy_bottleneck': dict(loc=jnp.zeros((Ch,), F32),
                                   scale=jnp.ones((Ch,), F32)),
    }


if __name__ == "__main__":
    key = jax.random.PRNGKey(0)
    pkey, xkey = jax.random.split(key)
    params = init_params(pkey)
    prep = prepare_params(params)               # pack / pad / lower / bf16 once
    x = jax.random.normal(xkey, (CFG['N'], CFG['in_ch'], CFG['H'], CFG['W']), F32)

    fwd = jax.jit(functools.partial(forward, prep))
    x_hat, (y_lik, z_lik), y_err = fwd(x)
    jax.block_until_ready((x_hat, y_lik, z_lik, y_err))

    assert x_hat.shape == (2, 3, 64, 64)
    assert y_err.shape == (2, 3, 64, 64)
    assert y_lik.shape == (2, CFG['num_features'], 4, 4)
    assert z_lik.shape == (2, CFG['num_hyperpriors'], 1, 1)
    assert bool(jnp.all(jnp.isfinite(x_hat)))
    assert bool(jnp.all(jnp.isfinite(y_err)))
    assert bool(jnp.all(y_lik > 0)) and bool(jnp.all(z_lik > 0))
    print("KERNEL_OK")
</pallas_src>

<mosaic_0001>
module attributes {stable_mosaic.version = 11 : i64} {
  func.func @_k_conv_gdn(%arg0: i32, %arg1: memref<1024x80xbf16, #tpu.memory_space<vmem>>, %arg2: memref<80x128xbf16, #tpu.memory_space<vmem>>, %arg3: memref<1x128xf32, #tpu.memory_space<vmem>>, %arg4: memref<128x128xf32, #tpu.memory_space<vmem>>, %arg5: memref<1x128xf32, #tpu.memory_space<vmem>>, %arg6: memref<1024x128xbf16, #tpu.memory_space<vmem>>) attributes {dimension_semantics = [#tpu.dimension_semantics<parallel>], iteration_bounds = array<i64: 2>, scalar_prefetch = 0 : i64, scratch_operands = 0 : i64, tpu.core_type = #tpu.core_type<tc>, window_params = [{transform_indices = @transform_0, window_bounds = array<i64: 1024, 80>}, {pipeline_mode = #tpu.pipeline_mode<synchronous>, transform_indices = @transform_1, window_bounds = array<i64: 80, 128>}, {pipeline_mode = #tpu.pipeline_mode<synchronous>, transform_indices = @transform_2, window_bounds = array<i64: 1, 128>}, {pipeline_mode = #tpu.pipeline_mode<synchronous>, transform_indices = @transform_3, window_bounds = array<i64: 128, 128>}, {pipeline_mode = #tpu.pipeline_mode<synchronous>, transform_indices = @transform_4, window_bounds = array<i64: 1, 128>}, {transform_indices = @transform_5, window_bounds = array<i64: 1024, 128>}]} {
    %c0 = arith.constant 0 : index
    %c0_0 = arith.constant 0 : index
    %0 = vector.load %arg1[%c0, %c0_0] : memref<1024x80xbf16, #tpu.memory_space<vmem>>, vector<1024x80xbf16>
    %c0_1 = arith.constant 0 : index
    %c0_2 = arith.constant 0 : index
    %1 = vector.load %arg2[%c0_1, %c0_2] : memref<80x128xbf16, #tpu.memory_space<vmem>>, vector<80x128xbf16>
    %cst = arith.constant dense<0.000000e+00> : vector<1024x128xf32>
    %2 = tpu.matmul %0, %1, %cst {dimension_numbers = #tpu.dot_dimension_numbers<[1], [0], [0], [1], [0, 0, 1, 1], [], []>} : vector<1024x80xbf16>, vector<80x128xbf16>, vector<1024x128xf32> -> vector<1024x128xf32>
    %c0_3 = arith.constant 0 : index
    %c0_4 = arith.constant 0 : index
    %3 = vector.load %arg3[%c0_3, %c0_4] : memref<1x128xf32, #tpu.memory_space<vmem>>, vector<1x128xf32>
    %4 = vector.broadcast %3 : vector<1x128xf32> to vector<1024x128xf32>
    %5 = arith.addf %2, %4 : vector<1024x128xf32>
    %6 = arith.mulf %5, %5 : vector<1024x128xf32>
    %c0_5 = arith.constant 0 : index
    %c0_6 = arith.constant 0 : index
    %7 = vector.load %arg4[%c0_5, %c0_6] : memref<128x128xf32, #tpu.memory_space<vmem>>, vector<128x128xf32>
    %cst_7 = arith.constant dense<0.000000e+00> : vector<1024x128xf32>
    %8 = tpu.matmul %6, %7, %cst_7 {dimension_numbers = #tpu.dot_dimension_numbers<[1], [0], [0], [1], [0, 0, 1, 1], [], []>} : vector<1024x128xf32>, vector<128x128xf32>, vector<1024x128xf32> -> vector<1024x128xf32>
    %c0_8 = arith.constant 0 : index
    %c0_9 = arith.constant 0 : index
    %9 = vector.load %arg5[%c0_8, %c0_9] : memref<1x128xf32, #tpu.memory_space<vmem>>, vector<1x128xf32>
    %10 = vector.broadcast %9 : vector<1x128xf32> to vector<1024x128xf32>
    %11 = arith.addf %8, %10 : vector<1024x128xf32>
    %12 = math.rsqrt %11 : vector<1024x128xf32>
    %13 = arith.mulf %5, %12 : vector<1024x128xf32>
    %14 = arith.truncf %13 : vector<1024x128xf32> to vector<1024x128xbf16>
    %c0_10 = arith.constant 0 : index
    %c0_11 = arith.constant 0 : index
    %15 = vector.load %arg6[%c0_10, %c0_11] : memref<1024x128xbf16, #tpu.memory_space<vmem>>, vector<1024x128xbf16>
    tpu.vector_store %arg6[%c0_10, %c0_11], %14 {strides = array<i32>} : memref<1024x128xbf16, #tpu.memory_space<vmem>>, vector<1024x128xbf16>,
    return
  }
  func.func @transform_0(%arg0: i32) -> (i32, i32) {
    %c0_i32 = arith.constant 0 : i32
    %c0_i32_0 = arith.constant 0 : i32
    return %arg0, %c0_i32 : i32, i32
  }
  func.func @transform_1(%arg0: i32) -> (i32, i32) {
    %c0_i32 = arith.constant 0 : i32
    %c0_i32_0 = arith.constant 0 : i32
    %c0_i32_1 = arith.constant 0 : i32
    return %c0_i32, %c0_i32_0 : i32, i32
  }
  func.func @transform_2(%arg0: i32) -> (i32, i32) {
    %c0_i32 = arith.constant 0 : i32
    %c0_i32_0 = arith.constant 0 : i32
    %c0_i32_1 = arith.constant 0 : i32
    return %c0_i32, %c0_i32_0 : i32, i32
  }
  func.func @transform_3(%arg0: i32) -> (i32, i32) {
    %c0_i32 = arith.constant 0 : i32
    %c0_i32_0 = arith.constant 0 : i32
    %c0_i32_1 = arith.constant 0 : i32
    return %c0_i32, %c0_i32_0 : i32, i32
  }
  func.func @transform_4(%arg0: i32) -> (i32, i32) {
    %c0_i32 = arith.constant 0 : i32
    %c0_i32_0 = arith.constant 0 : i32
    %c0_i32_1 = arith.constant 0 : i32
    return %c0_i32, %c0_i32_0 : i32, i32
  }
  func.func @transform_5(%arg0: i32) -> (i32, i32) {
    %c0_i32 = arith.constant 0 : i32
    %c0_i32_0 = arith.constant 0 : i32
    return %arg0, %c0_i32 : i32, i32
  }
}

module attributes {stable_mosaic.version = 11 : i64} {
  func.func @_k_conv_gdn(%arg0: i32, %arg1: memref<512x208xbf16, #tpu.memory_space<vmem>>, %arg2: memref<208x128xbf16, #tpu.memory_space<vmem>>, %arg3: memref<1x128xf32, #tpu.memory_space<vmem>>, %arg4: memref<128x128xf32, #tpu.memory_space<vmem>>, %arg5: memref<1x128xf32, #tpu.memory_space<vmem>>, %arg6: memref<512x128xbf16, #tpu.memory_space<vmem>>) attributes {dimension_semantics = [#tpu.dimension_semantics<parallel>], iteration_bounds = array<i64: 1>, scalar_prefetch = 0 : i64, scratch_operands = 0 : i64, tpu.core_type = #tpu.core_type<tc>, window_params = [{transform_indices = @transform_0, window_bounds = array<i64: 512, 208>}, {pipeline_mode = #tpu.pipeline_mode<synchronous>, transform_indices = @transform_1, window_bounds = array<i64: 208, 128>}, {pipeline_mode = #tpu.pipeline_mode<synchronous>, transform_indices = @transform_2, window_bounds = array<i64: 1, 128>}, {pipeline_mode = #tpu.pipeline_mode<synchronous>, transform_indices = @transform_3, window_bounds = array<i64: 128, 128>}, {pipeline_mode = #tpu.pipeline_mode<synchronous>, transform_indices = @transform_4, window_bounds = array<i64: 1, 128>}, {transform_indices = @transform_5, window_bounds = array<i64: 512, 128>}]} {
    %c0 = arith.constant 0 : index
    %c0_0 = arith.constant 0 : index
    %0 = vector.load %arg1[%c0, %c0_0] : memref<512x208xbf16, #tpu.memory_space<vmem>>, vector<512x208xbf16>
    %c0_1 = arith.constant 0 : index
    %c0_2 = arith.constant 0 : index
    %1 = vector.load %arg2[%c0_1, %c0_2] : memref<208x128xbf16, #tpu.memory_space<vmem>>, vector<208x128xbf16>
    %cst = arith.constant dense<0.000000e+00> : vector<512x128xf32>
    %2 = tpu.matmul %0, %1, %cst {dimension_numbers = #tpu.dot_dimension_numbers<[1], [0], [0], [1], [0, 0, 1, 1], [], []>} : vector<512x208xbf16>, vector<208x128xbf16>, vector<512x128xf32> -> vector<512x128xf32>
    %c0_3 = arith.constant 0 : index
    %c0_4 = arith.constant 0 : index
    %3 = vector.load %arg3[%c0_3, %c0_4] : memref<1x128xf32, #tpu.memory_space<vmem>>, vector<1x128xf32>
    %4 = vector.broadcast %3 : vector<1x128xf32> to vector<512x128xf32>
    %5 = arith.addf %2, %4 : vector<512x128xf32>
    %6 = arith.mulf %5, %5 : vector<512x128xf32>
    %c0_5 = arith.constant 0 : index
    %c0_6 = arith.constant 0 : index
    %7 = vector.load %arg4[%c0_5, %c0_6] : memref<128x128xf32, #tpu.memory_space<vmem>>, vector<128x128xf32>
    %cst_7 = arith.constant dense<0.000000e+00> : vector<512x128xf32>
    %8 = tpu.matmul %6, %7, %cst_7 {dimension_numbers = #tpu.dot_dimension_numbers<[1], [0], [0], [1], [0, 0, 1, 1], [], []>} : vector<512x128xf32>, vector<128x128xf32>, vector<512x128xf32> -> vector<512x128xf32>
    %c0_8 = arith.constant 0 : index
    %c0_9 = arith.constant 0 : index
    %9 = vector.load %arg5[%c0_8, %c0_9] : memref<1x128xf32, #tpu.memory_space<vmem>>, vector<1x128xf32>
    %10 = vector.broadcast %9 : vector<1x128xf32> to vector<512x128xf32>
    %11 = arith.addf %8, %10 : vector<512x128xf32>
    %12 = math.rsqrt %11 : vector<512x128xf32>
    %13 = arith.mulf %5, %12 : vector<512x128xf32>
    %14 = arith.truncf %13 : vector<512x128xf32> to vector<512x128xbf16>
    %c0_10 = arith.constant 0 : index
    %c0_11 = arith.constant 0 : index
    %15 = vector.load %arg6[%c0_10, %c0_11] : memref<512x128xbf16, #tpu.memory_space<vmem>>, vector<512x128xbf16>
    tpu.vector_store %arg6[%c0_10, %c0_11], %14 {strides = array<i32>} : memref<512x128xbf16, #tpu.memory_space<vmem>>, vector<512x128xbf16>,
    return
  }
  func.func @transform_0(%arg0: i32) -> (i32, i32) {
    %c0_i32 = arith.constant 0 : i32
    %c0_i32_0 = arith.constant 0 : i32
    return %arg0, %c0_i32 : i32, i32
  }
  func.func @transform_1(%arg0: i32) -> (i32, i32) {
    %c0_i32 = arith.constant 0 : i32
    %c0_i32_0 = arith.constant 0 : i32
    %c0_i32_1 = arith.constant 0 : i32
    return %c0_i32, %c0_i32_0 : i32, i32
  }
  func.func @transform_2(%arg0: i32) -> (i32, i32) {
    %c0_i32 = arith.constant 0 : i32
    %c0_i32_0 = arith.constant 0 : i32
    %c0_i32_1 = arith.constant 0 : i32
    return %c0_i32, %c0_i32_0 : i32, i32
  }
  func.func @transform_3(%arg0: i32) -> (i32, i32) {
    %c0_i32 = arith.constant 0 : i32
    %c0_i32_0 = arith.constant 0 : i32
    %c0_i32_1 = arith.constant 0 : i32
    return %c0_i32, %c0_i32_0 : i32, i32
  }
  func.func @transform_4(%arg0: i32) -> (i32, i32) {
    %c0_i32 = arith.constant 0 : i32
    %c0_i32_0 = arith.constant 0 : i32
    %c0_i32_1 = arith.constant 0 : i32
    return %c0_i32, %c0_i32_0 : i32, i32
  }
  func.func @transform_5(%arg0: i32) -> (i32, i32) {
    %c0_i32 = arith.constant 0 : i32
    %c0_i32_0 = arith.constant 0 : i32
    return %arg0, %c0_i32 : i32, i32
  }
}

module attributes {stable_mosaic.version = 11 : i64} {
  func.func @_k_conv_gdn(%arg0: i32, %arg1: memref<128x208xbf16, #tpu.memory_space<vmem>>, %arg2: memref<208x128xbf16, #tpu.memory_space<vmem>>, %arg3: memref<1x128xf32, #tpu.memory_space<vmem>>, %arg4: memref<128x128xf32, #tpu.memory_space<vmem>>, %arg5: memref<1x128xf32, #tpu.memory_space<vmem>>, %arg6: memref<128x128xbf16, #tpu.memory_space<vmem>>) attributes {dimension_semantics = [#tpu.dimension_semantics<parallel>], iteration_bounds = array<i64: 1>, scalar_prefetch = 0 : i64, scratch_operands = 0 : i64, tpu.core_type = #tpu.core_type<tc>, window_params = [{transform_indices = @transform_0, window_bounds = array<i64: 128, 208>}, {pipeline_mode = #tpu.pipeline_mode<synchronous>, transform_indices = @transform_1, window_bounds = array<i64: 208, 128>}, {pipeline_mode = #tpu.pipeline_mode<synchronous>, transform_indices = @transform_2, window_bounds = array<i64: 1, 128>}, {pipeline_mode = #tpu.pipeline_mode<synchronous>, transform_indices = @transform_3, window_bounds = array<i64: 128, 128>}, {pipeline_mode = #tpu.pipeline_mode<synchronous>, transform_indices = @transform_4, window_bounds = array<i64: 1, 128>}, {transform_indices = @transform_5, window_bounds = array<i64: 128, 128>}]} {
    %c0 = arith.constant 0 : index
    %c0_0 = arith.constant 0 : index
    %0 = vector.load %arg1[%c0, %c0_0] : memref<128x208xbf16, #tpu.memory_space<vmem>>, vector<128x208xbf16>
    %c0_1 = arith.constant 0 : index
    %c0_2 = arith.constant 0 : index
    %1 = vector.load %arg2[%c0_1, %c0_2] : memref<208x128xbf16, #tpu.memory_space<vmem>>, vector<208x128xbf16>
    %cst = arith.constant dense<0.000000e+00> : vector<128x128xf32>
    %2 = tpu.matmul %0, %1, %cst {dimension_numbers = #tpu.dot_dimension_numbers<[1], [0], [0], [1], [0, 0, 1, 1], [], []>} : vector<128x208xbf16>, vector<208x128xbf16>, vector<128x128xf32> -> vector<128x128xf32>
    %c0_3 = arith.constant 0 : index
    %c0_4 = arith.constant 0 : index
    %3 = vector.load %arg3[%c0_3, %c0_4] : memref<1x128xf32, #tpu.memory_space<vmem>>, vector<1x128xf32>
    %4 = vector.broadcast %3 : vector<1x128xf32> to vector<128x128xf32>
    %5 = arith.addf %2, %4 : vector<128x128xf32>
    %6 = arith.mulf %5, %5 : vector<128x128xf32>
    %c0_5 = arith.constant 0 : index
    %c0_6 = arith.constant 0 : index
    %7 = vector.load %arg4[%c0_5, %c0_6] : memref<128x128xf32, #tpu.memory_space<vmem>>, vector<128x128xf32>
    %cst_7 = arith.constant dense<0.000000e+00> : vector<128x128xf32>
    %8 = tpu.matmul %6, %7, %cst_7 {dimension_numbers = #tpu.dot_dimension_numbers<[1], [0], [0], [1], [0, 0, 1, 1], [], []>} : vector<128x128xf32>, vector<128x128xf32>, vector<128x128xf32> -> vector<128x128xf32>
    %c0_8 = arith.constant 0 : index
    %c0_9 = arith.constant 0 : index
    %9 = vector.load %arg5[%c0_8, %c0_9] : memref<1x128xf32, #tpu.memory_space<vmem>>, vector<1x128xf32>
    %10 = vector.broadcast %9 : vector<1x128xf32> to vector<128x128xf32>
    %11 = arith.addf %8, %10 : vector<128x128xf32>
    %12 = math.rsqrt %11 : vector<128x128xf32>
    %13 = arith.mulf %5, %12 : vector<128x128xf32>
    %14 = arith.truncf %13 : vector<128x128xf32> to vector<128x128xbf16>
    %c0_10 = arith.constant 0 : index
    %c0_11 = arith.constant 0 : index
    %15 = vector.load %arg6[%c0_10, %c0_11] : memref<128x128xbf16, #tpu.memory_space<vmem>>, vector<128x128xbf16>
    tpu.vector_store %arg6[%c0_10, %c0_11], %14 {strides = array<i32>} : memref<128x128xbf16, #tpu.memory_space<vmem>>, vector<128x128xbf16>,
    return
  }
  func.func @transform_0(%arg0: i32) -> (i32, i32) {
    %c0_i32 = arith.constant 0 : i32
    %c0_i32_0 = arith.constant 0 : i32
    return %arg0, %c0_i32 : i32, i32
  }
  func.func @transform_1(%arg0: i32) -> (i32, i32) {
    %c0_i32 = arith.constant 0 : i32
    %c0_i32_0 = arith.constant 0 : i32
    %c0_i32_1 = arith.constant 0 : i32
    return %c0_i32, %c0_i32_0 : i32, i32
  }
  func.func @transform_2(%arg0: i32) -> (i32, i32) {
    %c0_i32 = arith.constant 0 : i32
    %c0_i32_0 = arith.constant 0 : i32
    %c0_i32_1 = arith.constant 0 : i32
    return %c0_i32, %c0_i32_0 : i32, i32
  }
  func.func @transform_3(%arg0: i32) -> (i32, i32) {
    %c0_i32 = arith.constant 0 : i32
    %c0_i32_0 = arith.constant 0 : i32
    %c0_i32_1 = arith.constant 0 : i32
    return %c0_i32, %c0_i32_0 : i32, i32
  }
  func.func @transform_4(%arg0: i32) -> (i32, i32) {
    %c0_i32 = arith.constant 0 : i32
    %c0_i32_0 = arith.constant 0 : i32
    %c0_i32_1 = arith.constant 0 : i32
    return %c0_i32, %c0_i32_0 : i32, i32
  }
  func.func @transform_5(%arg0: i32) -> (i32, i32) {
    %c0_i32 = arith.constant 0 : i32
    %c0_i32_0 = arith.constant 0 : i32
    return %arg0, %c0_i32 : i32, i32
  }
}

module attributes {stable_mosaic.version = 11 : i64} {
  func.func @_k_conv_affine_couple(%arg0: i32, %arg1: memref<32x208xbf16, #tpu.memory_space<vmem>>, %arg2: memref<32x128xf32, #tpu.memory_space<vmem>>, %arg3: memref<208x128xbf16, #tpu.memory_space<vmem>>, %arg4: memref<1x128xf32, #tpu.memory_space<vmem>>, %arg5: memref<32x128xf32, #tpu.memory_space<vmem>>) attributes {dimension_semantics = [#tpu.dimension_semantics<parallel>], iteration_bounds = array<i64: 1>, scalar_prefetch = 0 : i64, scratch_operands = 0 : i64, tpu.core_type = #tpu.core_type<tc>, window_params = [{transform_indices = @transform_0, window_bounds = array<i64: 32, 208>}, {transform_indices = @transform_1, window_bounds = array<i64: 32, 128>}, {pipeline_mode = #tpu.pipeline_mode<synchronous>, transform_indices = @transform_2, window_bounds = array<i64: 208, 128>}, {pipeline_mode = #tpu.pipeline_mode<synchronous>, transform_indices = @transform_3, window_bounds = array<i64: 1, 128>}, {transform_indices = @transform_4, window_bounds = array<i64: 32, 128>}]} {
    %c0 = arith.constant 0 : index
    %c0_0 = arith.constant 0 : index
    %0 = vector.load %arg1[%c0, %c0_0] : memref<32x208xbf16, #tpu.memory_space<vmem>>, vector<32x208xbf16>
    %c0_1 = arith.constant 0 : index
    %c0_2 = arith.constant 0 : index
    %1 = vector.load %arg3[%c0_1, %c0_2] : memref<208x128xbf16, #tpu.memory_space<vmem>>, vector<208x128xbf16>
    %cst = arith.constant dense<0.000000e+00> : vector<32x128xf32>
    %2 = tpu.matmul %0, %1, %cst {dimension_numbers = #tpu.dot_dimension_numbers<[1], [0], [0], [1], [0, 0, 1, 1], [], []>} : vector<32x208xbf16>, vector<208x128xbf16>, vector<32x128xf32> -> vector<32x128xf32>
    %c0_3 = arith.constant 0 : index
    %c0_4 = arith.constant 0 : index
    %3 = vector.load %arg4[%c0_3, %c0_4] : memref<1x128xf32, #tpu.memory_space<vmem>>, vector<1x128xf32>
    %4 = vector.broadcast %3 : vector<1x128xf32> to vector<32x128xf32>
    %5 = arith.addf %2, %4 : vector<32x128xf32>
    %c64_i32 = arith.constant 64 : i32
    %6 = tpu.dynamic_rotate %5 by %c64_i32 dim 1 : vector<32x128xf32>, i32 -> vector<32x128xf32>
    %cst_5 = arith.constant 5.000000e-01 : f32
    %7 = vector.broadcast %cst_5 : f32 to vector<32x128xf32>
    %8 = arith.mulf %7, %6 : vector<32x128xf32>
    %9 = math.tanh %8 : vector<32x128xf32>
    %c0_6 = arith.constant 0 : index
    %c0_7 = arith.constant 0 : index
    %10 = vector.load %arg2[%c0_6, %c0_7] : memref<32x128xf32, #tpu.memory_space<vmem>>, vector<32x128xf32>
    %11 = math.exp %9 : vector<32x128xf32>
    %12 = arith.mulf %10, %11 : vector<32x128xf32>
    %13 = arith.addf %12, %5 : vector<32x128xf32>
    %c0_8 = arith.constant 0 : index
    %c0_9 = arith.constant 0 : index
    %14 = vector.load %arg5[%c0_8, %c0_9] : memref<32x128xf32, #tpu.memory_space<vmem>>, vector<32x128xf32>
    tpu.vector_store %arg5[%c0_8, %c0_9], %13 {strides = array<i32>} : memref<32x128xf32, #tpu.memory_space<vmem>>, vector<32x128xf32>,
    return
  }
  func.func @transform_0(%arg0: i32) -> (i32, i32) {
    %c0_i32 = arith.constant 0 : i32
    %c0_i32_0 = arith.constant 0 : i32
    return %arg0, %c0_i32 : i32, i32
  }
  func.func @transform_1(%arg0: i32) -> (i32, i32) {
    %c0_i32 = arith.constant 0 : i32
    %c0_i32_0 = arith.constant 0 : i32
    return %arg0, %c0_i32 : i32, i32
  }
  func.func @transform_2(%arg0: i32) -> (i32, i32) {
    %c0_i32 = arith.constant 0 : i32
    %c0_i32_0 = arith.constant 0 : i32
    %c0_i32_1 = arith.constant 0 : i32
    return %c0_i32, %c0_i32_0 : i32, i32
  }
  func.func @transform_3(%arg0: i32) -> (i32, i32) {
    %c0_i32 = arith.constant 0 : i32
    %c0_i32_0 = arith.constant 0 : i32
    %c0_i32_1 = arith.constant 0 : i32
    return %c0_i32, %c0_i32_0 : i32, i32
  }
  func.func @transform_4(%arg0: i32) -> (i32, i32) {
    %c0_i32 = arith.constant 0 : i32
    %c0_i32_0 = arith.constant 0 : i32
    return %arg0, %c0_i32 : i32, i32
  }
}

module attributes {stable_mosaic.version = 11 : i64} {
  func.func @_k_hyper_fused(%arg0: memref<8x128xf32, #tpu.memory_space<vmem>>, %arg1: memref<128x128xf32, #tpu.memory_space<vmem>>, %arg2: memref<1x128xf32, #tpu.memory_space<vmem>>, %arg3: memref<128x32xf32, #tpu.memory_space<vmem>>, %arg4: memref<1x32xf32, #tpu.memory_space<vmem>>, %arg5: memref<32x8xf32, #tpu.memory_space<vmem>>, %arg6: memref<1x8xf32, #tpu.memory_space<vmem>>, %arg7: memref<8x32xf32, #tpu.memory_space<vmem>>, %arg8: memref<1x32xf32, #tpu.memory_space<vmem>>, %arg9: memref<32x192xf32, #tpu.memory_space<vmem>>, %arg10: memref<1x192xf32, #tpu.memory_space<vmem>>, %arg11: memref<192x256xf32, #tpu.memory_space<vmem>>, %arg12: memref<1x256xf32, #tpu.memory_space<vmem>>, %arg13: memref<1x8xf32, #tpu.memory_space<vmem>>, %arg14: memref<1x8xf32, #tpu.memory_space<vmem>>, %arg15: memref<8x128xf32, #tpu.memory_space<vmem>>, %arg16: memref<8x128xf32, #tpu.memory_space<vmem>>, %arg17: memref<8x8xf32, #tpu.memory_space<vmem>>) attributes {dimension_semantics = [], scalar_prefetch = 0 : i64, scratch_operands = 0 : i64, tpu.core_type = #tpu.core_type<tc>} {
    %c0 = arith.constant 0 : index
    %c0_0 = arith.constant 0 : index
    %0 = vector.load %arg0[%c0, %c0_0] : memref<8x128xf32, #tpu.memory_space<vmem>>, vector<8x128xf32>
    %c0_1 = arith.constant 0 : index
    %c0_2 = arith.constant 0 : index
    %1 = vector.load %arg1[%c0_1, %c0_2] : memref<128x128xf32, #tpu.memory_space<vmem>>, vector<128x128xf32>
    %cst = arith.constant dense<0.000000e+00> : vector<8x128xf32>
    %2 = tpu.matmul %0, %1, %cst {dimension_numbers = #tpu.dot_dimension_numbers<[1], [0], [0], [1], [0, 0, 1, 1], [], []>} : vector<8x128xf32>, vector<128x128xf32>, vector<8x128xf32> -> vector<8x128xf32>
    %c0_3 = arith.constant 0 : index
    %c0_4 = arith.constant 0 : index
    %3 = vector.load %arg2[%c0_3, %c0_4] : memref<1x128xf32, #tpu.memory_space<vmem>>, vector<1x128xf32>
    %4 = vector.broadcast %3 : vector<1x128xf32> to vector<8x128xf32>
    %5 = arith.addf %2, %4 : vector<8x128xf32>
    %cst_5 = arith.constant 0.000000e+00 : f32
    %6 = vector.broadcast %cst_5 : f32 to vector<8x128xf32>
    %7 = arith.maximumf %5, %6 : vector<8x128xf32>
    %c0_6 = arith.constant 0 : index
    %c0_7 = arith.constant 0 : index
    %8 = vector.load %arg3[%c0_6, %c0_7] : memref<128x32xf32, #tpu.memory_space<vmem>>, vector<128x32xf32>
    %cst_8 = arith.constant dense<0.000000e+00> : vector<8x32xf32>
    %9 = tpu.matmul %7, %8, %cst_8 {dimension_numbers = #tpu.dot_dimension_numbers<[1], [0], [0], [1], [0, 0, 1, 1], [], []>} : vector<8x128xf32>, vector<128x32xf32>, vector<8x32xf32> -> vector<8x32xf32>
    %c0_9 = arith.constant 0 : index
    %c0_10 = arith.constant 0 : index
    %10 = vector.load %arg4[%c0_9, %c0_10] : memref<1x32xf32, #tpu.memory_space<vmem>>, vector<1x32xf32>
    %11 = vector.broadcast %10 : vector<1x32xf32> to vector<8x32xf32>
    %12 = arith.addf %9, %11 : vector<8x32xf32>
    %cst_11 = arith.constant 0.000000e+00 : f32
    %13 = vector.broadcast %cst_11 : f32 to vector<8x32xf32>
    %14 = arith.maximumf %12, %13 : vector<8x32xf32>
    %c0_12 = arith.constant 0 : index
    %c0_13 = arith.constant 0 : index
    %15 = vector.load %arg5[%c0_12, %c0_13] : memref<32x8xf32, #tpu.memory_space<vmem>>, vector<32x8xf32>
    %cst_14 = arith.constant dense<0.000000e+00> : vector<8x8xf32>
    %16 = tpu.matmul %14, %15, %cst_14 {dimension_numbers = #tpu.dot_dimension_numbers<[1], [0], [0], [1], [0, 0, 1, 1], [], []>} : vector<8x32xf32>, vector<32x8xf32>, vector<8x8xf32> -> vector<8x8xf32>
    %c0_15 = arith.constant 0 : index
    %c0_16 = arith.constant 0 : index
    %17 = vector.load %arg6[%c0_15, %c0_16] : memref<1x8xf32, #tpu.memory_space<vmem>>, vector<1x8xf32>
    %18 = vector.broadcast %17 : vector<1x8xf32> to vector<8x8xf32>
    %19 = arith.addf %16, %18 : vector<8x8xf32>
    %cst_17 = arith.constant 5.000000e-01 : f32
    %20 = vector.broadcast %cst_17 : f32 to vector<8x8xf32>
    %21 = arith.addf %19, %20 : vector<8x8xf32>
    %22 = math.floor %21 : vector<8x8xf32>
    %c0_18 = arith.constant 0 : index
    %c0_19 = arith.constant 0 : index
    %23 = vector.load %arg14[%c0_18, %c0_19] : memref<1x8xf32, #tpu.memory_space<vmem>>, vector<1x8xf32>
    %24 = tpu.reciprocal %23 {approx = true} : vector<1x8xf32> -> vector<1x8xf32>
    %c0_20 = arith.constant 0 : index
    %c0_21 = arith.constant 0 : index
    %25 = vector.load %arg13[%c0_20, %c0_21] : memref<1x8xf32, #tpu.memory_space<vmem>>, vector<1x8xf32>
    %cst_22 = arith.constant 5.000000e-01 : f32
    %26 = vector.broadcast %cst_22 : f32 to vector<8x8xf32>
    %27 = arith.addf %22, %26 : vector<8x8xf32>
    %28 = vector.broadcast %25 : vector<1x8xf32> to vector<8x8xf32>
    %29 = arith.subf %27, %28 : vector<8x8xf32>
    %30 = vector.broadcast %24 : vector<1x8xf32> to vector<8x8xf32>
    %31 = arith.mulf %29, %30 : vector<8x8xf32>
    %cst_23 = arith.constant 5.000000e-01 : f32
    %32 = vector.broadcast %cst_23 : f32 to vector<8x8xf32>
    %33 = arith.mulf %32, %31 : vector<8x8xf32>
    %34 = math.tanh %33 : vector<8x8xf32>
    %cst_24 = arith.constant 1.000000e+00 : f32
    %35 = vector.broadcast %cst_24 : f32 to vector<8x8xf32>
    %36 = arith.addf %34, %35 : vector<8x8xf32>
    %cst_25 = arith.constant 5.000000e-01 : f32
    %37 = vector.broadcast %cst_25 : f32 to vector<8x8xf32>
    %38 = arith.mulf %37, %36 : vector<8x8xf32>
    %cst_26 = arith.constant 5.000000e-01 : f32
    %39 = vector.broadcast %cst_26 : f32 to vector<8x8xf32>
    %40 = arith.subf %22, %39 : vector<8x8xf32>
    %41 = vector.broadcast %25 : vector<1x8xf32> to vector<8x8xf32>
    %42 = arith.subf %40, %41 : vector<8x8xf32>
    %43 = vector.broadcast %24 : vector<1x8xf32> to vector<8x8xf32>
    %44 = arith.mulf %42, %43 : vector<8x8xf32>
    %cst_27 = arith.constant 5.000000e-01 : f32
    %45 = vector.broadcast %cst_27 : f32 to vector<8x8xf32>
    %46 = arith.mulf %45, %44 : vector<8x8xf32>
    %47 = math.tanh %46 : vector<8x8xf32>
    %cst_28 = arith.constant 1.000000e+00 : f32
    %48 = vector.broadcast %cst_28 : f32 to vector<8x8xf32>
    %49 = arith.addf %47, %48 : vector<8x8xf32>
    %cst_29 = arith.constant 5.000000e-01 : f32
    %50 = vector.broadcast %cst_29 : f32 to vector<8x8xf32>
    %51 = arith.mulf %50, %49 : vector<8x8xf32>
    %52 = arith.subf %38, %51 : vector<8x8xf32>
    %cst_30 = arith.constant 9.99999971E-10 : f32
    %53 = vector.broadcast %cst_30 : f32 to vector<8x8xf32>
    %54 = arith.maximumf %52, %53 : vector<8x8xf32>
    %c0_31 = arith.constant 0 : index
    %c0_32 = arith.constant 0 : index
    %55 = vector.load %arg17[%c0_31, %c0_32] : memref<8x8xf32, #tpu.memory_space<vmem>>, vector<8x8xf32>
    tpu.vector_store %arg17[%c0_31, %c0_32], %54 {strides = array<i32>} : memref<8x8xf32, #tpu.memory_space<vmem>>, vector<8x8xf32>,
    %c0_33 = arith.constant 0 : index
    %c0_34 = arith.constant 0 : index
    %56 = vector.load %arg7[%c0_33, %c0_34] : memref<8x32xf32, #tpu.memory_space<vmem>>, vector<8x32xf32>
    %cst_35 = arith.constant dense<0.000000e+00> : vector<8x32xf32>
    %57 = tpu.matmul %22, %56, %cst_35 {dimension_numbers = #tpu.dot_dimension_numbers<[1], [0], [0], [1], [0, 0, 1, 1], [], []>} : vector<8x8xf32>, vector<8x32xf32>, vector<8x32xf32> -> vector<8x32xf32>
    %c0_36 = arith.constant 0 : index
    %c0_37 = arith.constant 0 : index
    %58 = vector.load %arg8[%c0_36, %c0_37] : memref<1x32xf32, #tpu.memory_space<vmem>>, vector<1x32xf32>
    %59 = vector.broadcast %58 : vector<1x32xf32> to vector<8x32xf32>
    %60 = arith.addf %57, %59 : vector<8x32xf32>
    %cst_38 = arith.constant 0.000000e+00 : f32
    %61 = vector.broadcast %cst_38 : f32 to vector<8x32xf32>
    %62 = arith.maximumf %60, %61 : vector<8x32xf32>
    %c0_39 = arith.constant 0 : index
    %c0_40 = arith.constant 0 : index
    %63 = vector.load %arg9[%c0_39, %c0_40] : memref<32x192xf32, #tpu.memory_space<vmem>>, vector<32x192xf32>
    %cst_41 = arith.constant dense<0.000000e+00> : vector<8x192xf32>
    %64 = tpu.matmul %62, %63, %cst_41 {dimension_numbers = #tpu.dot_dimension_numbers<[1], [0], [0], [1], [0, 0, 1, 1], [], []>} : vector<8x32xf32>, vector<32x192xf32>, vector<8x192xf32> -> vector<8x192xf32>
    %c0_42 = arith.constant 0 : index
    %c0_43 = arith.constant 0 : index
    %65 = vector.load %arg10[%c0_42, %c0_43] : memref<1x192xf32, #tpu.memory_space<vmem>>, vector<1x192xf32>
    %66 = vector.broadcast %65 : vector<1x192xf32> to vector<8x192xf32>
    %67 = arith.addf %64, %66 : vector<8x192xf32>
    %cst_44 = arith.constant 0.000000e+00 : f32
    %68 = vector.broadcast %cst_44 : f32 to vector<8x192xf32>
    %69 = arith.maximumf %67, %68 : vector<8x192xf32>
    %c0_45 = arith.constant 0 : index
    %c0_46 = arith.constant 0 : index
    %70 = vector.load %arg11[%c0_45, %c0_46] : memref<192x256xf32, #tpu.memory_space<vmem>>, vector<192x256xf32>
    %cst_47 = arith.constant dense<0.000000e+00> : vector<8x256xf32>
    %71 = tpu.matmul %69, %70, %cst_47 {dimension_numbers = #tpu.dot_dimension_numbers<[1], [0], [0], [1], [0, 0, 1, 1], [], []>} : vector<8x192xf32>, vector<192x256xf32>, vector<8x256xf32> -> vector<8x256xf32>
    %c0_48 = arith.constant 0 : index
    %c0_49 = arith.constant 0 : index
    %72 = vector.load %arg12[%c0_48, %c0_49] : memref<1x256xf32, #tpu.memory_space<vmem>>, vector<1x256xf32>
    %73 = vector.broadcast %72 : vector<1x256xf32> to vector<8x256xf32>
    %74 = arith.addf %71, %73 : vector<8x256xf32>
    %75 = vector.extract_strided_slice %74 {offsets = [0, 0], sizes = [8, 128], strides = [1, 1]} : vector<8x256xf32> to vector<8x128xf32>
    %76 = vector.extract_strided_slice %74 {offsets = [0, 128], sizes = [8, 128], strides = [1, 1]} : vector<8x256xf32> to vector<8x128xf32>
    %cst_50 = arith.constant 1.100000e-01 : f32
    %77 = vector.broadcast %cst_50 : f32 to vector<8x128xf32>
    %78 = arith.maximumf %76, %77 : vector<8x128xf32>
    %79 = arith.subf %0, %75 : vector<8x128xf32>
    %cst_51 = arith.constant 5.000000e-01 : f32
    %80 = vector.broadcast %cst_51 : f32 to vector<8x128xf32>
    %81 = arith.addf %79, %80 : vector<8x128xf32>
    %82 = math.floor %81 : vector<8x128xf32>
    %83 = arith.addf %82, %75 : vector<8x128xf32>
    %c0_52 = arith.constant 0 : index
    %c0_53 = arith.constant 0 : index
    %84 = vector.load %arg15[%c0_52, %c0_53] : memref<8x128xf32, #tpu.memory_space<vmem>>, vector<8x128xf32>
    tpu.vector_store %arg15[%c0_52, %c0_53], %83 {strides = array<i32>} : memref<8x128xf32, #tpu.memory_space<vmem>>, vector<8x128xf32>,
    %85 = tpu.reciprocal %78 {approx = true} : vector<8x128xf32> -> vector<8x128xf32>
    %cst_54 = arith.constant 5.000000e-01 : f32
    %86 = vector.broadcast %cst_54 : f32 to vector<8x128xf32>
    %87 = arith.addf %82, %86 : vector<8x128xf32>
    %88 = arith.mulf %87, %85 : vector<8x128xf32>
    %cst_55 = arith.constant 0.707106769 : f32
    %89 = vector.broadcast %cst_55 : f32 to vector<8x128xf32>
    %90 = arith.mulf %88, %89 : vector<8x128xf32>
    %cst_56 = arith.constant 0.000000e+00 : f32
    %91 = vector.broadcast %cst_56 : f32 to vector<8x128xf32>
    %92 = arith.cmpf oge, %90, %91 : vector<8x128xf32>
    %cst_57 = arith.constant 1.000000e+00 : f32
    %cst_58 = arith.constant -1.000000e+00 : f32
    %93 = vector.broadcast %cst_57 : f32 to vector<8x128xf32>
    %94 = vector.broadcast %cst_58 : f32 to vector<8x128xf32>
    %95 = arith.select %92, %93, %94 : vector<8x128xi1>, vector<8x128xf32>
    %96 = math.absf %90 : vector<8x128xf32>
    %cst_59 = arith.constant 0.327591091 : f32
    %97 = vector.broadcast %cst_59 : f32 to vector<8x128xf32>
    %98 = arith.mulf %97, %96 : vector<8x128xf32>
    %cst_60 = arith.constant 1.000000e+00 : f32
    %99 = vector.broadcast %cst_60 : f32 to vector<8x128xf32>
    %100 = arith.addf %99, %98 : vector<8x128xf32>
    %cst_61 = arith.constant 1.000000e+00 : f32
    %101 = vector.broadcast %cst_61 : f32 to vector<8x128xf32>
    %102 = arith.divf %101, %100 : vector<8x128xf32>
    %cst_62 = arith.constant 1.06140542 : f32
    %103 = vector.broadcast %cst_62 : f32 to vector<8x128xf32>
    %104 = arith.mulf %103, %102 : vector<8x128xf32>
    %cst_63 = arith.constant 1.45315206 : f32
    %105 = vector.broadcast %cst_63 : f32 to vector<8x128xf32>
    %106 = arith.subf %104, %105 : vector<8x128xf32>
    %107 = arith.mulf %106, %102 : vector<8x128xf32>
    %cst_64 = arith.constant 1.42141378 : f32
    %108 = vector.broadcast %cst_64 : f32 to vector<8x128xf32>
    %109 = arith.addf %107, %108 : vector<8x128xf32>
    %110 = arith.mulf %109, %102 : vector<8x128xf32>
    %cst_65 = arith.constant 0.284496725 : f32
    %111 = vector.broadcast %cst_65 : f32 to vector<8x128xf32>
    %112 = arith.subf %110, %111 : vector<8x128xf32>
    %113 = arith.mulf %112, %102 : vector<8x128xf32>
    %cst_66 = arith.constant 0.254829586 : f32
    %114 = vector.broadcast %cst_66 : f32 to vector<8x128xf32>
    %115 = arith.addf %113, %114 : vector<8x128xf32>
    %116 = arith.mulf %115, %102 : vector<8x128xf32>
    %cst_67 = arith.constant 0.000000e+00 : f32
    %117 = vector.broadcast %cst_67 : f32 to vector<8x128xf32>
    %118 = arith.subf %117, %96 : vector<8x128xf32>
    %119 = arith.mulf %118, %96 : vector<8x128xf32>
    %120 = math.exp %119 : vector<8x128xf32>
    %121 = arith.mulf %116, %120 : vector<8x128xf32>
    %cst_68 = arith.constant 1.000000e+00 : f32
    %122 = vector.broadcast %cst_68 : f32 to vector<8x128xf32>
    %123 = arith.subf %122, %121 : vector<8x128xf32>
    %124 = arith.mulf %95, %123 : vector<8x128xf32>
    %cst_69 = arith.constant 1.000000e+00 : f32
    %125 = vector.broadcast %cst_69 : f32 to vector<8x128xf32>
    %126 = arith.addf %125, %124 : vector<8x128xf32>
    %cst_70 = arith.constant 5.000000e-01 : f32
    %127 = vector.broadcast %cst_70 : f32 to vector<8x128xf32>
    %128 = arith.mulf %127, %126 : vector<8x128xf32>
    %cst_71 = arith.constant 5.000000e-01 : f32
    %129 = vector.broadcast %cst_71 : f32 to vector<8x128xf32>
    %130 = arith.subf %82, %129 : vector<8x128xf32>
    %131 = arith.mulf %130, %85 : vector<8x128xf32>
    %cst_72 = arith.constant 0.707106769 : f32
    %132 = vector.broadcast %cst_72 : f32 to vector<8x128xf32>
    %133 = arith.mulf %131, %132 : vector<8x128xf32>
    %cst_73 = arith.constant 0.000000e+00 : f32
    %134 = vector.broadcast %cst_73 : f32 to vector<8x128xf32>
    %135 = arith.cmpf oge, %133, %134 : vector<8x128xf32>
    %cst_74 = arith.constant 1.000000e+00 : f32
    %cst_75 = arith.constant -1.000000e+00 : f32
    %136 = vector.broadcast %cst_74 : f32 to vector<8x128xf32>
    %137 = vector.broadcast %cst_75 : f32 to vector<8x128xf32>
    %138 = arith.select %135, %136, %137 : vector<8x128xi1>, vector<8x128xf32>
    %139 = math.absf %133 : vector<8x128xf32>
    %cst_76 = arith.constant 0.327591091 : f32
    %140 = vector.broadcast %cst_76 : f32 to vector<8x128xf32>
    %141 = arith.mulf %140, %139 : vector<8x128xf32>
    %cst_77 = arith.constant 1.000000e+00 : f32
    %142 = vector.broadcast %cst_77 : f32 to vector<8x128xf32>
    %143 = arith.addf %142, %141 : vector<8x128xf32>
    %cst_78 = arith.constant 1.000000e+00 : f32
    %144 = vector.broadcast %cst_78 : f32 to vector<8x128xf32>
    %145 = arith.divf %144, %143 : vector<8x128xf32>
    %cst_79 = arith.constant 1.06140542 : f32
    %146 = vector.broadcast %cst_79 : f32 to vector<8x128xf32>
    %147 = arith.mulf %146, %145 : vector<8x128xf32>
    %cst_80 = arith.constant 1.45315206 : f32
    %148 = vector.broadcast %cst_80 : f32 to vector<8x128xf32>
    %149 = arith.subf %147, %148 : vector<8x128xf32>
    %150 = arith.mulf %149, %145 : vector<8x128xf32>
    %cst_81 = arith.constant 1.42141378 : f32
    %151 = vector.broadcast %cst_81 : f32 to vector<8x128xf32>
    %152 = arith.addf %150, %151 : vector<8x128xf32>
    %153 = arith.mulf %152, %145 : vector<8x128xf32>
    %cst_82 = arith.constant 0.284496725 : f32
    %154 = vector.broadcast %cst_82 : f32 to vector<8x128xf32>
    %155 = arith.subf %153, %154 : vector<8x128xf32>
    %156 = arith.mulf %155, %145 : vector<8x128xf32>
    %cst_83 = arith.constant 0.254829586 : f32
    %157 = vector.broadcast %cst_83 : f32 to vector<8x128xf32>
    %158 = arith.addf %156, %157 : vector<8x128xf32>
    %159 = arith.mulf %158, %145 : vector<8x128xf32>
    %cst_84 = arith.constant 0.000000e+00 : f32
    %160 = vector.broadcast %cst_84 : f32 to vector<8x128xf32>
    %161 = arith.subf %160, %139 : vector<8x128xf32>
    %162 = arith.mulf %161, %139 : vector<8x128xf32>
    %163 = math.exp %162 : vector<8x128xf32>
    %164 = arith.mulf %159, %163 : vector<8x128xf32>
    %cst_85 = arith.constant 1.000000e+00 : f32
    %165 = vector.broadcast %cst_85 : f32 to vector<8x128xf32>
    %166 = arith.subf %165, %164 : vector<8x128xf32>
    %167 = arith.mulf %138, %166 : vector<8x128xf32>
    %cst_86 = arith.constant 1.000000e+00 : f32
    %168 = vector.broadcast %cst_86 : f32 to vector<8x128xf32>
    %169 = arith.addf %168, %167 : vector<8x128xf32>
    %cst_87 = arith.constant 5.000000e-01 : f32
    %170 = vector.broadcast %cst_87 : f32 to vector<8x128xf32>
    %171 = arith.mulf %170, %169 : vector<8x128xf32>
    %172 = arith.subf %128, %171 : vector<8x128xf32>
    %cst_88 = arith.constant 9.99999971E-10 : f32
    %173 = vector.broadcast %cst_88 : f32 to vector<8x128xf32>
    %174 = arith.maximumf %172, %173 : vector<8x128xf32>
    %c0_89 = arith.constant 0 : index
    %c0_90 = arith.constant 0 : index
    %175 = vector.load %arg16[%c0_89, %c0_90] : memref<8x128xf32, #tpu.memory_space<vmem>>, vector<8x128xf32>
    tpu.vector_store %arg16[%c0_89, %c0_90], %174 {strides = array<i32>} : memref<8x128xf32, #tpu.memory_space<vmem>>, vector<8x128xf32>,
    return
  }
}

module attributes {stable_mosaic.version = 11 : i64} {
  func.func @_k_conv_gdn(%arg0: i32, %arg1: memref<32x80xbf16, #tpu.memory_space<vmem>>, %arg2: memref<80x128xbf16, #tpu.memory_space<vmem>>, %arg3: memref<1x128xf32, #tpu.memory_space<vmem>>, %arg4: memref<128x128xf32, #tpu.memory_space<vmem>>, %arg5: memref<1x128xf32, #tpu.memory_space<vmem>>, %arg6: memref<32x128xbf16, #tpu.memory_space<vmem>>) attributes {dimension_semantics = [#tpu.dimension_semantics<parallel>], iteration_bounds = array<i64: 1>, scalar_prefetch = 0 : i64, scratch_operands = 0 : i64, tpu.core_type = #tpu.core_type<tc>, window_params = [{transform_indices = @transform_0, window_bounds = array<i64: 32, 80>}, {pipeline_mode = #tpu.pipeline_mode<synchronous>, transform_indices = @transform_1, window_bounds = array<i64: 80, 128>}, {pipeline_mode = #tpu.pipeline_mode<synchronous>, transform_indices = @transform_2, window_bounds = array<i64: 1, 128>}, {pipeline_mode = #tpu.pipeline_mode<synchronous>, transform_indices = @transform_3, window_bounds = array<i64: 128, 128>}, {pipeline_mode = #tpu.pipeline_mode<synchronous>, transform_indices = @transform_4, window_bounds = array<i64: 1, 128>}, {transform_indices = @transform_5, window_bounds = array<i64: 32, 128>}]} {
    %c0 = arith.constant 0 : index
    %c0_0 = arith.constant 0 : index
    %0 = vector.load %arg1[%c0, %c0_0] : memref<32x80xbf16, #tpu.memory_space<vmem>>, vector<32x80xbf16>
    %c0_1 = arith.constant 0 : index
    %c0_2 = arith.constant 0 : index
    %1 = vector.load %arg2[%c0_1, %c0_2] : memref<80x128xbf16, #tpu.memory_space<vmem>>, vector<80x128xbf16>
    %cst = arith.constant dense<0.000000e+00> : vector<32x128xf32>
    %2 = tpu.matmul %0, %1, %cst {dimension_numbers = #tpu.dot_dimension_numbers<[1], [0], [0], [1], [0, 0, 1, 1], [], []>} : vector<32x80xbf16>, vector<80x128xbf16>, vector<32x128xf32> -> vector<32x128xf32>
    %c0_3 = arith.constant 0 : index
    %c0_4 = arith.constant 0 : index
    %3 = vector.load %arg3[%c0_3, %c0_4] : memref<1x128xf32, #tpu.memory_space<vmem>>, vector<1x128xf32>
    %4 = vector.broadcast %3 : vector<1x128xf32> to vector<32x128xf32>
    %5 = arith.addf %2, %4 : vector<32x128xf32>
    %6 = arith.mulf %5, %5 : vector<32x128xf32>
    %c0_5 = arith.constant 0 : index
    %c0_6 = arith.constant 0 : index
    %7 = vector.load %arg4[%c0_5, %c0_6] : memref<128x128xf32, #tpu.memory_space<vmem>>, vector<128x128xf32>
    %cst_7 = arith.constant dense<0.000000e+00> : vector<32x128xf32>
    %8 = tpu.matmul %6, %7, %cst_7 {dimension_numbers = #tpu.dot_dimension_numbers<[1], [0], [0], [1], [0, 0, 1, 1], [], []>} : vector<32x128xf32>, vector<128x128xf32>, vector<32x128xf32> -> vector<32x128xf32>
    %c0_8 = arith.constant 0 : index
    %c0_9 = arith.constant 0 : index
    %9 = vector.load %arg5[%c0_8, %c0_9] : memref<1x128xf32, #tpu.memory_space<vmem>>, vector<1x128xf32>
    %10 = vector.broadcast %9 : vector<1x128xf32> to vector<32x128xf32>
    %11 = arith.addf %8, %10 : vector<32x128xf32>
    %12 = math.sqrt %11 : vector<32x128xf32>
    %13 = arith.mulf %5, %12 : vector<32x128xf32>
    %14 = arith.truncf %13 : vector<32x128xf32> to vector<32x128xbf16>
    %c0_10 = arith.constant 0 : index
    %c0_11 = arith.constant 0 : index
    %15 = vector.load %arg6[%c0_10, %c0_11] : memref<32x128xbf16, #tpu.memory_space<vmem>>, vector<32x128xbf16>
    tpu.vector_store %arg6[%c0_10, %c0_11], %14 {strides = array<i32>} : memref<32x128xbf16, #tpu.memory_space<vmem>>, vector<32x128xbf16>,
    return
  }
  func.func @transform_0(%arg0: i32) -> (i32, i32) {
    %c0_i32 = arith.constant 0 : i32
    %c0_i32_0 = arith.constant 0 : i32
    return %arg0, %c0_i32 : i32, i32
  }
  func.func @transform_1(%arg0: i32) -> (i32, i32) {
    %c0_i32 = arith.constant 0 : i32
    %c0_i32_0 = arith.constant 0 : i32
    %c0_i32_1 = arith.constant 0 : i32
    return %c0_i32, %c0_i32_0 : i32, i32
  }
  func.func @transform_2(%arg0: i32) -> (i32, i32) {
    %c0_i32 = arith.constant 0 : i32
    %c0_i32_0 = arith.constant 0 : i32
    %c0_i32_1 = arith.constant 0 : i32
    return %c0_i32, %c0_i32_0 : i32, i32
  }
  func.func @transform_3(%arg0: i32) -> (i32, i32) {
    %c0_i32 = arith.constant 0 : i32
    %c0_i32_0 = arith.constant 0 : i32
    %c0_i32_1 = arith.constant 0 : i32
    return %c0_i32, %c0_i32_0 : i32, i32
  }
  func.func @transform_4(%arg0: i32) -> (i32, i32) {
    %c0_i32 = arith.constant 0 : i32
    %c0_i32_0 = arith.constant 0 : i32
    %c0_i32_1 = arith.constant 0 : i32
    return %c0_i32, %c0_i32_0 : i32, i32
  }
  func.func @transform_5(%arg0: i32) -> (i32, i32) {
    %c0_i32 = arith.constant 0 : i32
    %c0_i32_0 = arith.constant 0 : i32
    return %arg0, %c0_i32 : i32, i32
  }
}

module attributes {stable_mosaic.version = 11 : i64} {
  func.func @_k_conv_gdn(%arg0: i32, %arg1: memref<128x80xbf16, #tpu.memory_space<vmem>>, %arg2: memref<80x128xbf16, #tpu.memory_space<vmem>>, %arg3: memref<1x128xf32, #tpu.memory_space<vmem>>, %arg4: memref<128x128xf32, #tpu.memory_space<vmem>>, %arg5: memref<1x128xf32, #tpu.memory_space<vmem>>, %arg6: memref<128x128xbf16, #tpu.memory_space<vmem>>) attributes {dimension_semantics = [#tpu.dimension_semantics<parallel>], iteration_bounds = array<i64: 1>, scalar_prefetch = 0 : i64, scratch_operands = 0 : i64, tpu.core_type = #tpu.core_type<tc>, window_params = [{transform_indices = @transform_0, window_bounds = array<i64: 128, 80>}, {pipeline_mode = #tpu.pipeline_mode<synchronous>, transform_indices = @transform_1, window_bounds = array<i64: 80, 128>}, {pipeline_mode = #tpu.pipeline_mode<synchronous>, transform_indices = @transform_2, window_bounds = array<i64: 1, 128>}, {pipeline_mode = #tpu.pipeline_mode<synchronous>, transform_indices = @transform_3, window_bounds = array<i64: 128, 128>}, {pipeline_mode = #tpu.pipeline_mode<synchronous>, transform_indices = @transform_4, window_bounds = array<i64: 1, 128>}, {transform_indices = @transform_5, window_bounds = array<i64: 128, 128>}]} {
    %c0 = arith.constant 0 : index
    %c0_0 = arith.constant 0 : index
    %0 = vector.load %arg1[%c0, %c0_0] : memref<128x80xbf16, #tpu.memory_space<vmem>>, vector<128x80xbf16>
    %c0_1 = arith.constant 0 : index
    %c0_2 = arith.constant 0 : index
    %1 = vector.load %arg2[%c0_1, %c0_2] : memref<80x128xbf16, #tpu.memory_space<vmem>>, vector<80x128xbf16>
    %cst = arith.constant dense<0.000000e+00> : vector<128x128xf32>
    %2 = tpu.matmul %0, %1, %cst {dimension_numbers = #tpu.dot_dimension_numbers<[1], [0], [0], [1], [0, 0, 1, 1], [], []>} : vector<128x80xbf16>, vector<80x128xbf16>, vector<128x128xf32> -> vector<128x128xf32>
    %c0_3 = arith.constant 0 : index
    %c0_4 = arith.constant 0 : index
    %3 = vector.load %arg3[%c0_3, %c0_4] : memref<1x128xf32, #tpu.memory_space<vmem>>, vector<1x128xf32>
    %4 = vector.broadcast %3 : vector<1x128xf32> to vector<128x128xf32>
    %5 = arith.addf %2, %4 : vector<128x128xf32>
    %6 = arith.mulf %5, %5 : vector<128x128xf32>
    %c0_5 = arith.constant 0 : index
    %c0_6 = arith.constant 0 : index
    %7 = vector.load %arg4[%c0_5, %c0_6] : memref<128x128xf32, #tpu.memory_space<vmem>>, vector<128x128xf32>
    %cst_7 = arith.constant dense<0.000000e+00> : vector<128x128xf32>
    %8 = tpu.matmul %6, %7, %cst_7 {dimension_numbers = #tpu.dot_dimension_numbers<[1], [0], [0], [1], [0, 0, 1, 1], [], []>} : vector<128x128xf32>, vector<128x128xf32>, vector<128x128xf32> -> vector<128x128xf32>
    %c0_8 = arith.constant 0 : index
    %c0_9 = arith.constant 0 : index
    %9 = vector.load %arg5[%c0_8, %c0_9] : memref<1x128xf32, #tpu.memory_space<vmem>>, vector<1x128xf32>
    %10 = vector.broadcast %9 : vector<1x128xf32> to vector<128x128xf32>
    %11 = arith.addf %8, %10 : vector<128x128xf32>
    %12 = math.sqrt %11 : vector<128x128xf32>
    %13 = arith.mulf %5, %12 : vector<128x128xf32>
    %14 = arith.truncf %13 : vector<128x128xf32> to vector<128x128xbf16>
    %c0_10 = arith.constant 0 : index
    %c0_11 = arith.constant 0 : index
    %15 = vector.load %arg6[%c0_10, %c0_11] : memref<128x128xbf16, #tpu.memory_space<vmem>>, vector<128x128xbf16>
    tpu.vector_store %arg6[%c0_10, %c0_11], %14 {strides = array<i32>} : memref<128x128xbf16, #tpu.memory_space<vmem>>, vector<128x128xbf16>,
    return
  }
  func.func @transform_0(%arg0: i32) -> (i32, i32) {
    %c0_i32 = arith.constant 0 : i32
    %c0_i32_0 = arith.constant 0 : i32
    return %arg0, %c0_i32 : i32, i32
  }
  func.func @transform_1(%arg0: i32) -> (i32, i32) {
    %c0_i32 = arith.constant 0 : i32
    %c0_i32_0 = arith.constant 0 : i32
    %c0_i32_1 = arith.constant 0 : i32
    return %c0_i32, %c0_i32_0 : i32, i32
  }
  func.func @transform_2(%arg0: i32) -> (i32, i32) {
    %c0_i32 = arith.constant 0 : i32
    %c0_i32_0 = arith.constant 0 : i32
    %c0_i32_1 = arith.constant 0 : i32
    return %c0_i32, %c0_i32_0 : i32, i32
  }
  func.func @transform_3(%arg0: i32) -> (i32, i32) {
    %c0_i32 = arith.constant 0 : i32
    %c0_i32_0 = arith.constant 0 : i32
    %c0_i32_1 = arith.constant 0 : i32
    return %c0_i32, %c0_i32_0 : i32, i32
  }
  func.func @transform_4(%arg0: i32) -> (i32, i32) {
    %c0_i32 = arith.constant 0 : i32
    %c0_i32_0 = arith.constant 0 : i32
    %c0_i32_1 = arith.constant 0 : i32
    return %c0_i32, %c0_i32_0 : i32, i32
  }
  func.func @transform_5(%arg0: i32) -> (i32, i32) {
    %c0_i32 = arith.constant 0 : i32
    %c0_i32_0 = arith.constant 0 : i32
    return %arg0, %c0_i32 : i32, i32
  }
}

module attributes {stable_mosaic.version = 11 : i64} {
  func.func @_k_conv_gdn(%arg0: i32, %arg1: memref<512x80xbf16, #tpu.memory_space<vmem>>, %arg2: memref<80x128xbf16, #tpu.memory_space<vmem>>, %arg3: memref<1x128xf32, #tpu.memory_space<vmem>>, %arg4: memref<128x128xf32, #tpu.memory_space<vmem>>, %arg5: memref<1x128xf32, #tpu.memory_space<vmem>>, %arg6: memref<512x128xbf16, #tpu.memory_space<vmem>>) attributes {dimension_semantics = [#tpu.dimension_semantics<parallel>], iteration_bounds = array<i64: 1>, scalar_prefetch = 0 : i64, scratch_operands = 0 : i64, tpu.core_type = #tpu.core_type<tc>, window_params = [{transform_indices = @transform_0, window_bounds = array<i64: 512, 80>}, {pipeline_mode = #tpu.pipeline_mode<synchronous>, transform_indices = @transform_1, window_bounds = array<i64: 80, 128>}, {pipeline_mode = #tpu.pipeline_mode<synchronous>, transform_indices = @transform_2, window_bounds = array<i64: 1, 128>}, {pipeline_mode = #tpu.pipeline_mode<synchronous>, transform_indices = @transform_3, window_bounds = array<i64: 128, 128>}, {pipeline_mode = #tpu.pipeline_mode<synchronous>, transform_indices = @transform_4, window_bounds = array<i64: 1, 128>}, {transform_indices = @transform_5, window_bounds = array<i64: 512, 128>}]} {
    %c0 = arith.constant 0 : index
    %c0_0 = arith.constant 0 : index
    %0 = vector.load %arg1[%c0, %c0_0] : memref<512x80xbf16, #tpu.memory_space<vmem>>, vector<512x80xbf16>
    %c0_1 = arith.constant 0 : index
    %c0_2 = arith.constant 0 : index
    %1 = vector.load %arg2[%c0_1, %c0_2] : memref<80x128xbf16, #tpu.memory_space<vmem>>, vector<80x128xbf16>
    %cst = arith.constant dense<0.000000e+00> : vector<512x128xf32>
    %2 = tpu.matmul %0, %1, %cst {dimension_numbers = #tpu.dot_dimension_numbers<[1], [0], [0], [1], [0, 0, 1, 1], [], []>} : vector<512x80xbf16>, vector<80x128xbf16>, vector<512x128xf32> -> vector<512x128xf32>
    %c0_3 = arith.constant 0 : index
    %c0_4 = arith.constant 0 : index
    %3 = vector.load %arg3[%c0_3, %c0_4] : memref<1x128xf32, #tpu.memory_space<vmem>>, vector<1x128xf32>
    %4 = vector.broadcast %3 : vector<1x128xf32> to vector<512x128xf32>
    %5 = arith.addf %2, %4 : vector<512x128xf32>
    %6 = arith.mulf %5, %5 : vector<512x128xf32>
    %c0_5 = arith.constant 0 : index
    %c0_6 = arith.constant 0 : index
    %7 = vector.load %arg4[%c0_5, %c0_6] : memref<128x128xf32, #tpu.memory_space<vmem>>, vector<128x128xf32>
    %cst_7 = arith.constant dense<0.000000e+00> : vector<512x128xf32>
    %8 = tpu.matmul %6, %7, %cst_7 {dimension_numbers = #tpu.dot_dimension_numbers<[1], [0], [0], [1], [0, 0, 1, 1], [], []>} : vector<512x128xf32>, vector<128x128xf32>, vector<512x128xf32> -> vector<512x128xf32>
    %c0_8 = arith.constant 0 : index
    %c0_9 = arith.constant 0 : index
    %9 = vector.load %arg5[%c0_8, %c0_9] : memref<1x128xf32, #tpu.memory_space<vmem>>, vector<1x128xf32>
    %10 = vector.broadcast %9 : vector<1x128xf32> to vector<512x128xf32>
    %11 = arith.addf %8, %10 : vector<512x128xf32>
    %12 = math.sqrt %11 : vector<512x128xf32>
    %13 = arith.mulf %5, %12 : vector<512x128xf32>
    %14 = arith.truncf %13 : vector<512x128xf32> to vector<512x128xbf16>
    %c0_10 = arith.constant 0 : index
    %c0_11 = arith.constant 0 : index
    %15 = vector.load %arg6[%c0_10, %c0_11] : memref<512x128xbf16, #tpu.memory_space<vmem>>, vector<512x128xbf16>
    tpu.vector_store %arg6[%c0_10, %c0_11], %14 {strides = array<i32>} : memref<512x128xbf16, #tpu.memory_space<vmem>>, vector<512x128xbf16>,
    return
  }
  func.func @transform_0(%arg0: i32) -> (i32, i32) {
    %c0_i32 = arith.constant 0 : i32
    %c0_i32_0 = arith.constant 0 : i32
    return %arg0, %c0_i32 : i32, i32
  }
  func.func @transform_1(%arg0: i32) -> (i32, i32) {
    %c0_i32 = arith.constant 0 : i32
    %c0_i32_0 = arith.constant 0 : i32
    %c0_i32_1 = arith.constant 0 : i32
    return %c0_i32, %c0_i32_0 : i32, i32
  }
  func.func @transform_2(%arg0: i32) -> (i32, i32) {
    %c0_i32 = arith.constant 0 : i32
    %c0_i32_0 = arith.constant 0 : i32
    %c0_i32_1 = arith.constant 0 : i32
    return %c0_i32, %c0_i32_0 : i32, i32
  }
  func.func @transform_3(%arg0: i32) -> (i32, i32) {
    %c0_i32 = arith.constant 0 : i32
    %c0_i32_0 = arith.constant 0 : i32
    %c0_i32_1 = arith.constant 0 : i32
    return %c0_i32, %c0_i32_0 : i32, i32
  }
  func.func @transform_4(%arg0: i32) -> (i32, i32) {
    %c0_i32 = arith.constant 0 : i32
    %c0_i32_0 = arith.constant 0 : i32
    %c0_i32_1 = arith.constant 0 : i32
    return %c0_i32, %c0_i32_0 : i32, i32
  }
  func.func @transform_5(%arg0: i32) -> (i32, i32) {
    %c0_i32 = arith.constant 0 : i32
    %c0_i32_0 = arith.constant 0 : i32
    return %arg0, %c0_i32 : i32, i32
  }
}

module attributes {stable_mosaic.version = 11 : i64} {
  func.func @_k_conv_recon_err(%arg0: i32, %arg1: memref<1024x80xbf16, #tpu.memory_space<vmem>>, %arg2: memref<1024x128xf32, #tpu.memory_space<vmem>>, %arg3: memref<80x128xbf16, #tpu.memory_space<vmem>>, %arg4: memref<1x128xf32, #tpu.memory_space<vmem>>, %arg5: memref<1024x128xf32, #tpu.memory_space<vmem>>, %arg6: memref<1024x128xf32, #tpu.memory_space<vmem>>) attributes {dimension_semantics = [#tpu.dimension_semantics<parallel>], iteration_bounds = array<i64: 2>, scalar_prefetch = 0 : i64, scratch_operands = 0 : i64, tpu.core_type = #tpu.core_type<tc>, window_params = [{transform_indices = @transform_0, window_bounds = array<i64: 1024, 80>}, {transform_indices = @transform_1, window_bounds = array<i64: 1024, 128>}, {pipeline_mode = #tpu.pipeline_mode<synchronous>, transform_indices = @transform_2, window_bounds = array<i64: 80, 128>}, {pipeline_mode = #tpu.pipeline_mode<synchronous>, transform_indices = @transform_3, window_bounds = array<i64: 1, 128>}, {transform_indices = @transform_4, window_bounds = array<i64: 1024, 128>}, {transform_indices = @transform_5, window_bounds = array<i64: 1024, 128>}]} {
    %c0 = arith.constant 0 : index
    %c0_0 = arith.constant 0 : index
    %0 = vector.load %arg1[%c0, %c0_0] : memref<1024x80xbf16, #tpu.memory_space<vmem>>, vector<1024x80xbf16>
    %c0_1 = arith.constant 0 : index
    %c0_2 = arith.constant 0 : index
    %1 = vector.load %arg3[%c0_1, %c0_2] : memref<80x128xbf16, #tpu.memory_space<vmem>>, vector<80x128xbf16>
    %cst = arith.constant dense<0.000000e+00> : vector<1024x128xf32>
    %2 = tpu.matmul %0, %1, %cst {dimension_numbers = #tpu.dot_dimension_numbers<[1], [0], [0], [1], [0, 0, 1, 1], [], []>} : vector<1024x80xbf16>, vector<80x128xbf16>, vector<1024x128xf32> -> vector<1024x128xf32>
    %c0_3 = arith.constant 0 : index
    %c0_4 = arith.constant 0 : index
    %3 = vector.load %arg4[%c0_3, %c0_4] : memref<1x128xf32, #tpu.memory_space<vmem>>, vector<1x128xf32>
    %4 = vector.broadcast %3 : vector<1x128xf32> to vector<1024x128xf32>
    %5 = arith.addf %2, %4 : vector<1024x128xf32>
    %c0_5 = arith.constant 0 : index
    %c0_6 = arith.constant 0 : index
    %6 = vector.load %arg5[%c0_5, %c0_6] : memref<1024x128xf32, #tpu.memory_space<vmem>>, vector<1024x128xf32>
    tpu.vector_store %arg5[%c0_5, %c0_6], %5 {strides = array<i32>} : memref<1024x128xf32, #tpu.memory_space<vmem>>, vector<1024x128xf32>,
    %c0_7 = arith.constant 0 : index
    %c0_8 = arith.constant 0 : index
    %7 = vector.load %arg2[%c0_7, %c0_8] : memref<1024x128xf32, #tpu.memory_space<vmem>>, vector<1024x128xf32>
    %8 = arith.subf %7, %5 : vector<1024x128xf32>
    %c0_9 = arith.constant 0 : index
    %c0_10 = arith.constant 0 : index
    %9 = vector.load %arg6[%c0_9, %c0_10] : memref<1024x128xf32, #tpu.memory_space<vmem>>, vector<1024x128xf32>
    tpu.vector_store %arg6[%c0_9, %c0_10], %8 {strides = array<i32>} : memref<1024x128xf32, #tpu.memory_space<vmem>>, vector<1024x128xf32>,
    return
  }
  func.func @transform_0(%arg0: i32) -> (i32, i32) {
    %c0_i32 = arith.constant 0 : i32
    %c0_i32_0 = arith.constant 0 : i32
    return %arg0, %c0_i32 : i32, i32
  }
  func.func @transform_1(%arg0: i32) -> (i32, i32) {
    %c0_i32 = arith.constant 0 : i32
    %c0_i32_0 = arith.constant 0 : i32
    return %arg0, %c0_i32 : i32, i32
  }
  func.func @transform_2(%arg0: i32) -> (i32, i32) {
    %c0_i32 = arith.constant 0 : i32
    %c0_i32_0 = arith.constant 0 : i32
    %c0_i32_1 = arith.constant 0 : i32
    return %c0_i32, %c0_i32_0 : i32, i32
  }
  func.func @transform_3(%arg0: i32) -> (i32, i32) {
    %c0_i32 = arith.constant 0 : i32
    %c0_i32_0 = arith.constant 0 : i32
    %c0_i32_1 = arith.constant 0 : i32
    return %c0_i32, %c0_i32_0 : i32, i32
  }
  func.func @transform_4(%arg0: i32) -> (i32, i32) {
    %c0_i32 = arith.constant 0 : i32
    %c0_i32_0 = arith.constant 0 : i32
    return %arg0, %c0_i32 : i32, i32
  }
  func.func @transform_5(%arg0: i32) -> (i32, i32) {
    %c0_i32 = arith.constant 0 : i32
    %c0_i32_0 = arith.constant 0 : i32
    return %arg0, %c0_i32 : i32, i32
  }
}

</mosaic_0001>

<bundles_post_ra>
// kernel: forward.10
= control target key start
LH: loop header
LB: loop body
LE: loop exit
PB: predicated region body
PF: predicated region fallthrough
CT: control target
= control target key end

     0   :  { %v2728_v0 = vmov 0   ;;  %vm484_vm0 = vcmask 654336   ;;  %s3698_s1 = inlined_call_operand.vmem [shape: bf16[208,128], index: 1, kind: input, shape index: {}]   ;;  %s3699_s0 = inlined_call_operand.vmem [shape: bf16[512,208], index: 0, kind: input, shape index: {}]   ;;  %s3700_s3 = inlined_call_operand.vmem [shape: f32[128,128], index: 3, kind: input, shape index: {}]   ;;  %s3701_s2 = inlined_call_operand.vmem [shape: f32[1,128], index: 2, kind: input, shape index: {}]   ;;  %s3702_s4 = inlined_call_operand.vmem [shape: f32[1,128], index: 4, kind: input, shape index: {}]   ;;  %s3703_s5 = inlined_call_operand.vmem [shape: bf16[512,128], index: 5, kind: output, shape index: {}]  }
   0x1   :  { %581 = vmatprep.subr.bf16.mxu0 %v2728_v0  ;;  %v2491_v1 = vld [vmem:[%s3698_s1] sm:$0xff]   ;;  %2464 = vmatprep.subr.bf16.mxu1 %v2728_v0  ;;  %v2492_v2 = vld [vmem:[%s3698_s1 + $0x8] sm:$0xff]   ;;  %v2493_v3 = vld [vmem:[%s3698_s1 + $0x10] sm:$0xff]  }
   0x2   :  { %582 = vmatpush1.bf16.msra.mxu0 %v2491_v1  ;;  %2477 = vmatpush1.bf16.msra.mxu1 %v2491_v1  ;;  %v2494_v4 = vld [vmem:[%s3698_s1 + $0x18] sm:$0xff]   ;;  %v2495_v5 = vld [vmem:[%s3698_s1 + $0x20] sm:$0xff]   ;;  %v2496_v7 = vld [vmem:[%s3698_s1 + $0x28] sm:$0xff]  }
   0x3   :  { %583 = vmatprep.subr.bf16.mxu0 %v2728_v0  ;;  %2465 = vmatprep.subr.bf16.mxu1 %v2728_v0  ;;  %v2506_v6 = vld [vmem:[%s3699_s0 + $0x4] ss:$8 sps:$4 sm:$0xff]   ;;  %v2497_v8 = vld [vmem:[%s3698_s1 + $0x30] sm:$0xff]   ;;  %v2498_v9 = vld [vmem:[%s3698_s1 + $0x38] sm:$0xff]  }
   0x4   :  { %1872 = vmatprep.mubr.msk.bf16.mxu0 %vm484_vm0, %v2506_v6  ;;  %v2499_v10 = vld [vmem:[%s3698_s1 + $0x40] sm:$0xff]   ;;  %v2500_v11 = vld [vmem:[%s3698_s1 + $0x48] sm:$0xff]   ;;  %v2501_v12 = vld [vmem:[%s3698_s1 + $0x50] sm:$0xff]  }
   0x5   :  { %v2502_v13 = vld [vmem:[%s3698_s1 + $0x58] sm:$0xff]   ;;  %v2503_v14 = vld [vmem:[%s3698_s1 + $0x60] sm:$0xff]   ;;  %v935_v41 = vld [vmem:[%s3700_s3 + $0x8] sm:$0xff] }
   0x6   :  { %584 = vmatpush1.bf16.msra.mxu0 %v2492_v2  ;;  %2478 = vmatpush1.bf16.msra.mxu1 %v2492_v2  ;;  %v2504_v15 = vld [vmem:[%s3699_s0] ss:$8 sps:$4 sm:$0xff]   ;;  %v2507_v16 = vld [vmem:[%s3699_s0 + $0x14] ss:$8 sps:$4 sm:$0xff]   ;;  %v2509_v17 = vld [vmem:[%s3699_s0 + $0x10] ss:$8 sps:$4 sm:$0xff]  }
   0x7   :  { %585 = vmatprep.subr.bf16.mxu0 %v2728_v0  ;;  %2466 = vmatprep.subr.bf16.mxu1 %v2728_v0  ;;  %v2510_v18 = vld [vmem:[%s3699_s0 + $0x24] ss:$8 sps:$4 sm:$0xff]   ;;  %v2512_v19 = vld [vmem:[%s3699_s0 + $0x20] ss:$8 sps:$4 sm:$0xff]   ;;  %v2513_v20 = vld [vmem:[%s3699_s0 + $0x34] ss:$8 sps:$4 sm:$0xff]  }
   0x8   :  { %v2515_v21 = vld [vmem:[%s3699_s0 + $0x30] ss:$8 sps:$4 sm:$0xff]   ;;  %v2516_v22 = vld [vmem:[%s3699_s0 + $0x44] ss:$8 sps:$4 sm:$0xff]   ;;  %v2564_v24 = vld [vmem:[%s3699_s0 + $0x180] ss:$8 sps:$4 sm:$0xff]  }
   0x9   :  { %v2566_v23 = vld [vmem:[%s3699_s0 + $0x184] ss:$8 sps:$4 sm:$0xff]   ;;  %v2518_v25 = vld [vmem:[%s3699_s0 + $0x40] ss:$8 sps:$4 sm:$0xff]   ;;  %v2519_v26 = vld [vmem:[%s3699_s0 + $0x54] ss:$8 sps:$4 sm:$0xff]  }
   0xa   :  { %586 = vmatpush1.bf16.msra.mxu0 %v2493_v3  ;;  %2479 = vmatpush1.bf16.msra.mxu1 %v2493_v3  ;;  %v2570_v27 = vld [vmem:[%s3699_s0 + $0x194] ss:$8 sps:$4 sm:$0xff]   ;;  %v2572_v28 = vld [vmem:[%s3699_s0 + $0x190] ss:$8 sps:$4 sm:$0xff]   ;;  %v2522_v30 = vld [vmem:[%s3699_s0 + $0x64] ss:$8 sps:$4 sm:$0xff]  }
   0xb   :  { %587 = vmatprep.subr.bf16.mxu0 %v2728_v0  ;;  %2467 = vmatprep.subr.bf16.mxu1 %v2728_v0  ;;  %v2521_v29 = vld [vmem:[%s3699_s0 + $0x50] ss:$8 sps:$4 sm:$0xff]   ;;  %v2576_v31 = vld [vmem:[%s3699_s0 + $0x1a4] ss:$8 sps:$4 sm:$0xff]   ;;  %v2578_v32 = vld [vmem:[%s3699_s0 + $0x1a0] ss:$8 sps:$4 sm:$0xff]  }
   0xc   :  { %1896 = vmatprep.mubr.msk.bf16.mxu1 %vm484_vm0, %v2566_v23  ;;  %v2524_v33 = vld [vmem:[%s3699_s0 + $0x60] ss:$8 sps:$4 sm:$0xff]   ;;  %v2525_v34 = vld [vmem:[%s3699_s0 + $0x74] ss:$8 sps:$4 sm:$0xff]   ;;  %v2584_v36 = vld [vmem:[%s3699_s0 + $0x1b0] ss:$8 sps:$4 sm:$0xff]  }
   0xd   :  { %v2582_v35 = vld [vmem:[%s3699_s0 + $0x1b4] ss:$8 sps:$4 sm:$0xff]   ;;  %v2527_v37 = vld [vmem:[%s3699_s0 + $0x70] ss:$8 sps:$4 sm:$0xff]   ;;  %v2528_v38 = vld [vmem:[%s3699_s0 + $0x84] ss:$8 sps:$4 sm:$0xff]  }
   0xe   :  { %588 = vmatpush1.bf16.msra.mxu0 %v2494_v4  ;;  %2480 = vmatpush1.bf16.msra.mxu1 %v2494_v4  ;;  %v2588_v39 = vld [vmem:[%s3699_s0 + $0x1c4] ss:$8 sps:$4 sm:$0xff]   ;;  %v2590_v42 = vld [vmem:[%s3699_s0 + $0x1c0] ss:$8 sps:$4 sm:$0xff]   ;;  %v936_v44 = vld [vmem:[%s3700_s3 + $0x10] sm:$0xff] }
   0xf   :  { %589 = vmatprep.subr.bf16.mxu0 %v2728_v0  ;;  %2468 = vmatprep.subr.bf16.mxu1 %v2728_v0  ;;  %v934_v40 = vld [vmem:[%s3700_s3] sm:$0xff]  ;;  %v937_v45 = vld [vmem:[%s3700_s3 + $0x18] sm:$0xff]  ;;  %v939_v49 = vld [vmem:[%s3700_s3 + $0x28] sm:$0xff] }
  0x10   :  { %v2432_v43 = vpack.c.bf16 %v935_v41, %v934_v40  ;;  %v2436_v46 = vpack.c.bf16 %v937_v45, %v936_v44  ;;  %v2591_v47 = vld [vmem:[%s3699_s0 + $0x1d4] ss:$8 sps:$4 sm:$0xff]   ;;  %v938_v48 = vld [vmem:[%s3700_s3 + $0x20] sm:$0xff]  ;;  %v2593_v55 = vld [vmem:[%s3699_s0 + $0x1d0] ss:$8 sps:$4 sm:$0xff]  }
  0x11   :  { %v2530_v50 = vld [vmem:[%s3699_s0 + $0x80] ss:$8 sps:$4 sm:$0xff]   ;;  %v2440_v51 = vpack.c.bf16 %v939_v49, %v938_v48  ;;  %v2531_v52 = vld [vmem:[%s3699_s0 + $0x94] ss:$8 sps:$4 sm:$0xff]   ;;  %v2594_v56 = vld [vmem:[%s3699_s0 + $0x1e4] ss:$8 sps:$4 sm:$0xff]  }
  0x12   :  { %590 = vmatpush1.bf16.msra.mxu0 %v2495_v5  ;;  %2481 = vmatpush1.bf16.msra.mxu1 %v2495_v5  ;;  %v940_v53 = vld [vmem:[%s3700_s3 + $0x30] sm:$0xff]  ;;  %v941_v54 = vld [vmem:[%s3700_s3 + $0x38] sm:$0xff]  ;;  %v942_v58 = vld [vmem:[%s3700_s3 + $0x40] sm:$0xff] }
  0x13   :  { %591 = vmatprep.subr.bf16.mxu0 %v2728_v0  ;;  %2469 = vmatprep.subr.bf16.mxu1 %v2728_v0  ;;  %v2444_v57 = vpack.c.bf16 %v941_v54, %v940_v53  ;;  %v943_v59 = vld [vmem:[%s3700_s3 + $0x48] sm:$0xff]  ;;  %v2533_v60 = vld [vmem:[%s3699_s0 + $0x90] ss:$8 sps:$4 sm:$0xff]   ;;  %v2597_v2 = vld [vmem:[%s3699_s0 + $0x1f4] ss:$8 sps:$4 sm:$0xff]  }
  0x14   :  { %v2448_v61 = vpack.c.bf16 %v943_v59, %v942_v58  ;;  %v2534_v62 = vld [vmem:[%s3699_s0 + $0xa4] ss:$8 sps:$4 sm:$0xff]   ;;  %v944_v63 = vld [vmem:[%s3700_s3 + $0x50] sm:$0xff]  ;;  %v2596_v1 = vld [vmem:[%s3699_s0 + $0x1e0] ss:$8 sps:$4 sm:$0xff]  }
  0x15   :  { %v946_v4 = vld [vmem:[%s3700_s3 + $0x60] sm:$0xff]  ;;  %v947_v5 = vld [vmem:[%s3700_s3 + $0x68] sm:$0xff] }
  0x16   :  { %592 = vmatpush1.bf16.msra.mxu0 %v2496_v7  ;;  %2482 = vmatpush1.bf16.msra.mxu1 %v2496_v7  ;;  %v2536_v6 = vld [vmem:[%s3699_s0 + $0xa0] ss:$8 sps:$4 sm:$0xff]   ;;  %v2456_v7 = vpack.c.bf16 %v947_v5, %v946_v4 }
  0x17   :  { %593 = vmatprep.subr.bf16.mxu0 %v2728_v0  ;;  %2470 = vmatprep.subr.bf16.mxu1 %v2728_v0  ;;  %v2554_v23 = vld [vmem:[%s3699_s0 + $0x100] ss:$8 sps:$4 sm:$0xff]  }
  0x1a   :  { %594 = vmatpush1.bf16.msra.mxu0 %v2497_v8  ;;  %2483 = vmatpush1.bf16.msra.mxu1 %v2497_v8  ;;  %v2537_v8 = vld [vmem:[%s3699_s0 + $0xb4] ss:$8 sps:$4 sm:$0xff]  }
  0x1b   :  { %595 = vmatprep.subr.bf16.mxu0 %v2728_v0  ;;  %2471 = vmatprep.subr.bf16.mxu1 %v2728_v0 }
  0x1e   :  { %596 = vmatpush1.bf16.msra.mxu0 %v2498_v9  ;;  %2484 = vmatpush1.bf16.msra.mxu1 %v2498_v9  ;;  %v2599_v9 = vld [vmem:[%s3699_s0 + $0x1f0] ss:$8 sps:$4 sm:$0xff]  }
  0x1f   :  { %597 = vmatprep.subr.bf16.mxu0 %v2728_v0  ;;  %2472 = vmatprep.subr.bf16.mxu1 %v2728_v0 }
  0x22   :  { %598 = vmatpush1.bf16.msra.mxu0 %v2499_v10  ;;  %2485 = vmatpush1.bf16.msra.mxu1 %v2499_v10  ;;  %v948_v10 = vld [vmem:[%s3700_s3 + $0x70] sm:$0xff] }
  0x23   :  { %599 = vmatprep.subr.bf16.mxu0 %v2728_v0  ;;  %2473 = vmatprep.subr.bf16.mxu1 %v2728_v0 }
  0x26   :  { %600 = vmatpush1.bf16.msra.mxu0 %v2500_v11  ;;  %2486 = vmatpush1.bf16.msra.mxu1 %v2500_v11  ;;  %v949_v11 = vld [vmem:[%s3700_s3 + $0x78] sm:$0xff] }
  0x27   :  { %601 = vmatprep.subr.bf16.mxu0 %v2728_v0  ;;  %2474 = vmatprep.subr.bf16.mxu1 %v2728_v0 }
  0x2a   :  { %602 = vmatpush1.bf16.msra.mxu0 %v2501_v12  ;;  %2487 = vmatpush1.bf16.msra.mxu1 %v2501_v12  ;;  %v2539_v12 = vld [vmem:[%s3699_s0 + $0xb0] ss:$8 sps:$4 sm:$0xff]  }
  0x2b   :  { %603 = vmatprep.subr.bf16.mxu0 %v2728_v0  ;;  %2475 = vmatprep.subr.bf16.mxu1 %v2728_v0 }
  0x2e   :  { %604 = vmatpush1.bf16.msra.mxu0 %v2502_v13  ;;  %2488 = vmatpush1.bf16.msra.mxu1 %v2502_v13  ;;  %v2460_v13 = vpack.c.bf16 %v949_v11, %v948_v10 }
  0x2f   :  { %605 = vmatprep.subr.bf16.mxu0 %v2728_v0  ;;  %2476 = vmatprep.subr.bf16.mxu1 %v2728_v0  ;;  %v945_v0 = vld [vmem:[%s3700_s3 + $0x58] sm:$0xff] }
  0x30   :  { %v2452_v3 = vpack.c.bf16 %v945_v0, %v944_v63 }
  0x32   :  { %606 = vmatpush1.bf16.msra.mxu0 %v2503_v14  ;;  %2489 = vmatpush1.bf16.msra.mxu1 %v2503_v14  ;;  %v2540_v14 = vld [vmem:[%s3699_s0 + $0xc4] ss:$8 sps:$4 sm:$0xff]  }
  0x33   :  { %2433 = vmatprep.subr.bf16.mxu1 %v2432_v43 }
  0x35   :  { %614 = vmatmul.mubr.bf16.vlgmr.msra.gmra.mrb[0].mxu0 %v2504_v15  ;;  %806 = vmatmul.mubr.bf16.vlgmr.msra.gmra.mrb[0].mxu1 %v2564_v24  ;;  %v2542_v15 = vld [vmem:[%s3699_s0 + $0xc0] ss:$8 sps:$4 sm:$0xff]   ;;  %v2555_v24 = vld [vmem:[%s3699_s0 + $0x114] ss:$8 sps:$4 sm:$0xff]  }
  0x36   :  { %1873 = vmatprep.mubr.msk.bf16.mxu0 %vm484_vm0, %v2507_v16  ;;  %1897 = vmatprep.mubr.msk.bf16.mxu1 %vm484_vm0, %v2570_v27  ;;  %v2543_v16 = vld [vmem:[%s3699_s0 + $0xd4] ss:$8 sps:$4 sm:$0xff]   ;;  %v2560_v27 = vld [vmem:[%s3699_s0 + $0x120] ss:$8 sps:$4 sm:$0xff]  }
  0x37   :  { %2435 = vmatpush3.bf16.msra.mxu1 %v2432_v43 }
  0x38   :  { %2437 = vmatprep.subr.bf16.mxu1 %v2436_v46 }
  0x3b   :  { %2439 = vmatpush3.bf16.msra.mxu1 %v2436_v46 }
  0x3c   :  { %2441 = vmatprep.subr.bf16.mxu1 %v2440_v51 }
  0x3d   :  { %622 = vmatmul.mubr.bf16.gmra.mrb[4].mxu0 %v2509_v17  ;;  %814 = vmatmul.mubr.bf16.gmra.mrb[4].mxu1 %v2572_v28  ;;  %v2545_v17 = vld [vmem:[%s3699_s0 + $0xd0] ss:$8 sps:$4 sm:$0xff]   ;;  %v2561_v28 = vld [vmem:[%s3699_s0 + $0x134] ss:$8 sps:$4 sm:$0xff]  }
  0x3e   :  { %1874 = vmatprep.mubr.msk.bf16.mxu0 %vm484_vm0, %v2510_v18  ;;  %1898 = vmatprep.mubr.msk.bf16.mxu1 %vm484_vm0, %v2576_v31  ;;  %v2546_v18 = vld [vmem:[%s3699_s0 + $0xe4] ss:$8 sps:$4 sm:$0xff]   ;;  %v2569_v31 = vld [vmem:[%s3699_s0 + $0x140] ss:$8 sps:$4 sm:$0xff]  }
  0x3f   :  { %2443 = vmatpush3.bf16.msra.mxu1 %v2440_v51 }
  0x40   :  { %2445 = vmatprep.subr.bf16.mxu1 %v2444_v57 }
  0x43   :  { %2447 = vmatpush3.bf16.msra.mxu1 %v2444_v57 }
  0x44   :  { %2449 = vmatprep.subr.bf16.mxu1 %v2448_v61 }
  0x45   :  { %630 = vmatmul.mubr.bf16.gmra.mrb[8].mxu0 %v2512_v19  ;;  %822 = vmatmul.mubr.bf16.gmra.mrb[8].mxu1 %v2578_v32  ;;  %v2548_v19 = vld [vmem:[%s3699_s0 + $0xe0] ss:$8 sps:$4 sm:$0xff]   ;;  %v2573_v32 = vld [vmem:[%s3699_s0 + $0x154] ss:$8 sps:$4 sm:$0xff]  }
  0x46   :  { %1875 = vmatprep.mubr.msk.bf16.mxu0 %vm484_vm0, %v2513_v20  ;;  %1899 = vmatprep.mubr.msk.bf16.mxu1 %vm484_vm0, %v2582_v35  ;;  %v2549_v20 = vld [vmem:[%s3699_s0 + $0xf4] ss:$8 sps:$4 sm:$0xff]   ;;  %v2581_v35 = vld [vmem:[%s3699_s0 + $0x160] ss:$8 sps:$4 sm:$0xff]  }
  0x47   :  { %2451 = vmatpush3.bf16.msra.mxu1 %v2448_v61 }
  0x48   :  { %2453 = vmatprep.subr.bf16.mxu1 %v2452_v3 }
  0x4b   :  { %2455 = vmatpush3.bf16.msra.mxu1 %v2452_v3 }
  0x4c   :  { %2457 = vmatprep.subr.bf16.mxu1 %v2456_v7 }
  0x4d   :  { %638 = vmatmul.mubr.bf16.gmra.mrb[12].mxu0 %v2515_v21  ;;  %830 = vmatmul.mubr.bf16.gmra.mrb[12].mxu1 %v2584_v36  ;;  %v2551_v21 = vld [vmem:[%s3699_s0 + $0xf0] ss:$8 sps:$4 sm:$0xff]   ;;  %v2585_v36 = vld [vmem:[%s3699_s0 + $0x174] ss:$8 sps:$4 sm:$0xff]  }
  0x4e   :  { %1876 = vmatprep.mubr.msk.bf16.mxu0 %vm484_vm0, %v2516_v22  ;;  %1900 = vmatprep.mubr.msk.bf16.mxu1 %vm484_vm0, %v2588_v39  ;;  %v2552_v22 = vld [vmem:[%s3699_s0 + $0x104] ss:$8 sps:$4 sm:$0xff]  }
  0x4f   :  { %2459 = vmatpush3.bf16.msra.mxu1 %v2456_v7 }
  0x50   :  { %2461 = vmatprep.subr.bf16.mxu1 %v2460_v13 }
  0x53   :  { %2463 = vmatpush3.bf16.msra.mxu1 %v2460_v13 }
  0x55   :  { %646 = vmatmul.mubr.bf16.gmra.mrb[16].mxu0 %v2518_v25  ;;  %838 = vmatmul.mubr.bf16.gmra.mrb[16].mxu1 %v2590_v42  ;;  %v2557_v25 = vld [vmem:[%s3699_s0 + $0x110] ss:$8 sps:$4 sm:$0xff]  }
  0x56   :  { %1877 = vmatprep.mubr.msk.bf16.mxu0 %vm484_vm0, %v2519_v26  ;;  %1901 = vmatprep.mubr.msk.bf16.mxu1 %vm484_vm0, %v2591_v47  ;;  %v2558_v26 = vld [vmem:[%s3699_s0 + $0x124] ss:$8 sps:$4 sm:$0xff]  }
  0x5d   :  { %654 = vmatmul.mubr.bf16.gmra.mrb[20].mxu0 %v2521_v29  ;;  %846 = vmatmul.mubr.bf16.gmra.mrb[20].mxu1 %v2593_v55  ;;  %v2563_v29 = vld [vmem:[%s3699_s0 + $0x130] ss:$8 sps:$4 sm:$0xff]  }
  0x5e   :  { %1878 = vmatprep.mubr.msk.bf16.mxu0 %vm484_vm0, %v2522_v30  ;;  %1902 = vmatprep.mubr.msk.bf16.mxu1 %vm484_vm0, %v2594_v56  ;;  %v2567_v30 = vld [vmem:[%s3699_s0 + $0x144] ss:$8 sps:$4 sm:$0xff]  }
  0x65   :  { %662 = vmatmul.mubr.bf16.gmra.mrb[24].mxu0 %v2524_v33  ;;  %854 = vmatmul.mubr.bf16.gmra.mrb[24].mxu1 %v2596_v1  ;;  %v2575_v33 = vld [vmem:[%s3699_s0 + $0x150] ss:$8 sps:$4 sm:$0xff]  }
  0x66   :  { %1879 = vmatprep.mubr.msk.bf16.mxu0 %vm484_vm0, %v2525_v34  ;;  %1903 = vmatprep.mubr.msk.bf16.mxu1 %vm484_vm0, %v2597_v2  ;;  %v2579_v34 = vld [vmem:[%s3699_s0 + $0x164] ss:$8 sps:$4 sm:$0xff]  }
  0x6d   :  { %670 = vmatmul.mubr.bf16.gmra.mrb[28].mxu0 %v2527_v37  ;;  %862 = vmatmul.mubr.bf16.gmra.mrb[28].mxu1 %v2599_v9  ;;  %v2587_v37 = vld [vmem:[%s3699_s0 + $0x170] ss:$8 sps:$4 sm:$0xff]  }
  0x6e   :  { %1880 = vmatprep.mubr.msk.bf16.mxu0 %vm484_vm0, %v2528_v38  ;;  %v3099_v38 = vld [vmem:[%s3701_s2] ss:$0 sm:$0xff] }
  0x75   :  { %678 = vmatmul.mubr.bf16.gmra.mrb[32].mxu0 %v2530_v50 }
  0x76   :  { %1881 = vmatprep.mubr.msk.bf16.mxu0 %vm484_vm0, %v2531_v52 }
  0x7d   :  { %686 = vmatmul.mubr.bf16.gmra.mrb[36].mxu0 %v2533_v60 }
  0x7e   :  { %1882 = vmatprep.mubr.msk.bf16.mxu0 %vm484_vm0, %v2534_v62 }
  0x85   :  { %694 = vmatmul.mubr.bf16.gmra.mrb[40].mxu0 %v2536_v6 }
  0x86   :  { %1883 = vmatprep.mubr.msk.bf16.mxu0 %vm484_vm0, %v2537_v8 }
  0x8d   :  { %702 = vmatmul.mubr.bf16.gmra.mrb[44].mxu0 %v2539_v12 }
  0x8e   :  { %1884 = vmatprep.mubr.msk.bf16.mxu0 %vm484_vm0, %v2540_v14 }
  0x95   :  { %710 = vmatmul.mubr.bf16.gmra.mrb[48].mxu0 %v2542_v15 }
  0x96   :  { %1885 = vmatprep.mubr.msk.bf16.mxu0 %vm484_vm0, %v2543_v16 }
  0x9d   :  { %718 = vmatmul.mubr.bf16.gmra.mrb[52].mxu0 %v2545_v17 }
  0x9e   :  { %1886 = vmatprep.mubr.msk.bf16.mxu0 %vm484_vm0, %v2546_v18 }
  0xa5   :  { %726 = vmatmul.mubr.bf16.gmra.mrb[56].mxu0 %v2548_v19 }
  0xa6   :  { %1887 = vmatprep.mubr.msk.bf16.mxu0 %vm484_vm0, %v2549_v20 }
  0xad   :  { %734 = vmatmul.mubr.bf16.gmra.mrb[60].mxu0 %v2551_v21 }
  0xae   :  { %1888 = vmatprep.mubr.msk.bf16.mxu0 %vm484_vm0, %v2552_v22 }
  0xb5   :  { %742 = vmatmul.mubr.bf16.gmra.mrb[64].mxu0 %v2554_v23 }
  0xb6   :  { %1889 = vmatprep.mubr.msk.bf16.mxu0 %vm484_vm0, %v2555_v24 }
  0xbd   :  { %750 = vmatmul.mubr.bf16.gmra.mrb[68].mxu0 %v2557_v25 }
  0xbe   :  { %1890 = vmatprep.mubr.msk.bf16.mxu0 %vm484_vm0, %v2558_v26 }
  0xc5   :  { %758 = vmatmul.mubr.bf16.gmra.mrb[72].mxu0 %v2560_v27 }
  0xc6   :  { %1891 = vmatprep.mubr.msk.bf16.mxu0 %vm484_vm0, %v2561_v28 }
  0xcd   :  { %766 = vmatmul.mubr.bf16.gmra.mrb[76].mxu0 %v2563_v29 }
  0xce   :  { %1892 = vmatprep.mubr.msk.bf16.mxu0 %vm484_vm0, %v2567_v30 }
  0xd5   :  { %774 = vmatmul.mubr.bf16.gmra.mrb[80].mxu0 %v2569_v31 }
  0xd6   :  { %1893 = vmatprep.mubr.msk.bf16.mxu0 %vm484_vm0, %v2573_v32 }
  0xdd   :  { %782 = vmatmul.mubr.bf16.gmra.mrb[84].mxu0 %v2575_v33 }
  0xde   :  { %1894 = vmatprep.mubr.msk.bf16.mxu0 %vm484_vm0, %v2579_v34 }
  0xe5   :  { %790 = vmatmul.mubr.bf16.gmra.mrb[88].mxu0 %v2581_v35 }
  0xe6   :  { %1895 = vmatprep.mubr.msk.bf16.mxu0 %vm484_vm0, %v2585_v36 }
  0xed   :  { %798 = vmatmul.mubr.bf16.gmra.mrb[92].mxu0 %v2587_v37 }
 0x108   :  { %v615_v39 = vpop.f32.mrb[0].mxu0  ;;  %v3141_v7 = vpop.f32.mrb[0].mxu1 }
 0x109   :  { %v3102_v40 = vadd.f32 %v3099_v38, %v615_v39  ;;  %v617_v41 = vpop.f32.mrb[1].mxu0  ;;  %v809_v8 = vpop.f32.mrb[1].mxu1 }
 0x10a   :  { %v618_v42 = vpop.f32.mrb[2].mxu0  ;;  %v3143_v9 = vpop.f32.mrb[2].mxu1 }
 0x10b   :  { %v870_v43 = vmul.f32 %v3102_v40, %v3102_v40  ;;  %v3107_v44 = vadd.f32 %v3099_v38, %v618_v42  ;;  %v620_v45 = vpop.f32.mrb[3].mxu0  ;;  %v812_v11 = vpop.f32.mrb[3].mxu1 }
 0x10d   :  { %v871_v46 = vmul.f32 %v3107_v44, %v3107_v44  ;;  %2336 = vmatprep.mubr.f32.mxu1 %v870_v43 }
 0x10f   :  { %2337 = vmatmul.mubr.f32.vlgmr.msra.gmra.mrb[32].mxu1 %v871_v46 }
 0x110   :  { %v623_v47 = vpop.f32.mrb[4].mxu0  ;;  %v3155_v19 = vpop.f32.mrb[4].mxu1 }
 0x111   :  { %v3112_v48 = vadd.f32 %v3099_v38, %v623_v47  ;;  %v625_v49 = vpop.f32.mrb[5].mxu0  ;;  %v817_v20 = vpop.f32.mrb[5].mxu1 }
 0x112   :  { %v626_v50 = vpop.f32.mrb[6].mxu0  ;;  %v3157_v21 = vpop.f32.mrb[6].mxu1 }
 0x113   :  { %v872_v51 = vmul.f32 %v3112_v48, %v3112_v48  ;;  %v3117_v52 = vadd.f32 %v3099_v38, %v626_v50  ;;  %v628_v53 = vpop.f32.mrb[7].mxu0  ;;  %v820_v23 = vpop.f32.mrb[7].mxu1 }
 0x115   :  { %v873_v54 = vmul.f32 %v3117_v52, %v3117_v52  ;;  %2339 = vmatprep.mubr.f32.mxu1 %v872_v51 }
 0x117   :  { %2340 = vmatmul.mubr.f32.gmra.mrb[34].mxu1 %v873_v54 }
 0x118   :  { %v631_v55 = vpop.f32.mrb[8].mxu0  ;;  %v3169_v31 = vpop.f32.mrb[8].mxu1 }
 0x119   :  { %v3122_v56 = vadd.f32 %v3099_v38, %v631_v55  ;;  %v633_v57 = vpop.f32.mrb[9].mxu0  ;;  %v825_v32 = vpop.f32.mrb[9].mxu1 }
 0x11a   :  { %v634_v58 = vpop.f32.mrb[10].mxu0  ;;  %v3171_v33 = vpop.f32.mrb[10].mxu1 }
 0x11b   :  { %v874_v59 = vmul.f32 %v3122_v56, %v3122_v56  ;;  %v3127_v60 = vadd.f32 %v3099_v38, %v634_v58  ;;  %v636_v61 = vpop.f32.mrb[11].mxu0  ;;  %v828_v35 = vpop.f32.mrb[11].mxu1 }
 0x11d   :  { %v875_v62 = vmul.f32 %v3127_v60, %v3127_v60  ;;  %2342 = vmatprep.mubr.f32.mxu1 %v874_v59 }
 0x11f   :  { %2343 = vmatmul.mubr.f32.gmra.mrb[36].mxu1 %v875_v62 }
 0x120   :  { %v639_v63 = vpop.f32.mrb[12].mxu0  ;;  %v3183_v46 = vpop.f32.mrb[12].mxu1 }
 0x121   :  { %v3132_v0 = vadd.f32 %v3099_v38, %v639_v63  ;;  %v641_v1 = vpop.f32.mrb[13].mxu0  ;;  %v833_v47 = vpop.f32.mrb[13].mxu1 }
 0x122   :  { %v642_v2 = vpop.f32.mrb[14].mxu0  ;;  %v3185_v49 = vpop.f32.mrb[14].mxu1 }
 0x123   :  { %v876_v3 = vmul.f32 %v3132_v0, %v3132_v0  ;;  %v3137_v4 = vadd.f32 %v3099_v38, %v642_v2  ;;  %v644_v5 = vpop.f32.mrb[15].mxu0  ;;  %v836_v51 = vpop.f32.mrb[15].mxu1 }
 0x125   :  { %v877_v6 = vmul.f32 %v3137_v4, %v3137_v4  ;;  %2345 = vmatprep.mubr.f32.mxu1 %v876_v3 }
 0x127   :  { %2346 = vmatmul.mubr.f32.gmra.mrb[38].mxu1 %v877_v6 }
 0x128   :  { %v647_v10 = vpop.f32.mrb[16].mxu0  ;;  %v3197_v62 = vpop.f32.mrb[16].mxu1 }
 0x129   :  { %v3146_v12 = vadd.f32 %v3099_v38, %v647_v10  ;;  %v649_v13 = vpop.f32.mrb[17].mxu0  ;;  %v841_v63 = vpop.f32.mrb[17].mxu1 }
 0x12a   :  { %v650_v14 = vpop.f32.mrb[18].mxu0  ;;  %v3199_v1 = vpop.f32.mrb[18].mxu1 }
 0x12b   :  { %v878_v15 = vmul.f32 %v3146_v12, %v3146_v12  ;;  %v3151_v16 = vadd.f32 %v3099_v38, %v650_v14  ;;  %v652_v17 = vpop.f32.mrb[19].mxu0  ;;  %v844_v3 = vpop.f32.mrb[19].mxu1 }
 0x12d   :  { %v879_v18 = vmul.f32 %v3151_v16, %v3151_v16  ;;  %2348 = vmatprep.mubr.f32.mxu1 %v878_v15 }
 0x12f   :  { %2349 = vmatmul.mubr.f32.gmra.mrb[40].mxu1 %v879_v18 }
 0x130   :  { %v655_v22 = vpop.f32.mrb[20].mxu0  ;;  %v3209_v14 = vpop.f32.mrb[20].mxu1 }
 0x131   :  { %v3160_v24 = vadd.f32 %v3099_v38, %v655_v22  ;;  %v657_v25 = vpop.f32.mrb[21].mxu0  ;;  %v849_v17 = vpop.f32.mrb[21].mxu1 }
 0x132   :  { %v658_v26 = vpop.f32.mrb[22].mxu0  ;;  %v3213_v18 = vpop.f32.mrb[22].mxu1 }
 0x133   :  { %v880_v27 = vmul.f32 %v3160_v24, %v3160_v24  ;;  %v3165_v28 = vadd.f32 %v3099_v38, %v658_v26  ;;  %v660_v29 = vpop.f32.mrb[23].mxu0  ;;  %v852_v20 = vpop.f32.mrb[23].mxu1 }
 0x135   :  { %v881_v30 = vmul.f32 %v3165_v28, %v3165_v28  ;;  %2351 = vmatprep.mubr.f32.mxu1 %v880_v27 }
 0x137   :  { %2352 = vmatmul.mubr.f32.gmra.mrb[42].mxu1 %v881_v30 }
 0x138   :  { %v663_v34 = vpop.f32.mrb[24].mxu0  ;;  %v3223_v32 = vpop.f32.mrb[24].mxu1 }
 0x139   :  { %v3174_v36 = vadd.f32 %v3099_v38, %v663_v34  ;;  %v665_v37 = vpop.f32.mrb[25].mxu0  ;;  %v857_v35 = vpop.f32.mrb[25].mxu1 }
 0x13a   :  { %v666_v39 = vpop.f32.mrb[26].mxu0  ;;  %v3227_v37 = vpop.f32.mrb[26].mxu1 }
 0x13b   :  { %v882_v41 = vmul.f32 %v3174_v36, %v3174_v36  ;;  %v3179_v42 = vadd.f32 %v3099_v38, %v666_v39  ;;  %v668_v43 = vpop.f32.mrb[27].mxu0  ;;  %v860_v39 = vpop.f32.mrb[27].mxu1 }
 0x13d   :  { %v883_v45 = vmul.f32 %v3179_v42, %v3179_v42  ;;  %2354 = vmatprep.mubr.f32.mxu1 %v882_v41 }
 0x13f   :  { %2355 = vmatmul.mubr.f32.gmra.mrb[44].mxu1 %v883_v45 }
 0x140   :  { %v671_v50 = vpop.f32.mrb[28].mxu0 }
 0x141   :  { %v3188_v53 = vadd.f32 %v3099_v38, %v671_v50  ;;  %v673_v54 = vpop.f32.mrb[29].mxu0 }
 0x142   :  { %v674_v55 = vpop.f32.mrb[30].mxu0 }
 0x143   :  { %v884_v57 = vmul.f32 %v3188_v53, %v3188_v53  ;;  %v3193_v58 = vadd.f32 %v3099_v38, %v674_v55  ;;  %v676_v59 = vpop.f32.mrb[31].mxu0  ;;  %v3237_v55 = vpop.f32.mrb[28].mxu1 }
 0x144   :  { %v865_v59 = vpop.f32.mrb[29].mxu1 }
 0x145   :  { %v885_v61 = vmul.f32 %v3193_v58, %v3193_v58  ;;  %2357 = vmatprep.mubr.f32.mxu1 %v884_v57 }
 0x147   :  { %2358 = vmatmul.mubr.f32.gmra.mrb[46].mxu1 %v885_v61  ;;  %v3241_v61 = vpop.f32.mrb[30].mxu1 }
 0x148   :  { %v679_v2 = vpop.f32.mrb[32].mxu0  ;;  %v868_v63 = vpop.f32.mrb[31].mxu1 }
 0x149   :  { %v3202_v5 = vadd.f32 %v3099_v38, %v679_v2  ;;  %v681_v6 = vpop.f32.mrb[33].mxu0 }
 0x14a   :  { %v682_v8 = vpop.f32.mrb[34].mxu0 }
 0x14b   :  { %v886_v10 = vmul.f32 %v3202_v5, %v3202_v5  ;;  %v3207_v11 = vadd.f32 %v3099_v38, %v682_v8  ;;  %v684_v13 = vpop.f32.mrb[35].mxu0 }
 0x14d   :  { %v887_v15 = vmul.f32 %v3207_v11, %v3207_v11  ;;  %2360 = vmatprep.mubr.f32.mxu1 %v886_v10 }
 0x14f   :  { %2361 = vmatmul.mubr.f32.gmra.mrb[48].mxu1 %v887_v15 }
 0x150   :  { %v687_v22 = vpop.f32.mrb[36].mxu0 }
 0x151   :  { %v3216_v23 = vadd.f32 %v3099_v38, %v687_v22  ;;  %v689_v25 = vpop.f32.mrb[37].mxu0 }
 0x152   :  { %v690_v26 = vpop.f32.mrb[38].mxu0 }
 0x153   :  { %v888_v27 = vmul.f32 %v3216_v23, %v3216_v23  ;;  %v3221_v29 = vadd.f32 %v3099_v38, %v690_v26  ;;  %v692_v30 = vpop.f32.mrb[39].mxu0 }
 0x155   :  { %v889_v34 = vmul.f32 %v3221_v29, %v3221_v29  ;;  %2363 = vmatprep.mubr.f32.mxu1 %v888_v27 }
 0x157   :  { %2364 = vmatmul.mubr.f32.gmra.mrb[50].mxu1 %v889_v34 }
 0x158   :  { %v695_v41 = vpop.f32.mrb[40].mxu0 }
 0x159   :  { %v3230_v43 = vadd.f32 %v3099_v38, %v695_v41  ;;  %v697_v45 = vpop.f32.mrb[41].mxu0 }
 0x15a   :  { %v698_v47 = vpop.f32.mrb[42].mxu0 }
 0x15b   :  { %v890_v50 = vmul.f32 %v3230_v43, %v3230_v43  ;;  %v3235_v51 = vadd.f32 %v3099_v38, %v698_v47  ;;  %v700_v54 = vpop.f32.mrb[43].mxu0 }
 0x15d   :  { %v891_v57 = vmul.f32 %v3235_v51, %v3235_v51  ;;  %2366 = vmatprep.mubr.f32.mxu1 %v890_v50 }
 0x15f   :  { %2367 = vmatmul.mubr.f32.gmra.mrb[52].mxu1 %v891_v57 }
 0x160   :  { %v703_v2 = vpop.f32.mrb[44].mxu0 }
 0x161   :  { %v3244_v3 = vadd.f32 %v3099_v38, %v703_v2  ;;  %v705_v6 = vpop.f32.mrb[45].mxu0 }
 0x162   :  { %v706_v8 = vpop.f32.mrb[46].mxu0 }
 0x163   :  { %v892_v10 = vmul.f32 %v3244_v3, %v3244_v3  ;;  %v3249_v13 = vadd.f32 %v3099_v38, %v706_v8  ;;  %v708_v15 = vpop.f32.mrb[47].mxu0 }
 0x165   :  { %v893_v17 = vmul.f32 %v3249_v13, %v3249_v13  ;;  %2369 = vmatprep.mubr.f32.mxu1 %v892_v10 }
 0x167   :  { %2370 = vmatmul.mubr.f32.gmra.mrb[54].mxu1 %v893_v17 }
 0x168   :  { %v711_v20 = vpop.f32.mrb[48].mxu0 }
 0x169   :  { %v3254_v22 = vadd.f32 %v3099_v38, %v711_v20  ;;  %v713_v25 = vpop.f32.mrb[49].mxu0 }
 0x16a   :  { %v714_v26 = vpop.f32.mrb[50].mxu0 }
 0x16b   :  { %v894_v27 = vmul.f32 %v3254_v22, %v3254_v22  ;;  %v3259_v30 = vadd.f32 %v3099_v38, %v714_v26  ;;  %v716_v34 = vpop.f32.mrb[51].mxu0 }
 0x16d   :  { %v895_v35 = vmul.f32 %v3259_v30, %v3259_v30  ;;  %2372 = vmatprep.mubr.f32.mxu1 %v894_v27 }
 0x16f   :  { %2373 = vmatmul.mubr.f32.gmra.mrb[56].mxu1 %v895_v35 }
 0x170   :  { %v719_v39 = vpop.f32.mrb[52].mxu0 }
 0x171   :  { %v3264_v41 = vadd.f32 %v3099_v38, %v719_v39  ;;  %v721_v45 = vpop.f32.mrb[53].mxu0 }
 0x172   :  { %v722_v47 = vpop.f32.mrb[54].mxu0 }
 0x173   :  { %v896_v50 = vmul.f32 %v3264_v41, %v3264_v41  ;;  %v3269_v54 = vadd.f32 %v3099_v38, %v722_v47  ;;  %v724_v57 = vpop.f32.mrb[55].mxu0 }
 0x175   :  { %v897_v59 = vmul.f32 %v3269_v54, %v3269_v54  ;;  %2375 = vmatprep.mubr.f32.mxu1 %v896_v50 }
 0x177   :  { %2376 = vmatmul.mubr.f32.gmra.mrb[58].mxu1 %v897_v59 }
 0x178   :  { %v727_v63 = vpop.f32.mrb[56].mxu0 }
 0x179   :  { %v3274_v2 = vadd.f32 %v3099_v38, %v727_v63  ;;  %v729_v6 = vpop.f32.mrb[57].mxu0 }
 0x17a   :  { %v730_v8 = vpop.f32.mrb[58].mxu0 }
 0x17b   :  { %v898_v10 = vmul.f32 %v3274_v2, %v3274_v2  ;;  %v3279_v15 = vadd.f32 %v3099_v38, %v730_v8  ;;  %v732_v17 = vpop.f32.mrb[59].mxu0 }
 0x17d   :  { %v899_v20 = vmul.f32 %v3279_v15, %v3279_v15  ;;  %2378 = vmatprep.mubr.f32.mxu1 %v898_v10 }
 0x17f   :  { %2379 = vmatmul.mubr.f32.gmra.mrb[60].mxu1 %v899_v20 }
 0x180   :  { %v735_v25 = vpop.f32.mrb[60].mxu0 }
 0x181   :  { %v3284_v26 = vadd.f32 %v3099_v38, %v735_v25  ;;  %v737_v27 = vpop.f32.mrb[61].mxu0 }
 0x182   :  { %v738_v34 = vpop.f32.mrb[62].mxu0 }
 0x183   :  { %v900_v35 = vmul.f32 %v3284_v26, %v3284_v26  ;;  %v3289_v39 = vadd.f32 %v3099_v38, %v738_v34  ;;  %v740_v45 = vpop.f32.mrb[63].mxu0 }
 0x185   :  { %v901_v47 = vmul.f32 %v3289_v39, %v3289_v39  ;;  %2381 = vmatprep.mubr.f32.mxu1 %v900_v35 }
 0x187   :  { %2382 = vmatmul.mubr.f32.gmra.mrb[62].mxu1 %v901_v47 }
 0x188   :  { %v743_v50 = vpop.f32.mrb[64].mxu0 }
 0x189   :  { %v3294_v57 = vadd.f32 %v3099_v38, %v743_v50  ;;  %v745_v59 = vpop.f32.mrb[65].mxu0 }
 0x18a   :  { %v746_v63 = vpop.f32.mrb[66].mxu0 }
 0x18b   :  { %v902_v6 = vmul.f32 %v3294_v57, %v3294_v57  ;;  %v3299_v8 = vadd.f32 %v3099_v38, %v746_v63  ;;  %v748_v10 = vpop.f32.mrb[67].mxu0 }
 0x18d   :  { %v903_v17 = vmul.f32 %v3299_v8, %v3299_v8  ;;  %2384 = vmatprep.mubr.f32.mxu1 %v902_v6 }
 0x18f   :  { %2385 = vmatmul.mubr.f32.gmra.mrb[64].mxu1 %v903_v17 }
 0x190   :  { %v751_v20 = vpop.f32.mrb[68].mxu0 }
 0x191   :  { %v3304_v25 = vadd.f32 %v3099_v38, %v751_v20  ;;  %v753_v27 = vpop.f32.mrb[69].mxu0 }
 0x192   :  { %v754_v34 = vpop.f32.mrb[70].mxu0 }
 0x193   :  { %v904_v35 = vmul.f32 %v3304_v25, %v3304_v25  ;;  %v3309_v45 = vadd.f32 %v3099_v38, %v754_v34  ;;  %v756_v47 = vpop.f32.mrb[71].mxu0 }
 0x195   :  { %v905_v50 = vmul.f32 %v3309_v45, %v3309_v45  ;;  %2387 = vmatprep.mubr.f32.mxu1 %v904_v35 }
 0x197   :  { %2388 = vmatmul.mubr.f32.gmra.mrb[66].mxu1 %v905_v50 }
 0x198   :  { %v759_v59 = vpop.f32.mrb[72].mxu0 }
 0x199   :  { %v3314_v63 = vadd.f32 %v3099_v38, %v759_v59  ;;  %v761_v6 = vpop.f32.mrb[73].mxu0 }
 0x19a   :  { %v762_v10 = vpop.f32.mrb[74].mxu0 }
 0x19b   :  { %3718 = vst [vmem:[#allocation2_spill] sm:$0xff] %v3314_v63  ;;  %v906_v17 = vmul.f32 %v3314_v63, %v3314_v63  ;;  %v3319_v20 = vadd.f32 %v3099_v38, %v762_v10  ;;  %v764_v27 = vpop.f32.mrb[75].mxu0 }
 0x19d   :  { %3719 = vst [vmem:[#allocation3_spill] sm:$0xff] %v3319_v20  ;;  %v907_v34 = vmul.f32 %v3319_v20, %v3319_v20  ;;  %2390 = vmatprep.mubr.f32.mxu1 %v906_v17 }
 0x19f   :  { %2391 = vmatmul.mubr.f32.gmra.mrb[68].mxu1 %v907_v34 }
 0x1a0   :  { %v767_v35 = vpop.f32.mrb[76].mxu0 }
 0x1a1   :  { %v3324_v47 = vadd.f32 %v3099_v38, %v767_v35  ;;  %v769_v50 = vpop.f32.mrb[77].mxu0 }
 0x1a2   :  { %v770_v59 = vpop.f32.mrb[78].mxu0 }
 0x1a3   :  { %3720 = vst [vmem:[#allocation4_spill] sm:$0xff] %v3324_v47  ;;  %v908_v6 = vmul.f32 %v3324_v47, %v3324_v47  ;;  %v3329_v63 = vadd.f32 %v3099_v38, %v770_v59  ;;  %v772_v10 = vpop.f32.mrb[79].mxu0 }
 0x1a5   :  { %3721 = vst [vmem:[#allocation5_spill] sm:$0xff] %v3329_v63  ;;  %v909_v27 = vmul.f32 %v3329_v63, %v3329_v63  ;;  %2393 = vmatprep.mubr.f32.mxu1 %v908_v6 }
 0x1a7   :  { %2394 = vmatmul.mubr.f32.gmra.mrb[70].mxu1 %v909_v27 }
 0x1a8   :  { %v775_v17 = vpop.f32.mrb[80].mxu0 }
 0x1a9   :  { %v3334_v34 = vadd.f32 %v3099_v38, %v775_v17  ;;  %v777_v35 = vpop.f32.mrb[81].mxu0 }
 0x1aa   :  { %v778_v20 = vpop.f32.mrb[82].mxu0 }
 0x1ab   :  { %3722 = vst [vmem:[#allocation6_spill] sm:$0xff] %v3334_v34  ;;  %v910_v50 = vmul.f32 %v3334_v34, %v3334_v34  ;;  %v3339_v47 = vadd.f32 %v3099_v38, %v778_v20  ;;  %v780_v59 = vpop.f32.mrb[83].mxu0 }
 0x1ad   :  { %3723 = vst [vmem:[#allocation7_spill] sm:$0xff] %v3339_v47  ;;  %v911_v10 = vmul.f32 %v3339_v47, %v3339_v47  ;;  %2396 = vmatprep.mubr.f32.mxu1 %v910_v50 }
 0x1af   :  { %2397 = vmatmul.mubr.f32.gmra.mrb[72].mxu1 %v911_v10 }
 0x1b0   :  { %v783_v6 = vpop.f32.mrb[84].mxu0 }
 0x1b1   :  { %v3344_v27 = vadd.f32 %v3099_v38, %v783_v6  ;;  %v785_v17 = vpop.f32.mrb[85].mxu0 }
 0x1b2   :  { %v786_v63 = vpop.f32.mrb[86].mxu0 }
 0x1b3   :  { %3724 = vst [vmem:[#allocation8_spill] sm:$0xff] %v3344_v27  ;;  %v912_v35 = vmul.f32 %v3344_v27, %v3344_v27  ;;  %v3349_v34 = vadd.f32 %v3099_v38, %v786_v63  ;;  %v788_v20 = vpop.f32.mrb[87].mxu0 }
 0x1b5   :  { %3725 = vst [vmem:[#allocation9_spill] sm:$0xff] %v3349_v34  ;;  %v913_v59 = vmul.f32 %v3349_v34, %v3349_v34  ;;  %2399 = vmatprep.mubr.f32.mxu1 %v912_v35 }
 0x1b7   :  { %2400 = vmatmul.mubr.f32.gmra.mrb[74].mxu1 %v913_v59 }
 0x1b8   :  { %v791_v50 = vpop.f32.mrb[88].mxu0 }
 0x1b9   :  { %v3354_v10 = vadd.f32 %v3099_v38, %v791_v50  ;;  %v793_v6 = vpop.f32.mrb[89].mxu0 }
 0x1ba   :  { %v794_v47 = vpop.f32.mrb[90].mxu0  ;;  %v3368_v6 = vadd.f32 %v3099_v38, %v3141_v7 }
 0x1bb   :  { %3726 = vst [vmem:[#allocation10_spill] sm:$0xff] %v3354_v10  ;;  %v914_v17 = vmul.f32 %v3354_v10, %v3354_v10  ;;  %v3359_v27 = vadd.f32 %v3099_v38, %v794_v47  ;;  %v796_v63 = vpop.f32.mrb[91].mxu0 }
 0x1bc   :  { %v918_v7 = vmul.f32 %v3368_v6, %v3368_v6 }
 0x1bd   :  { %v915_v20 = vmul.f32 %v3359_v27, %v3359_v27  ;;  %2402 = vmatprep.mubr.f32.mxu1 %v914_v17  ;;  %v3377_v17 = vadd.f32 %v3099_v38, %v3143_v9  ;;  %v3391_v9 = vadd.f32 %v3099_v38, %v3157_v21 }
 0x1bf   :  { %2403 = vmatmul.mubr.f32.gmra.mrb[76].mxu1 %v915_v20 }
 0x1c0   :  { %v799_v35 = vpop.f32.mrb[92].mxu0 }
 0x1c1   :  { %v3364_v59 = vadd.f32 %v3099_v38, %v799_v35  ;;  %v801_v50 = vpop.f32.mrb[93].mxu0  ;;  %v3385_v35 = vadd.f32 %v3099_v38, %v3155_v19  ;;  %v921_v19 = vmul.f32 %v3391_v9, %v3391_v9 }
 0x1c2   :  { %v802_v34 = vpop.f32.mrb[94].mxu0  ;;  %v3397_v50 = vadd.f32 %v3099_v38, %v3169_v31 }
 0x1c3   :  { %v916_v47 = vmul.f32 %v3364_v59, %v3364_v59  ;;  %v3373_v63 = vadd.f32 %v3099_v38, %v802_v34  ;;  %v804_v10 = vpop.f32.mrb[95].mxu0  ;;  %v919_v34 = vmul.f32 %v3377_v17, %v3377_v17 }
 0x1c4   :  { %v920_v10 = vmul.f32 %v3385_v35, %v3385_v35  ;;  %v922_v21 = vmul.f32 %v3397_v50, %v3397_v50 }
 0x1c5   :  { %v917_v20 = vmul.f32 %v3373_v63, %v3373_v63  ;;  %2405 = vmatprep.mubr.f32.mxu1 %v916_v47  ;;  %v3403_v47 = vadd.f32 %v3099_v38, %v3171_v33 }
 0x1c7   :  { %2406 = vmatmul.mubr.f32.gmra.mrb[78].mxu1 %v917_v20  ;;  %v3409_v20 = vadd.f32 %v3099_v38, %v3183_v46  ;;  %v923_v31 = vmul.f32 %v3403_v47, %v3403_v47 }
 0x1c8   :  { %2408 = vmatprep.mubr.f32.mxu1 %v918_v7  ;;  %v3415_v7 = vadd.f32 %v3099_v38, %v3185_v49 }
 0x1c9   :  { %v924_v33 = vmul.f32 %v3409_v20, %v3409_v20 }
 0x1ca   :  { %v925_v46 = vmul.f32 %v3415_v7, %v3415_v7 }
 0x1cb   :  { %2409 = vmatmul.mubr.f32.gmra.mrb[80].mxu1 %v919_v34  ;;  %v3421_v34 = vadd.f32 %v3099_v38, %v3197_v62 }
 0x1cc   :  { %2411 = vmatprep.mubr.f32.mxu1 %v920_v10  ;;  %v3427_v10 = vadd.f32 %v3099_v38, %v3199_v1 }
 0x1cd   :  { %v926_v49 = vmul.f32 %v3421_v34, %v3421_v34 }
 0x1ce   :  { %v927_v62 = vmul.f32 %v3427_v10, %v3427_v10 }
 0x1cf   :  { %2412 = vmatmul.mubr.f32.gmra.mrb[82].mxu1 %v921_v19  ;;  %v3433_v19 = vadd.f32 %v3099_v38, %v3209_v14  ;;  %v3449_v14 = vadd.f32 %v3099_v38, %v3237_v55  ;;  %v3464_v55 = vld [vmem:[%s3702_s4] ss:$0 sm:$0xff] }
 0x1d0   :  { %2414 = vmatprep.mubr.f32.mxu1 %v922_v21  ;;  %v3439_v21 = vadd.f32 %v3099_v38, %v3213_v18  ;;  %v3455_v18 = vadd.f32 %v3099_v38, %v3227_v37  ;;  %v3470_v37 = vadd.f32 %v3099_v38, %v3241_v61 }
 0x1d1   :  { %3727 = vst [vmem:[#allocation11_spill] sm:$0xff] %v3433_v19  ;;  %v928_v1 = vmul.f32 %v3433_v19, %v3433_v19  ;;  %3730 = vst [vmem:[#allocation14_spill] sm:$0xff] %v3449_v14 }
 0x1d2   :  { %3728 = vst [vmem:[#allocation12_spill] sm:$0xff] %v3439_v21  ;;  %3731 = vst [vmem:[#allocation15_spill] sm:$0xff] %v3455_v18 }
 0x1d3   :  { %2415 = vmatmul.mubr.f32.gmra.mrb[84].mxu1 %v923_v31  ;;  %v3445_v31 = vadd.f32 %v3099_v38, %v3223_v32  ;;  %v932_v32 = vmul.f32 %v3449_v14, %v3449_v14 }
 0x1d4   :  { %2417 = vmatprep.mubr.f32.mxu1 %v924_v33  ;;  %v929_v33 = vmul.f32 %v3439_v21, %v3439_v21 }
 0x1d5   :  { %3729 = vst [vmem:[#allocation13_spill] sm:$0xff] %v3445_v31 }
 0x1d7   :  { %2418 = vmatmul.mubr.f32.gmra.mrb[86].mxu1 %v925_v46  ;;  %v930_v46 = vmul.f32 %v3445_v31, %v3445_v31 }
 0x1d8   :  { %2420 = vmatprep.mubr.f32.mxu1 %v926_v49  ;;  %v931_v49 = vmul.f32 %v3455_v18, %v3455_v18 }
 0x1db   :  { %2421 = vmatmul.mubr.f32.gmra.mrb[88].mxu1 %v927_v62 }
 0x1dc   :  { %2423 = vmatprep.mubr.f32.mxu1 %v928_v1 }
 0x1df   :  { %2424 = vmatmul.mubr.f32.gmra.mrb[90].mxu1 %v929_v33 }
 0x1e0   :  { %2426 = vmatprep.mubr.f32.mxu1 %v930_v46  ;;  %v933_v46 = vmul.f32 %v3470_v37, %v3470_v37 }
 0x1e2   :  { %v2338_v62 = vpop.f32.mrb[32].mxu1 }
 0x1e3   :  { %v1029_v1 = vadd.f32 %v2338_v62, %v3464_v55  ;;  %v1023_v33 = vpop.f32.mrb[33].mxu1  ;;  %2427 = vmatmul.mubr.f32.gmra.mrb[92].mxu1 %v931_v49 }
 0x1e4   :  { %v1024_v14 = vadd.f32 %v3464_v55, %v1023_v33  ;;  %2429 = vmatprep.mubr.f32.mxu1 %v932_v32 }
 0x1e5   :  { %2600 = vrsqrt.f32 %v1029_v1 }
 0x1e6   :  { %2602 = vrsqrt.f32 %v1024_v14 }
 0x1e7   :  { %2430 = vmatmul.mubr.f32.gmra.mrb[94].mxu1 %v933_v46 }
 0x1ea   :  { %v2341_v31 = vpop.f32.mrb[34].mxu1 }
 0x1eb   :  { %v1039_v18 = vadd.f32 %v2341_v31, %v3464_v55  ;;  %v1033_v19 = vpop.f32.mrb[35].mxu1 }
 0x1ec   :  { %v1034_v38 = vadd.f32 %v3464_v55, %v1033_v19 }
 0x1ed   :  { %2604 = vrsqrt.f32 %v1039_v18 }
 0x1ee   :  { %2606 = vrsqrt.f32 %v1034_v38 }
 0x1ef   :  { %v2601_v61 = vpop.eup %2600 }
 0x1f0   :  { %v2603_v62 = vpop.eup %2602  ;;  %v1407_v49 = vmul.f32 %v2601_v61, %v3107_v44 }
 0x1f1   :  { %v1406_v32 = vmul.f32 %v2603_v62, %v3102_v40 }
 0x1f2   :  { %v2344_v33 = vpop.f32.mrb[36].mxu1 }
 0x1f3   :  { %v2036_v21 = vpack.c.bf16 %v1407_v49, %v1406_v32  ;;  %v1049_v1 = vadd.f32 %v2344_v33, %v3464_v55  ;;  %v1043_v14 = vpop.f32.mrb[37].mxu1 }
 0x1f4   :  { %v1044_v46 = vadd.f32 %v3464_v55, %v1043_v14 }
 0x1f5   :  { %2037 = vst [vmem:[%s3703_s5] sm:$0xff] %v2036_v21   ;;  %2608 = vrsqrt.f32 %v1049_v1 }
 0x1f6   :  { %2610 = vrsqrt.f32 %v1044_v46 }
 0x1f7   :  { %v2605_v19 = vpop.eup %2604 }
 0x1f8   :  { %v2607_v31 = vpop.eup %2606  ;;  %v1409_v18 = vmul.f32 %v2605_v19, %v3117_v52 }
 0x1f9   :  { %v1408_v44 = vmul.f32 %v2607_v31, %v3112_v48 }
 0x1fa   :  { %v2347_v40 = vpop.f32.mrb[38].mxu1 }
 0x1fb   :  { %v2041_v38 = vpack.c.bf16 %v1409_v18, %v1408_v44  ;;  %v1059_v61 = vadd.f32 %v2347_v40, %v3464_v55  ;;  %v1053_v62 = vpop.f32.mrb[39].mxu1 }
 0x1fc   :  { %v1054_v49 = vadd.f32 %v3464_v55, %v1053_v62 }
 0x1fd   :  { %2193 = vst [vmem:[%s3703_s5 + $0x8] sm:$0xff] %v2041_v38   ;;  %2612 = vrsqrt.f32 %v1059_v61 }
 0x1fe   :  { %2614 = vrsqrt.f32 %v1054_v49 }
 0x1ff   :  { %v2609_v21 = vpop.eup %2608 }
 0x200   :  { %v2611_v32 = vpop.eup %2610  ;;  %v1411_v33 = vmul.f32 %v2609_v21, %v3127_v60 }
 0x201   :  { %v1410_v52 = vmul.f32 %v2611_v32, %v3122_v56 }
 0x202   :  { %v2350_v48 = vpop.f32.mrb[40].mxu1 }
 0x203   :  { %v2046_v1 = vpack.c.bf16 %v1411_v33, %v1410_v52  ;;  %v1069_v14 = vadd.f32 %v2350_v48, %v3464_v55  ;;  %v1063_v46 = vpop.f32.mrb[41].mxu1 }
 0x204   :  { %v1064_v19 = vadd.f32 %v3464_v55, %v1063_v46 }
 0x205   :  { %2194 = vst [vmem:[%s3703_s5 + $0x10] sm:$0xff] %v2046_v1   ;;  %2616 = vrsqrt.f32 %v1069_v14 }
 0x206   :  { %2618 = vrsqrt.f32 %v1064_v19 }
 0x207   :  { %v2613_v31 = vpop.eup %2612 }
 0x208   :  { %v2615_v18 = vpop.eup %2614  ;;  %v1413_v44 = vmul.f32 %v2613_v31, %v3137_v4 }
 0x209   :  { %v1412_v60 = vmul.f32 %v2615_v18, %v3132_v0 }
 0x20a   :  { %v2353_v56 = vpop.f32.mrb[42].mxu1 }
 0x20b   :  { %v2051_v40 = vpack.c.bf16 %v1413_v44, %v1412_v60  ;;  %v1079_v38 = vadd.f32 %v2353_v56, %v3464_v55  ;;  %v1073_v61 = vpop.f32.mrb[43].mxu1 }
 0x20c   :  { %v1074_v62 = vadd.f32 %v3464_v55, %v1073_v61 }
 0x20d   :  { %2195 = vst [vmem:[%s3703_s5 + $0x18] sm:$0xff] %v2051_v40   ;;  %2620 = vrsqrt.f32 %v1079_v38 }
 0x20e   :  { %2622 = vrsqrt.f32 %v1074_v62 }
 0x20f   :  { %v2617_v49 = vpop.eup %2616 }
 0x210   :  { %v2619_v21 = vpop.eup %2618  ;;  %v1415_v32 = vmul.f32 %v2617_v49, %v3151_v16 }
 0x211   :  { %v1414_v4 = vmul.f32 %v2619_v21, %v3146_v12 }
 0x212   :  { %v2356_v0 = vpop.f32.mrb[44].mxu1 }
 0x213   :  { %v2056_v33 = vpack.c.bf16 %v1415_v32, %v1414_v4  ;;  %v1089_v52 = vadd.f32 %v2356_v0, %v3464_v55  ;;  %v1083_v48 = vpop.f32.mrb[45].mxu1 }
 0x214   :  { %v1084_v1 = vadd.f32 %v3464_v55, %v1083_v48 }
 0x215   :  { %2196 = vst [vmem:[%s3703_s5 + $0x20] sm:$0xff] %v2056_v33   ;;  %2624 = vrsqrt.f32 %v1089_v52 }
 0x216   :  { %2626 = vrsqrt.f32 %v1084_v1 }
 0x217   :  { %v2621_v14 = vpop.eup %2620 }
 0x218   :  { %v2623_v46 = vpop.eup %2622  ;;  %v1417_v19 = vmul.f32 %v2621_v14, %v3165_v28 }
 0x219   :  { %v1416_v16 = vmul.f32 %v2623_v46, %v3160_v24 }
 0x21a   :  { %v2359_v12 = vpop.f32.mrb[46].mxu1 }
 0x21b   :  { %v2061_v31 = vpack.c.bf16 %v1417_v19, %v1416_v16  ;;  %v1099_v18 = vadd.f32 %v2359_v12, %v3464_v55  ;;  %v1093_v44 = vpop.f32.mrb[47].mxu1 }
 0x21c   :  { %v1094_v60 = vadd.f32 %v3464_v55, %v1093_v44 }
 0x21d   :  { %2197 = vst [vmem:[%s3703_s5 + $0x28] sm:$0xff] %v2061_v31   ;;  %2628 = vrsqrt.f32 %v1099_v18 }
 0x21e   :  { %2630 = vrsqrt.f32 %v1094_v60 }
 0x21f   :  { %v2625_v56 = vpop.eup %2624 }
 0x220   :  { %v2627_v40 = vpop.eup %2626  ;;  %v1419_v38 = vmul.f32 %v2625_v56, %v3179_v42 }
 0x221   :  { %v1418_v28 = vmul.f32 %v2627_v40, %v3174_v36 }
 0x222   :  { %v2362_v24 = vpop.f32.mrb[48].mxu1 }
 0x223   :  { %v2066_v61 = vpack.c.bf16 %v1419_v38, %v1418_v28  ;;  %v1109_v62 = vadd.f32 %v2362_v24, %v3464_v55  ;;  %v1103_v49 = vpop.f32.mrb[49].mxu1 }
 0x224   :  { %v1104_v21 = vadd.f32 %v3464_v55, %v1103_v49 }
 0x225   :  { %2198 = vst [vmem:[%s3703_s5 + $0x30] sm:$0xff] %v2066_v61   ;;  %2632 = vrsqrt.f32 %v1109_v62 }
 0x226   :  { %2634 = vrsqrt.f32 %v1104_v21 }
 0x227   :  { %v2629_v32 = vpop.eup %2628 }
 0x228   :  { %v2631_v4 = vpop.eup %2630  ;;  %v1421_v0 = vmul.f32 %v2629_v32, %v3193_v58 }
 0x229   :  { %v1420_v42 = vmul.f32 %v2631_v4, %v3188_v53 }
 0x22a   :  { %v2365_v36 = vpop.f32.mrb[50].mxu1 }
 0x22b   :  { %v2071_v33 = vpack.c.bf16 %v1421_v0, %v1420_v42  ;;  %v1119_v52 = vadd.f32 %v2365_v36, %v3464_v55  ;;  %v1113_v48 = vpop.f32.mrb[51].mxu1 }
 0x22c   :  { %v1114_v1 = vadd.f32 %v3464_v55, %v1113_v48 }
 0x22d   :  { %2199 = vst [vmem:[%s3703_s5 + $0x38] sm:$0xff] %v2071_v33   ;;  %2636 = vrsqrt.f32 %v1119_v52 }
 0x22e   :  { %2638 = vrsqrt.f32 %v1114_v1 }
 0x22f   :  { %v2633_v14 = vpop.eup %2632 }
 0x230   :  { %v2635_v46 = vpop.eup %2634  ;;  %v1423_v19 = vmul.f32 %v2633_v14, %v3207_v11 }
 0x231   :  { %v1422_v58 = vmul.f32 %v2635_v46, %v3202_v5 }
 0x232   :  { %v2368_v53 = vpop.f32.mrb[52].mxu1 }
 0x233   :  { %v2076_v16 = vpack.c.bf16 %v1423_v19, %v1422_v58  ;;  %v1129_v12 = vadd.f32 %v2368_v53, %v3464_v55  ;;  %v1123_v31 = vpop.f32.mrb[53].mxu1 }
 0x234   :  { %v1124_v18 = vadd.f32 %v3464_v55, %v1123_v31 }
 0x235   :  { %2200 = vst [vmem:[%s3703_s5 + $0x40] sm:$0xff] %v2076_v16   ;;  %2640 = vrsqrt.f32 %v1129_v12 }
 0x236   :  { %2642 = vrsqrt.f32 %v1124_v18 }
 0x237   :  { %v2637_v44 = vpop.eup %2636 }
 0x238   :  { %v2639_v60 = vpop.eup %2638  ;;  %v1425_v56 = vmul.f32 %v2637_v44, %v3221_v29 }
 0x239   :  { %v1424_v11 = vmul.f32 %v2639_v60, %v3216_v23 }
 0x23a   :  { %v2371_v5 = vpop.f32.mrb[54].mxu1 }
 0x23b   :  { %v2081_v40 = vpack.c.bf16 %v1425_v56, %v1424_v11  ;;  %v1139_v38 = vadd.f32 %v2371_v5, %v3464_v55  ;;  %v1133_v28 = vpop.f32.mrb[55].mxu1 }
 0x23c   :  { %v1134_v24 = vadd.f32 %v3464_v55, %v1133_v28 }
 0x23d   :  { %2201 = vst [vmem:[%s3703_s5 + $0x48] sm:$0xff] %v2081_v40   ;;  %2644 = vrsqrt.f32 %v1139_v38 }
 0x23e   :  { %2646 = vrsqrt.f32 %v1134_v24 }
 0x23f   :  { %v2641_v61 = vpop.eup %2640 }
 0x240   :  { %v2643_v62 = vpop.eup %2642  ;;  %v1427_v49 = vmul.f32 %v2641_v61, %v3235_v51 }
 0x241   :  { %v1426_v29 = vmul.f32 %v2643_v62, %v3230_v43 }
 0x242   :  { %v2374_v23 = vpop.f32.mrb[56].mxu1 }
 0x243   :  { %v2086_v21 = vpack.c.bf16 %v1427_v49, %v1426_v29  ;;  %v1149_v32 = vadd.f32 %v2374_v23, %v3464_v55  ;;  %v1143_v4 = vpop.f32.mrb[57].mxu1 }
 0x244   :  { %v1144_v0 = vadd.f32 %v3464_v55, %v1143_v4 }
 0x245   :  { %2202 = vst [vmem:[%s3703_s5 + $0x50] sm:$0xff] %v2086_v21   ;;  %2648 = vrsqrt.f32 %v1149_v32 }
 0x246   :  { %2650 = vrsqrt.f32 %v1144_v0 }
 0x247   :  { %v2645_v42 = vpop.eup %2644 }
 0x248   :  { %v2647_v36 = vpop.eup %2646  ;;  %v1429_v33 = vmul.f32 %v2645_v42, %v3249_v13 }
 0x249   :  { %v1428_v51 = vmul.f32 %v2647_v36, %v3244_v3 }
 0x24a   :  { %v2377_v43 = vpop.f32.mrb[58].mxu1 }
 0x24b   :  { %v2091_v52 = vpack.c.bf16 %v1429_v33, %v1428_v51  ;;  %v1159_v48 = vadd.f32 %v2377_v43, %v3464_v55  ;;  %v1153_v1 = vpop.f32.mrb[59].mxu1 }
 0x24c   :  { %v1154_v14 = vadd.f32 %v3464_v55, %v1153_v1 }
 0x24d   :  { %2203 = vst [vmem:[%s3703_s5 + $0x58] sm:$0xff] %v2091_v52   ;;  %2652 = vrsqrt.f32 %v1159_v48 }
 0x24e   :  { %2654 = vrsqrt.f32 %v1154_v14 }
 0x24f   :  { %v2649_v46 = vpop.eup %2648 }
 0x250   :  { %v2651_v19 = vpop.eup %2650  ;;  %v1431_v58 = vmul.f32 %v2649_v46, %v3259_v30 }
 0x251   :  { %v1430_v13 = vmul.f32 %v2651_v19, %v3254_v22 }
 0x252   :  { %v2380_v3 = vpop.f32.mrb[60].mxu1 }
 0x253   :  { %v2096_v53 = vpack.c.bf16 %v1431_v58, %v1430_v13  ;;  %v1169_v16 = vadd.f32 %v2380_v3, %v3464_v55  ;;  %v1163_v12 = vpop.f32.mrb[61].mxu1 }
 0x254   :  { %v1164_v31 = vadd.f32 %v3464_v55, %v1163_v12 }
 0x255   :  { %2204 = vst [vmem:[%s3703_s5 + $0x60] sm:$0xff] %v2096_v53   ;;  %2656 = vrsqrt.f32 %v1169_v16 }
 0x256   :  { %2658 = vrsqrt.f32 %v1164_v31 }
 0x257   :  { %v2653_v18 = vpop.eup %2652 }
 0x258   :  { %v2655_v44 = vpop.eup %2654  ;;  %v1433_v60 = vmul.f32 %v2653_v18, %v3269_v54  ;;  %v3732_v18 = vld [vmem:[#allocation3_spill] sm:$0xff] }
 0x259   :  { %v1432_v30 = vmul.f32 %v2655_v44, %v3264_v41 }
 0x25a   :  { %v2383_v22 = vpop.f32.mrb[62].mxu1 }
 0x25b   :  { %v2101_v56 = vpack.c.bf16 %v1433_v60, %v1432_v30  ;;  %v1179_v11 = vadd.f32 %v2383_v22, %v3464_v55  ;;  %v1173_v5 = vpop.f32.mrb[63].mxu1 }
 0x25c   :  { %v1174_v40 = vadd.f32 %v3464_v55, %v1173_v5 }
 0x25d   :  { %2205 = vst [vmem:[%s3703_s5 + $0x68] sm:$0xff] %v2101_v56   ;;  %2660 = vrsqrt.f32 %v1179_v11 }
 0x25e   :  { %2662 = vrsqrt.f32 %v1174_v40 }
 0x25f   :  { %v2657_v38 = vpop.eup %2656 }
 0x260   :  { %v2659_v28 = vpop.eup %2658  ;;  %v1435_v24 = vmul.f32 %v2657_v38, %v3279_v15  ;;  %v3734_v38 = vld [vmem:[#allocation5_spill] sm:$0xff] }
 0x261   :  { %v1434_v54 = vmul.f32 %v2659_v28, %v3274_v2 }
 0x262   :  { %v2386_v41 = vpop.f32.mrb[64].mxu1 }
 0x263   :  { %v2106_v61 = vpack.c.bf16 %v1435_v24, %v1434_v54  ;;  %v1189_v62 = vadd.f32 %v2386_v41, %v3464_v55  ;;  %v1183_v49 = vpop.f32.mrb[65].mxu1  ;;  %v3735_v24 = vld [vmem:[#allocation4_spill] sm:$0xff] }
 0x264   :  { %v1184_v29 = vadd.f32 %v3464_v55, %v1183_v49 }
 0x265   :  { %2206 = vst [vmem:[%s3703_s5 + $0x70] sm:$0xff] %v2106_v61   ;;  %2664 = vrsqrt.f32 %v1189_v62 }
 0x266   :  { %2666 = vrsqrt.f32 %v1184_v29 }
 0x267   :  { %v2661_v23 = vpop.eup %2660 }
 0x268   :  { %v2663_v21 = vpop.eup %2662  ;;  %v1437_v32 = vmul.f32 %v2661_v23, %v3289_v39 }
 0x269   :  { %v1436_v15 = vmul.f32 %v2663_v21, %v3284_v26 }
 0x26a   :  { %v2389_v2 = vpop.f32.mrb[66].mxu1 }
 0x26b   :  { %v2111_v4 = vpack.c.bf16 %v1437_v32, %v1436_v15  ;;  %v1199_v0 = vadd.f32 %v2389_v2, %v3464_v55  ;;  %v1193_v42 = vpop.f32.mrb[67].mxu1  ;;  %v3736_v32 = vld [vmem:[#allocation7_spill] sm:$0xff]  ;;  %v3737_v2 = vld [vmem:[#allocation6_spill] sm:$0xff] }
 0x26c   :  { %v1194_v36 = vadd.f32 %v3464_v55, %v1193_v42 }
 0x26d   :  { %2207 = vst [vmem:[%s3703_s5 + $0x78] sm:$0xff] %v2111_v4   ;;  %2668 = vrsqrt.f32 %v1199_v0 }
 0x26e   :  { %2670 = vrsqrt.f32 %v1194_v36 }
 0x26f   :  { %v2665_v33 = vpop.eup %2664 }
 0x270   :  { %v2667_v51 = vpop.eup %2666  ;;  %v1439_v43 = vmul.f32 %v2665_v33, %v3299_v8 }
 0x271   :  { %v1438_v39 = vmul.f32 %v2667_v51, %v3294_v57 }
 0x272   :  { %v2392_v26 = vpop.f32.mrb[68].mxu1 }
 0x273   :  { %v2116_v52 = vpack.c.bf16 %v1439_v43, %v1438_v39  ;;  %v1209_v48 = vadd.f32 %v2392_v26, %v3464_v55  ;;  %v1203_v1 = vpop.f32.mrb[69].mxu1  ;;  %v3738_v26 = vld [vmem:[#allocation9_spill] sm:$0xff] }
 0x274   :  { %v1204_v14 = vadd.f32 %v3464_v55, %v1203_v1 }
 0x275   :  { %2208 = vst [vmem:[%s3703_s5 + $0x80] sm:$0xff] %v2116_v52   ;;  %2672 = vrsqrt.f32 %v1209_v48  ;;  %v3739_v48 = vld [vmem:[#allocation8_spill] sm:$0xff] }
 0x276   :  { %2674 = vrsqrt.f32 %v1204_v14 }
 0x277   :  { %v2669_v46 = vpop.eup %2668 }
 0x278   :  { %v2671_v19 = vpop.eup %2670  ;;  %v1441_v58 = vmul.f32 %v2669_v46, %v3309_v45  ;;  %v3733_v45 = vld [vmem:[#allocation2_spill] sm:$0xff] }
 0x279   :  { %v1440_v8 = vmul.f32 %v2671_v19, %v3304_v25 }
 0x27a   :  { %v2395_v57 = vpop.f32.mrb[70].mxu1 }
 0x27b   :  { %v2121_v13 = vpack.c.bf16 %v1441_v58, %v1440_v8  ;;  %v1219_v3 = vadd.f32 %v2395_v57, %v3464_v55  ;;  %v1213_v53 = vpop.f32.mrb[71].mxu1 }
 0x27c   :  { %v1214_v16 = vadd.f32 %v3464_v55, %v1213_v53 }
 0x27d   :  { %2209 = vst [vmem:[%s3703_s5 + $0x88] sm:$0xff] %v2121_v13   ;;  %2676 = vrsqrt.f32 %v1219_v3 }
 0x27e   :  { %2678 = vrsqrt.f32 %v1214_v16 }
 0x27f   :  { %v2673_v12 = vpop.eup %2672 }
 0x280   :  { %v2675_v31 = vpop.eup %2674  ;;  %v1443_v44 = vmul.f32 %v2673_v12, %v3732_v18  ;;  %v3740_v18 = vld [vmem:[#allocation10_spill] sm:$0xff] }
 0x281   :  { %v1442_v60 = vmul.f32 %v2675_v31, %v3733_v45 }
 0x282   :  { %v2398_v25 = vpop.f32.mrb[72].mxu1 }
 0x283   :  { %v2126_v30 = vpack.c.bf16 %v1443_v44, %v1442_v60  ;;  %v1229_v22 = vadd.f32 %v2398_v25, %v3464_v55  ;;  %v1223_v56 = vpop.f32.mrb[73].mxu1 }
 0x284   :  { %v1224_v11 = vadd.f32 %v3464_v55, %v1223_v56 }
 0x285   :  { %2210 = vst [vmem:[%s3703_s5 + $0x90] sm:$0xff] %v2126_v30   ;;  %2680 = vrsqrt.f32 %v1229_v22 }
 0x286   :  { %2682 = vrsqrt.f32 %v1224_v11 }
 0x287   :  { %v2677_v5 = vpop.eup %2676 }
 0x288   :  { %v2679_v40 = vpop.eup %2678  ;;  %v1445_v28 = vmul.f32 %v2677_v5, %v3734_v38 }
 0x289   :  { %v1444_v54 = vmul.f32 %v2679_v40, %v3735_v24 }
 0x28a   :  { %v2401_v41 = vpop.f32.mrb[74].mxu1 }
 0x28b   :  { %v2131_v61 = vpack.c.bf16 %v1445_v28, %v1444_v54  ;;  %v1239_v62 = vadd.f32 %v2401_v41, %v3464_v55  ;;  %v1233_v49 = vpop.f32.mrb[75].mxu1 }
 0x28c   :  { %v1234_v29 = vadd.f32 %v3464_v55, %v1233_v49 }
 0x28d   :  { %2211 = vst [vmem:[%s3703_s5 + $0x98] sm:$0xff] %v2131_v61   ;;  %2684 = vrsqrt.f32 %v1239_v62 }
 0x28e   :  { %2686 = vrsqrt.f32 %v1234_v29 }
 0x28f   :  { %v2681_v23 = vpop.eup %2680 }
 0x290   :  { %v2683_v21 = vpop.eup %2682  ;;  %v1447_v15 = vmul.f32 %v2681_v23, %v3736_v32 }
 0x291   :  { %v1446_v4 = vmul.f32 %v2683_v21, %v3737_v2 }
 0x292   :  { %v2404_v0 = vpop.f32.mrb[76].mxu1 }
 0x293   :  { %v2136_v42 = vpack.c.bf16 %v1447_v15, %v1446_v4  ;;  %v1249_v36 = vadd.f32 %v2404_v0, %v3464_v55  ;;  %v1243_v33 = vpop.f32.mrb[77].mxu1 }
 0x294   :  { %v1244_v51 = vadd.f32 %v3464_v55, %v1243_v33 }
 0x295   :  { %2212 = vst [vmem:[%s3703_s5 + $0xa0] sm:$0xff] %v2136_v42   ;;  %2688 = vrsqrt.f32 %v1249_v36 }
 0x296   :  { %2690 = vrsqrt.f32 %v1244_v51 }
 0x297   :  { %v2685_v43 = vpop.eup %2684 }
 0x298   :  { %v2687_v39 = vpop.eup %2686  ;;  %v1449_v52 = vmul.f32 %v2685_v43, %v3738_v26 }
 0x299   :  { %v1448_v1 = vmul.f32 %v2687_v39, %v3739_v48 }
 0x29a   :  { %v2407_v14 = vpop.f32.mrb[78].mxu1 }
 0x29b   :  { %v2141_v46 = vpack.c.bf16 %v1449_v52, %v1448_v1  ;;  %v1259_v19 = vadd.f32 %v2407_v14, %v3464_v55  ;;  %v1253_v58 = vpop.f32.mrb[79].mxu1 }
 0x29c   :  { %v1254_v8 = vadd.f32 %v3464_v55, %v1253_v58 }
 0x29d   :  { %2213 = vst [vmem:[%s3703_s5 + $0xa8] sm:$0xff] %v2141_v46   ;;  %2692 = vrsqrt.f32 %v1259_v19 }
 0x29e   :  { %2694 = vrsqrt.f32 %v1254_v8  ;;  %v2410_v57 = vpop.f32.mrb[80].mxu1 }
 0x29f   :  { %v2689_v13 = vpop.eup %2688  ;;  %v1269_v3 = vadd.f32 %v2410_v57, %v3464_v55  ;;  %v1263_v53 = vpop.f32.mrb[81].mxu1 }
 0x2a0   :  { %v2691_v16 = vpop.eup %2690  ;;  %v1451_v12 = vmul.f32 %v2689_v13, %v3359_v27  ;;  %v1264_v31 = vadd.f32 %v3464_v55, %v1263_v53 }
 0x2a1   :  { %v1450_v44 = vmul.f32 %v2691_v16, %v3740_v18  ;;  %2696 = vrsqrt.f32 %v1269_v3 }
 0x2a2   :  { %2698 = vrsqrt.f32 %v1264_v31  ;;  %v2413_v45 = vpop.f32.mrb[82].mxu1 }
 0x2a3   :  { %v2146_v60 = vpack.c.bf16 %v1451_v12, %v1450_v44  ;;  %v1279_v25 = vadd.f32 %v2413_v45, %v3464_v55  ;;  %v1273_v30 = vpop.f32.mrb[83].mxu1 }
 0x2a4   :  { %v1274_v22 = vadd.f32 %v3464_v55, %v1273_v30 }
 0x2a5   :  { %2214 = vst [vmem:[%s3703_s5 + $0xb0] sm:$0xff] %v2146_v60   ;;  %2700 = vrsqrt.f32 %v1279_v25  ;;  %v3741_v60 = vld [vmem:[#allocation12_spill] sm:$0xff] }
 0x2a6   :  { %2702 = vrsqrt.f32 %v1274_v22  ;;  %v2416_v27 = vpop.f32.mrb[84].mxu1 }
 0x2a7   :  { %v2693_v56 = vpop.eup %2692  ;;  %v1289_v11 = vadd.f32 %v2416_v27, %v3464_v55  ;;  %v1283_v5 = vpop.f32.mrb[85].mxu1 }
 0x2a8   :  { %v2695_v40 = vpop.eup %2694  ;;  %v1453_v38 = vmul.f32 %v2693_v56, %v3373_v63  ;;  %v1284_v28 = vadd.f32 %v3464_v55, %v1283_v5  ;;  %v3743_v56 = vld [vmem:[#allocation15_spill] sm:$0xff] }
 0x2a9   :  { %v1452_v24 = vmul.f32 %v2695_v40, %v3364_v59  ;;  %2704 = vrsqrt.f32 %v1289_v11 }
 0x2aa   :  { %2706 = vrsqrt.f32 %v1284_v28  ;;  %v2419_v54 = vpop.f32.mrb[86].mxu1 }
 0x2ab   :  { %v2697_v41 = vpop.eup %2696  ;;  %v2151_v61 = vpack.c.bf16 %v1453_v38, %v1452_v24  ;;  %v1299_v62 = vadd.f32 %v2419_v54, %v3464_v55  ;;  %v1293_v49 = vpop.f32.mrb[87].mxu1  ;;  %v3745_v54 = vld [vmem:[#allocation14_spill] sm:$0xff] }
 0x2ac   :  { %v2699_v29 = vpop.eup %2698  ;;  %v1455_v23 = vmul.f32 %v2697_v41, %v3377_v17  ;;  %v1294_v21 = vadd.f32 %v3464_v55, %v1293_v49 }
 0x2ad   :  { %2215 = vst [vmem:[%s3703_s5 + $0xb8] sm:$0xff] %v2151_v61   ;;  %v1454_v63 = vmul.f32 %v2699_v29, %v3368_v6  ;;  %2708 = vrsqrt.f32 %v1299_v62 }
 0x2ae   :  { %2710 = vrsqrt.f32 %v1294_v21  ;;  %v2422_v59 = vpop.f32.mrb[88].mxu1 }
 0x2af   :  { %v2701_v32 = vpop.eup %2700  ;;  %v2156_v15 = vpack.c.bf16 %v1455_v23, %v1454_v63  ;;  %v1309_v2 = vadd.f32 %v2422_v59, %v3464_v55  ;;  %v1303_v4 = vpop.f32.mrb[89].mxu1 }
 0x2b0   :  { %v2703_v0 = vpop.eup %2702  ;;  %v1457_v42 = vmul.f32 %v2701_v32, %v3391_v9  ;;  %v1304_v17 = vadd.f32 %v3464_v55, %v1303_v4 }
 0x2b1   :  { %2216 = vst [vmem:[%s3703_s5 + $0xc0] sm:$0xff] %v2156_v15   ;;  %v1456_v36 = vmul.f32 %v2703_v0, %v3385_v35  ;;  %2712 = vrsqrt.f32 %v1309_v2 }
 0x2b2   :  { %2714 = vrsqrt.f32 %v1304_v17  ;;  %v2425_v6 = vpop.f32.mrb[90].mxu1 }
 0x2b3   :  { %v2705_v33 = vpop.eup %2704  ;;  %v2161_v51 = vpack.c.bf16 %v1457_v42, %v1456_v36  ;;  %v1319_v43 = vadd.f32 %v2425_v6, %v3464_v55  ;;  %v1313_v39 = vpop.f32.mrb[91].mxu1 }
 0x2b4   :  { %v2707_v26 = vpop.eup %2706  ;;  %v1459_v52 = vmul.f32 %v2705_v33, %v3403_v47  ;;  %v1314_v9 = vadd.f32 %v3464_v55, %v1313_v39 }
 0x2b5   :  { %2217 = vst [vmem:[%s3703_s5 + $0xc8] sm:$0xff] %v2161_v51   ;;  %v1458_v48 = vmul.f32 %v2707_v26, %v3397_v50  ;;  %2716 = vrsqrt.f32 %v1319_v43 }
 0x2b6   :  { %2718 = vrsqrt.f32 %v1314_v9  ;;  %v2428_v35 = vpop.f32.mrb[92].mxu1 }
 0x2b7   :  { %v2709_v1 = vpop.eup %2708  ;;  %v2166_v14 = vpack.c.bf16 %v1459_v52, %v1458_v48  ;;  %v1329_v46 = vadd.f32 %v2428_v35, %v3464_v55  ;;  %v1323_v19 = vpop.f32.mrb[93].mxu1 }
 0x2b8   :  { %v2711_v58 = vpop.eup %2710  ;;  %v1461_v8 = vmul.f32 %v2709_v1, %v3415_v7  ;;  %v1324_v47 = vadd.f32 %v3464_v55, %v1323_v19 }
 0x2b9   :  { %2218 = vst [vmem:[%s3703_s5 + $0xd0] sm:$0xff] %v2166_v14   ;;  %v1460_v57 = vmul.f32 %v2711_v58, %v3409_v20  ;;  %2720 = vrsqrt.f32 %v1329_v46 }
 0x2ba   :  { %2722 = vrsqrt.f32 %v1324_v47  ;;  %v2431_v50 = vpop.f32.mrb[94].mxu1 }
 0x2bb   :  { %v2713_v13 = vpop.eup %2712  ;;  %v2171_v3 = vpack.c.bf16 %v1461_v8, %v1460_v57  ;;  %v1339_v53 = vadd.f32 %v2431_v50, %v3464_v55  ;;  %v1333_v16 = vpop.f32.mrb[95].mxu1 }
 0x2bc   :  { %v2715_v12 = vpop.eup %2714  ;;  %v1463_v31 = vmul.f32 %v2713_v13, %v3427_v10  ;;  %v1334_v7 = vadd.f32 %v3464_v55, %v1333_v16  ;;  %v3742_v10 = vld [vmem:[#allocation11_spill] sm:$0xff] }
 0x2bd   :  { %2219 = vst [vmem:[%s3703_s5 + $0xd8] sm:$0xff] %v2171_v3   ;;  %v1462_v18 = vmul.f32 %v2715_v12, %v3421_v34  ;;  %2724 = vrsqrt.f32 %v1339_v53  ;;  %v3744_v34 = vld [vmem:[#allocation13_spill] sm:$0xff] }
 0x2be   :  { %2726 = vrsqrt.f32 %v1334_v7 }
 0x2bf   :  { %v2717_v20 = vpop.eup %2716  ;;  %v2176_v44 = vpack.c.bf16 %v1463_v31, %v1462_v18 }
 0x2c0   :  { %v2719_v45 = vpop.eup %2718  ;;  %v1465_v25 = vmul.f32 %v2717_v20, %v3741_v60 }
 0x2c1   :  { %2220 = vst [vmem:[%s3703_s5 + $0xe0] sm:$0xff] %v2176_v44   ;;  %v1464_v30 = vmul.f32 %v2719_v45, %v3742_v10 }
 0x2c3   :  { %v2721_v55 = vpop.eup %2720  ;;  %v2181_v22 = vpack.c.bf16 %v1465_v25, %v1464_v30 }
 0x2c4   :  { %v2723_v27 = vpop.eup %2722  ;;  %v1467_v11 = vmul.f32 %v2721_v55, %v3743_v56 }
 0x2c5   :  { %2221 = vst [vmem:[%s3703_s5 + $0xe8] sm:$0xff] %v2181_v22   ;;  %v1466_v5 = vmul.f32 %v2723_v27, %v3744_v34 }
 0x2c7   :  { %v2725_v40 = vpop.eup %2724  ;;  %v2186_v38 = vpack.c.bf16 %v1467_v11, %v1466_v5 }
 0x2c8   :  { %v2727_v28 = vpop.eup %2726  ;;  %v1469_v24 = vmul.f32 %v2725_v40, %v3470_v37 }
 0x2c9   :  { %2222 = vst [vmem:[%s3703_s5 + $0xf0] sm:$0xff] %v2186_v38   ;;  %v1468_v41 = vmul.f32 %v2727_v28, %v3745_v54 }
 0x2cb   :  { %v2191_v61 = vpack.c.bf16 %v1469_v24, %v1468_v41 }
 0x2cd   :  { %2223 = vst [vmem:[%s3703_s5 + $0xf8] sm:$0xff] %v2191_v61  }

// kernel: forward.9
= control target key start
LH: loop header
LB: loop body
LE: loop exit
PB: predicated region body
PF: predicated region fallthrough
CT: control target
= control target key end

     0   :  { %s5051_s18 = smov 0   ;;  %s6256_s0 = inlined_call_operand.vmem [shape: bf16[2048,80], index: 0, kind: input, shape index: {}]   ;;  %s6257_s1 = inlined_call_operand.vmem [shape: bf16[80,128], index: 1, kind: input, shape index: {}]   ;;  %s6258_s2 = inlined_call_operand.vmem [shape: f32[1,128], index: 2, kind: input, shape index: {}]   ;;  %s6259_s3 = inlined_call_operand.vmem [shape: f32[128,128], index: 3, kind: input, shape index: {}]   ;;  %s6260_s4 = inlined_call_operand.vmem [shape: f32[1,128], index: 4, kind: input, shape index: {}]   ;;  %s6261_s5 = inlined_call_operand.vmem [shape: bf16[2048,128], index: 5, kind: output, shape index: {}]  }
   0x1 LB: > { %s3270_s19 = sadd.s32 4294967295, %s5019_s18   ;;  %p3274_p0 = scmp.ge.s32.totalorder %s5019_s18, 1  ;;  %s5019_s18 = sphi %s5051_s18, %s15_s18  }
   0x2   : > { %p188_p1 = scmp.lt.s32.totalorder %s5019_s18, 3 }
   0x4   : > { %p189_p2 = pnand %p3274_p0, %p188_p1 }
   0x6   : > { %192 = sbr.rel (%p189_p2) target bundleno = 737 (0x2e1), region = 40 }
   0xd   : > { %v4686_v0 = vld [vmem:[%s6257_s1] sm:$0xff]   ;;  %s3275_s22 = sshll.u32 %s3270_s19, 7  ;;  %v4687_v1 = vld [vmem:[%s6257_s1 + $0x8] sm:$0xff]   ;;  %v4688_v2 = vld [vmem:[%s6257_s1 + $0x10] sm:$0xff]   ;;  %vm724_vm0 = vcmask 654336  }
   0xe   : > { %p217_p3 = scmp.lt.s32.totalorder %s3275_s22, 255  ;;  %4268 = vmatprep.subr.bf16.mxu0 %v4686_v0  ;;  %v4689_v4 = vld [vmem:[%s6257_s1 + $0x18] sm:$0xff]   ;;  %v4690_v5 = vld [vmem:[%s6257_s1 + $0x20] sm:$0xff]   ;;  %v1591_v23 = vld [vmem:[%s6259_s3 + $0x8] sm:$0xff] }
   0xf   : > { %4269 = vmatpush3.bf16.msra.mxu0 %v4686_v0  ;;  %v1590_v22 = vld [vmem:[%s6259_s3] sm:$0xff]  ;;  %v1592_v25 = vld [vmem:[%s6259_s3 + $0x10] sm:$0xff]  ;;  %v1593_v26 = vld [vmem:[%s6259_s3 + $0x18] sm:$0xff] }
  0x10   : > { %s6479_s22 = smov (!%p217_p3, %s3275_s22), 255  ;;  %4270 = vmatprep.subr.bf16.mxu0 %v4687_v1  ;;  %v4630_v24 = vpack.c.bf16 %v1591_v23, %v1590_v22  ;;  %v4634_v27 = vpack.c.bf16 %v1593_v26, %v1592_v25  ;;  %v1594_v30 = vld [vmem:[%s6259_s3 + $0x20] sm:$0xff]  ;;  %v1595_v31 = vld [vmem:[%s6259_s3 + $0x28] sm:$0xff]  ;;  %v1596_v33 = vld [vmem:[%s6259_s3 + $0x30] sm:$0xff] }
  0x11   : > { %s3276_s27 = sshll.u32 %s6479_s22, 2  ;;  %v4638_v32 = vpack.c.bf16 %v1595_v31, %v1594_v30  ;;  %v1597_v34 = vld [vmem:[%s6259_s3 + $0x38] sm:$0xff]  ;;  %v1598_v38 = vld [vmem:[%s6259_s3 + $0x40] sm:$0xff]  ;;  %v1599_v39 = vld [vmem:[%s6259_s3 + $0x48] sm:$0xff] }
  0x12   : > { %s5076_s30 = scalar_lea.vmem %s6256_s0, %s3276_s27  ;;  %4662 = vmatprep.subr.bf16.mxu1 %v4630_v24  ;;  %v4642_v35 = vpack.c.bf16 %v1597_v34, %v1596_v33  ;;  %v4646_v40 = vpack.c.bf16 %v1599_v39, %v1598_v38  ;;  %v1600_v41 = vld [vmem:[%s6259_s3 + $0x50] sm:$0xff]  ;;  %v1601_v42 = vld [vmem:[%s6259_s3 + $0x58] sm:$0xff]  ;;  %v1602_v46 = vld [vmem:[%s6259_s3 + $0x60] sm:$0xff]  ;;  %s5867_s29 = scalar_lea.vmem %s6261_s5, %s3276_s27 }
  0x13   : > { %4271 = vmatpush3.bf16.msra.mxu0 %v4687_v1  ;;  %v4691_v3 = vld [vmem:[%s5076_s30] sm:$0xff]   ;;  %v4692_v6 = vld [vmem:[%s5076_s30 + $0x8] sm:$0xff]   ;;  %v4693_v7 = vld [vmem:[%s5076_s30 + $0x10] sm:$0xff]   ;;  %4670 = vmatpush3.bf16.msra.mxu1 %v4630_v24  ;;  %v4650_v43 = vpack.c.bf16 %v1601_v42, %v1600_v41 }
  0x14   : > { %4272 = vmatprep.subr.bf16.mxu0 %v4688_v2  ;;  %4278 = vmatprep.mubr.msk.bf16.mxu0 %vm724_vm0, %v4691_v3  ;;  %v4694_v8 = vld [vmem:[%s5076_s30 + $0x18] sm:$0xff]   ;;  %v4695_v9 = vld [vmem:[%s5076_s30 + $0x20] sm:$0xff]   ;;  %v4696_v10 = vld [vmem:[%s5076_s30 + $0x28] sm:$0xff]  }
  0x15   : > { %v4697_v11 = vld [vmem:[%s5076_s30 + $0x30] sm:$0xff]   ;;  %v4698_v12 = vld [vmem:[%s5076_s30 + $0x38] sm:$0xff]   ;;  %v4699_v13 = vld [vmem:[%s5076_s30 + $0x40] sm:$0xff]   ;;  %4663 = vmatprep.subr.bf16.mxu1 %v4634_v27 }
  0x16   : > { %v4700_v14 = vld [vmem:[%s5076_s30 + $0x48] sm:$0xff]   ;;  %v4701_v15 = vld [vmem:[%s5076_s30 + $0x50] sm:$0xff]   ;;  %v4702_v16 = vld [vmem:[%s5076_s30 + $0x58] sm:$0xff]  }
  0x17   : > { %4273 = vmatpush3.bf16.msra.mxu0 %v4688_v2  ;;  %v4703_v17 = vld [vmem:[%s5076_s30 + $0x60] sm:$0xff]   ;;  %v4704_v18 = vld [vmem:[%s5076_s30 + $0x68] sm:$0xff]   ;;  %v4705_v19 = vld [vmem:[%s5076_s30 + $0x70] sm:$0xff]   ;;  %4671 = vmatpush3.bf16.msra.mxu1 %v4634_v27 }
  0x18   : > { %4274 = vmatprep.subr.bf16.mxu0 %v4689_v4  ;;  %v4706_v20 = vld [vmem:[%s5076_s30 + $0x78] sm:$0xff]   ;;  %v4707_v21 = vld [vmem:[%s5076_s30 + $0x80] sm:$0xff]   ;;  %v4708_v28 = vld [vmem:[%s5076_s30 + $0x88] sm:$0xff]   ;;  %4664 = vmatprep.subr.bf16.mxu1 %v4638_v32 }
  0x19   : > { %v4709_v29 = vld [vmem:[%s5076_s30 + $0x90] sm:$0xff]   ;;  %v4710_v36 = vld [vmem:[%s5076_s30 + $0x98] sm:$0xff]   ;;  %v4711_v37 = vld [vmem:[%s5076_s30 + $0xa0] sm:$0xff]  }
  0x1a   : > { %v4712_v44 = vld [vmem:[%s5076_s30 + $0xa8] sm:$0xff]   ;;  %v4713_v45 = vld [vmem:[%s5076_s30 + $0xb0] sm:$0xff]   ;;  %v1605_v50 = vld [vmem:[%s6259_s3 + $0x78] sm:$0xff] }
  0x1b   : > { %4275 = vmatpush3.bf16.msra.mxu0 %v4689_v4  ;;  %4672 = vmatpush3.bf16.msra.mxu1 %v4638_v32  ;;  %v1603_v47 = vld [vmem:[%s6259_s3 + $0x68] sm:$0xff]  ;;  %v1604_v49 = vld [vmem:[%s6259_s3 + $0x70] sm:$0xff]  ;;  %v4714_v51 = vld [vmem:[%s5076_s30 + $0xb8] sm:$0xff]  }
  0x1c   : > { %4276 = vmatprep.subr.bf16.mxu0 %v4690_v5  ;;  %4665 = vmatprep.subr.bf16.mxu1 %v4642_v35  ;;  %v4654_v48 = vpack.c.bf16 %v1603_v47, %v1602_v46  ;;  %v4658_v52 = vpack.c.bf16 %v1605_v50, %v1604_v49  ;;  %v4715_v53 = vld [vmem:[%s5076_s30 + $0xc0] sm:$0xff]   ;;  %v4716_v54 = vld [vmem:[%s5076_s30 + $0xc8] sm:$0xff]   ;;  %v4717_v55 = vld [vmem:[%s5076_s30 + $0xd0] sm:$0xff]  }
  0x1d   : > { %v4718_v56 = vld [vmem:[%s5076_s30 + $0xd8] sm:$0xff]   ;;  %v4719_v57 = vld [vmem:[%s5076_s30 + $0xe0] sm:$0xff]   ;;  %v4720_v58 = vld [vmem:[%s5076_s30 + $0xe8] sm:$0xff]  }
  0x1e   : > { %v4721_v59 = vld [vmem:[%s5076_s30 + $0xf0] sm:$0xff]   ;;  %v4722_v60 = vld [vmem:[%s5076_s30 + $0xf8] sm:$0xff]   ;;  %v4723_v61 = vld [vmem:[%s5076_s30 + $0x100] sm:$0xff]  }
  0x1f   : > { %4277 = vmatpush3.bf16.msra.mxu0 %v4690_v5  ;;  %4673 = vmatpush3.bf16.msra.mxu1 %v4642_v35  ;;  %v4724_v62 = vld [vmem:[%s5076_s30 + $0x108] sm:$0xff]   ;;  %v4725_v63 = vld [vmem:[%s5076_s30 + $0x110] sm:$0xff]   ;;  %v4726_v0 = vld [vmem:[%s5076_s30 + $0x118] sm:$0xff]  }
  0x20   : > { %4631 = vmatprep.subr.bf16.mxu0 %v4630_v24  ;;  %4666 = vmatprep.subr.bf16.mxu1 %v4646_v40  ;;  %v4727_v1 = vld [vmem:[%s5076_s30 + $0x120] sm:$0xff]   ;;  %v4728_v2 = vld [vmem:[%s5076_s30 + $0x128] sm:$0xff]   ;;  %v4729_v3 = vld [vmem:[%s5076_s30 + $0x130] sm:$0xff]  }
  0x21   : > { %v4730_v4 = vld [vmem:[%s5076_s30 + $0x138] sm:$0xff]   ;;  %v4731_v5 = vld [vmem:[%s5076_s30 + $0x140] sm:$0xff]   ;;  %v4748_v33 = vld [vmem:[%s5076_s30 + $0x1c8] sm:$0xff]  }
  0x22   : > { %4279 = vmatmul.mubr.msk.bf16.vlgmr.msra.gmra.mrb[0].mxu0 %vm724_vm0, %v4692_v6  ;;  %v4732_v6 = vld [vmem:[%s5076_s30 + $0x148] sm:$0xff]   ;;  %v4747_v26 = vld [vmem:[%s5076_s30 + $0x1c0] sm:$0xff]   ;;  %v4750_v46 = vld [vmem:[%s5076_s30 + $0x1d8] sm:$0xff]  }
  0x23   : > { %4282 = vmatprep.mubr.msk.bf16.mxu0 %vm724_vm0, %v4693_v7  ;;  %4633 = vmatpush3.bf16.msra.mxu0 %v4630_v24  ;;  %v4733_v7 = vld [vmem:[%s5076_s30 + $0x150] sm:$0xff]   ;;  %v4746_v24 = vld [vmem:[%s5076_s30 + $0x1b8] sm:$0xff]   ;;  %v4751_v50 = vld [vmem:[%s5076_s30 + $0x1e0] sm:$0xff]  }
  0x24   : > { %4635 = vmatprep.subr.bf16.mxu0 %v4634_v27  ;;  %4674 = vmatpush3.bf16.msra.mxu1 %v4646_v40 }
  0x25   : > { %4667 = vmatprep.subr.bf16.mxu1 %v4650_v43 }
  0x27   : > { %4637 = vmatpush3.bf16.msra.mxu0 %v4634_v27 }
  0x28   : > { %4639 = vmatprep.subr.bf16.mxu0 %v4638_v32  ;;  %4675 = vmatpush3.bf16.msra.mxu1 %v4650_v43 }
  0x29   : > { %4668 = vmatprep.subr.bf16.mxu1 %v4654_v48 }
  0x2a   : > { %4283 = vmatmul.mubr.msk.bf16.gmra.mrb[4].mxu0 %vm724_vm0, %v4694_v8  ;;  %v4734_v8 = vld [vmem:[%s5076_s30 + $0x158] sm:$0xff]  }
  0x2b   : > { %4286 = vmatprep.mubr.msk.bf16.mxu0 %vm724_vm0, %v4695_v9  ;;  %4641 = vmatpush3.bf16.msra.mxu0 %v4638_v32  ;;  %v4735_v9 = vld [vmem:[%s5076_s30 + $0x160] sm:$0xff]  }
  0x2c   : > { %4643 = vmatprep.subr.bf16.mxu0 %v4642_v35  ;;  %4676 = vmatpush3.bf16.msra.mxu1 %v4654_v48 }
  0x2d   : > { %4669 = vmatprep.subr.bf16.mxu1 %v4658_v52 }
  0x2f   : > { %4645 = vmatpush3.bf16.msra.mxu0 %v4642_v35 }
  0x30   : > { %4647 = vmatprep.subr.bf16.mxu0 %v4646_v40  ;;  %4677 = vmatpush3.bf16.msra.mxu1 %v4658_v52 }
  0x32   : > { %4287 = vmatmul.mubr.msk.bf16.gmra.mrb[8].mxu0 %vm724_vm0, %v4696_v10  ;;  %v4736_v10 = vld [vmem:[%s5076_s30 + $0x168] sm:$0xff]  }
  0x33   : > { %4290 = vmatprep.mubr.msk.bf16.mxu0 %vm724_vm0, %v4697_v11  ;;  %4649 = vmatpush3.bf16.msra.mxu0 %v4646_v40  ;;  %v4737_v11 = vld [vmem:[%s5076_s30 + $0x170] sm:$0xff]  }
  0x34   : > { %4651 = vmatprep.subr.bf16.mxu0 %v4650_v43 }
  0x37   : > { %4653 = vmatpush3.bf16.msra.mxu0 %v4650_v43 }
  0x38   : > { %4655 = vmatprep.subr.bf16.mxu0 %v4654_v48 }
  0x3a   : > { %4291 = vmatmul.mubr.msk.bf16.gmra.mrb[12].mxu0 %vm724_vm0, %v4698_v12  ;;  %v4738_v12 = vld [vmem:[%s5076_s30 + $0x178] sm:$0xff]  }
  0x3b   : > { %4294 = vmatprep.mubr.msk.bf16.mxu0 %vm724_vm0, %v4699_v13  ;;  %4657 = vmatpush3.bf16.msra.mxu0 %v4654_v48  ;;  %v4739_v13 = vld [vmem:[%s5076_s30 + $0x180] sm:$0xff]  }
  0x3c   : > { %4659 = vmatprep.subr.bf16.mxu0 %v4658_v52 }
  0x3f   : > { %4661 = vmatpush3.bf16.msra.mxu0 %v4658_v52 }
  0x42   : > { %4295 = vmatmul.mubr.msk.bf16.gmra.mrb[16].mxu0 %vm724_vm0, %v4700_v14  ;;  %v4740_v14 = vld [vmem:[%s5076_s30 + $0x188] sm:$0xff]  }
  0x43   : > { %4298 = vmatprep.mubr.msk.bf16.mxu0 %vm724_vm0, %v4701_v15  ;;  %v4741_v15 = vld [vmem:[%s5076_s30 + $0x190] sm:$0xff]  }
  0x4a   : > { %4299 = vmatmul.mubr.msk.bf16.gmra.mrb[20].mxu0 %vm724_vm0, %v4702_v16  ;;  %v4742_v16 = vld [vmem:[%s5076_s30 + $0x198] sm:$0xff]  }
  0x4b   : > { %4302 = vmatprep.mubr.msk.bf16.mxu0 %vm724_vm0, %v4703_v17  ;;  %v4743_v17 = vld [vmem:[%s5076_s30 + $0x1a0] sm:$0xff]  }
  0x52   : > { %4303 = vmatmul.mubr.msk.bf16.gmra.mrb[24].mxu0 %vm724_vm0, %v4704_v18  ;;  %v4744_v18 = vld [vmem:[%s5076_s30 + $0x1a8] sm:$0xff]  }
  0x53   : > { %4306 = vmatprep.mubr.msk.bf16.mxu0 %vm724_vm0, %v4705_v19  ;;  %v4745_v19 = vld [vmem:[%s5076_s30 + $0x1b0] sm:$0xff]  }
  0x5a   : > { %4307 = vmatmul.mubr.msk.bf16.gmra.mrb[28].mxu0 %vm724_vm0, %v4706_v20  ;;  %v5244_v20 = vld [vmem:[%s6258_s2] ss:$0 sm:$0xff] }
  0x5b   : > { %4310 = vmatprep.mubr.msk.bf16.mxu0 %vm724_vm0, %v4707_v21 }
  0x62   : > { %4311 = vmatmul.mubr.msk.bf16.gmra.mrb[32].mxu0 %vm724_vm0, %v4708_v28 }
  0x63   : > { %4314 = vmatprep.mubr.msk.bf16.mxu0 %vm724_vm0, %v4709_v29 }
  0x6a   : > { %4315 = vmatmul.mubr.msk.bf16.gmra.mrb[36].mxu0 %vm724_vm0, %v4710_v36  ;;  %v4749_v36 = vld [vmem:[%s5076_s30 + $0x1d0] sm:$0xff]  }
  0x6b   : > { %4318 = vmatprep.mubr.msk.bf16.mxu0 %vm724_vm0, %v4711_v37 }
  0x72   : > { %4319 = vmatmul.mubr.msk.bf16.gmra.mrb[40].mxu0 %vm724_vm0, %v4712_v44 }
  0x73   : > { %4322 = vmatprep.mubr.msk.bf16.mxu0 %vm724_vm0, %v4713_v45 }
  0x7a   : > { %4323 = vmatmul.mubr.msk.bf16.gmra.mrb[44].mxu0 %vm724_vm0, %v4714_v51 }
  0x7b   : > { %4326 = vmatprep.mubr.msk.bf16.mxu0 %vm724_vm0, %v4715_v53 }
  0x82   : > { %4327 = vmatmul.mubr.msk.bf16.gmra.mrb[48].mxu0 %vm724_vm0, %v4716_v54 }
  0x83   : > { %4330 = vmatprep.mubr.msk.bf16.mxu0 %vm724_vm0, %v4717_v55 }
  0x8a   : > { %4331 = vmatmul.mubr.msk.bf16.gmra.mrb[52].mxu0 %vm724_vm0, %v4718_v56 }
  0x8b   : > { %4334 = vmatprep.mubr.msk.bf16.mxu0 %vm724_vm0, %v4719_v57 }
  0x92   : > { %4335 = vmatmul.mubr.msk.bf16.gmra.mrb[56].mxu0 %vm724_vm0, %v4720_v58 }
  0x93   : > { %4338 = vmatprep.mubr.msk.bf16.mxu0 %vm724_vm0, %v4721_v59 }
  0x9a   : > { %4339 = vmatmul.mubr.msk.bf16.gmra.mrb[60].mxu0 %vm724_vm0, %v4722_v60  ;;  %v4752_v60 = vld [vmem:[%s5076_s30 + $0x1e8] sm:$0xff]  }
  0x9b   : > { %4342 = vmatprep.mubr.msk.bf16.mxu0 %vm724_vm0, %v4723_v61 }
  0xa2   : > { %4343 = vmatmul.mubr.msk.bf16.gmra.mrb[64].mxu0 %vm724_vm0, %v4724_v62 }
  0xa3   : > { %4346 = vmatprep.mubr.msk.bf16.mxu0 %vm724_vm0, %v4725_v63 }
  0xaa   : > { %4347 = vmatmul.mubr.msk.bf16.gmra.mrb[68].mxu0 %vm724_vm0, %v4726_v0  ;;  %v4753_v0 = vld [vmem:[%s5076_s30 + $0x1f0] sm:$0xff]  }
  0xab   : > { %4350 = vmatprep.mubr.msk.bf16.mxu0 %vm724_vm0, %v4727_v1 }
  0xb2   : > { %4351 = vmatmul.mubr.msk.bf16.gmra.mrb[72].mxu0 %vm724_vm0, %v4728_v2 }
  0xb3   : > { %4354 = vmatprep.mubr.msk.bf16.mxu0 %vm724_vm0, %v4729_v3 }
  0xba   : > { %4355 = vmatmul.mubr.msk.bf16.gmra.mrb[76].mxu0 %vm724_vm0, %v4730_v4 }
  0xbb   : > { %4358 = vmatprep.mubr.msk.bf16.mxu0 %vm724_vm0, %v4731_v5 }
  0xc2   : > { %4359 = vmatmul.mubr.msk.bf16.gmra.mrb[80].mxu0 %vm724_vm0, %v4732_v6 }
  0xc3   : > { %4362 = vmatprep.mubr.msk.bf16.mxu0 %vm724_vm0, %v4733_v7 }
  0xca   : > { %4363 = vmatmul.mubr.msk.bf16.gmra.mrb[84].mxu0 %vm724_vm0, %v4734_v8 }
  0xcb   : > { %4366 = vmatprep.mubr.msk.bf16.mxu0 %vm724_vm0, %v4735_v9 }
  0xd2   : > { %4367 = vmatmul.mubr.msk.bf16.gmra.mrb[88].mxu0 %vm724_vm0, %v4736_v10 }
  0xd3   : > { %4370 = vmatprep.mubr.msk.bf16.mxu0 %vm724_vm0, %v4737_v11  ;;  %v4754_v11 = vld [vmem:[%s5076_s30 + $0x1f8] sm:$0xff]  }
  0xda   : > { %4371 = vmatmul.mubr.msk.bf16.gmra.mrb[92].mxu0 %vm724_vm0, %v4738_v12 }
  0xdb   : > { %4374 = vmatprep.mubr.msk.bf16.mxu0 %vm724_vm0, %v4739_v13 }
  0xe2   : > { %4375 = vmatmul.mubr.msk.bf16.gmra.mrb[96].mxu0 %vm724_vm0, %v4740_v14 }
  0xe3   : > { %4378 = vmatprep.mubr.msk.bf16.mxu0 %vm724_vm0, %v4741_v15 }
  0xea   : > { %4379 = vmatmul.mubr.msk.bf16.gmra.mrb[100].mxu0 %vm724_vm0, %v4742_v16 }
  0xeb   : > { %4382 = vmatprep.mubr.msk.bf16.mxu0 %vm724_vm0, %v4743_v17 }
  0xf2   : > { %4383 = vmatmul.mubr.msk.bf16.gmra.mrb[104].mxu0 %vm724_vm0, %v4744_v18 }
  0xf3   : > { %4386 = vmatprep.mubr.msk.bf16.mxu0 %vm724_vm0, %v4745_v19 }
  0xf5   : > { %v4280_v21 = vpop.f32.mrb[0].mxu0 }
  0xf6   : > { %v5248_v22 = vadd.f32 %v4280_v21, %v5244_v20  ;;  %v5250_v23 = vpop.f32.mrb[1].mxu0 }
  0xf7   : > { %v4281_v25 = vpop.f32.mrb[2].mxu0  ;;  %v5337_v8 = vadd.f32 %v5244_v20, %v5250_v23 }
  0xf8   : > { %v5255_v27 = vadd.f32 %v4281_v25, %v5244_v20  ;;  %v5257_v28 = vpop.f32.mrb[3].mxu0  ;;  %v1464_v29 = vmul.f32 %v5248_v22, %v5248_v22 }
  0xf9   : > { %v1462_v17 = vmul.f32 %v5337_v8, %v5337_v8 }
  0xfa   : > { %v1465_v30 = vmul.f32 %v5255_v27, %v5255_v27  ;;  %4387 = vmatmul.mubr.msk.bf16.gmra.mrb[108].mxu0 %vm724_vm0, %v4746_v24  ;;  %4441 = vmatprep.mubr.f32.mxu1 %v1464_v29  ;;  %v5363_v24 = vadd.f32 %v5244_v20, %v5257_v28 }
  0xfb   : > { %4390 = vmatprep.mubr.msk.bf16.mxu0 %vm724_vm0, %v4747_v26 }
  0xfc   : > { %4442 = vmatmul.mubr.f32.vlgmr.msra.gmra.mrb[0].mxu1 %v1465_v30 }
  0xfd   : > { %v4284_v31 = vpop.f32.mrb[4].mxu0 }
  0xfe   : > { %v967_v32 = vpop.f32.mrb[5].mxu0  ;;  %v5271_v37 = vadd.f32 %v4284_v31, %v5244_v20 }
  0xff   : > { %v5267_v34 = vadd.f32 %v5244_v20, %v967_v32  ;;  %v4285_v35 = vpop.f32.mrb[6].mxu0 }
 0x100   : > { %v970_v38 = vpop.f32.mrb[7].mxu0  ;;  %v5280_v41 = vadd.f32 %v4285_v35, %v5244_v20  ;;  %v1468_v43 = vmul.f32 %v5271_v37, %v5271_v37 }
 0x101   : > { %v1466_v39 = vmul.f32 %v5267_v34, %v5267_v34  ;;  %v5276_v40 = vadd.f32 %v5244_v20, %v970_v38 }
 0x102   : > { %4391 = vmatmul.mubr.msk.bf16.gmra.mrb[112].mxu0 %vm724_vm0, %v4748_v33  ;;  %v1469_v47 = vmul.f32 %v5280_v41, %v5280_v41  ;;  %v1463_v33 = vmul.f32 %v5363_v24, %v5363_v24 }
 0x103   : > { %v1467_v42 = vmul.f32 %v5276_v40, %v5276_v40  ;;  %4444 = vmatprep.mubr.f32.mxu1 %v1466_v39  ;;  %4394 = vmatprep.mubr.msk.bf16.mxu0 %vm724_vm0, %v4749_v36 }
 0x105   : > { %v4288_v44 = vpop.f32.mrb[8].mxu0  ;;  %4445 = vmatmul.mubr.f32.gmra.mrb[2].mxu1 %v1467_v42 }
 0x106   : > { %v983_v45 = vpop.f32.mrb[9].mxu0  ;;  %4447 = vmatprep.mubr.f32.mxu1 %v1468_v43  ;;  %v5295_v51 = vadd.f32 %v4288_v44, %v5244_v20 }
 0x107   : > { %v5291_v48 = vadd.f32 %v5244_v20, %v983_v45  ;;  %v4289_v49 = vpop.f32.mrb[10].mxu0 }
 0x108   : > { %v986_v52 = vpop.f32.mrb[11].mxu0  ;;  %v5304_v55 = vadd.f32 %v4289_v49, %v5244_v20  ;;  %v1472_v57 = vmul.f32 %v5295_v51, %v5295_v51 }
 0x109   : > { %v1470_v53 = vmul.f32 %v5291_v48, %v5291_v48  ;;  %v5300_v54 = vadd.f32 %v5244_v20, %v986_v52  ;;  %4448 = vmatmul.mubr.f32.gmra.mrb[4].mxu1 %v1469_v47 }
 0x10a   : > { %4395 = vmatmul.mubr.msk.bf16.gmra.mrb[116].mxu0 %vm724_vm0, %v4750_v46  ;;  %v1473_v61 = vmul.f32 %v5304_v55, %v5304_v55 }
 0x10b   : > { %v1471_v56 = vmul.f32 %v5300_v54, %v5300_v54  ;;  %4450 = vmatprep.mubr.f32.mxu1 %v1470_v53  ;;  %4398 = vmatprep.mubr.msk.bf16.mxu0 %vm724_vm0, %v4751_v50 }
 0x10d   : > { %v4292_v58 = vpop.f32.mrb[12].mxu0  ;;  %4451 = vmatmul.mubr.f32.gmra.mrb[6].mxu1 %v1471_v56 }
 0x10e   : > { %v999_v59 = vpop.f32.mrb[13].mxu0  ;;  %4453 = vmatprep.mubr.f32.mxu1 %v1472_v57  ;;  %v5319_v1 = vadd.f32 %v4292_v58, %v5244_v20 }
 0x10f   : > { %v5315_v62 = vadd.f32 %v5244_v20, %v999_v59  ;;  %v4293_v63 = vpop.f32.mrb[14].mxu0 }
 0x110   : > { %v1002_v2 = vpop.f32.mrb[15].mxu0  ;;  %v5328_v5 = vadd.f32 %v4293_v63, %v5244_v20  ;;  %v1476_v7 = vmul.f32 %v5319_v1, %v5319_v1 }
 0x111   : > { %v1474_v3 = vmul.f32 %v5315_v62, %v5315_v62  ;;  %v5324_v4 = vadd.f32 %v5244_v20, %v1002_v2  ;;  %4454 = vmatmul.mubr.f32.gmra.mrb[8].mxu1 %v1473_v61 }
 0x112   : > { %4399 = vmatmul.mubr.msk.bf16.gmra.mrb[120].mxu0 %vm724_vm0, %v4752_v60  ;;  %v1477_v12 = vmul.f32 %v5328_v5, %v5328_v5 }
 0x113   : > { %v1475_v6 = vmul.f32 %v5324_v4, %v5324_v4  ;;  %4456 = vmatprep.mubr.f32.mxu1 %v1474_v3  ;;  %4402 = vmatprep.mubr.msk.bf16.mxu0 %vm724_vm0, %v4753_v0 }
 0x115   : > { %v4296_v9 = vpop.f32.mrb[16].mxu0  ;;  %4457 = vmatmul.mubr.f32.gmra.mrb[10].mxu1 %v1475_v6 }
 0x116   : > { %v1015_v10 = vpop.f32.mrb[17].mxu0  ;;  %4459 = vmatprep.mubr.f32.mxu1 %v1476_v7  ;;  %v5346_v15 = vadd.f32 %v4296_v9, %v5244_v20 }
 0x117   : > { %v5343_v13 = vadd.f32 %v5244_v20, %v1015_v10  ;;  %v4297_v14 = vpop.f32.mrb[18].mxu0 }
 0x118   : > { %v1018_v16 = vpop.f32.mrb[19].mxu0  ;;  %v5357_v21 = vadd.f32 %v4297_v14, %v5244_v20  ;;  %v1480_v25 = vmul.f32 %v5346_v15, %v5346_v15 }
 0x119   : > { %v1478_v18 = vmul.f32 %v5343_v13, %v5343_v13  ;;  %v5353_v19 = vadd.f32 %v5244_v20, %v1018_v16  ;;  %4460 = vmatmul.mubr.f32.gmra.mrb[12].mxu1 %v1477_v12 }
 0x11a   : > { %4403 = vmatmul.mubr.msk.bf16.gmra.mrb[124].mxu0 %vm724_vm0, %v4754_v11  ;;  %v1481_v30 = vmul.f32 %v5357_v21, %v5357_v21 }
 0x11b   : > { %v1479_v23 = vmul.f32 %v5353_v19, %v5353_v19  ;;  %4438 = vmatprep.mubr.f32.mxu0 %v1462_v17  ;;  %4462 = vmatprep.mubr.f32.mxu1 %v1478_v18 }
 0x11d   : > { %v4300_v26 = vpop.f32.mrb[20].mxu0  ;;  %4463 = vmatmul.mubr.f32.gmra.mrb[14].mxu1 %v1479_v23 }
 0x11e   : > { %v1031_v29 = vpop.f32.mrb[21].mxu0  ;;  %4465 = vmatprep.mubr.f32.mxu1 %v1480_v25  ;;  %v5375_v28 = vadd.f32 %v4300_v26, %v5244_v20 }
 0x11f   : > { %v5370_v31 = vadd.f32 %v5244_v20, %v1031_v29  ;;  %v4301_v32 = vpop.f32.mrb[22].mxu0 }
 0x120   : > { %v1034_v35 = vpop.f32.mrb[23].mxu0  ;;  %v5383_v39 = vadd.f32 %v4301_v32, %v5244_v20  ;;  %v1484_v43 = vmul.f32 %v5375_v28, %v5375_v28 }
 0x121   : > { %v1482_v36 = vmul.f32 %v5370_v31, %v5370_v31  ;;  %v5380_v38 = vadd.f32 %v5244_v20, %v1034_v35  ;;  %4466 = vmatmul.mubr.f32.gmra.mrb[16].mxu1 %v1481_v30 }
 0x122   : > { %4439 = vmatmul.mubr.f32.vlgmr.msra.gmra.mrb[128].mxu0 %v1463_v33  ;;  %v1485_v46 = vmul.f32 %v5383_v39, %v5383_v39 }
 0x123   : > { %v1483_v42 = vmul.f32 %v5380_v38, %v5380_v38  ;;  %4468 = vmatprep.mubr.f32.mxu1 %v1482_v36 }
 0x125   : > { %v4304_v44 = vpop.f32.mrb[24].mxu0  ;;  %4469 = vmatmul.mubr.f32.gmra.mrb[18].mxu1 %v1483_v42 }
 0x126   : > { %v1047_v45 = vpop.f32.mrb[25].mxu0  ;;  %4471 = vmatprep.mubr.f32.mxu1 %v1484_v43  ;;  %v5395_v50 = vadd.f32 %v4304_v44, %v5244_v20 }
 0x127   : > { %v5392_v47 = vadd.f32 %v5244_v20, %v1047_v45  ;;  %v4305_v49 = vpop.f32.mrb[26].mxu0 }
 0x128   : > { %v1050_v52 = vpop.f32.mrb[27].mxu0  ;;  %v5403_v57 = vadd.f32 %v4305_v49, %v5244_v20  ;;  %v1488_v59 = vmul.f32 %v5395_v50, %v5395_v50 }
 0x129   : > { %v1486_v53 = vmul.f32 %v5392_v47, %v5392_v47  ;;  %v5400_v56 = vadd.f32 %v5244_v20, %v1050_v52  ;;  %4472 = vmatmul.mubr.f32.gmra.mrb[20].mxu1 %v1485_v46 }
 0x12a   : > { %v1489_v63 = vmul.f32 %v5403_v57, %v5403_v57 }
 0x12b   : > { %v1487_v58 = vmul.f32 %v5400_v56, %v5400_v56  ;;  %4474 = vmatprep.mubr.f32.mxu1 %v1486_v53 }
 0x12d   : > { %v4308_v60 = vpop.f32.mrb[28].mxu0  ;;  %4475 = vmatmul.mubr.f32.gmra.mrb[22].mxu1 %v1487_v58 }
 0x12e   : > { %v1063_v61 = vpop.f32.mrb[29].mxu0  ;;  %4477 = vmatprep.mubr.f32.mxu1 %v1488_v59  ;;  %v5415_v3 = vadd.f32 %v4308_v60, %v5244_v20 }
 0x12f   : > { %v5412_v0 = vadd.f32 %v5244_v20, %v1063_v61  ;;  %v4309_v2 = vpop.f32.mrb[30].mxu0 }
 0x130   : > { %v1066_v6 = vpop.f32.mrb[31].mxu0  ;;  %v5423_v10 = vadd.f32 %v4309_v2, %v5244_v20  ;;  %v1492_v12 = vmul.f32 %v5415_v3, %v5415_v3 }
 0x131   : > { %v1490_v7 = vmul.f32 %v5412_v0, %v5412_v0  ;;  %v5420_v9 = vadd.f32 %v5244_v20, %v1066_v6  ;;  %4478 = vmatmul.mubr.f32.gmra.mrb[24].mxu1 %v1489_v63 }
 0x132   : > { %v1493_v17 = vmul.f32 %v5423_v10, %v5423_v10 }
 0x133   : > { %v1491_v11 = vmul.f32 %v5420_v9, %v5420_v9  ;;  %4480 = vmatprep.mubr.f32.mxu1 %v1490_v7 }
 0x135   : > { %v4312_v14 = vpop.f32.mrb[32].mxu0  ;;  %4481 = vmatmul.mubr.f32.gmra.mrb[26].mxu1 %v1491_v11 }
 0x136   : > { %v1079_v16 = vpop.f32.mrb[33].mxu0  ;;  %4483 = vmatprep.mubr.f32.mxu1 %v1492_v12  ;;  %v5435_v25 = vadd.f32 %v4312_v14, %v5244_v20 }
 0x137   : > { %v5432_v18 = vadd.f32 %v5244_v20, %v1079_v16  ;;  %v4313_v23 = vpop.f32.mrb[34].mxu0 }
 0x138   : > { %v1082_v26 = vpop.f32.mrb[35].mxu0  ;;  %v5443_v32 = vadd.f32 %v4313_v23, %v5244_v20  ;;  %v1496_v35 = vmul.f32 %v5435_v25, %v5435_v25 }
 0x139   : > { %v1494_v29 = vmul.f32 %v5432_v18, %v5432_v18  ;;  %v5440_v30 = vadd.f32 %v5244_v20, %v1082_v26  ;;  %4484 = vmatmul.mubr.f32.gmra.mrb[28].mxu1 %v1493_v17 }
 0x13a   : > { %v1497_v43 = vmul.f32 %v5443_v32, %v5443_v32 }
 0x13b   : > { %v1495_v33 = vmul.f32 %v5440_v30, %v5440_v30  ;;  %4486 = vmatprep.mubr.f32.mxu1 %v1494_v29 }
 0x13d   : > { %v4316_v36 = vpop.f32.mrb[36].mxu0  ;;  %4487 = vmatmul.mubr.f32.gmra.mrb[30].mxu1 %v1495_v33 }
 0x13e   : > { %v1095_v42 = vpop.f32.mrb[37].mxu0  ;;  %4489 = vmatprep.mubr.f32.mxu1 %v1496_v35  ;;  %v5455_v46 = vadd.f32 %v4316_v36, %v5244_v20 }
 0x13f   : > { %v5452_v44 = vadd.f32 %v5244_v20, %v1095_v42  ;;  %v4317_v45 = vpop.f32.mrb[38].mxu0 }
 0x140   : > { %v1098_v49 = vpop.f32.mrb[39].mxu0  ;;  %v5463_v58 = vadd.f32 %v4317_v45, %v5244_v20  ;;  %v1500_v60 = vmul.f32 %v5455_v46, %v5455_v46 }
 0x141   : > { %v1498_v52 = vmul.f32 %v5452_v44, %v5452_v44  ;;  %v5460_v53 = vadd.f32 %v5244_v20, %v1098_v49  ;;  %4490 = vmatmul.mubr.f32.gmra.mrb[32].mxu1 %v1497_v43 }
 0x142   : > { %v1501_v2 = vmul.f32 %v5463_v58, %v5463_v58 }
 0x143   : > { %v1499_v59 = vmul.f32 %v5460_v53, %v5460_v53  ;;  %4492 = vmatprep.mubr.f32.mxu1 %v1498_v52 }
 0x145   : > { %v4320_v61 = vpop.f32.mrb[40].mxu0  ;;  %4493 = vmatmul.mubr.f32.gmra.mrb[34].mxu1 %v1499_v59 }
 0x146   : > { %v1111_v63 = vpop.f32.mrb[41].mxu0  ;;  %4495 = vmatprep.mubr.f32.mxu1 %v1500_v60  ;;  %v5475_v11 = vadd.f32 %v4320_v61, %v5244_v20 }
 0x147   : > { %v5472_v6 = vadd.f32 %v5244_v20, %v1111_v63  ;;  %v4321_v7 = vpop.f32.mrb[42].mxu0 }
 0x148   : > { %v1114_v12 = vpop.f32.mrb[43].mxu0  ;;  %v5483_v17 = vadd.f32 %v4321_v7, %v5244_v20  ;;  %v1504_v26 = vmul.f32 %v5475_v11, %v5475_v11 }
 0x149   : > { %v1502_v14 = vmul.f32 %v5472_v6, %v5472_v6  ;;  %v5480_v16 = vadd.f32 %v5244_v20, %v1114_v12  ;;  %4496 = vmatmul.mubr.f32.gmra.mrb[36].mxu1 %v1501_v2 }
 0x14a   : > { %v1505_v35 = vmul.f32 %v5483_v17, %v5483_v17 }
 0x14b   : > { %v1503_v23 = vmul.f32 %v5480_v16, %v5480_v16  ;;  %4498 = vmatprep.mubr.f32.mxu1 %v1502_v14 }
 0x14d   : > { %v4324_v29 = vpop.f32.mrb[44].mxu0  ;;  %4499 = vmatmul.mubr.f32.gmra.mrb[38].mxu1 %v1503_v23 }
 0x14e   : > { %v1127_v33 = vpop.f32.mrb[45].mxu0  ;;  %4501 = vmatprep.mubr.f32.mxu1 %v1504_v26  ;;  %v5495_v43 = vadd.f32 %v4324_v29, %v5244_v20 }
 0x14f   : > { %v5492_v36 = vadd.f32 %v5244_v20, %v1127_v33  ;;  %v4325_v42 = vpop.f32.mrb[46].mxu0 }
 0x150   : > { %6334 = vst [vmem:[#allocation2_spill] sm:$0xff] %v5495_v43  ;;  %v1130_v45 = vpop.f32.mrb[47].mxu0  ;;  %v5503_v59 = vadd.f32 %v4325_v42, %v5244_v20  ;;  %v1508_v61 = vmul.f32 %v5495_v43, %v5495_v43 }
 0x151   : > { %v1506_v49 = vmul.f32 %v5492_v36, %v5492_v36  ;;  %v5500_v52 = vadd.f32 %v5244_v20, %v1130_v45  ;;  %4502 = vmatmul.mubr.f32.gmra.mrb[40].mxu1 %v1505_v35 }
 0x152   : > { %6335 = vst [vmem:[#allocation3_spill] sm:$0xff] %v5503_v59  ;;  %v1509_v7 = vmul.f32 %v5503_v59, %v5503_v59 }
 0x153   : > { %v1507_v60 = vmul.f32 %v5500_v52, %v5500_v52  ;;  %4504 = vmatprep.mubr.f32.mxu1 %v1506_v49 }
 0x155   : > { %v4328_v63 = vpop.f32.mrb[48].mxu0  ;;  %4505 = vmatmul.mubr.f32.gmra.mrb[42].mxu1 %v1507_v60 }
 0x156   : > { %v1143_v2 = vpop.f32.mrb[49].mxu0  ;;  %4507 = vmatprep.mubr.f32.mxu1 %v1508_v61  ;;  %v5515_v23 = vadd.f32 %v4328_v63, %v5244_v20 }
 0x157   : > { %v5512_v12 = vadd.f32 %v5244_v20, %v1143_v2  ;;  %v4329_v14 = vpop.f32.mrb[50].mxu0 }
 0x158   : > { %6337 = vst [vmem:[#allocation5_spill] sm:$0xff] %v5515_v23  ;;  %v1146_v26 = vpop.f32.mrb[51].mxu0  ;;  %v5523_v35 = vadd.f32 %v4329_v14, %v5244_v20  ;;  %v1512_v45 = vmul.f32 %v5515_v23, %v5515_v23 }
 0x159   : > { %6336 = vst [vmem:[#allocation4_spill] sm:$0xff] %v5512_v12  ;;  %v1510_v29 = vmul.f32 %v5512_v12, %v5512_v12  ;;  %v5520_v33 = vadd.f32 %v5244_v20, %v1146_v26  ;;  %4508 = vmatmul.mubr.f32.gmra.mrb[44].mxu1 %v1509_v7 }
 0x15a   : > { %6339 = vst [vmem:[#allocation7_spill] sm:$0xff] %v5523_v35  ;;  %v1513_v61 = vmul.f32 %v5523_v35, %v5523_v35 }
 0x15b   : > { %6338 = vst [vmem:[#allocation6_spill] sm:$0xff] %v5520_v33  ;;  %v1511_v42 = vmul.f32 %v5520_v33, %v5520_v33  ;;  %4510 = vmatprep.mubr.f32.mxu1 %v1510_v29 }
 0x15d   : > { %v4332_v49 = vpop.f32.mrb[52].mxu0  ;;  %4511 = vmatmul.mubr.f32.gmra.mrb[46].mxu1 %v1511_v42 }
 0x15e   : > { %v1159_v60 = vpop.f32.mrb[53].mxu0  ;;  %4513 = vmatprep.mubr.f32.mxu1 %v1512_v45  ;;  %v5535_v7 = vadd.f32 %v4332_v49, %v5244_v20 }
 0x15f   : > { %v5532_v63 = vadd.f32 %v5244_v20, %v1159_v60  ;;  %v4333_v2 = vpop.f32.mrb[54].mxu0 }
 0x160   : > { %6341 = vst [vmem:[#allocation9_spill] sm:$0xff] %v5535_v7  ;;  %v1162_v14 = vpop.f32.mrb[55].mxu0  ;;  %v5543_v42 = vadd.f32 %v4333_v2, %v5244_v20  ;;  %v1516_v60 = vmul.f32 %v5535_v7, %v5535_v7 }
 0x161   : > { %6340 = vst [vmem:[#allocation8_spill] sm:$0xff] %v5532_v63  ;;  %v1514_v26 = vmul.f32 %v5532_v63, %v5532_v63  ;;  %v5540_v29 = vadd.f32 %v5244_v20, %v1162_v14  ;;  %4514 = vmatmul.mubr.f32.gmra.mrb[48].mxu1 %v1513_v61 }
 0x162   : > { %6343 = vst [vmem:[#allocation11_spill] sm:$0xff] %v5543_v42  ;;  %v1517_v63 = vmul.f32 %v5543_v42, %v5543_v42 }
 0x163   : > { %6342 = vst [vmem:[#allocation10_spill] sm:$0xff] %v5540_v29  ;;  %v1515_v45 = vmul.f32 %v5540_v29, %v5540_v29  ;;  %4516 = vmatprep.mubr.f32.mxu1 %v1514_v26 }
 0x165   : > { %v4336_v49 = vpop.f32.mrb[56].mxu0  ;;  %4517 = vmatmul.mubr.f32.gmra.mrb[50].mxu1 %v1515_v45 }
 0x166   : > { %v1175_v23 = vpop.f32.mrb[57].mxu0  ;;  %4519 = vmatprep.mubr.f32.mxu1 %v1516_v60  ;;  %v5555_v2 = vadd.f32 %v4336_v49, %v5244_v20 }
 0x167   : > { %v5552_v14 = vadd.f32 %v5244_v20, %v1175_v23  ;;  %v4337_v61 = vpop.f32.mrb[58].mxu0 }
 0x168   : > { %6345 = vst [vmem:[#allocation13_spill] sm:$0xff] %v5555_v2  ;;  %v1178_v35 = vpop.f32.mrb[59].mxu0  ;;  %v5563_v45 = vadd.f32 %v4337_v61, %v5244_v20  ;;  %v1520_v23 = vmul.f32 %v5555_v2, %v5555_v2 }
 0x169   : > { %6344 = vst [vmem:[#allocation12_spill] sm:$0xff] %v5552_v14  ;;  %v1518_v26 = vmul.f32 %v5552_v14, %v5552_v14  ;;  %v5560_v7 = vadd.f32 %v5244_v20, %v1178_v35  ;;  %4520 = vmatmul.mubr.f32.gmra.mrb[52].mxu1 %v1517_v63 }
 0x16a   : > { %6347 = vst [vmem:[#allocation15_spill] sm:$0xff] %v5563_v45  ;;  %v1521_v14 = vmul.f32 %v5563_v45, %v5563_v45 }
 0x16b   : > { %6346 = vst [vmem:[#allocation14_spill] sm:$0xff] %v5560_v7  ;;  %v1519_v60 = vmul.f32 %v5560_v7, %v5560_v7  ;;  %4522 = vmatprep.mubr.f32.mxu1 %v1518_v26 }
 0x16d   : > { %v4340_v49 = vpop.f32.mrb[60].mxu0  ;;  %4523 = vmatmul.mubr.f32.gmra.mrb[54].mxu1 %v1519_v60 }
 0x16e   : > { %v1191_v42 = vpop.f32.mrb[61].mxu0  ;;  %4525 = vmatprep.mubr.f32.mxu1 %v1520_v23  ;;  %v5575_v61 = vadd.f32 %v4340_v49, %v5244_v20 }
 0x16f   : > { %v5572_v35 = vadd.f32 %v5244_v20, %v1191_v42  ;;  %v4341_v63 = vpop.f32.mrb[62].mxu0 }
 0x170   : > { %6349 = vst [vmem:[#allocation17_spill] sm:$0xff] %v5575_v61  ;;  %v1194_v29 = vpop.f32.mrb[63].mxu0  ;;  %v5583_v60 = vadd.f32 %v4341_v63, %v5244_v20  ;;  %v1524_v42 = vmul.f32 %v5575_v61, %v5575_v61 }
 0x171   : > { %6348 = vst [vmem:[#allocation16_spill] sm:$0xff] %v5572_v35  ;;  %v1522_v26 = vmul.f32 %v5572_v35, %v5572_v35  ;;  %v5580_v2 = vadd.f32 %v5244_v20, %v1194_v29  ;;  %4526 = vmatmul.mubr.f32.gmra.mrb[56].mxu1 %v1521_v14 }
 0x172   : > { %6351 = vst [vmem:[#allocation19_spill] sm:$0xff] %v5583_v60  ;;  %v1525_v35 = vmul.f32 %v5583_v60, %v5583_v60 }
 0x173   : > { %6350 = vst [vmem:[#allocation18_spill] sm:$0xff] %v5580_v2  ;;  %v1523_v23 = vmul.f32 %v5580_v2, %v5580_v2  ;;  %4528 = vmatprep.mubr.f32.mxu1 %v1522_v26 }
 0x175   : > { %v4344_v49 = vpop.f32.mrb[64].mxu0  ;;  %4529 = vmatmul.mubr.f32.gmra.mrb[58].mxu1 %v1523_v23 }
 0x176   : > { %v1207_v45 = vpop.f32.mrb[65].mxu0  ;;  %4531 = vmatprep.mubr.f32.mxu1 %v1524_v42  ;;  %v5595_v63 = vadd.f32 %v4344_v49, %v5244_v20 }
 0x177   : > { %v5592_v29 = vadd.f32 %v5244_v20, %v1207_v45  ;;  %v4345_v14 = vpop.f32.mrb[66].mxu0 }
 0x178   : > { %6353 = vst [vmem:[#allocation21_spill] sm:$0xff] %v5595_v63  ;;  %v1210_v7 = vpop.f32.mrb[67].mxu0  ;;  %v5603_v23 = vadd.f32 %v4345_v14, %v5244_v20  ;;  %v1528_v45 = vmul.f32 %v5595_v63, %v5595_v63 }
 0x179   : > { %6352 = vst [vmem:[#allocation20_spill] sm:$0xff] %v5592_v29  ;;  %v1526_v26 = vmul.f32 %v5592_v29, %v5592_v29  ;;  %v5600_v61 = vadd.f32 %v5244_v20, %v1210_v7  ;;  %4532 = vmatmul.mubr.f32.gmra.mrb[60].mxu1 %v1525_v35 }
 0x17a   : > { %6355 = vst [vmem:[#allocation23_spill] sm:$0xff] %v5603_v23  ;;  %v1529_v29 = vmul.f32 %v5603_v23, %v5603_v23 }
 0x17b   : > { %6354 = vst [vmem:[#allocation22_spill] sm:$0xff] %v5600_v61  ;;  %v1527_v42 = vmul.f32 %v5600_v61, %v5600_v61  ;;  %4534 = vmatprep.mubr.f32.mxu1 %v1526_v26 }
 0x17d   : > { %v4348_v49 = vpop.f32.mrb[68].mxu0  ;;  %4535 = vmatmul.mubr.f32.gmra.mrb[62].mxu1 %v1527_v42 }
 0x17e   : > { %v1223_v60 = vpop.f32.mrb[69].mxu0  ;;  %4537 = vmatprep.mubr.f32.mxu1 %v1528_v45  ;;  %v5615_v14 = vadd.f32 %v4348_v49, %v5244_v20 }
 0x17f   : > { %v5612_v7 = vadd.f32 %v5244_v20, %v1223_v60  ;;  %v4349_v35 = vpop.f32.mrb[70].mxu0 }
 0x180   : > { %6357 = vst [vmem:[#allocation25_spill] sm:$0xff] %v5615_v14  ;;  %v1226_v2 = vpop.f32.mrb[71].mxu0  ;;  %v5623_v42 = vadd.f32 %v4349_v35, %v5244_v20  ;;  %v1532_v60 = vmul.f32 %v5615_v14, %v5615_v14 }
 0x181   : > { %6356 = vst [vmem:[#allocation24_spill] sm:$0xff] %v5612_v7  ;;  %v1530_v26 = vmul.f32 %v5612_v7, %v5612_v7  ;;  %v5620_v63 = vadd.f32 %v5244_v20, %v1226_v2  ;;  %4538 = vmatmul.mubr.f32.gmra.mrb[64].mxu1 %v1529_v29 }
 0x182   : > { %6359 = vst [vmem:[#allocation27_spill] sm:$0xff] %v5623_v42  ;;  %v1533_v7 = vmul.f32 %v5623_v42, %v5623_v42 }
 0x183   : > { %6358 = vst [vmem:[#allocation26_spill] sm:$0xff] %v5620_v63  ;;  %v1531_v45 = vmul.f32 %v5620_v63, %v5620_v63  ;;  %4540 = vmatprep.mubr.f32.mxu1 %v1530_v26 }
 0x185   : > { %v4352_v49 = vpop.f32.mrb[72].mxu0  ;;  %4541 = vmatmul.mubr.f32.gmra.mrb[66].mxu1 %v1531_v45 }
 0x186   : > { %v1239_v23 = vpop.f32.mrb[73].mxu0  ;;  %4543 = vmatprep.mubr.f32.mxu1 %v1532_v60  ;;  %v5635_v35 = vadd.f32 %v4352_v49, %v5244_v20 }
 0x187   : > { %v5632_v2 = vadd.f32 %v5244_v20, %v1239_v23  ;;  %v4353_v29 = vpop.f32.mrb[74].mxu0 }
 0x188   : > { %6361 = vst [vmem:[#allocation29_spill] sm:$0xff] %v5635_v35  ;;  %v1242_v61 = vpop.f32.mrb[75].mxu0  ;;  %v5643_v45 = vadd.f32 %v4353_v29, %v5244_v20  ;;  %v1536_v23 = vmul.f32 %v5635_v35, %v5635_v35 }
 0x189   : > { %6360 = vst [vmem:[#allocation28_spill] sm:$0xff] %v5632_v2  ;;  %v1534_v26 = vmul.f32 %v5632_v2, %v5632_v2  ;;  %v5640_v14 = vadd.f32 %v5244_v20, %v1242_v61  ;;  %4544 = vmatmul.mubr.f32.gmra.mrb[68].mxu1 %v1533_v7 }
 0x18a   : > { %6363 = vst [vmem:[#allocation31_spill] sm:$0xff] %v5643_v45  ;;  %v1537_v2 = vmul.f32 %v5643_v45, %v5643_v45 }
 0x18b   : > { %6362 = vst [vmem:[#allocation30_spill] sm:$0xff] %v5640_v14  ;;  %v1535_v60 = vmul.f32 %v5640_v14, %v5640_v14  ;;  %4546 = vmatprep.mubr.f32.mxu1 %v1534_v26 }
 0x18d   : > { %v4356_v49 = vpop.f32.mrb[76].mxu0  ;;  %4547 = vmatmul.mubr.f32.gmra.mrb[70].mxu1 %v1535_v60 }
 0x18e   : > { %v1255_v42 = vpop.f32.mrb[77].mxu0  ;;  %4549 = vmatprep.mubr.f32.mxu1 %v1536_v23  ;;  %v5655_v29 = vadd.f32 %v4356_v49, %v5244_v20 }
 0x18f   : > { %v5652_v61 = vadd.f32 %v5244_v20, %v1255_v42  ;;  %v4357_v7 = vpop.f32.mrb[78].mxu0 }
 0x190   : > { %6365 = vst [vmem:[#allocation33_spill] sm:$0xff] %v5655_v29  ;;  %v1258_v63 = vpop.f32.mrb[79].mxu0  ;;  %v5663_v60 = vadd.f32 %v4357_v7, %v5244_v20  ;;  %v1540_v42 = vmul.f32 %v5655_v29, %v5655_v29 }
 0x191   : > { %6364 = vst [vmem:[#allocation32_spill] sm:$0xff] %v5652_v61  ;;  %v1538_v26 = vmul.f32 %v5652_v61, %v5652_v61  ;;  %v5660_v35 = vadd.f32 %v5244_v20, %v1258_v63  ;;  %4550 = vmatmul.mubr.f32.gmra.mrb[72].mxu1 %v1537_v2 }
 0x192   : > { %6367 = vst [vmem:[#allocation35_spill] sm:$0xff] %v5663_v60  ;;  %v1541_v61 = vmul.f32 %v5663_v60, %v5663_v60 }
 0x193   : > { %6366 = vst [vmem:[#allocation34_spill] sm:$0xff] %v5660_v35  ;;  %v1539_v23 = vmul.f32 %v5660_v35, %v5660_v35  ;;  %4552 = vmatprep.mubr.f32.mxu1 %v1538_v26 }
 0x195   : > { %v4360_v49 = vpop.f32.mrb[80].mxu0  ;;  %4553 = vmatmul.mubr.f32.gmra.mrb[74].mxu1 %v1539_v23 }
 0x196   : > { %v1271_v45 = vpop.f32.mrb[81].mxu0  ;;  %4555 = vmatprep.mubr.f32.mxu1 %v1540_v42  ;;  %v5675_v7 = vadd.f32 %v4360_v49, %v5244_v20 }
 0x197   : > { %v5672_v63 = vadd.f32 %v5244_v20, %v1271_v45  ;;  %v4361_v2 = vpop.f32.mrb[82].mxu0 }
 0x198   : > { %6369 = vst [vmem:[#allocation37_spill] sm:$0xff] %v5675_v7  ;;  %v1274_v14 = vpop.f32.mrb[83].mxu0  ;;  %v5683_v23 = vadd.f32 %v4361_v2, %v5244_v20  ;;  %v1544_v45 = vmul.f32 %v5675_v7, %v5675_v7 }
 0x199   : > { %6368 = vst [vmem:[#allocation36_spill] sm:$0xff] %v5672_v63  ;;  %v1542_v26 = vmul.f32 %v5672_v63, %v5672_v63  ;;  %v5680_v29 = vadd.f32 %v5244_v20, %v1274_v14  ;;  %4556 = vmatmul.mubr.f32.gmra.mrb[76].mxu1 %v1541_v61 }
 0x19a   : > { %6371 = vst [vmem:[#allocation39_spill] sm:$0xff] %v5683_v23  ;;  %v1545_v63 = vmul.f32 %v5683_v23, %v5683_v23 }
 0x19b   : > { %6370 = vst [vmem:[#allocation38_spill] sm:$0xff] %v5680_v29  ;;  %v1543_v42 = vmul.f32 %v5680_v29, %v5680_v29  ;;  %4558 = vmatprep.mubr.f32.mxu1 %v1542_v26 }
 0x19d   : > { %v4364_v49 = vpop.f32.mrb[84].mxu0  ;;  %4559 = vmatmul.mubr.f32.gmra.mrb[78].mxu1 %v1543_v42 }
 0x19e   : > { %v1287_v60 = vpop.f32.mrb[85].mxu0  ;;  %4561 = vmatprep.mubr.f32.mxu1 %v1544_v45  ;;  %v5695_v2 = vadd.f32 %v4364_v49, %v5244_v20 }
 0x19f   : > { %v5692_v14 = vadd.f32 %v5244_v20, %v1287_v60  ;;  %v4365_v61 = vpop.f32.mrb[86].mxu0 }
 0x1a0   : > { %6373 = vst [vmem:[#allocation41_spill] sm:$0xff] %v5695_v2  ;;  %v1290_v35 = vpop.f32.mrb[87].mxu0  ;;  %v5703_v42 = vadd.f32 %v4365_v61, %v5244_v20  ;;  %v1548_v60 = vmul.f32 %v5695_v2, %v5695_v2 }
 0x1a1   : > { %6372 = vst [vmem:[#allocation40_spill] sm:$0xff] %v5692_v14  ;;  %v1546_v26 = vmul.f32 %v5692_v14, %v5692_v14  ;;  %v5700_v7 = vadd.f32 %v5244_v20, %v1290_v35  ;;  %4562 = vmatmul.mubr.f32.gmra.mrb[80].mxu1 %v1545_v63 }
 0x1a2   : > { %6375 = vst [vmem:[#allocation43_spill] sm:$0xff] %v5703_v42  ;;  %v1549_v14 = vmul.f32 %v5703_v42, %v5703_v42 }
 0x1a3   : > { %6374 = vst [vmem:[#allocation42_spill] sm:$0xff] %v5700_v7  ;;  %v1547_v45 = vmul.f32 %v5700_v7, %v5700_v7  ;;  %4564 = vmatprep.mubr.f32.mxu1 %v1546_v26 }
 0x1a5   : > { %v4368_v49 = vpop.f32.mrb[88].mxu0  ;;  %4565 = vmatmul.mubr.f32.gmra.mrb[82].mxu1 %v1547_v45 }
 0x1a6   : > { %v1303_v23 = vpop.f32.mrb[89].mxu0  ;;  %4567 = vmatprep.mubr.f32.mxu1 %v1548_v60  ;;  %v5715_v61 = vadd.f32 %v4368_v49, %v5244_v20 }
 0x1a7   : > { %v5712_v35 = vadd.f32 %v5244_v20, %v1303_v23  ;;  %v4369_v63 = vpop.f32.mrb[90].mxu0 }
 0x1a8   : > { %6377 = vst [vmem:[#allocation45_spill] sm:$0xff] %v5715_v61  ;;  %v1306_v29 = vpop.f32.mrb[91].mxu0  ;;  %v5723_v45 = vadd.f32 %v4369_v63, %v5244_v20  ;;  %v1552_v23 = vmul.f32 %v5715_v61, %v5715_v61 }
 0x1a9   : > { %6376 = vst [vmem:[#allocation44_spill] sm:$0xff] %v5712_v35  ;;  %v1550_v26 = vmul.f32 %v5712_v35, %v5712_v35  ;;  %v5720_v2 = vadd.f32 %v5244_v20, %v1306_v29  ;;  %4568 = vmatmul.mubr.f32.gmra.mrb[84].mxu1 %v1549_v14 }
 0x1aa   : > { %6379 = vst [vmem:[#allocation47_spill] sm:$0xff] %v5723_v45  ;;  %v1553_v35 = vmul.f32 %v5723_v45, %v5723_v45 }
 0x1ab   : > { %6378 = vst [vmem:[#allocation46_spill] sm:$0xff] %v5720_v2  ;;  %v1551_v60 = vmul.f32 %v5720_v2, %v5720_v2  ;;  %4570 = vmatprep.mubr.f32.mxu1 %v1550_v26 }
 0x1ad   : > { %v4372_v49 = vpop.f32.mrb[92].mxu0  ;;  %4571 = vmatmul.mubr.f32.gmra.mrb[86].mxu1 %v1551_v60 }
 0x1ae   : > { %v1319_v42 = vpop.f32.mrb[93].mxu0  ;;  %4573 = vmatprep.mubr.f32.mxu1 %v1552_v23  ;;  %v5735_v63 = vadd.f32 %v4372_v49, %v5244_v20 }
 0x1af   : > { %v5732_v29 = vadd.f32 %v5244_v20, %v1319_v42  ;;  %v4373_v14 = vpop.f32.mrb[94].mxu0 }
 0x1b0   : > { %6381 = vst [vmem:[#allocation49_spill] sm:$0xff] %v5735_v63  ;;  %v1322_v7 = vpop.f32.mrb[95].mxu0  ;;  %v5743_v60 = vadd.f32 %v4373_v14, %v5244_v20  ;;  %v1556_v42 = vmul.f32 %v5735_v63, %v5735_v63 }
 0x1b1   : > { %6380 = vst [vmem:[#allocation48_spill] sm:$0xff] %v5732_v29  ;;  %v1554_v26 = vmul.f32 %v5732_v29, %v5732_v29  ;;  %v5740_v61 = vadd.f32 %v5244_v20, %v1322_v7  ;;  %4574 = vmatmul.mubr.f32.gmra.mrb[88].mxu1 %v1553_v35 }
 0x1b2   : > { %6383 = vst [vmem:[#allocation51_spill] sm:$0xff] %v5743_v60  ;;  %v1557_v29 = vmul.f32 %v5743_v60, %v5743_v60 }
 0x1b3   : > { %6382 = vst [vmem:[#allocation50_spill] sm:$0xff] %v5740_v61  ;;  %v1555_v23 = vmul.f32 %v5740_v61, %v5740_v61  ;;  %4576 = vmatprep.mubr.f32.mxu1 %v1554_v26 }
 0x1b5   : > { %v4376_v49 = vpop.f32.mrb[96].mxu0  ;;  %4577 = vmatmul.mubr.f32.gmra.mrb[90].mxu1 %v1555_v23 }
 0x1b6   : > { %v1335_v45 = vpop.f32.mrb[97].mxu0  ;;  %4579 = vmatprep.mubr.f32.mxu1 %v1556_v42  ;;  %v5755_v14 = vadd.f32 %v4376_v49, %v5244_v20 }
 0x1b7   : > { %v5752_v7 = vadd.f32 %v5244_v20, %v1335_v45  ;;  %v4377_v35 = vpop.f32.mrb[98].mxu0 }
 0x1b8   : > { %6385 = vst [vmem:[#allocation53_spill] sm:$0xff] %v5755_v14  ;;  %v1338_v2 = vpop.f32.mrb[99].mxu0  ;;  %v5763_v23 = vadd.f32 %v4377_v35, %v5244_v20  ;;  %v1560_v45 = vmul.f32 %v5755_v14, %v5755_v14 }
 0x1b9   : > { %6384 = vst [vmem:[#allocation52_spill] sm:$0xff] %v5752_v7  ;;  %v1558_v26 = vmul.f32 %v5752_v7, %v5752_v7  ;;  %v5760_v63 = vadd.f32 %v5244_v20, %v1338_v2  ;;  %4580 = vmatmul.mubr.f32.gmra.mrb[92].mxu1 %v1557_v29 }
 0x1ba   : > { %6387 = vst [vmem:[#allocation55_spill] sm:$0xff] %v5763_v23  ;;  %v1561_v7 = vmul.f32 %v5763_v23, %v5763_v23 }
 0x1bb   : > { %6386 = vst [vmem:[#allocation54_spill] sm:$0xff] %v5760_v63  ;;  %v1559_v42 = vmul.f32 %v5760_v63, %v5760_v63  ;;  %4582 = vmatprep.mubr.f32.mxu1 %v1558_v26 }
 0x1bd   : > { %v4380_v49 = vpop.f32.mrb[100].mxu0  ;;  %4583 = vmatmul.mubr.f32.gmra.mrb[94].mxu1 %v1559_v42 }
 0x1be   : > { %v1351_v60 = vpop.f32.mrb[101].mxu0  ;;  %4585 = vmatprep.mubr.f32.mxu1 %v1560_v45  ;;  %v5775_v35 = vadd.f32 %v4380_v49, %v5244_v20 }
 0x1bf   : > { %v5772_v2 = vadd.f32 %v5244_v20, %v1351_v60  ;;  %v4381_v29 = vpop.f32.mrb[102].mxu0 }
 0x1c0   : > { %6389 = vst [vmem:[#allocation57_spill] sm:$0xff] %v5775_v35  ;;  %v1354_v61 = vpop.f32.mrb[103].mxu0  ;;  %v5783_v42 = vadd.f32 %v4381_v29, %v5244_v20  ;;  %v1564_v60 = vmul.f32 %v5775_v35, %v5775_v35 }
 0x1c1   : > { %6388 = vst [vmem:[#allocation56_spill] sm:$0xff] %v5772_v2  ;;  %v1562_v26 = vmul.f32 %v5772_v2, %v5772_v2  ;;  %v5780_v14 = vadd.f32 %v5244_v20, %v1354_v61  ;;  %4586 = vmatmul.mubr.f32.gmra.mrb[96].mxu1 %v1561_v7 }
 0x1c2   : > { %6391 = vst [vmem:[#allocation59_spill] sm:$0xff] %v5783_v42  ;;  %v1565_v2 = vmul.f32 %v5783_v42, %v5783_v42 }
 0x1c3   : > { %6390 = vst [vmem:[#allocation58_spill] sm:$0xff] %v5780_v14  ;;  %v1563_v45 = vmul.f32 %v5780_v14, %v5780_v14  ;;  %4588 = vmatprep.mubr.f32.mxu1 %v1562_v26 }
 0x1c5   : > { %v4384_v49 = vpop.f32.mrb[104].mxu0  ;;  %4589 = vmatmul.mubr.f32.gmra.mrb[98].mxu1 %v1563_v45 }
 0x1c6   : > { %v1367_v23 = vpop.f32.mrb[105].mxu0  ;;  %4591 = vmatprep.mubr.f32.mxu1 %v1564_v60  ;;  %v5795_v29 = vadd.f32 %v4384_v49, %v5244_v20 }
 0x1c7   : > { %v5792_v61 = vadd.f32 %v5244_v20, %v1367_v23  ;;  %v4385_v7 = vpop.f32.mrb[106].mxu0 }
 0x1c8   : > { %6393 = vst [vmem:[#allocation61_spill] sm:$0xff] %v5795_v29  ;;  %v1370_v63 = vpop.f32.mrb[107].mxu0  ;;  %v5803_v45 = vadd.f32 %v4385_v7, %v5244_v20  ;;  %v1568_v23 = vmul.f32 %v5795_v29, %v5795_v29 }
 0x1c9   : > { %6392 = vst [vmem:[#allocation60_spill] sm:$0xff] %v5792_v61  ;;  %v1566_v26 = vmul.f32 %v5792_v61, %v5792_v61  ;;  %v5800_v35 = vadd.f32 %v5244_v20, %v1370_v63  ;;  %4592 = vmatmul.mubr.f32.gmra.mrb[100].mxu1 %v1565_v2  ;;  %v5812_v61 = vld [vmem:[%s6260_s4] ss:$0 sm:$0xff] }
 0x1ca   : > { %6395 = vst [vmem:[#allocation63_spill] sm:$0xff] %v5803_v45  ;;  %v1569_v2 = vmul.f32 %v5803_v45, %v5803_v45 }
 0x1cb   : > { %6394 = vst [vmem:[#allocation62_spill] sm:$0xff] %v5800_v35  ;;  %v1567_v60 = vmul.f32 %v5800_v35, %v5800_v35  ;;  %4594 = vmatprep.mubr.f32.mxu1 %v1566_v26 }
 0x1cd   : > { %v4388_v49 = vpop.f32.mrb[108].mxu0  ;;  %4595 = vmatmul.mubr.f32.gmra.mrb[102].mxu1 %v1567_v60 }
 0x1ce   : > { %v1383_v63 = vpop.f32.mrb[109].mxu0  ;;  %4597 = vmatprep.mubr.f32.mxu1 %v1568_v23  ;;  %v5820_v42 = vadd.f32 %v4388_v49, %v5244_v20 }
 0x1cf   : > { %v5817_v7 = vadd.f32 %v5244_v20, %v1383_v63  ;;  %v4389_v35 = vpop.f32.mrb[110].mxu0  ;;  %v4443_v26 = vpop.f32.mrb[0].mxu1 }
 0x1d0   : > { %6397 = vst [vmem:[#allocation65_spill] sm:$0xff] %v5820_v42  ;;  %v1695_v60 = vadd.f32 %v4443_v26, %v5812_v61  ;;  %v1386_v29 = vpop.f32.mrb[111].mxu0  ;;  %v1689_v14 = vpop.f32.mrb[1].mxu1  ;;  %v5830_v63 = vadd.f32 %v4389_v35, %v5244_v20  ;;  %v1572_v26 = vmul.f32 %v5820_v42, %v5820_v42 }
 0x1d1   : > { %6396 = vst [vmem:[#allocation64_spill] sm:$0xff] %v5817_v7  ;;  %v1570_v12 = vmul.f32 %v5817_v7, %v5817_v7  ;;  %v5826_v23 = vadd.f32 %v5244_v20, %v1386_v29  ;;  %v1690_v45 = vadd.f32 %v5812_v61, %v1689_v14  ;;  %4598 = vmatmul.mubr.f32.gmra.mrb[104].mxu1 %v1569_v2 }
 0x1d2   : > { %4755 = vrsqrt.f32 %v1695_v60  ;;  %6399 = vst [vmem:[#allocation67_spill] sm:$0xff] %v5830_v63  ;;  %v1573_v14 = vmul.f32 %v5830_v63, %v5830_v63 }
 0x1d3   : > { %6398 = vst [vmem:[#allocation66_spill] sm:$0xff] %v5826_v23  ;;  %v1571_v49 = vmul.f32 %v5826_v23, %v5826_v23  ;;  %4757 = vrsqrt.f32 %v1690_v45  ;;  %4600 = vmatprep.mubr.f32.mxu1 %v1570_v12 }
 0x1d5   : > { %v4392_v33 = vpop.f32.mrb[112].mxu0  ;;  %4601 = vmatmul.mubr.f32.gmra.mrb[106].mxu1 %v1571_v49 }
 0x1d6   : > { %v1399_v7 = vpop.f32.mrb[113].mxu0  ;;  %4603 = vmatprep.mubr.f32.mxu1 %v1572_v26  ;;  %v5842_v2 = vadd.f32 %v4392_v33, %v5244_v20 }
 0x1d7   : > { %v5839_v29 = vadd.f32 %v5244_v20, %v1399_v7  ;;  %v4393_v35 = vpop.f32.mrb[114].mxu0 }
 0x1d8   : > { %6401 = vst [vmem:[#allocation69_spill] sm:$0xff] %v5842_v2  ;;  %v1402_v60 = vpop.f32.mrb[115].mxu0  ;;  %v4446_v45 = vpop.f32.mrb[2].mxu1  ;;  %v5852_v7 = vadd.f32 %v4393_v35, %v5244_v20 }
 0x1d9   : > { %6400 = vst [vmem:[#allocation68_spill] sm:$0xff] %v5839_v29  ;;  %v1574_v12 = vmul.f32 %v5839_v29, %v5839_v29  ;;  %v5847_v42 = vadd.f32 %v5244_v20, %v1402_v60  ;;  %v1705_v49 = vadd.f32 %v4446_v45, %v5812_v61  ;;  %v1699_v26 = vpop.f32.mrb[3].mxu1  ;;  %4604 = vmatmul.mubr.f32.gmra.mrb[108].mxu1 %v1573_v14 }
 0x1da   : > { %v1700_v63 = vadd.f32 %v5812_v61, %v1699_v26  ;;  %v1576_v60 = vmul.f32 %v5842_v2, %v5842_v2 }
 0x1db   : > { %6402 = vst [vmem:[#allocation70_spill] sm:$0xff] %v5847_v42  ;;  %v1575_v33 = vmul.f32 %v5847_v42, %v5847_v42  ;;  %4759 = vrsqrt.f32 %v1705_v49  ;;  %4606 = vmatprep.mubr.f32.mxu1 %v1574_v12 }
 0x1dc   : > { %v4756_v23 = vpop.eup %4755  ;;  %4761 = vrsqrt.f32 %v1700_v63  ;;  %v4449_v29 = vpop.f32.mrb[4].mxu1 }
 0x1dd   : > { %v4758_v45 = vpop.eup %4757  ;;  %v2449_v14 = vmul.f32 %v4756_v23, %v5255_v27  ;;  %v1715_v26 = vadd.f32 %v4449_v29, %v5812_v61  ;;  %v4396_v43 = vpop.f32.mrb[116].mxu0  ;;  %4607 = vmatmul.mubr.f32.gmra.mrb[110].mxu1 %v1575_v33  ;;  %v1577_v27 = vmul.f32 %v5852_v7, %v5852_v7 }
 0x1de   : > { %v1709_v35 = vpop.f32.mrb[5].mxu1  ;;  %v2448_v59 = vmul.f32 %v4758_v45, %v5248_v22  ;;  %v1415_v42 = vpop.f32.mrb[117].mxu0  ;;  %4609 = vmatprep.mubr.f32.mxu1 %v1576_v60  ;;  %v5875_v29 = vadd.f32 %v4396_v43, %v5244_v20  ;;  %v5882_v45 = vld [vmem:[%s6258_s2] ss:$0 sm:$0xff] }
 0x1df   : > { %v1710_v49 = vadd.f32 %v5812_v61, %v1709_v35  ;;  %4763 = vrsqrt.f32 %v1715_v26  ;;  %v5872_v23 = vadd.f32 %v5244_v20, %v1415_v42  ;;  %v4397_v63 = vpop.f32.mrb[118].mxu0 }
 0x1e0   : > { %v3680_v22 = vpack.c.bf16 %v2449_v14, %v2448_v59  ;;  %6404 = vst [vmem:[#allocation72_spill] sm:$0xff] %v5875_v29  ;;  %v1418_v12 = vpop.f32.mrb[119].mxu0  ;;  %v4452_v33 = vpop.f32.mrb[6].mxu1  ;;  %v5891_v43 = vadd.f32 %v5882_v45, %v4397_v63  ;;  %v1580_v35 = vmul.f32 %v5875_v29, %v5875_v29 }
 0x1e1   : > { %6403 = vst [vmem:[#allocation71_spill] sm:$0xff] %v5872_v23  ;;  %4765 = vrsqrt.f32 %v1710_v49  ;;  %v1578_v60 = vmul.f32 %v5872_v23, %v5872_v23  ;;  %v5885_v26 = vadd.f32 %v5882_v45, %v1418_v12  ;;  %v1725_v42 = vadd.f32 %v4452_v33, %v5812_v61  ;;  %v1719_v59 = vpop.f32.mrb[7].mxu1  ;;  %4610 = vmatmul.mubr.f32.gmra.mrb[112].mxu1 %v1577_v27 }
 0x1e2   : > { %3992 = vst [vmem:[%s5867_s29 + $0x8] sm:$0xff] %v3680_v22   ;;  %v1720_v20 = vadd.f32 %v5812_v61, %v1719_v59  ;;  %6405 = vst [vmem:[#allocation73_spill] sm:$0xff] %v5891_v43 }
 0x1e3   : > { %v1579_v14 = vmul.f32 %v5885_v26, %v5885_v26  ;;  %4767 = vrsqrt.f32 %v1725_v42  ;;  %4612 = vmatprep.mubr.f32.mxu1 %v1578_v60  ;;  %v1581_v42 = vmul.f32 %v5891_v43, %v5891_v43 }
 0x1e4   : > { %4769 = vrsqrt.f32 %v1720_v20  ;;  %v4455_v49 = vpop.f32.mrb[8].mxu1 }
 0x1e5   : > { %v4760_v12 = vpop.eup %4759  ;;  %v1735_v33 = vadd.f32 %v4455_v49, %v5812_v61  ;;  %v4400_v27 = vpop.f32.mrb[120].mxu0  ;;  %4613 = vmatmul.mubr.f32.gmra.mrb[114].mxu1 %v1579_v14 }
 0x1e6   : > { %v1729_v22 = vpop.f32.mrb[9].mxu1  ;;  %v4762_v59 = vpop.eup %4761  ;;  %v2451_v63 = vmul.f32 %v4760_v12, %v5276_v40  ;;  %4615 = vmatprep.mubr.f32.mxu1 %v1580_v35  ;;  %v5907_v14 = vadd.f32 %v5882_v45, %v4400_v27 }
 0x1e7   : > { %v1730_v23 = vadd.f32 %v5812_v61, %v1729_v22  ;;  %v1431_v2 = vpop.f32.mrb[121].mxu0  ;;  %v2450_v60 = vmul.f32 %v4762_v59, %v5267_v34  ;;  %4771 = vrsqrt.f32 %v1735_v33 }
 0x1e8   : > { %v5904_v20 = vadd.f32 %v5882_v45, %v1431_v2  ;;  %v4401_v49 = vpop.f32.mrb[122].mxu0  ;;  %v4458_v12 = vpop.f32.mrb[10].mxu1 }
 0x1e9   : > { %4773 = vrsqrt.f32 %v1730_v23  ;;  %v1434_v40 = vpop.f32.mrb[123].mxu0  ;;  %v4764_v22 = vpop.eup %4763  ;;  %v3685_v29 = vpack.c.bf16 %v2451_v63, %v2450_v60  ;;  %v1745_v33 = vadd.f32 %v4458_v12, %v5812_v61  ;;  %4616 = vmatmul.mubr.f32.gmra.mrb[116].mxu1 %v1581_v42  ;;  %v5920_v63 = vadd.f32 %v5882_v45, %v4401_v49 }
 0x1ea   : > { %v1582_v34 = vmul.f32 %v5904_v20, %v5904_v20  ;;  %v5912_v35 = vadd.f32 %v5882_v45, %v1434_v40  ;;  %v1739_v2 = vpop.f32.mrb[11].mxu1  ;;  %v2453_v43 = vmul.f32 %v4764_v22, %v5280_v41  ;;  %v1584_v42 = vmul.f32 %v5907_v14, %v5907_v14 }
 0x1eb   : > { %v4766_v59 = vpop.eup %4765  ;;  %v1740_v27 = vadd.f32 %v5812_v61, %v1739_v2  ;;  %3993 = vst [vmem:[%s5867_s29 + $0x10] sm:$0xff] %v3685_v29   ;;  %4775 = vrsqrt.f32 %v1745_v33 }
 0x1ec   : > { %v2452_v23 = vmul.f32 %v4766_v59, %v5271_v37  ;;  %v1583_v60 = vmul.f32 %v5912_v35, %v5912_v35  ;;  %4618 = vmatprep.mubr.f32.mxu1 %v1582_v34  ;;  %v4461_v40 = vpop.f32.mrb[12].mxu1 }
 0x1ed   : > { %4777 = vrsqrt.f32 %v1740_v27  ;;  %v4768_v41 = vpop.eup %4767  ;;  %v1755_v29 = vadd.f32 %v4461_v40, %v5812_v61  ;;  %v4404_v22 = vpop.f32.mrb[124].mxu0  ;;  %v1585_v27 = vmul.f32 %v5920_v63, %v5920_v63 }
 0x1ee   : > { %v3690_v12 = vpack.c.bf16 %v2453_v43, %v2452_v23  ;;  %v1749_v37 = vpop.f32.mrb[13].mxu1  ;;  %4619 = vmatmul.mubr.f32.gmra.mrb[118].mxu1 %v1583_v60  ;;  %v4770_v49 = vpop.eup %4769  ;;  %v2455_v2 = vmul.f32 %v4768_v41, %v5300_v54  ;;  %v5937_v60 = vadd.f32 %v5882_v45, %v4404_v22 }
 0x1ef   : > { %v1750_v59 = vadd.f32 %v5812_v61, %v1749_v37  ;;  %v1447_v33 = vpop.f32.mrb[125].mxu0  ;;  %4621 = vmatprep.mubr.f32.mxu1 %v1584_v42  ;;  %v2454_v34 = vmul.f32 %v4770_v49, %v5291_v48  ;;  %4779 = vrsqrt.f32 %v1755_v29 }
 0x1f0   : > { %3994 = vst [vmem:[%s5867_s29 + $0x18] sm:$0xff] %v3690_v12   ;;  %v5934_v43 = vadd.f32 %v5882_v45, %v1447_v33  ;;  %v4405_v23 = vpop.f32.mrb[126].mxu0  ;;  %v4464_v40 = vpop.f32.mrb[14].mxu1 }
 0x1f1   : > { %4781 = vrsqrt.f32 %v1750_v59  ;;  %v1450_v54 = vpop.f32.mrb[127].mxu0  ;;  %v4772_v41 = vpop.eup %4771  ;;  %v3695_v42 = vpack.c.bf16 %v2455_v2, %v2454_v34  ;;  %v1765_v29 = vadd.f32 %v4464_v40, %v5812_v61  ;;  %v5950_v2 = vadd.f32 %v5882_v45, %v4405_v23 }
 0x1f2   : > { %v1586_v48 = vmul.f32 %v5934_v43, %v5934_v43  ;;  %v5942_v12 = vadd.f32 %v5882_v45, %v1450_v54  ;;  %v1759_v37 = vpop.f32.mrb[15].mxu1  ;;  %4622 = vmatmul.mubr.f32.gmra.mrb[120].mxu1 %v1585_v27  ;;  %v2457_v33 = vmul.f32 %v4772_v41, %v5304_v55  ;;  %v1588_v27 = vmul.f32 %v5937_v60, %v5937_v60 }
 0x1f3   : > { %v4774_v49 = vpop.eup %4773  ;;  %v1760_v22 = vadd.f32 %v5812_v61, %v1759_v37  ;;  %3995 = vst [vmem:[%s5867_s29 + $0x20] sm:$0xff] %v3695_v42   ;;  %4783 = vrsqrt.f32 %v1765_v29 }
 0x1f4   : > { %v2456_v59 = vmul.f32 %v4774_v49, %v5295_v51  ;;  %v1587_v34 = vmul.f32 %v5942_v12, %v5942_v12  ;;  %4624 = vmatprep.mubr.f32.mxu1 %v1586_v48  ;;  %v4467_v54 = vpop.f32.mrb[16].mxu1 }
 0x1f5   : > { %4785 = vrsqrt.f32 %v1760_v22  ;;  %v4776_v55 = vpop.eup %4775  ;;  %v1775_v41 = vadd.f32 %v4467_v54, %v5812_v61  ;;  %v4440_v42 = vpop.f32.mrb[128].mxu0 }
 0x1f6   : > { %v3700_v40 = vpack.c.bf16 %v2457_v33, %v2456_v59  ;;  %v1769_v51 = vpop.f32.mrb[17].mxu1  ;;  %4625 = vmatmul.mubr.f32.gmra.mrb[122].mxu1 %v1587_v34  ;;  %v2459_v23 = vmul.f32 %v4776_v55, %v5324_v4  ;;  %v1685_v37 = vadd.f32 %v4440_v42, %v5812_v61  ;;  %v1679_v29 = vpop.f32.mrb[129].mxu0  ;;  %v1589_v33 = vmul.f32 %v5950_v2, %v5950_v2 }
 0x1f7   : > { %v4778_v45 = vpop.eup %4777  ;;  %v1770_v48 = vadd.f32 %v5812_v61, %v1769_v51  ;;  %4627 = vmatprep.mubr.f32.mxu1 %v1588_v27  ;;  %4787 = vrsqrt.f32 %v1775_v41  ;;  %v1680_v22 = vadd.f32 %v5812_v61, %v1679_v29 }
 0x1f8   : > { %3996 = vst [vmem:[%s5867_s29 + $0x28] sm:$0xff] %v3700_v40   ;;  %v2458_v49 = vmul.f32 %v4778_v45, %v5315_v62  ;;  %4789 = vrsqrt.f32 %v1685_v37  ;;  %v4470_v59 = vpop.f32.mrb[18].mxu1 }
 0x1f9   : > { %v4780_v34 = vpop.eup %4779  ;;  %4791 = vrsqrt.f32 %v1770_v48  ;;  %v1785_v54 = vadd.f32 %v4470_v59, %v5812_v61  ;;  %v1779_v55 = vpop.f32.mrb[19].mxu1 }
 0x1fa   : > { %v3705_v4 = vpack.c.bf16 %v2459_v23, %v2458_v49  ;;  %4628 = vmatmul.mubr.f32.gmra.mrb[124].mxu1 %v1589_v33  ;;  %v2461_v62 = vmul.f32 %v4780_v34, %v5328_v5  ;;  %4793 = vrsqrt.f32 %v1680_v22  ;;  %v1780_v40 = vadd.f32 %v5812_v61, %v1779_v55 }
 0x1fb   : > { %v4782_v27 = vpop.eup %4781  ;;  %4795 = vrsqrt.f32 %v1785_v54 }
 0x1fc   : > { %3997 = vst [vmem:[%s5867_s29 + $0x30] sm:$0xff] %v3705_v4   ;;  %v2460_v41 = vmul.f32 %v4782_v27, %v5319_v1  ;;  %4797 = vrsqrt.f32 %v1780_v40  ;;  %v4473_v42 = vpop.f32.mrb[20].mxu1 }
 0x1fd   : > { %v4784_v51 = vpop.eup %4783  ;;  %v1795_v23 = vadd.f32 %v4473_v42, %v5812_v61  ;;  %v1789_v37 = vpop.f32.mrb[21].mxu1 }
 0x1fe   : > { %v3710_v45 = vpack.c.bf16 %v2461_v62, %v2460_v41  ;;  %v2463_v29 = vmul.f32 %v4784_v51, %v5353_v19  ;;  %v1790_v5 = vadd.f32 %v5812_v61, %v1789_v37 }
 0x1ff   : > { %v4786_v48 = vpop.eup %4785  ;;  %4799 = vrsqrt.f32 %v1795_v23 }
 0x200   : > { %3998 = vst [vmem:[%s5867_s29 + $0x38] sm:$0xff] %v3710_v45   ;;  %v2462_v49 = vmul.f32 %v4786_v48, %v5343_v13  ;;  %4801 = vrsqrt.f32 %v1790_v5  ;;  %v4476_v1 = vpop.f32.mrb[22].mxu1 }
 0x201   : > { %v4788_v33 = vpop.eup %4787  ;;  %v1805_v59 = vadd.f32 %v4476_v1, %v5812_v61  ;;  %v1799_v34 = vpop.f32.mrb[23].mxu1 }
 0x202   : > { %v3715_v22 = vpack.c.bf16 %v2463_v29, %v2462_v49  ;;  %v4790_v4 = vpop.eup %4789  ;;  %v2465_v54 = vmul.f32 %v4788_v33, %v5357_v21  ;;  %v1800_v55 = vadd.f32 %v5812_v61, %v1799_v34 }
 0x203   : > { %v4792_v27 = vpop.eup %4791  ;;  %v2447_v19 = vmul.f32 %v4790_v4, %v5363_v24  ;;  %4803 = vrsqrt.f32 %v1805_v59 }
 0x204   : > { %3999 = vst [vmem:[%s5867_s29 + $0x40] sm:$0xff] %v3715_v22   ;;  %v4794_v13 = vpop.eup %4793  ;;  %v2464_v62 = vmul.f32 %v4792_v27, %v5346_v15  ;;  %4805 = vrsqrt.f32 %v1800_v55  ;;  %v4479_v40 = vpop.f32.mrb[24].mxu1 }
 0x205   : > { %v4796_v41 = vpop.eup %4795  ;;  %v2446_v42 = vmul.f32 %v4794_v13, %v5337_v8  ;;  %v1815_v51 = vadd.f32 %v4479_v40, %v5812_v61  ;;  %v1809_v21 = vpop.f32.mrb[25].mxu1 }
 0x206   : > { %v4798_v45 = vpop.eup %4797  ;;  %v3720_v23 = vpack.c.bf16 %v2465_v54, %v2464_v62  ;;  %v2467_v37 = vmul.f32 %v4796_v41, %v5380_v38  ;;  %v1810_v24 = vadd.f32 %v5812_v61, %v1809_v21 }
 0x207   : > { %v3675_v48 = vpack.c.bf16 %v2447_v19, %v2446_v42  ;;  %v2466_v29 = vmul.f32 %v4798_v45, %v5370_v31  ;;  %4807 = vrsqrt.f32 %v1815_v51 }
 0x208   : > { %4000 = vst [vmem:[%s5867_s29 + $0x48] sm:$0xff] %v3720_v23   ;;  %4809 = vrsqrt.f32 %v1810_v24  ;;  %v4482_v15 = vpop.f32.mrb[26].mxu1 }
 0x209   : > { %v4800_v5 = vpop.eup %4799  ;;  %3676 = vst [vmem:[%s5867_s29] sm:$0xff] %v3675_v48   ;;  %v3725_v8 = vpack.c.bf16 %v2467_v37, %v2466_v29  ;;  %v1825_v49 = vadd.f32 %v4482_v15, %v5812_v61  ;;  %v1819_v1 = vpop.f32.mrb[27].mxu1 }
 0x20a   : > { %v4802_v33 = vpop.eup %4801  ;;  %v2469_v38 = vmul.f32 %v4800_v5, %v5383_v39  ;;  %v1820_v22 = vadd.f32 %v5812_v61, %v1819_v1 }
 0x20b   : > { %4001 = vst [vmem:[%s5867_s29 + $0x50] sm:$0xff] %v3725_v8   ;;  %v2468_v59 = vmul.f32 %v4802_v33, %v5375_v28  ;;  %4811 = vrsqrt.f32 %v1825_v49 }
 0x20c   : > { %4813 = vrsqrt.f32 %v1820_v22  ;;  %v4485_v31 = vpop.f32.mrb[28].mxu1 }
 0x20d   : > { %v4804_v34 = vpop.eup %4803  ;;  %v3730_v4 = vpack.c.bf16 %v2469_v38, %v2468_v59  ;;  %v1835_v54 = vadd.f32 %v4485_v31, %v5812_v61  ;;  %v1829_v55 = vpop.f32.mrb[29].mxu1 }
 0x20e   : > { %v4806_v27 = vpop.eup %4805  ;;  %v2471_v19 = vmul.f32 %v4804_v34, %v5400_v56  ;;  %v1830_v13 = vadd.f32 %v5812_v61, %v1829_v55 }
 0x20f   : > { %4002 = vst [vmem:[%s5867_s29 + $0x58] sm:$0xff] %v3730_v4   ;;  %v2470_v39 = vmul.f32 %v4806_v27, %v5392_v47  ;;  %4815 = vrsqrt.f32 %v1835_v54 }
 0x210   : > { %4817 = vrsqrt.f32 %v1830_v13  ;;  %v4488_v28 = vpop.f32.mrb[30].mxu1 }
 0x211   : > { %v4808_v62 = vpop.eup %4807  ;;  %v3735_v40 = vpack.c.bf16 %v2471_v19, %v2470_v39  ;;  %v1845_v41 = vadd.f32 %v4488_v28, %v5812_v61  ;;  %v1839_v42 = vpop.f32.mrb[31].mxu1 }
 0x212   : > { %v4810_v51 = vpop.eup %4809  ;;  %v2473_v21 = vmul.f32 %v4808_v62, %v5403_v57  ;;  %v1840_v45 = vadd.f32 %v5812_v61, %v1839_v42 }
 0x213   : > { %4003 = vst [vmem:[%s5867_s29 + $0x60] sm:$0xff] %v3735_v40   ;;  %v2472_v56 = vmul.f32 %v4810_v51, %v5395_v50  ;;  %4819 = vrsqrt.f32 %v1845_v41 }
 0x214   : > { %4821 = vrsqrt.f32 %v1840_v45  ;;  %v4491_v47 = vpop.f32.mrb[32].mxu1 }
 0x215   : > { %v4812_v23 = vpop.eup %4811  ;;  %v3740_v37 = vpack.c.bf16 %v2473_v21, %v2472_v56  ;;  %v1855_v24 = vadd.f32 %v4491_v47, %v5812_v61  ;;  %v1849_v48 = vpop.f32.mrb[33].mxu1 }
 0x216   : > { %v4814_v29 = vpop.eup %4813  ;;  %v2475_v15 = vmul.f32 %v4812_v23, %v5420_v9  ;;  %v1850_v5 = vadd.f32 %v5812_v61, %v1849_v48 }
 0x217   : > { %4004 = vst [vmem:[%s5867_s29 + $0x68] sm:$0xff] %v3740_v37   ;;  %v2474_v57 = vmul.f32 %v4814_v29, %v5412_v0  ;;  %4823 = vrsqrt.f32 %v1855_v24 }
 0x218   : > { %4825 = vrsqrt.f32 %v1850_v5  ;;  %v4494_v50 = vpop.f32.mrb[34].mxu1 }
 0x219   : > { %v4816_v8 = vpop.eup %4815  ;;  %v3745_v49 = vpack.c.bf16 %v2475_v15, %v2474_v57  ;;  %v1865_v1 = vadd.f32 %v4494_v50, %v5812_v61  ;;  %v1859_v33 = vpop.f32.mrb[35].mxu1 }
 0x21a   : > { %v4818_v38 = vpop.eup %4817  ;;  %v2477_v22 = vmul.f32 %v4816_v8, %v5423_v10  ;;  %v1860_v59 = vadd.f32 %v5812_v61, %v1859_v33 }
 0x21b   : > { %4005 = vst [vmem:[%s5867_s29 + $0x70] sm:$0xff] %v3745_v49   ;;  %v2476_v9 = vmul.f32 %v4818_v38, %v5415_v3  ;;  %4827 = vrsqrt.f32 %v1865_v1 }
 0x21c   : > { %4829 = vrsqrt.f32 %v1860_v59  ;;  %v4497_v0 = vpop.f32.mrb[36].mxu1 }
 0x21d   : > { %v4820_v31 = vpop.eup %4819  ;;  %v3750_v34 = vpack.c.bf16 %v2477_v22, %v2476_v9  ;;  %v1875_v4 = vadd.f32 %v4497_v0, %v5812_v61  ;;  %v1869_v54 = vpop.f32.mrb[37].mxu1 }
 0x21e   : > { %v4822_v55 = vpop.eup %4821  ;;  %v2479_v27 = vmul.f32 %v4820_v31, %v5440_v30  ;;  %v1870_v19 = vadd.f32 %v5812_v61, %v1869_v54 }
 0x21f   : > { %4006 = vst [vmem:[%s5867_s29 + $0x78] sm:$0xff] %v3750_v34   ;;  %v2478_v10 = vmul.f32 %v4822_v55, %v5432_v18  ;;  %4831 = vrsqrt.f32 %v1875_v4 }
 0x220   : > { %4833 = vrsqrt.f32 %v1870_v19  ;;  %v4500_v3 = vpop.f32.mrb[38].mxu1 }
 0x221   : > { %v4824_v13 = vpop.eup %4823  ;;  %v3755_v39 = vpack.c.bf16 %v2479_v27, %v2478_v10  ;;  %v1885_v28 = vadd.f32 %v4500_v3, %v5812_v61  ;;  %v1879_v62 = vpop.f32.mrb[39].mxu1 }
 0x222   : > { %v4826_v40 = vpop.eup %4825  ;;  %v2481_v41 = vmul.f32 %v4824_v13, %v5443_v32  ;;  %v1880_v42 = vadd.f32 %v5812_v61, %v1879_v62 }
 0x223   : > { %4007 = vst [vmem:[%s5867_s29 + $0x80] sm:$0xff] %v3755_v39   ;;  %v2480_v30 = vmul.f32 %v4826_v40, %v5435_v25  ;;  %4835 = vrsqrt.f32 %v1885_v28 }
 0x224   : > { %4837 = vrsqrt.f32 %v1880_v42  ;;  %v4503_v18 = vpop.f32.mrb[40].mxu1 }
 0x225   : > { %v4828_v51 = vpop.eup %4827  ;;  %v3760_v21 = vpack.c.bf16 %v2481_v41, %v2480_v30  ;;  %v1895_v45 = vadd.f32 %v4503_v18, %v5812_v61  ;;  %v1889_v56 = vpop.f32.mrb[41].mxu1  ;;  %v6406_v18 = vld [vmem:[#allocation3_spill] sm:$0xff] }
 0x226   : > { %v4830_v47 = vpop.eup %4829  ;;  %v2483_v23 = vmul.f32 %v4828_v51, %v5460_v53  ;;  %v1890_v37 = vadd.f32 %v5812_v61, %v1889_v56 }
 0x227   : > { %4008 = vst [vmem:[%s5867_s29 + $0x88] sm:$0xff] %v3760_v21   ;;  %v2482_v32 = vmul.f32 %v4830_v47, %v5452_v44  ;;  %4839 = vrsqrt.f32 %v1895_v45 }
 0x228   : > { %4841 = vrsqrt.f32 %v1890_v37  ;;  %v4506_v25 = vpop.f32.mrb[42].mxu1 }
 0x229   : > { %v4832_v24 = vpop.eup %4831  ;;  %v3765_v48 = vpack.c.bf16 %v2483_v23, %v2482_v32  ;;  %v1905_v29 = vadd.f32 %v4506_v25, %v5812_v61  ;;  %v1899_v15 = vpop.f32.mrb[43].mxu1  ;;  %v6408_v25 = vld [vmem:[#allocation6_spill] sm:$0xff] }
 0x22a   : > { %v4834_v5 = vpop.eup %4833  ;;  %v2485_v57 = vmul.f32 %v4832_v24, %v5463_v58  ;;  %v1900_v50 = vadd.f32 %v5812_v61, %v1899_v15 }
 0x22b   : > { %4009 = vst [vmem:[%s5867_s29 + $0x90] sm:$0xff] %v3765_v48   ;;  %v2484_v53 = vmul.f32 %v4834_v5, %v5455_v46  ;;  %4843 = vrsqrt.f32 %v1905_v29  ;;  %v6409_v29 = vld [vmem:[#allocation4_spill] sm:$0xff] }
 0x22c   : > { %4845 = vrsqrt.f32 %v1900_v50  ;;  %v4509_v44 = vpop.f32.mrb[44].mxu1 }
 0x22d   : > { %v4836_v8 = vpop.eup %4835  ;;  %v3770_v49 = vpack.c.bf16 %v2485_v57, %v2484_v53  ;;  %v1915_v1 = vadd.f32 %v4509_v44, %v5812_v61  ;;  %v1909_v33 = vpop.f32.mrb[45].mxu1 }
 0x22e   : > { %v4838_v38 = vpop.eup %4837  ;;  %v2487_v22 = vmul.f32 %v4836_v8, %v5480_v16  ;;  %v1910_v59 = vadd.f32 %v5812_v61, %v1909_v33 }
 0x22f   : > { %4010 = vst [vmem:[%s5867_s29 + $0x98] sm:$0xff] %v3770_v49   ;;  %v2486_v58 = vmul.f32 %v4838_v38, %v5472_v6  ;;  %4847 = vrsqrt.f32 %v1915_v1  ;;  %v6410_v49 = vld [vmem:[#allocation7_spill] sm:$0xff]  ;;  %v6411_v38 = vld [vmem:[#allocation5_spill] sm:$0xff] }
 0x230   : > { %4849 = vrsqrt.f32 %v1910_v59  ;;  %v4512_v46 = vpop.f32.mrb[46].mxu1 }
 0x231   : > { %v4840_v9 = vpop.eup %4839  ;;  %v3775_v0 = vpack.c.bf16 %v2487_v22, %v2486_v58  ;;  %v1925_v31 = vadd.f32 %v4512_v46, %v5812_v61  ;;  %v1919_v34 = vpop.f32.mrb[47].mxu1 }
 0x232   : > { %v4842_v4 = vpop.eup %4841  ;;  %v2489_v54 = vmul.f32 %v4840_v9, %v5483_v17  ;;  %v1920_v55 = vadd.f32 %v5812_v61, %v1919_v34  ;;  %v6412_v34 = vld [vmem:[#allocation10_spill] sm:$0xff] }
 0x233   : > { %4011 = vst [vmem:[%s5867_s29 + $0xa0] sm:$0xff] %v3775_v0   ;;  %v2488_v16 = vmul.f32 %v4842_v4, %v5475_v11  ;;  %4851 = vrsqrt.f32 %v1925_v31 }
 0x234   : > { %4853 = vrsqrt.f32 %v1920_v55  ;;  %v4515_v6 = vpop.f32.mrb[48].mxu1  ;;  %v6413_v55 = vld [vmem:[#allocation8_spill] sm:$0xff] }
 0x235   : > { %v4844_v27 = vpop.eup %4843  ;;  %v3780_v19 = vpack.c.bf16 %v2489_v54, %v2488_v16  ;;  %v1935_v10 = vadd.f32 %v4515_v6, %v5812_v61  ;;  %v1929_v3 = vpop.f32.mrb[49].mxu1 }
 0x236   : > { %v4846_v13 = vpop.eup %4845  ;;  %v2491_v39 = vmul.f32 %v4844_v27, %v5500_v52  ;;  %v1930_v28 = vadd.f32 %v5812_v61, %v1929_v3  ;;  %v6407_v52 = vld [vmem:[#allocation2_spill] sm:$0xff] }
 0x237   : > { %4012 = vst [vmem:[%s5867_s29 + $0xa8] sm:$0xff] %v3780_v19   ;;  %v2490_v17 = vmul.f32 %v4846_v13, %v5492_v36  ;;  %4855 = vrsqrt.f32 %v1935_v10 }
 0x238   : > { %4857 = vrsqrt.f32 %v1930_v28  ;;  %v4518_v11 = vpop.f32.mrb[50].mxu1 }
 0x239   : > { %v4848_v62 = vpop.eup %4847  ;;  %v3785_v40 = vpack.c.bf16 %v2491_v39, %v2490_v17  ;;  %v1945_v41 = vadd.f32 %v4518_v11, %v5812_v61  ;;  %v1939_v42 = vpop.f32.mrb[51].mxu1  ;;  %v6414_v39 = vld [vmem:[#allocation11_spill] sm:$0xff]  ;;  %v6415_v11 = vld [vmem:[#allocation9_spill] sm:$0xff] }
 0x23a   : > { %v4850_v30 = vpop.eup %4849  ;;  %v2493_v51 = vmul.f32 %v4848_v62, %v6406_v18  ;;  %v1940_v21 = vadd.f32 %v5812_v61, %v1939_v42 }
 0x23b   : > { %4013 = vst [vmem:[%s5867_s29 + $0xb0] sm:$0xff] %v3785_v40   ;;  %v2492_v45 = vmul.f32 %v4850_v30, %v6407_v52  ;;  %4859 = vrsqrt.f32 %v1945_v41 }
 0x23c   : > { %4861 = vrsqrt.f32 %v1940_v21  ;;  %v4521_v36 = vpop.f32.mrb[52].mxu1  ;;  %v6416_v21 = vld [vmem:[#allocation14_spill] sm:$0xff] }
 0x23d   : > { %v4852_v56 = vpop.eup %4851  ;;  %v3790_v47 = vpack.c.bf16 %v2493_v51, %v2492_v45  ;;  %v1955_v23 = vadd.f32 %v4521_v36, %v5812_v61  ;;  %v1949_v37 = vpop.f32.mrb[53].mxu1  ;;  %v6417_v36 = vld [vmem:[#allocation12_spill] sm:$0xff] }
 0x23e   : > { %v4854_v32 = vpop.eup %4853  ;;  %v2495_v24 = vmul.f32 %v4852_v56, %v6408_v25  ;;  %v1950_v48 = vadd.f32 %v5812_v61, %v1949_v37 }
 0x23f   : > { %4014 = vst [vmem:[%s5867_s29 + $0xb8] sm:$0xff] %v3790_v47   ;;  %v2494_v15 = vmul.f32 %v4854_v32, %v6409_v29  ;;  %4863 = vrsqrt.f32 %v1955_v23 }
 0x240   : > { %4865 = vrsqrt.f32 %v1950_v48  ;;  %v4524_v5 = vpop.f32.mrb[54].mxu1  ;;  %v6418_v48 = vld [vmem:[#allocation15_spill] sm:$0xff] }
 0x241   : > { %v4856_v57 = vpop.eup %4855  ;;  %v3795_v50 = vpack.c.bf16 %v2495_v24, %v2494_v15  ;;  %v1965_v53 = vadd.f32 %v4524_v5, %v5812_v61  ;;  %v1959_v44 = vpop.f32.mrb[55].mxu1  ;;  %v6419_v5 = vld [vmem:[#allocation13_spill] sm:$0xff] }
 0x242   : > { %v4858_v8 = vpop.eup %4857  ;;  %v2497_v1 = vmul.f32 %v4856_v57, %v6410_v49  ;;  %v1960_v33 = vadd.f32 %v5812_v61, %v1959_v44 }
 0x243   : > { %4015 = vst [vmem:[%s5867_s29 + $0xc0] sm:$0xff] %v3795_v50   ;;  %v2496_v22 = vmul.f32 %v4858_v8, %v6411_v38  ;;  %4867 = vrsqrt.f32 %v1965_v53 }
 0x244   : > { %4869 = vrsqrt.f32 %v1960_v33  ;;  %v4527_v59 = vpop.f32.mrb[56].mxu1  ;;  %v6420_v33 = vld [vmem:[#allocation18_spill] sm:$0xff] }
 0x245   : > { %v4860_v58 = vpop.eup %4859  ;;  %v3800_v46 = vpack.c.bf16 %v2497_v1, %v2496_v22  ;;  %v1975_v9 = vadd.f32 %v4527_v59, %v5812_v61  ;;  %v1969_v0 = vpop.f32.mrb[57].mxu1  ;;  %v6421_v59 = vld [vmem:[#allocation16_spill] sm:$0xff] }
 0x246   : > { %v4862_v31 = vpop.eup %4861  ;;  %v2499_v4 = vmul.f32 %v4860_v58, %v6412_v34  ;;  %v1970_v54 = vadd.f32 %v5812_v61, %v1969_v0 }
 0x247   : > { %4016 = vst [vmem:[%s5867_s29 + $0xc8] sm:$0xff] %v3800_v46   ;;  %v2498_v16 = vmul.f32 %v4862_v31, %v6413_v55  ;;  %4871 = vrsqrt.f32 %v1975_v9 }
 0x248   : > { %4873 = vrsqrt.f32 %v1970_v54  ;;  %v4530_v6 = vpop.f32.mrb[58].mxu1  ;;  %v6422_v54 = vld [vmem:[#allocation19_spill] sm:$0xff] }
 0x249   : > { %v4864_v27 = vpop.eup %4863  ;;  %v3805_v19 = vpack.c.bf16 %v2499_v4, %v2498_v16  ;;  %v1985_v10 = vadd.f32 %v4530_v6, %v5812_v61  ;;  %v1979_v3 = vpop.f32.mrb[59].mxu1  ;;  %v6423_v6 = vld [vmem:[#allocation17_spill] sm:$0xff] }
 0x24a   : > { %v4866_v13 = vpop.eup %4865  ;;  %v2501_v28 = vmul.f32 %v4864_v27, %v6414_v39  ;;  %v1980_v17 = vadd.f32 %v5812_v61, %v1979_v3 }
 0x24b   : > { %4017 = vst [vmem:[%s5867_s29 + $0xd0] sm:$0xff] %v3805_v19   ;;  %v2500_v62 = vmul.f32 %v4866_v13, %v6415_v11  ;;  %4875 = vrsqrt.f32 %v1985_v10 }
 0x24c   : > { %4877 = vrsqrt.f32 %v1980_v17  ;;  %v4533_v40 = vpop.f32.mrb[60].mxu1  ;;  %v6424_v17 = vld [vmem:[#allocation22_spill] sm:$0xff] }
 0x24d   : > { %v4868_v41 = vpop.eup %4867  ;;  %v3810_v42 = vpack.c.bf16 %v2501_v28, %v2500_v62  ;;  %v1995_v30 = vadd.f32 %v4533_v40, %v5812_v61  ;;  %v1989_v18 = vpop.f32.mrb[61].mxu1  ;;  %v6425_v40 = vld [vmem:[#allocation20_spill] sm:$0xff] }
 0x24e   : > { %v4870_v51 = vpop.eup %4869  ;;  %v2503_v52 = vmul.f32 %v4868_v41, %v6416_v21  ;;  %v1990_v45 = vadd.f32 %v5812_v61, %v1989_v18 }
 0x24f   : > { %4018 = vst [vmem:[%s5867_s29 + $0xd8] sm:$0xff] %v3810_v42   ;;  %v2502_v56 = vmul.f32 %v4870_v51, %v6417_v36  ;;  %4879 = vrsqrt.f32 %v1995_v30 }
 0x250   : > { %4881 = vrsqrt.f32 %v1990_v45  ;;  %v4536_v47 = vpop.f32.mrb[62].mxu1  ;;  %v6426_v45 = vld [vmem:[#allocation23_spill] sm:$0xff] }
 0x251   : > { %v4872_v23 = vpop.eup %4871  ;;  %v3815_v37 = vpack.c.bf16 %v2503_v52, %v2502_v56  ;;  %v2005_v32 = vadd.f32 %v4536_v47, %v5812_v61  ;;  %v1999_v25 = vpop.f32.mrb[63].mxu1  ;;  %v6427_v47 = vld [vmem:[#allocation21_spill] sm:$0xff] }
 0x252   : > { %v4874_v24 = vpop.eup %4873  ;;  %v2505_v29 = vmul.f32 %v4872_v23, %v6418_v48  ;;  %v2000_v15 = vadd.f32 %v5812_v61, %v1999_v25 }
 0x253   : > { %4019 = vst [vmem:[%s5867_s29 + $0xe0] sm:$0xff] %v3815_v37   ;;  %v2504_v57 = vmul.f32 %v4874_v24, %v6419_v5  ;;  %4883 = vrsqrt.f32 %v2005_v32 }
 0x254   : > { %4885 = vrsqrt.f32 %v2000_v15  ;;  %v4539_v50 = vpop.f32.mrb[64].mxu1  ;;  %v6428_v15 = vld [vmem:[#allocation26_spill] sm:$0xff] }
 0x255   : > { %v4876_v53 = vpop.eup %4875  ;;  %v3820_v44 = vpack.c.bf16 %v2505_v29, %v2504_v57  ;;  %v2015_v8 = vadd.f32 %v4539_v50, %v5812_v61  ;;  %v2009_v49 = vpop.f32.mrb[65].mxu1  ;;  %v6108_v57 = vld [vmem:[%s6260_s4] ss:$0 sm:$0xff] }
 0x256   : > { %v4878_v1 = vpop.eup %4877  ;;  %v2507_v38 = vmul.f32 %v4876_v53, %v6420_v33  ;;  %v2010_v22 = vadd.f32 %v5812_v61, %v2009_v49  ;;  %v6429_v53 = vld [vmem:[#allocation24_spill] sm:$0xff] }
 0x257   : > { %4020 = vst [vmem:[%s5867_s29 + $0xe8] sm:$0xff] %v3820_v44   ;;  %v2506_v58 = vmul.f32 %v4878_v1, %v6421_v59  ;;  %4887 = vrsqrt.f32 %v2015_v8 }
 0x258   : > { %4889 = vrsqrt.f32 %v2010_v22  ;;  %v4542_v46 = vpop.f32.mrb[66].mxu1  ;;  %v6430_v22 = vld [vmem:[#allocation27_spill] sm:$0xff] }
 0x259   : > { %v4880_v9 = vpop.eup %4879  ;;  %v3825_v0 = vpack.c.bf16 %v2507_v38, %v2506_v58  ;;  %v2025_v31 = vadd.f32 %v4542_v46, %v5812_v61  ;;  %v2019_v34 = vpop.f32.mrb[67].mxu1  ;;  %v6431_v46 = vld [vmem:[#allocation25_spill] sm:$0xff] }
 0x25a   : > { %v4882_v4 = vpop.eup %4881  ;;  %v2509_v55 = vmul.f32 %v4880_v9, %v6422_v54  ;;  %v2020_v16 = vadd.f32 %v5812_v61, %v2019_v34 }
 0x25b   : > { %4021 = vst [vmem:[%s5867_s29 + $0xf0] sm:$0xff] %v3825_v0   ;;  %v2508_v27 = vmul.f32 %v4882_v4, %v6423_v6  ;;  %4891 = vrsqrt.f32 %v2025_v31 }
 0x25c   : > { %4893 = vrsqrt.f32 %v2020_v16  ;;  %v4545_v19 = vpop.f32.mrb[68].mxu1  ;;  %v6432_v16 = vld [vmem:[#allocation30_spill] sm:$0xff] }
 0x25d   : > { %v4884_v10 = vpop.eup %4883  ;;  %v3830_v3 = vpack.c.bf16 %v2509_v55, %v2508_v27  ;;  %v2035_v13 = vadd.f32 %v4545_v19, %v5812_v61  ;;  %v2029_v39 = vpop.f32.mrb[69].mxu1  ;;  %v6433_v19 = vld [vmem:[#allocation28_spill] sm:$0xff] }
 0x25e   : > { %v4886_v28 = vpop.eup %4885  ;;  %v2511_v11 = vmul.f32 %v4884_v10, %v6424_v17  ;;  %v2030_v62 = vadd.f32 %v5812_v61, %v2029_v39 }
 0x25f   : > { %4022 = vst [vmem:[%s5867_s29 + $0xf8] sm:$0xff] %v3830_v3   ;;  %v2510_v41 = vmul.f32 %v4886_v28, %v6425_v40  ;;  %4895 = vrsqrt.f32 %v2035_v13 }
 0x260   : > { %4897 = vrsqrt.f32 %v2030_v62  ;;  %v4548_v42 = vpop.f32.mrb[70].mxu1  ;;  %v6434_v62 = vld [vmem:[#allocation31_spill] sm:$0xff] }
 0x261   : > { %v4888_v30 = vpop.eup %4887  ;;  %v3835_v18 = vpack.c.bf16 %v2511_v11, %v2510_v41  ;;  %v2045_v51 = vadd.f32 %v4548_v42, %v5812_v61  ;;  %v2039_v21 = vpop.f32.mrb[71].mxu1  ;;  %v6435_v42 = vld [vmem:[#allocation29_spill] sm:$0xff] }
 0x262   : > { %v4890_v52 = vpop.eup %4889  ;;  %v2513_v36 = vmul.f32 %v4888_v30, %v6426_v45  ;;  %v2040_v56 = vadd.f32 %v5812_v61, %v2039_v21 }
 0x263   : > { %4023 = vst [vmem:[%s5867_s29 + $0x100] sm:$0xff] %v3835_v18   ;;  %v2512_v23 = vmul.f32 %v4890_v52, %v6427_v47  ;;  %4899 = vrsqrt.f32 %v2045_v51 }
 0x264   : > { %4901 = vrsqrt.f32 %v2040_v56  ;;  %v4551_v37 = vpop.f32.mrb[72].mxu1  ;;  %v6436_v56 = vld [vmem:[#allocation34_spill] sm:$0xff] }
 0x265   : > { %v4892_v32 = vpop.eup %4891  ;;  %v3840_v25 = vpack.c.bf16 %v2513_v36, %v2512_v23  ;;  %v2055_v24 = vadd.f32 %v4551_v37, %v5812_v61  ;;  %v2049_v48 = vpop.f32.mrb[73].mxu1  ;;  %v6437_v37 = vld [vmem:[#allocation32_spill] sm:$0xff] }
 0x266   : > { %v4894_v29 = vpop.eup %4893  ;;  %v2515_v5 = vmul.f32 %v4892_v32, %v6428_v15  ;;  %v2050_v50 = vadd.f32 %v6108_v57, %v2049_v48 }
 0x267   : > { %4024 = vst [vmem:[%s5867_s29 + $0x108] sm:$0xff] %v3840_v25   ;;  %v2514_v44 = vmul.f32 %v4894_v29, %v6429_v53  ;;  %4903 = vrsqrt.f32 %v2055_v24 }
 0x268   : > { %4905 = vrsqrt.f32 %v2050_v50  ;;  %v4554_v8 = vpop.f32.mrb[74].mxu1  ;;  %v6438_v50 = vld [vmem:[#allocation35_spill] sm:$0xff] }
 0x269   : > { %v4896_v49 = vpop.eup %4895  ;;  %v3845_v61 = vpack.c.bf16 %v2515_v5, %v2514_v44  ;;  %v2065_v1 = vadd.f32 %v6108_v57, %v4554_v8  ;;  %v2059_v33 = vpop.f32.mrb[75].mxu1  ;;  %v6439_v8 = vld [vmem:[#allocation33_spill] sm:$0xff] }
 0x26a   : > { %v4898_v38 = vpop.eup %4897  ;;  %v2517_v59 = vmul.f32 %v4896_v49, %v6430_v22  ;;  %v2060_v58 = vadd.f32 %v6108_v57, %v2059_v33 }
 0x26b   : > { %4025 = vst [vmem:[%s5867_s29 + $0x110] sm:$0xff] %v3845_v61   ;;  %v2516_v9 = vmul.f32 %v4898_v38, %v6431_v46  ;;  %4907 = vrsqrt.f32 %v2065_v1 }
 0x26c   : > { %4909 = vrsqrt.f32 %v2060_v58  ;;  %v4557_v0 = vpop.f32.mrb[76].mxu1  ;;  %v6440_v58 = vld [vmem:[#allocation38_spill] sm:$0xff] }
 0x26d   : > { %v4900_v31 = vpop.eup %4899  ;;  %v3850_v34 = vpack.c.bf16 %v2517_v59, %v2516_v9  ;;  %v2075_v4 = vadd.f32 %v6108_v57, %v4557_v0  ;;  %v2069_v54 = vpop.f32.mrb[77].mxu1  ;;  %v6441_v0 = vld [vmem:[#allocation36_spill] sm:$0xff] }
 0x26e   : > { %v4902_v55 = vpop.eup %4901  ;;  %v2519_v6 = vmul.f32 %v4900_v31, %v6432_v16  ;;  %v2070_v27 = vadd.f32 %v6108_v57, %v2069_v54 }
 0x26f   : > { %4026 = vst [vmem:[%s5867_s29 + $0x118] sm:$0xff] %v3850_v34   ;;  %v2518_v10 = vmul.f32 %v4902_v55, %v6433_v19  ;;  %4911 = vrsqrt.f32 %v2075_v4 }
 0x270   : > { %4913 = vrsqrt.f32 %v2070_v27  ;;  %v4560_v3 = vpop.f32.mrb[78].mxu1  ;;  %v6442_v27 = vld [vmem:[#allocation39_spill] sm:$0xff] }
 0x271   : > { %v4904_v13 = vpop.eup %4903  ;;  %v3855_v39 = vpack.c.bf16 %v2519_v6, %v2518_v10  ;;  %v2085_v28 = vadd.f32 %v6108_v57, %v4560_v3  ;;  %v2079_v17 = vpop.f32.mrb[79].mxu1  ;;  %v6443_v3 = vld [vmem:[#allocation37_spill] sm:$0xff] }
 0x272   : > { %v4906_v11 = vpop.eup %4905  ;;  %v2521_v40 = vmul.f32 %v4904_v13, %v6434_v62  ;;  %v2080_v41 = vadd.f32 %v6108_v57, %v2079_v17 }
 0x273   : > { %4027 = vst [vmem:[%s5867_s29 + $0x120] sm:$0xff] %v3855_v39   ;;  %v2520_v30 = vmul.f32 %v4906_v11, %v6435_v42  ;;  %4915 = vrsqrt.f32 %v2085_v28 }
 0x274   : > { %4917 = vrsqrt.f32 %v2080_v41  ;;  %v4563_v18 = vpop.f32.mrb[80].mxu1  ;;  %v6444_v41 = vld [vmem:[#allocation42_spill] sm:$0xff] }
 0x275   : > { %v4908_v51 = vpop.eup %4907  ;;  %v3860_v21 = vpack.c.bf16 %v2521_v40, %v2520_v30  ;;  %v2095_v52 = vadd.f32 %v6108_v57, %v4563_v18  ;;  %v2089_v45 = vpop.f32.mrb[81].mxu1  ;;  %v6445_v18 = vld [vmem:[#allocation40_spill] sm:$0xff] }
 0x276   : > { %v4910_v36 = vpop.eup %4909  ;;  %v2523_v47 = vmul.f32 %v4908_v51, %v6436_v56  ;;  %v2090_v23 = vadd.f32 %v6108_v57, %v2089_v45 }
 0x277   : > { %4028 = vst [vmem:[%s5867_s29 + $0x128] sm:$0xff] %v3860_v21   ;;  %v2522_v32 = vmul.f32 %v4910_v36, %v6437_v37  ;;  %4919 = vrsqrt.f32 %v2095_v52 }
 0x278   : > { %4921 = vrsqrt.f32 %v2090_v23  ;;  %v4566_v25 = vpop.f32.mrb[82].mxu1  ;;  %v6446_v23 = vld [vmem:[#allocation43_spill] sm:$0xff] }
 0x279   : > { %v4912_v24 = vpop.eup %4911  ;;  %v3865_v48 = vpack.c.bf16 %v2523_v47, %v2522_v32  ;;  %v2105_v29 = vadd.f32 %v6108_v57, %v4566_v25  ;;  %v2099_v15 = vpop.f32.mrb[83].mxu1  ;;  %v6447_v25 = vld [vmem:[#allocation41_spill] sm:$0xff] }
 0x27a   : > { %v4914_v5 = vpop.eup %4913  ;;  %v2525_v53 = vmul.f32 %v4912_v24, %v6438_v50  ;;  %v2100_v44 = vadd.f32 %v6108_v57, %v2099_v15 }
 0x27b   : > { %4029 = vst [vmem:[%s5867_s29 + $0x130] sm:$0xff] %v3865_v48   ;;  %v2524_v49 = vmul.f32 %v4914_v5, %v6439_v8  ;;  %4923 = vrsqrt.f32 %v2105_v29 }
 0x27c   : > { %4925 = vrsqrt.f32 %v2100_v44  ;;  %v4569_v61 = vpop.f32.mrb[84].mxu1  ;;  %v6448_v44 = vld [vmem:[#allocation46_spill] sm:$0xff] }
 0x27d   : > { %v4916_v1 = vpop.eup %4915  ;;  %v3870_v33 = vpack.c.bf16 %v2525_v53, %v2524_v49  ;;  %v2115_v38 = vadd.f32 %v6108_v57, %v4569_v61  ;;  %v2109_v22 = vpop.f32.mrb[85].mxu1  ;;  %v6449_v61 = vld [vmem:[#allocation44_spill] sm:$0xff] }
 0x27e   : > { %v4918_v59 = vpop.eup %4917  ;;  %v2527_v46 = vmul.f32 %v4916_v1, %v6440_v58  ;;  %v2110_v9 = vadd.f32 %v6108_v57, %v2109_v22 }
 0x27f   : > { %4030 = vst [vmem:[%s5867_s29 + $0x138] sm:$0xff] %v3870_v33   ;;  %v2526_v31 = vmul.f32 %v4918_v59, %v6441_v0  ;;  %4927 = vrsqrt.f32 %v2115_v38 }
 0x280   : > { %4929 = vrsqrt.f32 %v2110_v9  ;;  %v4572_v34 = vpop.f32.mrb[86].mxu1  ;;  %v6450_v9 = vld [vmem:[#allocation47_spill] sm:$0xff] }
 0x281   : > { %v4920_v4 = vpop.eup %4919  ;;  %v3875_v54 = vpack.c.bf16 %v2527_v46, %v2526_v31  ;;  %v2125_v55 = vadd.f32 %v6108_v57, %v4572_v34  ;;  %v2119_v16 = vpop.f32.mrb[87].mxu1  ;;  %v6451_v34 = vld [vmem:[#allocation45_spill] sm:$0xff] }
 0x282   : > { %v4922_v6 = vpop.eup %4921  ;;  %v2529_v19 = vmul.f32 %v4920_v4, %v6442_v27  ;;  %v2120_v10 = vadd.f32 %v6108_v57, %v2119_v16 }
 0x283   : > { %4031 = vst [vmem:[%s5867_s29 + $0x140] sm:$0xff] %v3875_v54   ;;  %v2528_v13 = vmul.f32 %v4922_v6, %v6443_v3  ;;  %4931 = vrsqrt.f32 %v2125_v55 }
 0x284   : > { %4933 = vrsqrt.f32 %v2120_v10  ;;  %v4575_v39 = vpop.f32.mrb[88].mxu1  ;;  %v6452_v10 = vld [vmem:[#allocation50_spill] sm:$0xff] }
 0x285   : > { %v4924_v28 = vpop.eup %4923  ;;  %v3880_v17 = vpack.c.bf16 %v2529_v19, %v2528_v13  ;;  %v2135_v11 = vadd.f32 %v6108_v57, %v4575_v39  ;;  %v2129_v62 = vpop.f32.mrb[89].mxu1  ;;  %v6453_v39 = vld [vmem:[#allocation48_spill] sm:$0xff] }
 0x286   : > { %v4926_v40 = vpop.eup %4925  ;;  %v2531_v42 = vmul.f32 %v4924_v28, %v6444_v41  ;;  %v2130_v30 = vadd.f32 %v6108_v57, %v2129_v62 }
 0x287   : > { %4032 = vst [vmem:[%s5867_s29 + $0x148] sm:$0xff] %v3880_v17   ;;  %v2530_v51 = vmul.f32 %v4926_v40, %v6445_v18  ;;  %4935 = vrsqrt.f32 %v2135_v11 }
 0x288   : > { %4937 = vrsqrt.f32 %v2130_v30  ;;  %v4578_v21 = vpop.f32.mrb[90].mxu1  ;;  %v6454_v30 = vld [vmem:[#allocation51_spill] sm:$0xff] }
 0x289   : > { %v4928_v52 = vpop.eup %4927  ;;  %v3885_v45 = vpack.c.bf16 %v2531_v42, %v2530_v51  ;;  %v2145_v36 = vadd.f32 %v6108_v57, %v4578_v21  ;;  %v2139_v56 = vpop.f32.mrb[91].mxu1  ;;  %v6455_v21 = vld [vmem:[#allocation49_spill] sm:$0xff] }
 0x28a   : > { %v4930_v47 = vpop.eup %4929  ;;  %v2533_v37 = vmul.f32 %v4928_v52, %v6446_v23  ;;  %v2140_v32 = vadd.f32 %v6108_v57, %v2139_v56 }
 0x28b   : > { %4033 = vst [vmem:[%s5867_s29 + $0x150] sm:$0xff] %v3885_v45   ;;  %v2532_v24 = vmul.f32 %v4930_v47, %v6447_v25  ;;  %4939 = vrsqrt.f32 %v2145_v36 }
 0x28c   : > { %4941 = vrsqrt.f32 %v2140_v32  ;;  %v4581_v48 = vpop.f32.mrb[92].mxu1  ;;  %v6456_v32 = vld [vmem:[#allocation54_spill] sm:$0xff] }
 0x28d   : > { %v4932_v29 = vpop.eup %4931  ;;  %v3890_v15 = vpack.c.bf16 %v2533_v37, %v2532_v24  ;;  %v2155_v5 = vadd.f32 %v6108_v57, %v4581_v48  ;;  %v2149_v50 = vpop.f32.mrb[93].mxu1  ;;  %v6457_v48 = vld [vmem:[#allocation52_spill] sm:$0xff] }
 0x28e   : > { %v4934_v53 = vpop.eup %4933  ;;  %v2535_v8 = vmul.f32 %v4932_v29, %v6448_v44  ;;  %v2150_v49 = vadd.f32 %v6108_v57, %v2149_v50 }
 0x28f   : > { %4034 = vst [vmem:[%s5867_s29 + $0x158] sm:$0xff] %v3890_v15   ;;  %v2534_v1 = vmul.f32 %v4934_v53, %v6449_v61  ;;  %4943 = vrsqrt.f32 %v2155_v5 }
 0x290   : > { %4945 = vrsqrt.f32 %v2150_v49  ;;  %v4584_v33 = vpop.f32.mrb[94].mxu1  ;;  %v6458_v49 = vld [vmem:[#allocation55_spill] sm:$0xff] }
 0x291   : > { %v4936_v38 = vpop.eup %4935  ;;  %v3895_v22 = vpack.c.bf16 %v2535_v8, %v2534_v1  ;;  %v2165_v59 = vadd.f32 %v6108_v57, %v4584_v33  ;;  %v2159_v58 = vpop.f32.mrb[95].mxu1  ;;  %v6459_v33 = vld [vmem:[#allocation53_spill] sm:$0xff] }
 0x292   : > { %v4938_v46 = vpop.eup %4937  ;;  %v2537_v0 = vmul.f32 %v4936_v38, %v6450_v9  ;;  %v2160_v31 = vadd.f32 %v6108_v57, %v2159_v58 }
 0x293   : > { %4035 = vst [vmem:[%s5867_s29 + $0x160] sm:$0xff] %v3895_v22   ;;  %v2536_v4 = vmul.f32 %v4938_v46, %v6451_v34  ;;  %4947 = vrsqrt.f32 %v2165_v59 }
 0x294   : > { %4949 = vrsqrt.f32 %v2160_v31  ;;  %v4587_v54 = vpop.f32.mrb[96].mxu1  ;;  %v6460_v31 = vld [vmem:[#allocation58_spill] sm:$0xff] }
 0x295   : > { %v4940_v55 = vpop.eup %4939  ;;  %v3900_v16 = vpack.c.bf16 %v2537_v0, %v2536_v4  ;;  %v2175_v6 = vadd.f32 %v6108_v57, %v4587_v54  ;;  %v2169_v27 = vpop.f32.mrb[97].mxu1  ;;  %v6461_v54 = vld [vmem:[#allocation56_spill] sm:$0xff] }
 0x296   : > { %v4942_v19 = vpop.eup %4941  ;;  %v2539_v3 = vmul.f32 %v4940_v55, %v6452_v10  ;;  %v2170_v13 = vadd.f32 %v6108_v57, %v2169_v27 }
 0x297   : > { %4036 = vst [vmem:[%s5867_s29 + $0x168] sm:$0xff] %v3900_v16   ;;  %v2538_v28 = vmul.f32 %v4942_v19, %v6453_v39  ;;  %4951 = vrsqrt.f32 %v2175_v6 }
 0x298   : > { %4953 = vrsqrt.f32 %v2170_v13  ;;  %v4590_v17 = vpop.f32.mrb[98].mxu1  ;;  %v6462_v13 = vld [vmem:[#allocation59_spill] sm:$0xff] }
 0x299   : > { %v4944_v11 = vpop.eup %4943  ;;  %v3905_v62 = vpack.c.bf16 %v2539_v3, %v2538_v28  ;;  %v2185_v40 = vadd.f32 %v6108_v57, %v4590_v17  ;;  %v2179_v41 = vpop.f32.mrb[99].mxu1  ;;  %v6463_v17 = vld [vmem:[#allocation57_spill] sm:$0xff] }
 0x29a   : > { %v4946_v42 = vpop.eup %4945  ;;  %v2541_v18 = vmul.f32 %v4944_v11, %v6454_v30  ;;  %v2180_v51 = vadd.f32 %v6108_v57, %v2179_v41 }
 0x29b   : > { %4037 = vst [vmem:[%s5867_s29 + $0x170] sm:$0xff] %v3905_v62   ;;  %v2540_v52 = vmul.f32 %v4946_v42, %v6455_v21  ;;  %4955 = vrsqrt.f32 %v2185_v40 }
 0x29c   : > { %4957 = vrsqrt.f32 %v2180_v51  ;;  %v4593_v45 = vpop.f32.mrb[100].mxu1  ;;  %v6464_v51 = vld [vmem:[#allocation62_spill] sm:$0xff] }
 0x29d   : > { %v4948_v36 = vpop.eup %4947  ;;  %v3910_v56 = vpack.c.bf16 %v2541_v18, %v2540_v52  ;;  %v2195_v47 = vadd.f32 %v6108_v57, %v4593_v45  ;;  %v2189_v23 = vpop.f32.mrb[101].mxu1  ;;  %v6465_v45 = vld [vmem:[#allocation60_spill] sm:$0xff] }
 0x29e   : > { %v4950_v37 = vpop.eup %4949  ;;  %v2543_v25 = vmul.f32 %v4948_v36, %v6456_v32  ;;  %v2190_v24 = vadd.f32 %v6108_v57, %v2189_v23 }
 0x29f   : > { %4038 = vst [vmem:[%s5867_s29 + $0x178] sm:$0xff] %v3910_v56   ;;  %v2542_v29 = vmul.f32 %v4950_v37, %v6457_v48  ;;  %4959 = vrsqrt.f32 %v2195_v47 }
 0x2a0   : > { %4961 = vrsqrt.f32 %v2190_v24  ;;  %v4596_v15 = vpop.f32.mrb[102].mxu1  ;;  %v6466_v24 = vld [vmem:[#allocation63_spill] sm:$0xff] }
 0x2a1   : > { %v4952_v5 = vpop.eup %4951  ;;  %v3915_v50 = vpack.c.bf16 %v2543_v25, %v2542_v29  ;;  %v2205_v53 = vadd.f32 %v6108_v57, %v4596_v15  ;;  %v2199_v44 = vpop.f32.mrb[103].mxu1  ;;  %v6467_v15 = vld [vmem:[#allocation61_spill] sm:$0xff] }
 0x2a2   : > { %v4954_v8 = vpop.eup %4953  ;;  %v2545_v61 = vmul.f32 %v4952_v5, %v6458_v49  ;;  %v2200_v1 = vadd.f32 %v6108_v57, %v2199_v44 }
 0x2a3   : > { %4039 = vst [vmem:[%s5867_s29 + $0x180] sm:$0xff] %v3915_v50   ;;  %v2544_v38 = vmul.f32 %v4954_v8, %v6459_v33  ;;  %4963 = vrsqrt.f32 %v2205_v53 }
 0x2a4   : > { %4965 = vrsqrt.f32 %v2200_v1  ;;  %v4599_v22 = vpop.f32.mrb[104].mxu1  ;;  %v6468_v1 = vld [vmem:[#allocation66_spill] sm:$0xff] }
 0x2a5   : > { %v4956_v59 = vpop.eup %4955  ;;  %v3920_v58 = vpack.c.bf16 %v2545_v61, %v2544_v38  ;;  %v2215_v46 = vadd.f32 %v6108_v57, %v4599_v22  ;;  %v2209_v9 = vpop.f32.mrb[105].mxu1  ;;  %v6469_v22 = vld [vmem:[#allocation64_spill] sm:$0xff] }
 0x2a6   : > { %v4958_v0 = vpop.eup %4957  ;;  %v2547_v34 = vmul.f32 %v4956_v59, %v6460_v31  ;;  %v2210_v4 = vadd.f32 %v6108_v57, %v2209_v9 }
 0x2a7   : > { %4040 = vst [vmem:[%s5867_s29 + $0x188] sm:$0xff] %v3920_v58   ;;  %v2546_v55 = vmul.f32 %v4958_v0, %v6461_v54  ;;  %4967 = vrsqrt.f32 %v2215_v46 }
 0x2a8   : > { %4969 = vrsqrt.f32 %v2210_v4  ;;  %v4602_v16 = vpop.f32.mrb[106].mxu1  ;;  %v6470_v4 = vld [vmem:[#allocation67_spill] sm:$0xff] }
 0x2a9   : > { %v4960_v6 = vpop.eup %4959  ;;  %v3925_v27 = vpack.c.bf16 %v2547_v34, %v2546_v55  ;;  %v2225_v19 = vadd.f32 %v6108_v57, %v4602_v16  ;;  %v2219_v10 = vpop.f32.mrb[107].mxu1  ;;  %v6471_v16 = vld [vmem:[#allocation65_spill] sm:$0xff] }
 0x2aa   : > { %v4962_v3 = vpop.eup %4961  ;;  %v2549_v39 = vmul.f32 %v4960_v6, %v6462_v13  ;;  %v2220_v28 = vadd.f32 %v6108_v57, %v2219_v10 }
 0x2ab   : > { %4041 = vst [vmem:[%s5867_s29 + $0x190] sm:$0xff] %v3925_v27   ;;  %v2548_v11 = vmul.f32 %v4962_v3, %v6463_v17  ;;  %4971 = vrsqrt.f32 %v2225_v19 }
 0x2ac   : > { %4973 = vrsqrt.f32 %v2220_v28  ;;  %v4605_v62 = vpop.f32.mrb[108].mxu1  ;;  %v6472_v28 = vld [vmem:[#allocation70_spill] sm:$0xff] }
 0x2ad   : > { %v4964_v40 = vpop.eup %4963  ;;  %v3930_v41 = vpack.c.bf16 %v2549_v39, %v2548_v11  ;;  %v2235_v42 = vadd.f32 %v6108_v57, %v4605_v62  ;;  %v2229_v30 = vpop.f32.mrb[109].mxu1  ;;  %v6473_v62 = vld [vmem:[#allocation68_spill] sm:$0xff] }
 0x2ae   : > { %v4966_v18 = vpop.eup %4965  ;;  %v2551_v21 = vmul.f32 %v4964_v40, %v6464_v51  ;;  %v2230_v52 = vadd.f32 %v6108_v57, %v2229_v30 }
 0x2af   : > { %4042 = vst [vmem:[%s5867_s29 + $0x198] sm:$0xff] %v3930_v41   ;;  %v2550_v36 = vmul.f32 %v4966_v18, %v6465_v45  ;;  %4975 = vrsqrt.f32 %v2235_v42 }
 0x2b0   : > { %4977 = vrsqrt.f32 %v2230_v52  ;;  %v4608_v56 = vpop.f32.mrb[110].mxu1 }
 0x2b1   : > { %v4968_v47 = vpop.eup %4967  ;;  %v3935_v23 = vpack.c.bf16 %v2551_v21, %v2550_v36  ;;  %v2245_v37 = vadd.f32 %v6108_v57, %v4608_v56  ;;  %v2239_v32 = vpop.f32.mrb[111].mxu1  ;;  %v6474_v36 = vld [vmem:[#allocation69_spill] sm:$0xff] }
 0x2b2   : > { %v4970_v25 = vpop.eup %4969  ;;  %v2553_v48 = vmul.f32 %v4968_v47, %v6466_v24  ;;  %v2240_v29 = vadd.f32 %v6108_v57, %v2239_v32 }
 0x2b3   : > { %4043 = vst [vmem:[%s5867_s29 + $0x1a0] sm:$0xff] %v3935_v23   ;;  %v2552_v5 = vmul.f32 %v4970_v25, %v6467_v15  ;;  %4979 = vrsqrt.f32 %v2245_v37 }
 0x2b4   : > { %4981 = vrsqrt.f32 %v2240_v29  ;;  %v4611_v50 = vpop.f32.mrb[112].mxu1 }
 0x2b5   : > { %v4972_v53 = vpop.eup %4971  ;;  %v3940_v44 = vpack.c.bf16 %v2553_v48, %v2552_v5  ;;  %v2255_v8 = vadd.f32 %v6108_v57, %v4611_v50  ;;  %v2249_v49 = vpop.f32.mrb[113].mxu1 }
 0x2b6   : > { %v4974_v61 = vpop.eup %4973  ;;  %v2555_v33 = vmul.f32 %v4972_v53, %v6468_v1  ;;  %v2250_v38 = vadd.f32 %v6108_v57, %v2249_v49 }
 0x2b7   : > { %4044 = vst [vmem:[%s5867_s29 + $0x1a8] sm:$0xff] %v3940_v44   ;;  %v2554_v59 = vmul.f32 %v4974_v61, %v6469_v22  ;;  %4983 = vrsqrt.f32 %v2255_v8  ;;  %v6476_v61 = vld [vmem:[#allocation73_spill] sm:$0xff] }
 0x2b8   : > { %4985 = vrsqrt.f32 %v2250_v38  ;;  %v4614_v58 = vpop.f32.mrb[114].mxu1 }
 0x2b9   : > { %v4976_v46 = vpop.eup %4975  ;;  %v3945_v9 = vpack.c.bf16 %v2555_v33, %v2554_v59  ;;  %v2265_v0 = vadd.f32 %v6108_v57, %v4614_v58  ;;  %v2259_v31 = vpop.f32.mrb[115].mxu1 }
 0x2ba   : > { %v4978_v34 = vpop.eup %4977  ;;  %v2557_v54 = vmul.f32 %v4976_v46, %v6470_v4  ;;  %v2260_v55 = vadd.f32 %v6108_v57, %v2259_v31 }
 0x2bb   : > { %4045 = vst [vmem:[%s5867_s29 + $0x1b0] sm:$0xff] %v3945_v9   ;;  %v2556_v6 = vmul.f32 %v4978_v34, %v6471_v16  ;;  %4987 = vrsqrt.f32 %v2265_v0 }
 0x2bc   : > { %4989 = vrsqrt.f32 %v2260_v55  ;;  %v4617_v27 = vpop.f32.mrb[116].mxu1 }
 0x2bd   : > { %v4980_v19 = vpop.eup %4979  ;;  %v3950_v10 = vpack.c.bf16 %v2557_v54, %v2556_v6  ;;  %v2275_v3 = vadd.f32 %v6108_v57, %v4617_v27  ;;  %v2269_v13 = vpop.f32.mrb[117].mxu1 }
 0x2be   : > { %v4982_v39 = vpop.eup %4981  ;;  %v2559_v17 = vmul.f32 %v4980_v19, %v6472_v28  ;;  %v2270_v11 = vadd.f32 %v6108_v57, %v2269_v13 }
 0x2bf   : > { %4046 = vst [vmem:[%s5867_s29 + $0x1b8] sm:$0xff] %v3950_v10   ;;  %v2558_v40 = vmul.f32 %v4982_v39, %v6473_v62  ;;  %4991 = vrsqrt.f32 %v2275_v3 }
 0x2c0   : > { %4993 = vrsqrt.f32 %v2270_v11 }
 0x2c1   : > { %v4620_v41 = vpop.f32.mrb[118].mxu1  ;;  %v4984_v42 = vpop.eup %4983  ;;  %v3955_v30 = vpack.c.bf16 %v2559_v17, %v2558_v40 }
 0x2c2   : > { %v2285_v18 = vadd.f32 %v6108_v57, %v4620_v41  ;;  %v2279_v51 = vpop.f32.mrb[119].mxu1  ;;  %v4986_v21 = vpop.eup %4985  ;;  %v2561_v52 = vmul.f32 %v4984_v42, %v5852_v7  ;;  %v6475_v7 = vld [vmem:[#allocation71_spill] sm:$0xff] }
 0x2c3   : > { %v2280_v45 = vadd.f32 %v6108_v57, %v2279_v51  ;;  %4047 = vst [vmem:[%s5867_s29 + $0x1c0] sm:$0xff] %v3955_v30   ;;  %v2560_v56 = vmul.f32 %v4986_v21, %v6474_v36 }
 0x2c4   : > { %4995 = vrsqrt.f32 %v2285_v18 }
 0x2c5   : > { %4997 = vrsqrt.f32 %v2280_v45  ;;  %v4623_v47 = vpop.f32.mrb[120].mxu1  ;;  %v4988_v23 = vpop.eup %4987  ;;  %v3960_v37 = vpack.c.bf16 %v2561_v52, %v2560_v56 }
 0x2c6   : > { %v2295_v32 = vadd.f32 %v6108_v57, %v4623_v47  ;;  %v2289_v25 = vpop.f32.mrb[121].mxu1  ;;  %v4990_v24 = vpop.eup %4989  ;;  %v2563_v48 = vmul.f32 %v4988_v23, %v5885_v26  ;;  %v6477_v26 = vld [vmem:[#allocation72_spill] sm:$0xff] }
 0x2c7   : > { %v2290_v29 = vadd.f32 %v6108_v57, %v2289_v25  ;;  %4048 = vst [vmem:[%s5867_s29 + $0x1c8] sm:$0xff] %v3960_v37   ;;  %v2562_v15 = vmul.f32 %v4990_v24, %v6475_v7 }
 0x2c8   : > { %4999 = vrsqrt.f32 %v2295_v32 }
 0x2c9   : > { %5001 = vrsqrt.f32 %v2290_v29  ;;  %v4626_v5 = vpop.f32.mrb[122].mxu1  ;;  %v4992_v50 = vpop.eup %4991  ;;  %v3965_v53 = vpack.c.bf16 %v2563_v48, %v2562_v15 }
 0x2ca   : > { %v2305_v44 = vadd.f32 %v6108_v57, %v4626_v5  ;;  %v2299_v8 = vpop.f32.mrb[123].mxu1  ;;  %v4994_v49 = vpop.eup %4993  ;;  %v2565_v1 = vmul.f32 %v4992_v50, %v6476_v61 }
 0x2cb   : > { %v2300_v33 = vadd.f32 %v6108_v57, %v2299_v8  ;;  %4049 = vst [vmem:[%s5867_s29 + $0x1d0] sm:$0xff] %v3965_v53   ;;  %v2564_v38 = vmul.f32 %v4994_v49, %v6477_v26 }
 0x2cc   : > { %5003 = vrsqrt.f32 %v2305_v44 }
 0x2cd   : > { %5005 = vrsqrt.f32 %v2300_v33  ;;  %v4629_v22 = vpop.f32.mrb[124].mxu1  ;;  %v3970_v58 = vpack.c.bf16 %v2565_v1, %v2564_v38 }
 0x2ce   : > { %v4996_v59 = vpop.eup %4995  ;;  %v2315_v46 = vadd.f32 %v6108_v57, %v4629_v22  ;;  %v2309_v9 = vpop.f32.mrb[125].mxu1 }
 0x2cf   : > { %v4998_v0 = vpop.eup %4997  ;;  %v2567_v31 = vmul.f32 %v4996_v59, %v5912_v35  ;;  %v2310_v34 = vadd.f32 %v6108_v57, %v2309_v9  ;;  %4050 = vst [vmem:[%s5867_s29 + $0x1d8] sm:$0xff] %v3970_v58  }
 0x2d0   : > { %v2566_v4 = vmul.f32 %v4998_v0, %v5904_v20  ;;  %5007 = vrsqrt.f32 %v2315_v46 }
 0x2d1   : > { %5009 = vrsqrt.f32 %v2310_v34 }
 0x2d2   : > { %v5000_v54 = vpop.eup %4999  ;;  %v3975_v55 = vpack.c.bf16 %v2567_v31, %v2566_v4 }
 0x2d3   : > { %v5002_v16 = vpop.eup %5001  ;;  %v2569_v6 = vmul.f32 %v5000_v54, %v5920_v63 }
 0x2d4   : > { %4051 = vst [vmem:[%s5867_s29 + $0x1e0] sm:$0xff] %v3975_v55   ;;  %v2568_v27 = vmul.f32 %v5002_v16, %v5907_v14 }
 0x2d6   : > { %v5004_v19 = vpop.eup %5003  ;;  %v3980_v35 = vpack.c.bf16 %v2569_v6, %v2568_v27 }
 0x2d7   : > { %v5006_v10 = vpop.eup %5005  ;;  %v2571_v57 = vmul.f32 %v5004_v19, %v5942_v12 }
 0x2d8   : > { %4052 = vst [vmem:[%s5867_s29 + $0x1e8] sm:$0xff] %v3980_v35   ;;  %v2570_v20 = vmul.f32 %v5006_v10, %v5934_v43 }
 0x2da   : > { %v5008_v3 = vpop.eup %5007  ;;  %v3985_v13 = vpack.c.bf16 %v2571_v57, %v2570_v20 }
 0x2db   : > { %v5010_v39 = vpop.eup %5009  ;;  %v2573_v28 = vmul.f32 %v5008_v3, %v5950_v2 }
 0x2dc   : > { %4053 = vst [vmem:[%s5867_s29 + $0x1f0] sm:$0xff] %v3985_v13   ;;  %v2572_v63 = vmul.f32 %v5010_v39, %v5937_v60 }
 0x2de   : > { %v3990_v17 = vpack.c.bf16 %v2573_v28, %v2572_v63 }
 0x2e0   : > { %4054 = vst [vmem:[%s5867_s29 + $0x1f8] sm:$0xff] %v3990_v17  }
 0x2e1 PF: > { %s15_s18 = sadd.s32 1, %s5019_s18  }
 0x2e2   : > { %p12_p4 = scmp.ge.s32.totalorder %s15_s18, 4  }
 0x2e4   :  { %14 = sbr.rel (!%p12_p4) target bundleno = 1 (0x1), region = 70 }

// kernel: forward.11
= control target key start
LH: loop header
LB: loop body
LE: loop exit
PB: predicated region body
PF: predicated region fallthrough
CT: control target
= control target key end

     0   :  { %v950_v0 = vmov 0   ;;  %vm220_vm0 = vcmask 654336   ;;  %s1283_s1 = inlined_call_operand.vmem [shape: bf16[208,128], index: 1, kind: input, shape index: {}]   ;;  %s1284_s0 = inlined_call_operand.vmem [shape: bf16[128,208], index: 0, kind: input, shape index: {}]   ;;  %s1285_s3 = inlined_call_operand.vmem [shape: f32[128,128], index: 3, kind: input, shape index: {}]   ;;  %s1286_s2 = inlined_call_operand.vmem [shape: f32[1,128], index: 2, kind: input, shape index: {}]   ;;  %s1287_s4 = inlined_call_operand.vmem [shape: f32[1,128], index: 4, kind: input, shape index: {}]   ;;  %s1288_s5 = inlined_call_operand.vmem [shape: bf16[128,128], index: 5, kind: output, shape index: {}]  }
   0x1   :  { %245 = vmatprep.subr.bf16.mxu0 %v950_v0  ;;  %v881_v1 = vld [vmem:[%s1283_s1] sm:$0xff]   ;;  %v882_v2 = vld [vmem:[%s1283_s1 + $0x8] sm:$0xff]   ;;  %v883_v3 = vld [vmem:[%s1283_s1 + $0x10] sm:$0xff]  }
   0x2   :  { %246 = vmatpush1.bf16.msra.mxu0 %v881_v1  ;;  %v884_v4 = vld [vmem:[%s1283_s1 + $0x18] sm:$0xff]   ;;  %v885_v5 = vld [vmem:[%s1283_s1 + $0x20] sm:$0xff]   ;;  %v886_v7 = vld [vmem:[%s1283_s1 + $0x28] sm:$0xff]  }
   0x3   :  { %247 = vmatprep.subr.bf16.mxu0 %v950_v0  ;;  %v896_v6 = vld [vmem:[%s1284_s0 + $0x4] ss:$8 sps:$4 sm:$0xff]   ;;  %v887_v8 = vld [vmem:[%s1283_s1 + $0x30] sm:$0xff]   ;;  %v361_v12 = vld [vmem:[%s1285_s3 + $0x18] sm:$0xff] }
   0x4   :  { %672 = vmatprep.mubr.msk.bf16.mxu0 %vm220_vm0, %v896_v6  ;;  %v358_v9 = vld [vmem:[%s1285_s3] sm:$0xff]  ;;  %v359_v10 = vld [vmem:[%s1285_s3 + $0x8] sm:$0xff]  ;;  %v360_v11 = vld [vmem:[%s1285_s3 + $0x10] sm:$0xff] }
   0x5   :  { %v848_v13 = vpack.c.bf16 %v359_v10, %v358_v9  ;;  %v852_v14 = vpack.c.bf16 %v361_v12, %v360_v11  ;;  %v888_v15 = vld [vmem:[%s1283_s1 + $0x38] sm:$0xff]   ;;  %v362_v16 = vld [vmem:[%s1285_s3 + $0x20] sm:$0xff]  ;;  %v363_v17 = vld [vmem:[%s1285_s3 + $0x28] sm:$0xff] }
   0x6   :  { %248 = vmatpush1.bf16.msra.mxu0 %v882_v2  ;;  %v856_v18 = vpack.c.bf16 %v363_v17, %v362_v16  ;;  %v889_v19 = vld [vmem:[%s1283_s1 + $0x40] sm:$0xff]   ;;  %v364_v20 = vld [vmem:[%s1285_s3 + $0x30] sm:$0xff]  ;;  %v365_v21 = vld [vmem:[%s1285_s3 + $0x38] sm:$0xff] }
   0x7   :  { %249 = vmatprep.subr.bf16.mxu0 %v950_v0  ;;  %849 = vmatprep.subr.bf16.mxu1 %v848_v13  ;;  %v860_v22 = vpack.c.bf16 %v365_v21, %v364_v20  ;;  %v890_v23 = vld [vmem:[%s1283_s1 + $0x48] sm:$0xff]   ;;  %v366_v24 = vld [vmem:[%s1285_s3 + $0x40] sm:$0xff]  ;;  %v891_v27 = vld [vmem:[%s1283_s1 + $0x50] sm:$0xff]  }
   0x8   :  { %851 = vmatpush3.bf16.msra.mxu1 %v848_v13  ;;  %v367_v25 = vld [vmem:[%s1285_s3 + $0x48] sm:$0xff]  ;;  %v368_v28 = vld [vmem:[%s1285_s3 + $0x50] sm:$0xff]  ;;  %v369_v29 = vld [vmem:[%s1285_s3 + $0x58] sm:$0xff] }
   0x9   :  { %853 = vmatprep.subr.bf16.mxu1 %v852_v14  ;;  %v864_v26 = vpack.c.bf16 %v367_v25, %v366_v24  ;;  %v868_v30 = vpack.c.bf16 %v369_v29, %v368_v28  ;;  %v892_v31 = vld [vmem:[%s1283_s1 + $0x58] sm:$0xff]   ;;  %v370_v32 = vld [vmem:[%s1285_s3 + $0x60] sm:$0xff]  ;;  %v371_v33 = vld [vmem:[%s1285_s3 + $0x68] sm:$0xff] }
   0xa   :  { %250 = vmatpush1.bf16.msra.mxu0 %v883_v3  ;;  %v872_v34 = vpack.c.bf16 %v371_v33, %v370_v32  ;;  %v893_v35 = vld [vmem:[%s1283_s1 + $0x60] sm:$0xff]   ;;  %v897_v37 = vld [vmem:[%s1284_s0 + $0x14] ss:$8 sps:$4 sm:$0xff]   ;;  %v899_v38 = vld [vmem:[%s1284_s0 + $0x10] ss:$8 sps:$4 sm:$0xff]  }
   0xb   :  { %251 = vmatprep.subr.bf16.mxu0 %v950_v0  ;;  %v894_v36 = vld [vmem:[%s1284_s0] ss:$8 sps:$4 sm:$0xff]   ;;  %v900_v39 = vld [vmem:[%s1284_s0 + $0x24] ss:$8 sps:$4 sm:$0xff]   ;;  %v903_v41 = vld [vmem:[%s1284_s0 + $0x34] ss:$8 sps:$4 sm:$0xff]  }
   0xc   :  { %855 = vmatpush3.bf16.msra.mxu1 %v852_v14  ;;  %v902_v40 = vld [vmem:[%s1284_s0 + $0x20] ss:$8 sps:$4 sm:$0xff]   ;;  %v905_v42 = vld [vmem:[%s1284_s0 + $0x30] ss:$8 sps:$4 sm:$0xff]   ;;  %v906_v43 = vld [vmem:[%s1284_s0 + $0x44] ss:$8 sps:$4 sm:$0xff]  }
   0xd   :  { %857 = vmatprep.subr.bf16.mxu1 %v856_v18  ;;  %v908_v44 = vld [vmem:[%s1284_s0 + $0x40] ss:$8 sps:$4 sm:$0xff]   ;;  %v909_v45 = vld [vmem:[%s1284_s0 + $0x54] ss:$8 sps:$4 sm:$0xff]   ;;  %v911_v46 = vld [vmem:[%s1284_s0 + $0x50] ss:$8 sps:$4 sm:$0xff]  }
   0xe   :  { %252 = vmatpush1.bf16.msra.mxu0 %v884_v4  ;;  %v912_v47 = vld [vmem:[%s1284_s0 + $0x64] ss:$8 sps:$4 sm:$0xff]   ;;  %v914_v48 = vld [vmem:[%s1284_s0 + $0x60] ss:$8 sps:$4 sm:$0xff]   ;;  %v915_v49 = vld [vmem:[%s1284_s0 + $0x74] ss:$8 sps:$4 sm:$0xff]  }
   0xf   :  { %253 = vmatprep.subr.bf16.mxu0 %v950_v0  ;;  %v917_v50 = vld [vmem:[%s1284_s0 + $0x70] ss:$8 sps:$4 sm:$0xff]   ;;  %v1140_v54 = vld [vmem:[%s1286_s2] ss:$0 sm:$0xff] }
  0x10   :  { %859 = vmatpush3.bf16.msra.mxu1 %v856_v18  ;;  %v372_v51 = vld [vmem:[%s1285_s3 + $0x70] sm:$0xff]  ;;  %v373_v52 = vld [vmem:[%s1285_s3 + $0x78] sm:$0xff] }
  0x11   :  { %861 = vmatprep.subr.bf16.mxu1 %v860_v22  ;;  %v876_v53 = vpack.c.bf16 %v373_v52, %v372_v51 }
  0x12   :  { %254 = vmatpush1.bf16.msra.mxu0 %v885_v5 }
  0x13   :  { %255 = vmatprep.subr.bf16.mxu0 %v950_v0 }
  0x14   :  { %863 = vmatpush3.bf16.msra.mxu1 %v860_v22 }
  0x15   :  { %865 = vmatprep.subr.bf16.mxu1 %v864_v26 }
  0x16   :  { %256 = vmatpush1.bf16.msra.mxu0 %v886_v7 }
  0x17   :  { %257 = vmatprep.subr.bf16.mxu0 %v950_v0 }
  0x18   :  { %867 = vmatpush3.bf16.msra.mxu1 %v864_v26 }
  0x19   :  { %869 = vmatprep.subr.bf16.mxu1 %v868_v30 }
  0x1a   :  { %258 = vmatpush1.bf16.msra.mxu0 %v887_v8 }
  0x1b   :  { %259 = vmatprep.subr.bf16.mxu0 %v950_v0 }
  0x1c   :  { %871 = vmatpush3.bf16.msra.mxu1 %v868_v30 }
  0x1d   :  { %873 = vmatprep.subr.bf16.mxu1 %v872_v34 }
  0x1e   :  { %260 = vmatpush1.bf16.msra.mxu0 %v888_v15 }
  0x1f   :  { %261 = vmatprep.subr.bf16.mxu0 %v950_v0 }
  0x20   :  { %875 = vmatpush3.bf16.msra.mxu1 %v872_v34 }
  0x21   :  { %877 = vmatprep.subr.bf16.mxu1 %v876_v53 }
  0x22   :  { %262 = vmatpush1.bf16.msra.mxu0 %v889_v19 }
  0x23   :  { %263 = vmatprep.subr.bf16.mxu0 %v950_v0 }
  0x24   :  { %879 = vmatpush3.bf16.msra.mxu1 %v876_v53 }
  0x26   :  { %264 = vmatpush1.bf16.msra.mxu0 %v890_v23 }
  0x27   :  { %265 = vmatprep.subr.bf16.mxu0 %v950_v0 }
  0x2a   :  { %266 = vmatpush1.bf16.msra.mxu0 %v891_v27 }
  0x2b   :  { %267 = vmatprep.subr.bf16.mxu0 %v950_v0 }
  0x2e   :  { %268 = vmatpush1.bf16.msra.mxu0 %v892_v31 }
  0x2f   :  { %269 = vmatprep.subr.bf16.mxu0 %v950_v0 }
  0x32   :  { %270 = vmatpush1.bf16.msra.mxu0 %v893_v35 }
  0x35   :  { %278 = vmatmul.mubr.bf16.vlgmr.msra.gmra.mrb[0].mxu0 %v894_v36 }
  0x36   :  { %673 = vmatprep.mubr.msk.bf16.mxu0 %vm220_vm0, %v897_v37 }
  0x3d   :  { %286 = vmatmul.mubr.bf16.gmra.mrb[4].mxu0 %v899_v38 }
  0x3e   :  { %674 = vmatprep.mubr.msk.bf16.mxu0 %vm220_vm0, %v900_v39 }
  0x45   :  { %294 = vmatmul.mubr.bf16.gmra.mrb[8].mxu0 %v902_v40 }
  0x46   :  { %675 = vmatprep.mubr.msk.bf16.mxu0 %vm220_vm0, %v903_v41 }
  0x4d   :  { %302 = vmatmul.mubr.bf16.gmra.mrb[12].mxu0 %v905_v42 }
  0x4e   :  { %676 = vmatprep.mubr.msk.bf16.mxu0 %vm220_vm0, %v906_v43 }
  0x55   :  { %310 = vmatmul.mubr.bf16.gmra.mrb[16].mxu0 %v908_v44 }
  0x56   :  { %677 = vmatprep.mubr.msk.bf16.mxu0 %vm220_vm0, %v909_v45 }
  0x5d   :  { %318 = vmatmul.mubr.bf16.gmra.mrb[20].mxu0 %v911_v46 }
  0x5e   :  { %678 = vmatprep.mubr.msk.bf16.mxu0 %vm220_vm0, %v912_v47 }
  0x65   :  { %326 = vmatmul.mubr.bf16.gmra.mrb[24].mxu0 %v914_v48 }
  0x66   :  { %679 = vmatprep.mubr.msk.bf16.mxu0 %vm220_vm0, %v915_v49 }
  0x6d   :  { %334 = vmatmul.mubr.bf16.gmra.mrb[28].mxu0 %v917_v50 }
 0x108   :  { %v279_v55 = vpop.f32.mrb[0].mxu0 }
 0x109   :  { %v1143_v56 = vadd.f32 %v1140_v54, %v279_v55  ;;  %v281_v57 = vpop.f32.mrb[1].mxu0 }
 0x10a   :  { %v282_v58 = vpop.f32.mrb[2].mxu0  ;;  %v1225_v57 = vld [vmem:[%s1287_s4] ss:$0 sm:$0xff] }
 0x10b   :  { %v1146_v59 = vadd.f32 %v1140_v54, %v282_v58  ;;  %v284_v60 = vpop.f32.mrb[3].mxu0  ;;  %v342_v61 = vmul.f32 %v1143_v56, %v1143_v56 }
 0x10d   :  { %v343_v62 = vmul.f32 %v1146_v59, %v1146_v59  ;;  %824 = vmatprep.mubr.f32.mxu1 %v342_v61 }
 0x10f   :  { %825 = vmatmul.mubr.f32.vlgmr.msra.gmra.mrb[0].mxu1 %v343_v62 }
 0x110   :  { %v287_v63 = vpop.f32.mrb[4].mxu0 }
 0x111   :  { %v1153_v0 = vadd.f32 %v1140_v54, %v287_v63  ;;  %v289_v1 = vpop.f32.mrb[5].mxu0 }
 0x112   :  { %v290_v2 = vpop.f32.mrb[6].mxu0 }
 0x113   :  { %v344_v3 = vmul.f32 %v1153_v0, %v1153_v0  ;;  %v1158_v4 = vadd.f32 %v1140_v54, %v290_v2  ;;  %v292_v5 = vpop.f32.mrb[7].mxu0 }
 0x115   :  { %v345_v6 = vmul.f32 %v1158_v4, %v1158_v4  ;;  %827 = vmatprep.mubr.f32.mxu1 %v344_v3 }
 0x117   :  { %828 = vmatmul.mubr.f32.gmra.mrb[2].mxu1 %v345_v6 }
 0x118   :  { %v295_v7 = vpop.f32.mrb[8].mxu0 }
 0x119   :  { %v1163_v8 = vadd.f32 %v1140_v54, %v295_v7  ;;  %v297_v9 = vpop.f32.mrb[9].mxu0 }
 0x11a   :  { %v298_v10 = vpop.f32.mrb[10].mxu0 }
 0x11b   :  { %v346_v11 = vmul.f32 %v1163_v8, %v1163_v8  ;;  %v1168_v12 = vadd.f32 %v1140_v54, %v298_v10  ;;  %v300_v13 = vpop.f32.mrb[11].mxu0 }
 0x11d   :  { %v347_v14 = vmul.f32 %v1168_v12, %v1168_v12  ;;  %830 = vmatprep.mubr.f32.mxu1 %v346_v11 }
 0x11f   :  { %831 = vmatmul.mubr.f32.gmra.mrb[4].mxu1 %v347_v14 }
 0x120   :  { %v303_v15 = vpop.f32.mrb[12].mxu0 }
 0x121   :  { %v1173_v16 = vadd.f32 %v1140_v54, %v303_v15  ;;  %v305_v17 = vpop.f32.mrb[13].mxu0 }
 0x122   :  { %v306_v18 = vpop.f32.mrb[14].mxu0 }
 0x123   :  { %v348_v19 = vmul.f32 %v1173_v16, %v1173_v16  ;;  %v1178_v20 = vadd.f32 %v1140_v54, %v306_v18  ;;  %v308_v21 = vpop.f32.mrb[15].mxu0 }
 0x125   :  { %v349_v22 = vmul.f32 %v1178_v20, %v1178_v20  ;;  %833 = vmatprep.mubr.f32.mxu1 %v348_v19 }
 0x127   :  { %834 = vmatmul.mubr.f32.gmra.mrb[6].mxu1 %v349_v22 }
 0x128   :  { %v311_v23 = vpop.f32.mrb[16].mxu0 }
 0x129   :  { %v1183_v24 = vadd.f32 %v1140_v54, %v311_v23  ;;  %v313_v25 = vpop.f32.mrb[17].mxu0 }
 0x12a   :  { %v314_v26 = vpop.f32.mrb[18].mxu0 }
 0x12b   :  { %v350_v27 = vmul.f32 %v1183_v24, %v1183_v24  ;;  %v1188_v28 = vadd.f32 %v1140_v54, %v314_v26  ;;  %v316_v29 = vpop.f32.mrb[19].mxu0 }
 0x12d   :  { %v351_v30 = vmul.f32 %v1188_v28, %v1188_v28  ;;  %836 = vmatprep.mubr.f32.mxu1 %v350_v27 }
 0x12f   :  { %837 = vmatmul.mubr.f32.gmra.mrb[8].mxu1 %v351_v30 }
 0x130   :  { %v319_v31 = vpop.f32.mrb[20].mxu0 }
 0x131   :  { %v1193_v32 = vadd.f32 %v1140_v54, %v319_v31  ;;  %v321_v33 = vpop.f32.mrb[21].mxu0 }
 0x132   :  { %v322_v34 = vpop.f32.mrb[22].mxu0 }
 0x133   :  { %v352_v35 = vmul.f32 %v1193_v32, %v1193_v32  ;;  %v1198_v36 = vadd.f32 %v1140_v54, %v322_v34  ;;  %v324_v37 = vpop.f32.mrb[23].mxu0 }
 0x135   :  { %v353_v38 = vmul.f32 %v1198_v36, %v1198_v36  ;;  %839 = vmatprep.mubr.f32.mxu1 %v352_v35 }
 0x137   :  { %840 = vmatmul.mubr.f32.gmra.mrb[10].mxu1 %v353_v38 }
 0x138   :  { %v327_v39 = vpop.f32.mrb[24].mxu0 }
 0x139   :  { %v1203_v40 = vadd.f32 %v1140_v54, %v327_v39  ;;  %v329_v41 = vpop.f32.mrb[25].mxu0 }
 0x13a   :  { %v330_v42 = vpop.f32.mrb[26].mxu0 }
 0x13b   :  { %v354_v43 = vmul.f32 %v1203_v40, %v1203_v40  ;;  %v1208_v44 = vadd.f32 %v1140_v54, %v330_v42  ;;  %v332_v45 = vpop.f32.mrb[27].mxu0 }
 0x13d   :  { %v355_v46 = vmul.f32 %v1208_v44, %v1208_v44  ;;  %842 = vmatprep.mubr.f32.mxu1 %v354_v43 }
 0x13f   :  { %843 = vmatmul.mubr.f32.gmra.mrb[12].mxu1 %v355_v46 }
 0x140   :  { %v335_v47 = vpop.f32.mrb[28].mxu0 }
 0x141   :  { %v1213_v48 = vadd.f32 %v1140_v54, %v335_v47  ;;  %v337_v49 = vpop.f32.mrb[29].mxu0 }
 0x142   :  { %v338_v50 = vpop.f32.mrb[30].mxu0 }
 0x143   :  { %v356_v51 = vmul.f32 %v1213_v48, %v1213_v48  ;;  %v1218_v52 = vadd.f32 %v1140_v54, %v338_v50  ;;  %v340_v53 = vpop.f32.mrb[31].mxu0 }
 0x145   :  { %v357_v55 = vmul.f32 %v1218_v52, %v1218_v52  ;;  %845 = vmatprep.mubr.f32.mxu1 %v356_v51 }
 0x147   :  { %846 = vmatmul.mubr.f32.gmra.mrb[14].mxu1 %v357_v55 }
 0x1e2   :  { %v826_v58 = vpop.f32.mrb[0].mxu1 }
 0x1e3   :  { %v453_v60 = vadd.f32 %v826_v58, %v1225_v57  ;;  %v447_v61 = vpop.f32.mrb[1].mxu1 }
 0x1e4   :  { %v448_v62 = vadd.f32 %v1225_v57, %v447_v61 }
 0x1e5   :  { %918 = vrsqrt.f32 %v453_v60 }
 0x1e6   :  { %920 = vrsqrt.f32 %v448_v62 }
 0x1ea   :  { %v829_v54 = vpop.f32.mrb[2].mxu1 }
 0x1eb   :  { %v463_v63 = vadd.f32 %v829_v54, %v1225_v57  ;;  %v457_v1 = vpop.f32.mrb[3].mxu1 }
 0x1ec   :  { %v458_v2 = vadd.f32 %v1225_v57, %v457_v1 }
 0x1ed   :  { %922 = vrsqrt.f32 %v463_v63 }
 0x1ee   :  { %924 = vrsqrt.f32 %v458_v2 }
 0x1ef   :  { %v919_v3 = vpop.eup %918 }
 0x1f0   :  { %v921_v5 = vpop.eup %920  ;;  %v543_v6 = vmul.f32 %v919_v3, %v1146_v59 }
 0x1f1   :  { %v542_v7 = vmul.f32 %v921_v5, %v1143_v56 }
 0x1f2   :  { %v832_v9 = vpop.f32.mrb[4].mxu1 }
 0x1f3   :  { %v716_v10 = vpack.c.bf16 %v543_v6, %v542_v7  ;;  %v473_v11 = vadd.f32 %v832_v9, %v1225_v57  ;;  %v467_v13 = vpop.f32.mrb[5].mxu1 }
 0x1f4   :  { %v468_v14 = vadd.f32 %v1225_v57, %v467_v13 }
 0x1f5   :  { %717 = vst [vmem:[%s1288_s5] sm:$0xff] %v716_v10   ;;  %926 = vrsqrt.f32 %v473_v11 }
 0x1f6   :  { %928 = vrsqrt.f32 %v468_v14 }
 0x1f7   :  { %v923_v15 = vpop.eup %922 }
 0x1f8   :  { %v925_v17 = vpop.eup %924  ;;  %v545_v18 = vmul.f32 %v923_v15, %v1158_v4 }
 0x1f9   :  { %v544_v59 = vmul.f32 %v925_v17, %v1153_v0 }
 0x1fa   :  { %v835_v56 = vpop.f32.mrb[6].mxu1 }
 0x1fb   :  { %v721_v19 = vpack.c.bf16 %v545_v18, %v544_v59  ;;  %v483_v21 = vadd.f32 %v835_v56, %v1225_v57  ;;  %v477_v22 = vpop.f32.mrb[7].mxu1 }
 0x1fc   :  { %v478_v23 = vadd.f32 %v1225_v57, %v477_v22 }
 0x1fd   :  { %753 = vst [vmem:[%s1288_s5 + $0x8] sm:$0xff] %v721_v19   ;;  %930 = vrsqrt.f32 %v483_v21 }
 0x1fe   :  { %932 = vrsqrt.f32 %v478_v23 }
 0x1ff   :  { %v927_v25 = vpop.eup %926 }
 0x200   :  { %v929_v26 = vpop.eup %928  ;;  %v547_v27 = vmul.f32 %v927_v25, %v1168_v12 }
 0x201   :  { %v546_v4 = vmul.f32 %v929_v26, %v1163_v8 }
 0x202   :  { %v838_v0 = vpop.f32.mrb[8].mxu1 }
 0x203   :  { %v726_v29 = vpack.c.bf16 %v547_v27, %v546_v4  ;;  %v493_v30 = vadd.f32 %v838_v0, %v1225_v57  ;;  %v487_v31 = vpop.f32.mrb[9].mxu1 }
 0x204   :  { %v488_v33 = vadd.f32 %v1225_v57, %v487_v31 }
 0x205   :  { %754 = vst [vmem:[%s1288_s5 + $0x10] sm:$0xff] %v726_v29   ;;  %934 = vrsqrt.f32 %v493_v30 }
 0x206   :  { %936 = vrsqrt.f32 %v488_v33 }
 0x207   :  { %v931_v34 = vpop.eup %930 }
 0x208   :  { %v933_v35 = vpop.eup %932  ;;  %v549_v37 = vmul.f32 %v931_v34, %v1178_v20 }
 0x209   :  { %v548_v12 = vmul.f32 %v933_v35, %v1173_v16 }
 0x20a   :  { %v841_v8 = vpop.f32.mrb[10].mxu1 }
 0x20b   :  { %v731_v38 = vpack.c.bf16 %v549_v37, %v548_v12  ;;  %v503_v39 = vadd.f32 %v841_v8, %v1225_v57  ;;  %v497_v41 = vpop.f32.mrb[11].mxu1 }
 0x20c   :  { %v498_v42 = vadd.f32 %v1225_v57, %v497_v41 }
 0x20d   :  { %755 = vst [vmem:[%s1288_s5 + $0x18] sm:$0xff] %v731_v38   ;;  %938 = vrsqrt.f32 %v503_v39 }
 0x20e   :  { %940 = vrsqrt.f32 %v498_v42 }
 0x20f   :  { %v935_v43 = vpop.eup %934 }
 0x210   :  { %v937_v45 = vpop.eup %936  ;;  %v551_v46 = vmul.f32 %v935_v43, %v1188_v28 }
 0x211   :  { %v550_v20 = vmul.f32 %v937_v45, %v1183_v24 }
 0x212   :  { %v844_v16 = vpop.f32.mrb[12].mxu1 }
 0x213   :  { %v736_v47 = vpack.c.bf16 %v551_v46, %v550_v20  ;;  %v513_v49 = vadd.f32 %v844_v16, %v1225_v57  ;;  %v507_v50 = vpop.f32.mrb[13].mxu1 }
 0x214   :  { %v508_v51 = vadd.f32 %v1225_v57, %v507_v50 }
 0x215   :  { %756 = vst [vmem:[%s1288_s5 + $0x20] sm:$0xff] %v736_v47   ;;  %942 = vrsqrt.f32 %v513_v49 }
 0x216   :  { %944 = vrsqrt.f32 %v508_v51 }
 0x217   :  { %v939_v53 = vpop.eup %938 }
 0x218   :  { %v941_v55 = vpop.eup %940  ;;  %v553_v58 = vmul.f32 %v939_v53, %v1198_v36 }
 0x219   :  { %v552_v28 = vmul.f32 %v941_v55, %v1193_v32 }
 0x21a   :  { %v847_v24 = vpop.f32.mrb[14].mxu1 }
 0x21b   :  { %v741_v60 = vpack.c.bf16 %v553_v58, %v552_v28  ;;  %v523_v61 = vadd.f32 %v847_v24, %v1225_v57  ;;  %v517_v62 = vpop.f32.mrb[15].mxu1 }
 0x21c   :  { %v518_v54 = vadd.f32 %v1225_v57, %v517_v62 }
 0x21d   :  { %757 = vst [vmem:[%s1288_s5 + $0x28] sm:$0xff] %v741_v60   ;;  %946 = vrsqrt.f32 %v523_v61 }
 0x21e   :  { %948 = vrsqrt.f32 %v518_v54 }
 0x21f   :  { %v943_v63 = vpop.eup %942 }
 0x220   :  { %v945_v1 = vpop.eup %944  ;;  %v555_v2 = vmul.f32 %v943_v63, %v1208_v44 }
 0x221   :  { %v554_v36 = vmul.f32 %v945_v1, %v1203_v40 }
 0x223   :  { %v746_v32 = vpack.c.bf16 %v555_v2, %v554_v36 }
 0x225   :  { %758 = vst [vmem:[%s1288_s5 + $0x30] sm:$0xff] %v746_v32  }
 0x227   :  { %v947_v3 = vpop.eup %946 }
 0x228   :  { %v949_v5 = vpop.eup %948  ;;  %v557_v57 = vmul.f32 %v947_v3, %v1218_v52 }
 0x229   :  { %v556_v6 = vmul.f32 %v949_v5, %v1213_v48 }
 0x22b   :  { %v751_v7 = vpack.c.bf16 %v557_v57, %v556_v6 }
 0x22d   :  { %759 = vst [vmem:[%s1288_s5 + $0x38] sm:$0xff] %v751_v7  }

// kernel: forward.12
= control target key start
LH: loop header
LB: loop body
LE: loop exit
PB: predicated region body
PF: predicated region fallthrough
CT: control target
= control target key end

     0   :  { %v334_v0 = vmov 0   ;;  %vm151_vm0 = vcmask 654336   ;;  %s465_s2 = inlined_call_operand.vmem [shape: bf16[208,128], index: 2, kind: input, shape index: {}]   ;;  %s466_s0 = inlined_call_operand.vmem [shape: bf16[32,208], index: 0, kind: input, shape index: {}]   ;;  %s467_s3 = inlined_call_operand.vmem [shape: f32[1,128], index: 3, kind: input, shape index: {}]   ;;  %s468_s1 = inlined_call_operand.vmem [shape: f32[32,128], index: 1, kind: input, shape index: {}]   ;;  %s469_s4 = inlined_call_operand.vmem [shape: f32[32,128], index: 4, kind: output, shape index: {}]  }
   0x1   :  { %158 = vmatprep.subr.bf16.mxu0 %v334_v0  ;;  %271 = vmatprep.subr.bf16.mxu1 %v334_v0  ;;  %v299_v1 = vld [vmem:[%s465_s2] sm:$0xff]   ;;  %v300_v2 = vld [vmem:[%s465_s2 + $0x8] sm:$0xff]   ;;  %v301_v3 = vld [vmem:[%s465_s2 + $0x10] sm:$0xff]  }
   0x2   :  { %159 = vmatpush1.bf16.msra.mxu0 %v299_v1  ;;  %284 = vmatpush1.bf16.msra.mxu1 %v299_v1  ;;  %v302_v4 = vld [vmem:[%s465_s2 + $0x18] sm:$0xff]   ;;  %v303_v5 = vld [vmem:[%s465_s2 + $0x20] sm:$0xff]   ;;  %v304_v8 = vld [vmem:[%s465_s2 + $0x28] sm:$0xff]  }
   0x3   :  { %160 = vmatprep.subr.bf16.mxu0 %v334_v0  ;;  %272 = vmatprep.subr.bf16.mxu1 %v334_v0  ;;  %v314_v6 = vld [vmem:[%s466_s0 + $0x4] ss:$8 sps:$4 sm:$0xff]   ;;  %v317_v7 = vld [vmem:[%s466_s0 + $0x14] ss:$8 sps:$4 sm:$0xff]   ;;  %v312_v16 = vld [vmem:[%s466_s0] ss:$8 sps:$4 sm:$0xff]  }
   0x4   :  { %269 = vmatprep.mubr.msk.bf16.mxu0 %vm151_vm0, %v314_v6  ;;  %270 = vmatprep.mubr.msk.bf16.mxu1 %vm151_vm0, %v317_v7  ;;  %v305_v9 = vld [vmem:[%s465_s2 + $0x30] sm:$0xff]   ;;  %v306_v10 = vld [vmem:[%s465_s2 + $0x38] sm:$0xff]   ;;  %v307_v11 = vld [vmem:[%s465_s2 + $0x40] sm:$0xff]  }
   0x5   :  { %v308_v12 = vld [vmem:[%s465_s2 + $0x48] sm:$0xff]   ;;  %v309_v13 = vld [vmem:[%s465_s2 + $0x50] sm:$0xff]   ;;  %v310_v14 = vld [vmem:[%s465_s2 + $0x58] sm:$0xff]  }
   0x6   :  { %161 = vmatpush1.bf16.msra.mxu0 %v300_v2  ;;  %285 = vmatpush1.bf16.msra.mxu1 %v300_v2  ;;  %v311_v15 = vld [vmem:[%s465_s2 + $0x60] sm:$0xff]   ;;  %v315_v17 = vld [vmem:[%s466_s0 + $0x10] ss:$8 sps:$4 sm:$0xff]   ;;  %s335_s2 = smov 64   ;;  %v224_v55 = vld [vmem:[%s468_s1 + $0x8] sm:$0xff] }
   0x7   :  { %162 = vmatprep.subr.bf16.mxu0 %v334_v0  ;;  %273 = vmatprep.subr.bf16.mxu1 %v334_v0  ;;  %v251_v18 = vld [vmem:[%s467_s3] ss:$0 sm:$0xff]  ;;  %v225_v47 = vld [vmem:[%s468_s1 + $0x10] sm:$0xff]  ;;  %v226_v53 = vld [vmem:[%s468_s1 + $0x18] sm:$0xff] }
   0x8   :  { %v223_v48 = vld [vmem:[%s468_s1] sm:$0xff] }
   0xa   :  { %163 = vmatpush1.bf16.msra.mxu0 %v301_v3  ;;  %286 = vmatpush1.bf16.msra.mxu1 %v301_v3 }
   0xb   :  { %164 = vmatprep.subr.bf16.mxu0 %v334_v0  ;;  %274 = vmatprep.subr.bf16.mxu1 %v334_v0 }
   0xe   :  { %165 = vmatpush1.bf16.msra.mxu0 %v302_v4  ;;  %287 = vmatpush1.bf16.msra.mxu1 %v302_v4 }
   0xf   :  { %166 = vmatprep.subr.bf16.mxu0 %v334_v0  ;;  %275 = vmatprep.subr.bf16.mxu1 %v334_v0 }
  0x12   :  { %167 = vmatpush1.bf16.msra.mxu0 %v303_v5  ;;  %288 = vmatpush1.bf16.msra.mxu1 %v303_v5 }
  0x13   :  { %168 = vmatprep.subr.bf16.mxu0 %v334_v0  ;;  %276 = vmatprep.subr.bf16.mxu1 %v334_v0 }
  0x16   :  { %169 = vmatpush1.bf16.msra.mxu0 %v304_v8  ;;  %289 = vmatpush1.bf16.msra.mxu1 %v304_v8 }
  0x17   :  { %170 = vmatprep.subr.bf16.mxu0 %v334_v0  ;;  %277 = vmatprep.subr.bf16.mxu1 %v334_v0 }
  0x1a   :  { %171 = vmatpush1.bf16.msra.mxu0 %v305_v9  ;;  %290 = vmatpush1.bf16.msra.mxu1 %v305_v9 }
  0x1b   :  { %172 = vmatprep.subr.bf16.mxu0 %v334_v0  ;;  %278 = vmatprep.subr.bf16.mxu1 %v334_v0 }
  0x1e   :  { %173 = vmatpush1.bf16.msra.mxu0 %v306_v10  ;;  %291 = vmatpush1.bf16.msra.mxu1 %v306_v10 }
  0x1f   :  { %174 = vmatprep.subr.bf16.mxu0 %v334_v0  ;;  %279 = vmatprep.subr.bf16.mxu1 %v334_v0 }
  0x22   :  { %175 = vmatpush1.bf16.msra.mxu0 %v307_v11  ;;  %292 = vmatpush1.bf16.msra.mxu1 %v307_v11 }
  0x23   :  { %176 = vmatprep.subr.bf16.mxu0 %v334_v0  ;;  %280 = vmatprep.subr.bf16.mxu1 %v334_v0 }
  0x26   :  { %177 = vmatpush1.bf16.msra.mxu0 %v308_v12  ;;  %293 = vmatpush1.bf16.msra.mxu1 %v308_v12 }
  0x27   :  { %178 = vmatprep.subr.bf16.mxu0 %v334_v0  ;;  %281 = vmatprep.subr.bf16.mxu1 %v334_v0 }
  0x2a   :  { %179 = vmatpush1.bf16.msra.mxu0 %v309_v13  ;;  %294 = vmatpush1.bf16.msra.mxu1 %v309_v13 }
  0x2b   :  { %180 = vmatprep.subr.bf16.mxu0 %v334_v0  ;;  %282 = vmatprep.subr.bf16.mxu1 %v334_v0 }
  0x2e   :  { %181 = vmatpush1.bf16.msra.mxu0 %v310_v14  ;;  %295 = vmatpush1.bf16.msra.mxu1 %v310_v14 }
  0x2f   :  { %182 = vmatprep.subr.bf16.mxu0 %v334_v0  ;;  %283 = vmatprep.subr.bf16.mxu1 %v334_v0 }
  0x32   :  { %183 = vmatpush1.bf16.msra.mxu0 %v311_v15  ;;  %296 = vmatpush1.bf16.msra.mxu1 %v311_v15 }
  0x35   :  { %191 = vmatmul.mubr.bf16.vlgmr.msra.gmra.mrb[0].mxu0 %v312_v16  ;;  %199 = vmatmul.mubr.bf16.vlgmr.msra.gmra.mrb[0].mxu1 %v315_v17 }
 0x108   :  { %v192_v19 = vpop.f32.mrb[0].mxu0  ;;  %v200_v20 = vpop.f32.mrb[0].mxu1 }
 0x109   :  { %v193_v21 = vadd.f32 %v251_v18, %v192_v19  ;;  %v201_v22 = vadd.f32 %v251_v18, %v200_v20  ;;  %v194_v23 = vpop.f32.mrb[1].mxu0  ;;  %v202_v24 = vpop.f32.mrb[1].mxu1 }
 0x10a   :  { %v195_v25 = vpop.f32.mrb[2].mxu0  ;;  %v203_v26 = vpop.f32.mrb[2].mxu1 }
 0x10b   :  { %v205_v27 = vpop.f32.mrb[3].mxu1  ;;  %211 = vrot.lane.b32.xlu1 %v201_v22, %s335_s2  ;;  %v197_v28 = vpop.f32.mrb[3].mxu0  ;;  %207 = vrot.lane.b32.xlu0 %v193_v21, %s335_s2  ;;  %v196_v29 = vadd.f32 %v251_v18, %v195_v25  ;;  %v204_v30 = vadd.f32 %v251_v18, %v203_v26 }
 0x10f   :  { %213 = vrot.lane.b32.xlu1 %v204_v30, %s335_s2  ;;  %209 = vrot.lane.b32.xlu0 %v196_v29, %s335_s2 }
 0x17d   :  { %v212_v31 = vpop.permute.xlu1 %211  ;;  %v208_v32 = vpop.permute.xlu0 %207 }
 0x17e   :  { %v217_v33 = vmul.f32 0.5, %v212_v31  ;;  %v215_v34 = vmul.f32 0.5, %v208_v32 }
 0x180   :  { %318 = vtanh.f32 %v217_v33 }
 0x181   :  { %320 = vtanh.f32 %v215_v34  ;;  %v214_v35 = vpop.permute.xlu1 %213  ;;  %v210_v36 = vpop.permute.xlu0 %209 }
 0x182   :  { %v218_v37 = vmul.f32 0.5, %v214_v35  ;;  %v216_v38 = vmul.f32 0.5, %v210_v36 }
 0x184   :  { %322 = vtanh.f32 %v218_v37 }
 0x185   :  { %324 = vtanh.f32 %v216_v38 }
 0x18a   :  { %v319_v39 = vpop.eup %318 }
 0x18b   :  { %v321_v40 = vpop.eup %320  ;;  %v231_v41 = vmul.f32 1.442695, %v319_v39 }
 0x18c   :  { %v227_v42 = vmul.f32 1.442695, %v321_v40 }
 0x18d   :  { %326 = vpow2.f32 %v231_v41 }
 0x18e   :  { %v323_v43 = vpop.eup %322  ;;  %328 = vpow2.f32 %v227_v42 }
 0x18f   :  { %v325_v44 = vpop.eup %324  ;;  %v233_v45 = vmul.f32 1.442695, %v323_v43 }
 0x190   :  { %v229_v46 = vmul.f32 1.442695, %v325_v44 }
 0x191   :  { %330 = vpow2.f32 %v233_v45 }
 0x192   :  { %332 = vpow2.f32 %v229_v46 }
 0x197   :  { %v327_v49 = vpop.eup %326 }
 0x198   :  { %v329_v50 = vpop.eup %328  ;;  %v237_v51 = vmul.f32 %v327_v49, %v225_v47 }
 0x199   :  { %v235_v52 = vmul.f32 %v329_v50, %v223_v48 }
 0x19a   :  { %v241_v54 = vadd.f32 %v237_v51, %v201_v22 }
 0x19b   :  { %v331_v56 = vpop.eup %330  ;;  %v239_v57 = vadd.f32 %v235_v52, %v193_v21 }
 0x19c   :  { %v333_v58 = vpop.eup %332  ;;  %245 = vst [vmem:[%s469_s4 + $0x10] sm:$0xff] %v241_v54  ;;  %v238_v59 = vmul.f32 %v331_v56, %v226_v53 }
 0x19d   :  { %243 = vst [vmem:[%s469_s4] sm:$0xff] %v239_v57  ;;  %v236_v60 = vmul.f32 %v333_v58, %v224_v55 }
 0x19e   :  { %v242_v61 = vadd.f32 %v238_v59, %v204_v30 }
 0x19f   :  { %v240_v62 = vadd.f32 %v236_v60, %v196_v29 }
 0x1a0   :  { %246 = vst [vmem:[%s469_s4 + $0x18] sm:$0xff] %v242_v61 }
 0x1a1   :  { %244 = vst [vmem:[%s469_s4 + $0x8] sm:$0xff] %v240_v62 }

// kernel: forward.13
= control target key start
LH: loop header
LB: loop body
LE: loop exit
PB: predicated region body
PF: predicated region fallthrough
CT: control target
= control target key end

     0   :  { %v1025_v0 = vmov 0.0|0.0   ;;  %vm1026_vm0 = vmmov 0   ;;  %v1027_v4 = vmov 0.0   ;;  %vm253_vm1 = vcmask 261120   ;;  %s1479_s1 = inlined_call_operand.vmem [shape: f32[128,128], index: 1, kind: input, shape index: {}]   ;;  %s1480_s3 = inlined_call_operand.vmem [shape: f32[128,32], index: 3, kind: input, shape index: {}]   ;;  %s1481_s0 = inlined_call_operand.vmem [shape: f32[8,128], index: 0, kind: input, shape index: {}]   ;;  %s1482_s5 = inlined_call_operand.vmem [shape: f32[32,8], index: 5, kind: input, shape index: {}]   ;;  %s1483_s2 = inlined_call_operand.vmem [shape: f32[1,128], index: 2, kind: input, shape index: {}]   ;;  %s1484_s4 = inlined_call_operand.vmem [shape: f32[1,32], index: 4, kind: input, shape index: {}]   ;;  %s1485_s7 = inlined_call_operand.vmem [shape: f32[8,32], index: 7, kind: input, shape index: {}]   ;;  %s1486_s9 = inlined_call_operand.vmem [shape: f32[32,192], index: 9, kind: input, shape index: {}]   ;;  %s1487_s14 = inlined_call_operand.vmem [shape: f32[1,8], index: 14, kind: input, shape index: {}]   ;;  %s1488_s6 = inlined_call_operand.vmem [shape: f32[1,8], index: 6, kind: input, shape index: {}]   ;;  %s1489_s13 = inlined_call_operand.vmem [shape: f32[1,8], index: 13, kind: input, shape index: {}]   ;;  %s1490_s17 = inlined_call_operand.vmem [shape: f32[8,8], index: 17, kind: output, shape index: {2}]   ;;  %s1491_s11 = inlined_call_operand.vmem [shape: f32[192,256], index: 11, kind: input, shape index: {}]   ;;  %s1492_s8 = inlined_call_operand.vmem [shape: f32[1,32], index: 8, kind: input, shape index: {}]   ;;  %s1493_s10 = inlined_call_operand.vmem [shape: f32[1,192], index: 10, kind: input, shape index: {}]   ;;  %s1494_s12 = inlined_call_operand.vmem [shape: f32[1,256], index: 12, kind: input, shape index: {}]   ;;  %s1495_s15 = inlined_call_operand.vmem [shape: f32[8,128], index: 15, kind: output, shape index: {0}]   ;;  %s1496_s16 = inlined_call_operand.vmem [shape: f32[8,128], index: 16, kind: output, shape index: {1}]  }
   0x1   :  { %1499 = sst [smem:[#allocation2_spill]] %s1479_s1  ;;  %895 = vmatprep.subr.bf16.mxu1 %v1025_v0  ;;  %841 = vmatprep.mubr.msk.f32.mxu1 %vm1026_vm0, %v1027_v4  ;;  %v1189_v28 = vld [vmem:[%s1481_s0] sm:$0xff]  ;;  %v243_v52 = vld [vmem:[%s1482_s5 + $0x8] sm:$0xff]  ;;  %v244_v59 = vld [vmem:[%s1482_s5 + $0x10] sm:$0xff]  ;;  %vm360_vm2 = vcmask 64512   ;;  %vm600_vm3 = vcmask 523264  }
   0x2   :  { %1500 = sst [smem:[#allocation3_spill]] %s1480_s3  ;;  %s1501_s26 = sld [smem:[#allocation2_spill]]  ;;  %943 = vmatprep.subr.bf16.mxu0 %v1025_v0  ;;  %887 = vmatprep.mubr.msk.f32.mxu0 %vm1026_vm0, %v1027_v4  ;;  %v242_v51 = vld [vmem:[%s1482_s5] sm:$0xff]  ;;  %v245_v60 = vld [vmem:[%s1482_s5 + $0x18] sm:$0xff] }
   0x3   :  { %s1502_s30 = sld [smem:[#allocation3_spill]]  ;;  %v944_v53 = vpack.c.bf16 %v243_v52, %v242_v51  ;;  %v753_v54 = vld [vmem:[%s1483_s2] ss:$0 sm:$0xff]  ;;  %v947_v61 = vpack.c.bf16 %v245_v60, %v244_v59  ;;  %v542_v51 = vld [vmem:[%s1491_s11 + $0x10] sm:$0xff] }
   0x4   :  { %v754_v62 = vld [vmem:[%s1484_s4] ss:$0 sm:$0xff] }
   0x5   :  { %945 = vmatpush3.bf16.msra.mxu0 %v944_v53  ;;  %v545_v53 = vld [vmem:[%s1491_s11 + $0x28] sm:$0xff]  ;;  %v544_v60 = vld [vmem:[%s1491_s11 + $0x20] sm:$0xff] }
   0x6   :  { %946 = vmatprep.subr.bf16.mxu0 %v1025_v0 }
   0x8   :  { %v54_v1 = vld [vmem:[%s1501_s26] sm:$0xff]  ;;  %v55_v2 = vld [vmem:[%s1501_s26 + $0x8] sm:$0xff]  ;;  %v56_v3 = vld [vmem:[%s1501_s26 + $0x10] sm:$0xff] }
   0x9   :  { %v896_v5 = vpack.c.bf16 %v55_v2, %v54_v1  ;;  %v57_v6 = vld [vmem:[%s1501_s26 + $0x18] sm:$0xff]  ;;  %v58_v8 = vld [vmem:[%s1501_s26 + $0x20] sm:$0xff]  ;;  %v59_v9 = vld [vmem:[%s1501_s26 + $0x28] sm:$0xff]  ;;  %948 = vmatpush3.bf16.msra.mxu0 %v947_v61 }
   0xa   :  { %v899_v7 = vpack.c.bf16 %v57_v6, %v56_v3  ;;  %v902_v10 = vpack.c.bf16 %v59_v9, %v58_v8  ;;  %v60_v11 = vld [vmem:[%s1501_s26 + $0x30] sm:$0xff]  ;;  %v61_v12 = vld [vmem:[%s1501_s26 + $0x38] sm:$0xff]  ;;  %v62_v14 = vld [vmem:[%s1501_s26 + $0x40] sm:$0xff] }
   0xb   :  { %897 = vmatpush3.bf16.msra.mxu1 %v896_v5  ;;  %v905_v13 = vpack.c.bf16 %v61_v12, %v60_v11  ;;  %v63_v15 = vld [vmem:[%s1501_s26 + $0x48] sm:$0xff]  ;;  %v64_v17 = vld [vmem:[%s1501_s26 + $0x50] sm:$0xff]  ;;  %v65_v18 = vld [vmem:[%s1501_s26 + $0x58] sm:$0xff]  ;;  %v341_v11 = vlaneseq }
   0xc   :  { %898 = vmatprep.subr.bf16.mxu1 %v1025_v0  ;;  %v908_v16 = vpack.c.bf16 %v63_v15, %v62_v14  ;;  %v911_v19 = vpack.c.bf16 %v65_v18, %v64_v17  ;;  %v66_v20 = vld [vmem:[%s1501_s26 + $0x60] sm:$0xff]  ;;  %v67_v21 = vld [vmem:[%s1501_s26 + $0x68] sm:$0xff]  ;;  %v68_v23 = vld [vmem:[%s1501_s26 + $0x70] sm:$0xff] }
   0xd   :  { %v914_v22 = vpack.c.bf16 %v67_v21, %v66_v20  ;;  %v69_v24 = vld [vmem:[%s1501_s26 + $0x78] sm:$0xff]  ;;  %v148_v26 = vld [vmem:[%s1502_s30] sm:$0xff]  ;;  %v149_v27 = vld [vmem:[%s1502_s30 + $0x8] sm:$0xff] }
   0xe   :  { %v917_v25 = vpack.c.bf16 %v69_v24, %v68_v23  ;;  %v920_v29 = vpack.c.bf16 %v149_v27, %v148_v26  ;;  %v150_v30 = vld [vmem:[%s1502_s30 + $0x10] sm:$0xff]  ;;  %v151_v31 = vld [vmem:[%s1502_s30 + $0x18] sm:$0xff]  ;;  %v152_v33 = vld [vmem:[%s1502_s30 + $0x20] sm:$0xff] }
   0xf   :  { %900 = vmatpush3.bf16.msra.mxu1 %v899_v7  ;;  %v923_v32 = vpack.c.bf16 %v151_v31, %v150_v30  ;;  %v153_v34 = vld [vmem:[%s1502_s30 + $0x28] sm:$0xff]  ;;  %v154_v36 = vld [vmem:[%s1502_s30 + $0x30] sm:$0xff]  ;;  %v155_v37 = vld [vmem:[%s1502_s30 + $0x38] sm:$0xff] }
  0x10   :  { %901 = vmatprep.subr.bf16.mxu1 %v1025_v0  ;;  %v926_v35 = vpack.c.bf16 %v153_v34, %v152_v33  ;;  %v929_v38 = vpack.c.bf16 %v155_v37, %v154_v36  ;;  %v156_v39 = vld [vmem:[%s1502_s30 + $0x40] sm:$0xff]  ;;  %v157_v40 = vld [vmem:[%s1502_s30 + $0x48] sm:$0xff]  ;;  %v158_v42 = vld [vmem:[%s1502_s30 + $0x50] sm:$0xff] }
  0x11   :  { %v932_v41 = vpack.c.bf16 %v157_v40, %v156_v39  ;;  %v159_v43 = vld [vmem:[%s1502_s30 + $0x58] sm:$0xff]  ;;  %v160_v45 = vld [vmem:[%s1502_s30 + $0x60] sm:$0xff]  ;;  %v161_v46 = vld [vmem:[%s1502_s30 + $0x68] sm:$0xff] }
  0x12   :  { %v935_v44 = vpack.c.bf16 %v159_v43, %v158_v42  ;;  %v938_v47 = vpack.c.bf16 %v161_v46, %v160_v45  ;;  %v162_v48 = vld [vmem:[%s1502_s30 + $0x70] sm:$0xff]  ;;  %v163_v49 = vld [vmem:[%s1502_s30 + $0x78] sm:$0xff]  ;;  %v362_v3 = vld [vmem:[%s1485_s7] sm:$0xff] }
  0x13   :  { %903 = vmatpush3.bf16.msra.mxu1 %v902_v10  ;;  %v941_v50 = vpack.c.bf16 %v163_v49, %v162_v48  ;;  %v445_v5 = vld [vmem:[%s1486_s9 + $0x8] sm:$0xff]  ;;  %v447_v6 = vld [vmem:[%s1486_s9 + $0x18] sm:$0xff]  ;;  %v444_v7 = vld [vmem:[%s1486_s9] sm:$0xff] }
  0x14   :  { %904 = vmatprep.subr.bf16.mxu1 %v1025_v0  ;;  %v949_v8 = vpack.c.bf16 %v447_v6, %v445_v5  ;;  %v329_v10 = vld [vmem:[%s1487_s14] sm:$0x1]  ;;  %v449_v40 = vld [vmem:[%s1486_s9 + $0x28] sm:$0xff]  ;;  %v546_v61 = vld [vmem:[%s1491_s11 + $0x30] sm:$0xff] }
  0x15   :  { %1009 = vrcp.f32 %v329_v10  ;;  %v755_v12 = vld [vmem:[%s1488_s6] ss:$0 sm:$0xff]  ;;  %v541_v46 = vld [vmem:[%s1491_s11 + $0x8] sm:$0xff]  ;;  %v555_v6 = vld [vmem:[%s1491_s11 + $0x78] sm:$0xff] }
  0x16   :  { %950 = vmatprep.subr.bf16.mxu0 %v949_v8  ;;  %v757_v21 = vld [vmem:[%s1489_s13] ss:$0 sm:$0xff]  ;;  %v553_v5 = vld [vmem:[%s1491_s11 + $0x68] sm:$0xff] }
  0x17   :  { %906 = vmatpush3.bf16.msra.mxu1 %v905_v13  ;;  %v1289_v13 = vshrl.u32 %v341_v11, 7  ;;  %v448_v43 = vld [vmem:[%s1486_s9 + $0x20] sm:$0xff]  ;;  %v969_v8 = vpack.c.bf16 %v555_v6, %v553_v5  ;;  %v557_v10 = vld [vmem:[%s1491_s11 + $0x88] sm:$0xff]  ;;  %v559_v11 = vld [vmem:[%s1491_s11 + $0x98] sm:$0xff] }
  0x18   :  { %907 = vmatprep.subr.bf16.mxu1 %v1025_v0  ;;  %v759_v49 = vld [vmem:[%s1492_s8] ss:$0 sm:$0xff] }
  0x19   :  { %v1292_v18 = vsub.s32 0, %v1289_v13 }
  0x1b   :  { %909 = vmatpush3.bf16.msra.mxu1 %v908_v16 }
  0x1c   :  { %910 = vmatprep.subr.bf16.mxu1 %v1025_v0 }
  0x1f   :  { %912 = vmatpush3.bf16.msra.mxu1 %v911_v19  ;;  %v1010_v19 = vpop.eup %1009 }
  0x20   :  { %913 = vmatprep.subr.bf16.mxu1 %v1025_v0  ;;  %v344_v24 = vrot.slane %v1010_v19, %v1292_v18  ;;  %v563_v19 = vld [vmem:[%s1491_s11 + $0xb8] sm:$0xff] }
  0x23   :  { %915 = vmatpush3.bf16.msra.mxu1 %v914_v22 }
  0x24   :  { %916 = vmatprep.subr.bf16.mxu1 %v1025_v0 }
  0x27   :  { %918 = vmatpush3.bf16.msra.mxu1 %v917_v25 }
  0x28   :  { %919 = vmatprep.subr.bf16.mxu1 %v1025_v0 }
  0x2a   :  { %842 = vmatmul.mubr.f32.vlgmr.msra.gmra.mrb[0].mxu1 %v1189_v28 }
  0x2b   :  { %921 = vmatpush3.bf16.msra.mxu1 %v920_v29  ;;  %876 = vmatprep.mubr.msk.f32.mxu1 %vm1026_vm0, %v1027_v4 }
  0x2c   :  { %922 = vmatprep.subr.bf16.mxu1 %v1025_v0 }
  0x2f   :  { %924 = vmatpush3.bf16.msra.mxu1 %v923_v32 }
  0x30   :  { %925 = vmatprep.subr.bf16.mxu1 %v1025_v0 }
  0x33   :  { %927 = vmatpush3.bf16.msra.mxu1 %v926_v35 }
  0x34   :  { %928 = vmatprep.subr.bf16.mxu1 %v1025_v0 }
  0x37   :  { %930 = vmatpush3.bf16.msra.mxu1 %v929_v38 }
  0x38   :  { %931 = vmatprep.subr.bf16.mxu1 %v1025_v0 }
  0x3b   :  { %933 = vmatpush3.bf16.msra.mxu1 %v932_v41  ;;  %v451_v41 = vld [vmem:[%s1486_s9 + $0x38] sm:$0xff] }
  0x3c   :  { %934 = vmatprep.subr.bf16.mxu1 %v1025_v0  ;;  %v953_v42 = vpack.c.bf16 %v451_v41, %v449_v40  ;;  %v572_v41 = vld [vmem:[%s1491_s11 + $0x100] sm:$0xff] }
  0x3f   :  { %936 = vmatpush3.bf16.msra.mxu1 %v935_v44  ;;  %v450_v44 = vld [vmem:[%s1486_s9 + $0x30] sm:$0xff] }
  0x40   :  { %937 = vmatprep.subr.bf16.mxu1 %v1025_v0  ;;  %v955_v45 = vpack.c.bf16 %v450_v44, %v448_v43  ;;  %v577_v43 = vld [vmem:[%s1491_s11 + $0x128] sm:$0xff]  ;;  %v579_v44 = vld [vmem:[%s1491_s11 + $0x138] sm:$0xff] }
  0x43   :  { %939 = vmatpush3.bf16.msra.mxu1 %v938_v47  ;;  %v543_v47 = vld [vmem:[%s1491_s11 + $0x18] sm:$0xff] }
  0x44   :  { %940 = vmatprep.subr.bf16.mxu1 %v1025_v0  ;;  %v957_v48 = vpack.c.bf16 %v543_v47, %v541_v46  ;;  %v993_v46 = vpack.c.bf16 %v579_v44, %v577_v43  ;;  %v576_v47 = vld [vmem:[%s1491_s11 + $0x120] sm:$0xff] }
  0x47   :  { %942 = vmatpush3.bf16.msra.mxu1 %v941_v50  ;;  %v540_v50 = vld [vmem:[%s1491_s11] sm:$0xff] }
  0x48   :  { %890 = vmatprep.subr.mxu1 %v1027_v4 }
  0xfd   :  { %v143_v55 = vpop.f32.mrb[0].mxu1 }
  0xfe   :  { %v144_v56 = vadd.f32 %v753_v54, %v143_v55  ;;  %v843_v57 = vpop.f32.mrb[1].mxu1  ;;  %v547_v54 = vld [vmem:[%s1491_s11 + $0x38] sm:$0xff] }
  0xff   :  { %v959_v57 = vpack.c.bf16 %v542_v51, %v540_v50  ;;  %v961_v59 = vpack.c.bf16 %v547_v54, %v545_v53  ;;  %v583_v50 = vld [vmem:[%s1491_s11 + $0x158] sm:$0xff]  ;;  %v580_v53 = vld [vmem:[%s1491_s11 + $0x140] sm:$0xff]  ;;  %v582_v54 = vld [vmem:[%s1491_s11 + $0x150] sm:$0xff] }
 0x100   :  { %v147_v58 = vmax.f32 %v144_v56, 0.0 }
 0x102   :  { %877 = vmatmul.mubr.f32.vlgmr.msra.gmra.mrb[2].mxu1 %v147_v58 }
 0x103   :  { %892 = vmatprep.mubr.msk.f32.mxu1 %vm1026_vm0, %v1027_v4  ;;  %891 = vmatpush3.msra.mxu1 %v362_v3  ;;  %v550_v3 = vld [vmem:[%s1491_s11 + $0x50] sm:$0xff] }
 0x1d5   :  { %v237_v63 = vpop.f32.mrb[2].mxu1 }
 0x1d6   :  { %v238_v0 = vadd.f32 %v754_v62, %v237_v63  ;;  %v878_v1 = vpop.f32.mrb[3].mxu1  ;;  %v549_v62 = vld [vmem:[%s1491_s11 + $0x48] sm:$0xff]  ;;  %v551_v63 = vld [vmem:[%s1491_s11 + $0x58] sm:$0xff] }
 0x1d7   :  { %v965_v1 = vpack.c.bf16 %v551_v63, %v549_v62  ;;  %v452_v62 = vld [vmem:[%s1493_s10] sm:$0x3]  ;;  %v460_v63 = vsub.s32 1, %v1289_v13 }
 0x1d8   :  { %v241_v2 = vmax.f32 %v238_v0, 0.0  ;;  %v963_v0 = vpack.c.bf16 %v546_v61, %v544_v60  ;;  %v586_v60 = vld [vmem:[%s1491_s11 + $0x170] sm:$0xff] }
 0x1da   :  { %888 = vmatmul.mubr.msk.f32.vlgmr.msra.gmra.mrb[0].mxu0 %vm253_vm1, %v241_v2  ;;  %v548_v2 = vld [vmem:[%s1491_s11 + $0x40] sm:$0xff] }
 0x1db   :  { %531 = vmatprep.mubr.f32.mxu0 %v1027_v4  ;;  %v446_v4 = vld [vmem:[%s1486_s9 + $0x10] sm:$0xff] }
 0x1dc   :  { %v951_v9 = vpack.c.bf16 %v446_v4, %v444_v7  ;;  %v967_v7 = vpack.c.bf16 %v550_v3, %v548_v2  ;;  %v552_v4 = vld [vmem:[%s1491_s11 + $0x60] sm:$0xff] }
 0x1de   :  { %952 = vmatpush1.bf16.msra.mxu0 %v951_v9  ;;  %v554_v9 = vld [vmem:[%s1491_s11 + $0x70] sm:$0xff] }
 0x1df   :  { %954 = vmatprep.subr.bf16.mxu0 %v953_v42  ;;  %v574_v42 = vld [vmem:[%s1491_s11 + $0x110] sm:$0xff] }
 0x1e2   :  { %956 = vmatpush1.bf16.msra.mxu0 %v955_v45  ;;  %v991_v45 = vpack.c.bf16 %v574_v42, %v572_v41 }
 0x1e3   :  { %958 = vmatprep.subr.bf16.mxu0 %v957_v48  ;;  %v578_v48 = vld [vmem:[%s1491_s11 + $0x130] sm:$0xff] }
 0x1e4   :  { %v995_v51 = vpack.c.bf16 %v578_v48, %v576_v47 }
 0x2ad   :  { %v323_v14 = vpop.f32.mrb[0].mxu0 }
 0x2ae   :  { %v324_v15 = vadd.f32 %v755_v12, %v323_v14  ;;  %v889_v16 = vpop.f32.mrb[1].mxu0  ;;  %v971_v12 = vpack.c.bf16 %v554_v9, %v552_v4  ;;  %v973_v14 = vpack.c.bf16 %v559_v11, %v557_v10  ;;  %v588_v4 = vld [vmem:[%s1494_s12] sm:$0x3] }
 0x2af   :  { %v558_v16 = vld [vmem:[%s1491_s11 + $0x90] sm:$0xff]  ;;  %v593_v9 = vrot.slane %v588_v4, %v1292_v18  ;;  %v597_v10 = vrot.slane %v588_v4, %v460_v63 }
 0x2b0   :  { %v327_v17 = vadd.f32 0.5, %v324_v15  ;;  %v556_v15 = vld [vmem:[%s1491_s11 + $0x80] sm:$0xff] }
 0x2b2   :  { %v328_v20 = vfloor.f32 %v327_v17  ;;  %v561_v17 = vld [vmem:[%s1491_s11 + $0xa8] sm:$0xff] }
 0x2b4   :  { %v332_v22 = vadd.f32 0.5, %v328_v20  ;;  %v758_v23 = vadd.f32 -0.5, %v328_v20  ;;  %893 = vmatmul.mubr.msk.f32.vlgmr.msra.gmra.mrb[4].mxu1 %vm360_vm2, %v328_v20  ;;  %v975_v20 = vpack.c.bf16 %v558_v16, %v556_v15 }
 0x2b6   :  { %v339_v25 = vsub.f32 %v332_v22, %v757_v21  ;;  %v352_v26 = vsub.f32 %v758_v23, %v757_v21  ;;  %v977_v21 = vpack.c.bf16 %v563_v19, %v561_v17  ;;  %v560_v22 = vld [vmem:[%s1491_s11 + $0xa0] sm:$0xff]  ;;  %v562_v23 = vld [vmem:[%s1491_s11 + $0xb0] sm:$0xff] }
 0x2b8   :  { %v346_v27 = vmul.f32 %v344_v24, %v339_v25  ;;  %v353_v29 = vmul.f32 %v352_v26, %v344_v24  ;;  %v565_v24 = vld [vmem:[%s1491_s11 + $0xc8] sm:$0xff]  ;;  %v567_v25 = vld [vmem:[%s1491_s11 + $0xd8] sm:$0xff]  ;;  %v979_v26 = vpack.c.bf16 %v562_v23, %v560_v22 }
 0x2ba   :  { %v347_v30 = vmul.f32 0.5, %v346_v27  ;;  %v354_v31 = vmul.f32 0.5, %v353_v29  ;;  %v981_v27 = vpack.c.bf16 %v567_v25, %v565_v24  ;;  %v564_v29 = vld [vmem:[%s1491_s11 + $0xc0] sm:$0xff] }
 0x2bc   :  { %1011 = vtanh.f32 %v347_v30  ;;  %v566_v30 = vld [vmem:[%s1491_s11 + $0xd0] sm:$0xff] }
 0x2bd   :  { %1013 = vtanh.f32 %v354_v31  ;;  %v569_v31 = vld [vmem:[%s1491_s11 + $0xe8] sm:$0xff] }
 0x2c6   :  { %v1012_v32 = vpop.eup %1011 }
 0x2c7   :  { %v1014_v33 = vpop.eup %1013  ;;  %v349_v34 = vadd.f32 1.0, %v1012_v32  ;;  %v571_v32 = vld [vmem:[%s1491_s11 + $0xf8] sm:$0xff] }
 0x2c8   :  { %v356_v35 = vadd.f32 1.0, %v1014_v33  ;;  %v983_v33 = vpack.c.bf16 %v566_v30, %v564_v29 }
 0x2c9   :  { %v350_v36 = vmul.f32 0.5, %v349_v34  ;;  %v985_v34 = vpack.c.bf16 %v571_v32, %v569_v31 }
 0x2ca   :  { %v357_v37 = vmul.f32 0.5, %v356_v35  ;;  %v568_v35 = vld [vmem:[%s1491_s11 + $0xe0] sm:$0xff] }
 0x2cc   :  { %v358_v38 = vsub.f32 %v350_v36, %v357_v37  ;;  %v570_v36 = vld [vmem:[%s1491_s11 + $0xf0] sm:$0xff]  ;;  %v573_v37 = vld [vmem:[%s1491_s11 + $0x108] sm:$0xff] }
 0x2ce   :  { %v359_v39 = vmax.f32 %v358_v38, 1e-09  ;;  %v575_v38 = vld [vmem:[%s1491_s11 + $0x118] sm:$0xff] }
 0x2cf   :  { %v989_v40 = vpack.c.bf16 %v575_v38, %v573_v37 }
 0x2d0   :  { %361 = vst.msk [vmem:[%s1490_s17] sm:$0xff] %vm360_vm2, %v359_v39  ;;  %v987_v39 = vpack.c.bf16 %v570_v36, %v568_v35 }
 0x387   :  { %v439_v52 = vpop.f32.mrb[4].mxu1 }
 0x388   :  { %v440_v55 = vadd.f32 %v759_v49, %v439_v52  ;;  %v894_v56 = vpop.f32.mrb[5].mxu1  ;;  %v581_v49 = vld [vmem:[%s1491_s11 + $0x148] sm:$0xff] }
 0x389   :  { %v997_v52 = vpack.c.bf16 %v583_v50, %v581_v49  ;;  %v585_v56 = vld [vmem:[%s1491_s11 + $0x168] sm:$0xff] }
 0x38a   :  { %v443_v58 = vmax.f32 %v440_v55, 0.0  ;;  %v999_v55 = vpack.c.bf16 %v582_v54, %v580_v53 }
 0x38c   :  { %761 = vmatmul.mubr.msk.f32.vlgmr.msra.gmra.mrb[2].mxu0 %vm253_vm1, %v443_v58 }
 0x38d   :  { %960 = vmatpush1.bf16.msra.mxu0 %v959_v57  ;;  %v587_v57 = vld [vmem:[%s1491_s11 + $0x178] sm:$0xff] }
 0x38e   :  { %962 = vmatprep.subr.bf16.mxu0 %v961_v59  ;;  %v1001_v58 = vpack.c.bf16 %v587_v57, %v585_v56  ;;  %v584_v59 = vld [vmem:[%s1491_s11 + $0x160] sm:$0xff] }
 0x38f   :  { %v1003_v61 = vpack.c.bf16 %v586_v60, %v584_v59 }
 0x391   :  { %964 = vmatpush1.bf16.msra.mxu0 %v963_v0  ;;  %v457_v0 = vrot.slane %v452_v62, %v1292_v18 }
 0x392   :  { %966 = vmatprep.subr.bf16.mxu0 %v965_v1  ;;  %v461_v1 = vrot.slane %v452_v62, %v460_v63 }
 0x395   :  { %968 = vmatpush1.bf16.msra.mxu0 %v967_v7 }
 0x396   :  { %970 = vmatprep.subr.bf16.mxu0 %v969_v8 }
 0x399   :  { %972 = vmatpush1.bf16.msra.mxu0 %v971_v12 }
 0x39a   :  { %974 = vmatprep.subr.bf16.mxu0 %v973_v14 }
 0x39d   :  { %976 = vmatpush1.bf16.msra.mxu0 %v975_v20 }
 0x39e   :  { %978 = vmatprep.subr.bf16.mxu0 %v977_v21 }
 0x3a1   :  { %980 = vmatpush1.bf16.msra.mxu0 %v979_v26 }
 0x3a2   :  { %982 = vmatprep.subr.bf16.mxu0 %v981_v27 }
 0x3a5   :  { %984 = vmatpush1.bf16.msra.mxu0 %v983_v33 }
 0x3a6   :  { %986 = vmatprep.subr.bf16.mxu0 %v985_v34 }
 0x3a9   :  { %988 = vmatpush1.bf16.msra.mxu0 %v987_v39 }
 0x3aa   :  { %990 = vmatprep.subr.bf16.mxu0 %v989_v40 }
 0x3ad   :  { %992 = vmatpush1.bf16.msra.mxu0 %v991_v45 }
 0x3ae   :  { %994 = vmatprep.subr.bf16.mxu0 %v993_v46 }
 0x3b1   :  { %996 = vmatpush1.bf16.msra.mxu0 %v995_v51 }
 0x3b2   :  { %998 = vmatprep.subr.bf16.mxu0 %v997_v52 }
 0x3b5   :  { %1000 = vmatpush1.bf16.msra.mxu0 %v999_v55 }
 0x3b6   :  { %1002 = vmatprep.subr.bf16.mxu0 %v1001_v58 }
 0x3b9   :  { %1004 = vmatpush1.bf16.msra.mxu0 %v1003_v61 }
 0x45f   :  { %v533_v2 = vpop.f32.mrb[2].mxu0 }
 0x460   :  { %v534_v3 = vadd.f32 %v533_v2, %v457_v0  ;;  %v535_v5 = vpop.f32.mrb[3].mxu0  ;;  %v1028_v0 = vmov -1.0  }
 0x461   :  { %v536_v6 = vadd.f32 %v535_v5, %v461_v1 }
 0x462   :  { %v538_v8 = vmax.f32 %v534_v3, 0.0 }
 0x463   :  { %v539_v7 = vmax.f32 %v536_v6, 0.0 }
 0x465   :  { %762 = vmatprep.mubr.msk.f32.mxu0 %vm600_vm3, %v539_v7 }
 0x466   :  { %669 = vmatmul.mubr.f32.vlgmr.msra.gmra.mrb[4].mxu0 %v538_v8 }
 0x539   :  { %v670_v13 = vpop.f32.mrb[4].mxu0 }
 0x53a   :  { %v671_v11 = vadd.f32 %v670_v13, %v593_v9  ;;  %v672_v12 = vpop.f32.mrb[5].mxu0 }
 0x53b   :  { %v673_v14 = vadd.f32 %v672_v12, %v597_v10 }
 0x53c   :  { %v676_v15 = vsub.f32 %v1189_v28, %v671_v11 }
 0x53d   :  { %v675_v16 = vmax.f32 %v673_v14, 0.11 }
 0x53e   :  { %v677_v17 = vadd.f32 0.5, %v676_v15 }
 0x53f   :  { %1015 = vrcp.f32 %v675_v16 }
 0x540   :  { %v678_v19 = vfloor.f32 %v677_v17 }
 0x542   :  { %v679_v20 = vadd.f32 %v678_v19, %v671_v11  ;;  %v682_v21 = vadd.f32 0.5, %v678_v19  ;;  %v765_v22 = vadd.f32 -0.5, %v678_v19 }
 0x544   :  { %680 = vst [vmem:[%s1495_s15] sm:$0xff] %v679_v20 }
 0x549   :  { %v1016_v23 = vpop.eup %1015 }
 0x54a   :  { %v683_v18 = vmul.f32 %v1016_v23, %v682_v21  ;;  %v711_v24 = vmul.f32 %v1016_v23, %v765_v22 }
 0x54c   :  { %v684_v25 = vmul.f32 0.70710677, %v683_v18  ;;  %v712_v26 = vmul.f32 0.70710677, %v711_v24 }
 0x54e   :  { %v687_v27 = vand.u32 2147483647, %v684_v25  ;;  %v715_v29 = vand.u32 2147483647, %v712_v26  ;;  %vm685_vm4 = vcmp.ge.f32.partialorder %v684_v25, 0.0  ;;  %vm713_vm5 = vcmp.ge.f32.partialorder %v712_v26, 0.0 }
 0x54f   :  { %v686_v1 = vsel %vm685_vm4, 1.0, %v1028_v0  ;;  %v714_v5 = vsel %vm713_vm5, 1.0, %v1028_v0 }
 0x550   :  { %v688_v30 = vmul.f32 0.3275911, %v687_v27  ;;  %v716_v28 = vmul.f32 0.3275911, %v715_v29  ;;  %v701_v33 = vsub.f32 0.0, %v687_v27  ;;  %v729_v34 = vsub.f32 0.0, %v715_v29 }
 0x552   :  { %v689_v31 = vadd.f32 1.0, %v688_v30  ;;  %v717_v32 = vadd.f32 1.0, %v716_v28  ;;  %v702_v36 = vmul.f32 %v701_v33, %v687_v27  ;;  %v730_v39 = vmul.f32 %v729_v34, %v715_v29 }
 0x554   :  { %1017 = vrcp.f32 %v689_v31  ;;  %v703_v42 = vmul.f32 1.442695, %v702_v36  ;;  %v731_v45 = vmul.f32 1.442695, %v730_v39 }
 0x555   :  { %1019 = vrcp.f32 %v717_v32 }
 0x556   :  { %1021 = vpow2.f32 %v703_v42 }
 0x557   :  { %1023 = vpow2.f32 %v731_v45 }
 0x55e   :  { %v1018_v35 = vpop.eup %1017 }
 0x55f   :  { %v1020_v37 = vpop.eup %1019  ;;  %v692_v38 = vmul.f32 1.0614054, %v1018_v35 }
 0x560   :  { %v720_v40 = vmul.f32 1.0614054, %v1020_v37  ;;  %v1022_v58 = vpop.eup %1021 }
 0x561   :  { %v763_v41 = vadd.f32 -1.4531521, %v692_v38  ;;  %v1024_v60 = vpop.eup %1023 }
 0x562   :  { %v766_v43 = vadd.f32 -1.4531521, %v720_v40 }
 0x563   :  { %v694_v44 = vmul.f32 %v1018_v35, %v763_v41 }
 0x564   :  { %v722_v46 = vmul.f32 %v1020_v37, %v766_v43 }
 0x565   :  { %v695_v47 = vadd.f32 1.4214138, %v694_v44 }
 0x566   :  { %v723_v48 = vadd.f32 1.4214138, %v722_v46 }
 0x567   :  { %v696_v49 = vmul.f32 %v1018_v35, %v695_v47 }
 0x568   :  { %v724_v50 = vmul.f32 %v1020_v37, %v723_v48 }
 0x569   :  { %v764_v51 = vadd.f32 -0.28449672, %v696_v49 }
 0x56a   :  { %v767_v52 = vadd.f32 -0.28449672, %v724_v50 }
 0x56b   :  { %v698_v53 = vmul.f32 %v1018_v35, %v764_v51 }
 0x56c   :  { %v726_v54 = vmul.f32 %v1020_v37, %v767_v52 }
 0x56d   :  { %v699_v55 = vadd.f32 0.2548296, %v698_v53 }
 0x56e   :  { %v727_v56 = vadd.f32 0.2548296, %v726_v54 }
 0x56f   :  { %v700_v57 = vmul.f32 %v1018_v35, %v699_v55 }
 0x570   :  { %v728_v59 = vmul.f32 %v1020_v37, %v727_v56 }
 0x571   :  { %v705_v61 = vmul.f32 %v1022_v58, %v700_v57 }
 0x572   :  { %v733_v62 = vmul.f32 %v1024_v60, %v728_v59 }
 0x573   :  { %v706_v63 = vsub.f32 1.0, %v705_v61 }
 0x574   :  { %v734_v2 = vsub.f32 1.0, %v733_v62 }
 0x575   :  { %v707_v3 = vmul.f32 %v706_v63, %v686_v1 }
 0x576   :  { %v735_v6 = vmul.f32 %v734_v2, %v714_v5 }
 0x577   :  { %v708_v7 = vadd.f32 1.0, %v707_v3 }
 0x578   :  { %v736_v8 = vadd.f32 1.0, %v735_v6 }
 0x579   :  { %v709_v4 = vmul.f32 0.5, %v708_v7 }
 0x57a   :  { %v737_v9 = vmul.f32 0.5, %v736_v8 }
 0x57c   :  { %v738_v10 = vsub.f32 %v709_v4, %v737_v9 }
 0x57e   :  { %v739_v13 = vmax.f32 %v738_v10, 1e-09 }
 0x580   :  { %740 = vst [vmem:[%s1496_s16] sm:$0xff] %v739_v13 }

// kernel: forward.14
= control target key start
LH: loop header
LB: loop body
LE: loop exit
PB: predicated region body
PF: predicated region fallthrough
CT: control target
= control target key end

     0   :  { %vm82_vm0 = vcmask 654336   ;;  %s575_s1 = inlined_call_operand.vmem [shape: bf16[80,128], index: 1, kind: input, shape index: {}]   ;;  %s576_s0 = inlined_call_operand.vmem [shape: bf16[32,80], index: 0, kind: input, shape index: {}]   ;;  %s577_s3 = inlined_call_operand.vmem [shape: f32[128,128], index: 3, kind: input, shape index: {}]   ;;  %s578_s2 = inlined_call_operand.vmem [shape: f32[1,128], index: 2, kind: input, shape index: {}]   ;;  %s579_s4 = inlined_call_operand.vmem [shape: f32[1,128], index: 4, kind: input, shape index: {}]   ;;  %s580_s5 = inlined_call_operand.vmem [shape: bf16[32,128], index: 5, kind: output, shape index: {}]  }
   0x1   :  { %v447_v0 = vld [vmem:[%s575_s1] sm:$0xff]   ;;  %v448_v1 = vld [vmem:[%s575_s1 + $0x8] sm:$0xff]   ;;  %v449_v2 = vld [vmem:[%s575_s1 + $0x10] sm:$0xff]  }
   0x2   :  { %363 = vmatprep.subr.bf16.mxu0 %v447_v0  ;;  %v452_v3 = vld [vmem:[%s576_s0] sm:$0xff]   ;;  %v143_v5 = vld [vmem:[%s577_s3 + $0x8] sm:$0xff]  ;;  %v144_v6 = vld [vmem:[%s577_s3 + $0x10] sm:$0xff] }
   0x3   :  { %364 = vmatpush3.bf16.msra.mxu0 %v447_v0  ;;  %373 = vmatprep.mubr.msk.bf16.mxu0 %vm82_vm0, %v452_v3  ;;  %v142_v4 = vld [vmem:[%s577_s3] sm:$0xff]  ;;  %v450_v7 = vld [vmem:[%s575_s1 + $0x18] sm:$0xff]   ;;  %v147_v12 = vld [vmem:[%s577_s3 + $0x28] sm:$0xff] }
   0x4   :  { %365 = vmatprep.subr.bf16.mxu0 %v448_v1  ;;  %v415_v8 = vpack.c.bf16 %v143_v5, %v142_v4  ;;  %v145_v9 = vld [vmem:[%s577_s3 + $0x18] sm:$0xff]  ;;  %v146_v11 = vld [vmem:[%s577_s3 + $0x20] sm:$0xff]  ;;  %v148_v15 = vld [vmem:[%s577_s3 + $0x30] sm:$0xff] }
   0x5   :  { %v419_v10 = vpack.c.bf16 %v145_v9, %v144_v6  ;;  %v451_v13 = vld [vmem:[%s575_s1 + $0x20] sm:$0xff]   ;;  %v423_v14 = vpack.c.bf16 %v147_v12, %v146_v11  ;;  %v149_v16 = vld [vmem:[%s577_s3 + $0x38] sm:$0xff]  ;;  %v151_v19 = vld [vmem:[%s577_s3 + $0x48] sm:$0xff] }
   0x6   :  { %416 = vmatprep.subr.bf16.mxu1 %v415_v8  ;;  %v427_v17 = vpack.c.bf16 %v149_v16, %v148_v15  ;;  %v150_v18 = vld [vmem:[%s577_s3 + $0x40] sm:$0xff]  ;;  %v453_v20 = vld [vmem:[%s576_s0 + $0x8] sm:$0xff]   ;;  %v152_v22 = vld [vmem:[%s577_s3 + $0x50] sm:$0xff] }
   0x7   :  { %366 = vmatpush3.bf16.msra.mxu0 %v448_v1  ;;  %418 = vmatpush3.bf16.msra.mxu1 %v415_v8  ;;  %v431_v21 = vpack.c.bf16 %v151_v19, %v150_v18  ;;  %v153_v23 = vld [vmem:[%s577_s3 + $0x58] sm:$0xff]  ;;  %v154_v25 = vld [vmem:[%s577_s3 + $0x60] sm:$0xff]  ;;  %v155_v26 = vld [vmem:[%s577_s3 + $0x68] sm:$0xff] }
   0x8   :  { %367 = vmatprep.subr.bf16.mxu0 %v449_v2  ;;  %420 = vmatprep.subr.bf16.mxu1 %v419_v10  ;;  %v435_v24 = vpack.c.bf16 %v153_v23, %v152_v22  ;;  %v439_v27 = vpack.c.bf16 %v155_v26, %v154_v25  ;;  %v156_v28 = vld [vmem:[%s577_s3 + $0x70] sm:$0xff]  ;;  %v157_v29 = vld [vmem:[%s577_s3 + $0x78] sm:$0xff]  ;;  %v306_v31 = vld [vmem:[%s578_s2] ss:$0 sm:$0xff] }
   0x9   :  { %v443_v30 = vpack.c.bf16 %v157_v29, %v156_v28  ;;  %v316_v44 = vld [vmem:[%s579_s4] ss:$0 sm:$0xff] }
   0xb   :  { %368 = vmatpush3.bf16.msra.mxu0 %v449_v2  ;;  %422 = vmatpush3.bf16.msra.mxu1 %v419_v10 }
   0xc   :  { %369 = vmatprep.subr.bf16.mxu0 %v450_v7  ;;  %424 = vmatprep.subr.bf16.mxu1 %v423_v14 }
   0xf   :  { %370 = vmatpush3.bf16.msra.mxu0 %v450_v7  ;;  %426 = vmatpush3.bf16.msra.mxu1 %v423_v14 }
  0x10   :  { %371 = vmatprep.subr.bf16.mxu0 %v451_v13  ;;  %428 = vmatprep.subr.bf16.mxu1 %v427_v17 }
  0x13   :  { %372 = vmatpush3.bf16.msra.mxu0 %v451_v13  ;;  %430 = vmatpush3.bf16.msra.mxu1 %v427_v17 }
  0x14   :  { %432 = vmatprep.subr.bf16.mxu1 %v431_v21 }
  0x16   :  { %374 = vmatmul.mubr.msk.bf16.vlgmr.msra.gmra.mrb[0].mxu0 %vm82_vm0, %v453_v20 }
  0x17   :  { %434 = vmatpush3.bf16.msra.mxu1 %v431_v21 }
  0x18   :  { %436 = vmatprep.subr.bf16.mxu1 %v435_v24 }
  0x1b   :  { %438 = vmatpush3.bf16.msra.mxu1 %v435_v24 }
  0x1c   :  { %440 = vmatprep.subr.bf16.mxu1 %v439_v27 }
  0x1f   :  { %442 = vmatpush3.bf16.msra.mxu1 %v439_v27 }
  0x20   :  { %444 = vmatprep.subr.bf16.mxu1 %v443_v30 }
  0x23   :  { %446 = vmatpush3.bf16.msra.mxu1 %v443_v30 }
  0xe9   :  { %v375_v32 = vpop.f32.mrb[0].mxu0 }
  0xea   :  { %v123_v33 = vpop.f32.mrb[1].mxu0  ;;  %v132_v36 = vadd.f32 %v375_v32, %v306_v31 }
  0xeb   :  { %v124_v34 = vadd.f32 %v306_v31, %v123_v33  ;;  %v376_v35 = vpop.f32.mrb[2].mxu0 }
  0xec   :  { %v126_v37 = vpop.f32.mrb[3].mxu0  ;;  %v135_v40 = vadd.f32 %v376_v35, %v306_v31  ;;  %v140_v42 = vmul.f32 %v132_v36, %v132_v36 }
  0xed   :  { %v127_v38 = vadd.f32 %v306_v31, %v126_v37  ;;  %v138_v39 = vmul.f32 %v124_v34, %v124_v34 }
  0xee   :  { %v141_v43 = vmul.f32 %v135_v40, %v135_v40 }
  0xef   :  { %v139_v41 = vmul.f32 %v127_v38, %v127_v38  ;;  %409 = vmatprep.mubr.f32.mxu1 %v138_v39 }
  0xf1   :  { %410 = vmatmul.mubr.f32.vlgmr.msra.gmra.mrb[0].mxu1 %v139_v41 }
  0xf2   :  { %412 = vmatprep.mubr.f32.mxu1 %v140_v42 }
  0xf5   :  { %413 = vmatmul.mubr.f32.gmra.mrb[2].mxu1 %v141_v43 }
 0x1c4   :  { %v411_v45 = vpop.f32.mrb[0].mxu1 }
 0x1c5   :  { %v237_v46 = vadd.f32 %v411_v45, %v316_v44  ;;  %v231_v47 = vpop.f32.mrb[1].mxu1 }
 0x1c6   :  { %v232_v48 = vadd.f32 %v316_v44, %v231_v47 }
 0x1c7   :  { %454 = vrsqrt.f32 %v237_v46  ;;  %vm259_vm1 = vcmp.eq.f32.partialorder %v237_v46, inf  ;;  %v262_v56 = vand.u32 2147483648, %v237_v46  ;;  %vm261_vm2 = vcmp.eq.f32.partialorder %v237_v46, 0.0 }
 0x1c8   :  { %456 = vrsqrt.f32 %v232_v48  ;;  %v414_v49 = vpop.f32.mrb[2].mxu1  ;;  %vm252_vm3 = vcmp.eq.f32.partialorder %v232_v48, inf  ;;  %v255_v59 = vand.u32 2147483648, %v232_v48  ;;  %vm254_vm4 = vcmp.eq.f32.partialorder %v232_v48, 0.0 }
 0x1c9   :  { %v247_v50 = vadd.f32 %v414_v49, %v316_v44  ;;  %v241_v51 = vpop.f32.mrb[3].mxu1 }
 0x1ca   :  { %v242_v52 = vadd.f32 %v316_v44, %v241_v51 }
 0x1cb   :  { %458 = vrsqrt.f32 %v247_v50  ;;  %vm273_vm5 = vcmp.eq.f32.partialorder %v247_v50, inf  ;;  %v276_v4 = vand.u32 2147483648, %v247_v50  ;;  %vm275_vm6 = vcmp.eq.f32.partialorder %v247_v50, 0.0 }
 0x1cc   :  { %460 = vrsqrt.f32 %v242_v52  ;;  %vm266_vm7 = vcmp.eq.f32.partialorder %v242_v52, inf  ;;  %v269_v7 = vand.u32 2147483648, %v242_v52  ;;  %vm268_vm8 = vcmp.eq.f32.partialorder %v242_v52, 0.0 }
 0x1d1   :  { %v455_v53 = vpop.eup %454 }
 0x1d2   :  { %v457_v54 = vpop.eup %456  ;;  %v258_v55 = vmul.f32 %v455_v53, %v237_v46 }
 0x1d3   :  { %v251_v57 = vmul.f32 %v457_v54, %v232_v48 }
 0x1d4   :  { %v260_v58 = vsel %vm259_vm1, %v237_v46, %v258_v55 }
 0x1d5   :  { %v459_v60 = vpop.eup %458  ;;  %v263_v61 = vsel %vm261_vm2, %v262_v56, %v260_v58  ;;  %v253_v62 = vsel %vm252_vm3, %v232_v48, %v251_v57 }
 0x1d6   :  { %v461_v63 = vpop.eup %460  ;;  %v279_v0 = vmul.f32 %v263_v61, %v127_v38  ;;  %v256_v1 = vsel %vm254_vm4, %v255_v59, %v253_v62  ;;  %v272_v2 = vmul.f32 %v459_v60, %v247_v50 }
 0x1d7   :  { %v278_v3 = vmul.f32 %v256_v1, %v124_v34  ;;  %v265_v5 = vmul.f32 %v461_v63, %v242_v52 }
 0x1d8   :  { %v274_v6 = vsel %vm273_vm5, %v247_v50, %v272_v2 }
 0x1d9   :  { %v328_v8 = vpack.c.bf16 %v279_v0, %v278_v3  ;;  %v277_v9 = vsel %vm275_vm6, %v276_v4, %v274_v6  ;;  %v267_v10 = vsel %vm266_vm7, %v242_v52, %v265_v5 }
 0x1da   :  { %v281_v11 = vmul.f32 %v277_v9, %v135_v40  ;;  %v270_v12 = vsel %vm268_vm8, %v269_v7, %v267_v10 }
 0x1db   :  { %329 = vst [vmem:[%s580_s5] sm:$0xff] %v328_v8   ;;  %v280_v13 = vmul.f32 %v270_v12, %v132_v36 }
 0x1dd   :  { %v333_v14 = vpack.c.bf16 %v281_v11, %v280_v13 }
 0x1df   :  { %335 = vst [vmem:[%s580_s5 + $0x8] sm:$0xff] %v333_v14  }

// kernel: forward.15
= control target key start
LH: loop header
LB: loop body
LE: loop exit
PB: predicated region body
PF: predicated region fallthrough
CT: control target
= control target key end

     0   :  { %vm124_vm0 = vcmask 654336   ;;  %s1314_s1 = inlined_call_operand.vmem [shape: bf16[80,128], index: 1, kind: input, shape index: {}]   ;;  %s1315_s0 = inlined_call_operand.vmem [shape: bf16[128,80], index: 0, kind: input, shape index: {}]   ;;  %s1316_s3 = inlined_call_operand.vmem [shape: f32[128,128], index: 3, kind: input, shape index: {}]   ;;  %s1317_s2 = inlined_call_operand.vmem [shape: f32[1,128], index: 2, kind: input, shape index: {}]   ;;  %s1318_s4 = inlined_call_operand.vmem [shape: f32[1,128], index: 4, kind: input, shape index: {}]   ;;  %s1319_s5 = inlined_call_operand.vmem [shape: bf16[128,128], index: 5, kind: output, shape index: {}]  }
   0x1   :  { %v919_v0 = vld [vmem:[%s1314_s1] sm:$0xff]   ;;  %v920_v1 = vld [vmem:[%s1314_s1 + $0x8] sm:$0xff]   ;;  %v921_v2 = vld [vmem:[%s1314_s1 + $0x10] sm:$0xff]  }
   0x2   :  { %789 = vmatprep.subr.bf16.mxu0 %v919_v0  ;;  %v924_v3 = vld [vmem:[%s1315_s0] sm:$0xff]   ;;  %v922_v4 = vld [vmem:[%s1314_s1 + $0x18] sm:$0xff]   ;;  %v263_v7 = vld [vmem:[%s1316_s3 + $0x8] sm:$0xff] }
   0x3   :  { %790 = vmatpush3.bf16.msra.mxu0 %v919_v0  ;;  %799 = vmatprep.mubr.msk.bf16.mxu0 %vm124_vm0, %v924_v3  ;;  %v923_v5 = vld [vmem:[%s1314_s1 + $0x20] sm:$0xff]   ;;  %v264_v8 = vld [vmem:[%s1316_s3 + $0x10] sm:$0xff]  ;;  %v265_v10 = vld [vmem:[%s1316_s3 + $0x18] sm:$0xff] }
   0x4   :  { %791 = vmatprep.subr.bf16.mxu0 %v920_v1  ;;  %v262_v6 = vld [vmem:[%s1316_s3] sm:$0xff]  ;;  %v875_v11 = vpack.c.bf16 %v265_v10, %v264_v8  ;;  %v267_v13 = vld [vmem:[%s1316_s3 + $0x28] sm:$0xff]  ;;  %v926_v16 = vld [vmem:[%s1315_s0 + $0x10] sm:$0xff]  }
   0x5   :  { %v871_v9 = vpack.c.bf16 %v263_v7, %v262_v6  ;;  %v266_v12 = vld [vmem:[%s1316_s3 + $0x20] sm:$0xff]  ;;  %v925_v14 = vld [vmem:[%s1315_s0 + $0x8] sm:$0xff]   ;;  %v268_v17 = vld [vmem:[%s1316_s3 + $0x30] sm:$0xff] }
   0x6   :  { %v879_v15 = vpack.c.bf16 %v267_v13, %v266_v12  ;;  %v269_v18 = vld [vmem:[%s1316_s3 + $0x38] sm:$0xff]  ;;  %v270_v20 = vld [vmem:[%s1316_s3 + $0x40] sm:$0xff]  ;;  %v271_v21 = vld [vmem:[%s1316_s3 + $0x48] sm:$0xff] }
   0x7   :  { %792 = vmatpush3.bf16.msra.mxu0 %v920_v1  ;;  %903 = vmatprep.subr.bf16.mxu1 %v871_v9  ;;  %v883_v19 = vpack.c.bf16 %v269_v18, %v268_v17  ;;  %v927_v22 = vld [vmem:[%s1315_s0 + $0x18] sm:$0xff]   ;;  %v887_v23 = vpack.c.bf16 %v271_v21, %v270_v20  ;;  %v928_v24 = vld [vmem:[%s1315_s0 + $0x20] sm:$0xff]   ;;  %v272_v25 = vld [vmem:[%s1316_s3 + $0x50] sm:$0xff] }
   0x8   :  { %793 = vmatprep.subr.bf16.mxu0 %v921_v2  ;;  %911 = vmatpush3.bf16.msra.mxu1 %v871_v9  ;;  %v273_v26 = vld [vmem:[%s1316_s3 + $0x58] sm:$0xff]  ;;  %v274_v28 = vld [vmem:[%s1316_s3 + $0x60] sm:$0xff]  ;;  %v275_v29 = vld [vmem:[%s1316_s3 + $0x68] sm:$0xff] }
   0x9   :  { %904 = vmatprep.subr.bf16.mxu1 %v875_v11  ;;  %v891_v27 = vpack.c.bf16 %v273_v26, %v272_v25  ;;  %v929_v30 = vld [vmem:[%s1315_s0 + $0x28] sm:$0xff]   ;;  %v895_v31 = vpack.c.bf16 %v275_v29, %v274_v28  ;;  %v930_v32 = vld [vmem:[%s1315_s0 + $0x30] sm:$0xff]   ;;  %v931_v33 = vld [vmem:[%s1315_s0 + $0x38] sm:$0xff]  }
   0xa   :  { %v276_v34 = vld [vmem:[%s1316_s3 + $0x70] sm:$0xff]  ;;  %v277_v35 = vld [vmem:[%s1316_s3 + $0x78] sm:$0xff]  ;;  %v642_v37 = vld [vmem:[%s1317_s2] ss:$0 sm:$0xff] }
   0xb   :  { %794 = vmatpush3.bf16.msra.mxu0 %v921_v2  ;;  %v899_v36 = vpack.c.bf16 %v277_v35, %v276_v34 }
   0xc   :  { %795 = vmatprep.subr.bf16.mxu0 %v922_v4  ;;  %912 = vmatpush3.bf16.msra.mxu1 %v875_v11 }
   0xd   :  { %905 = vmatprep.subr.bf16.mxu1 %v879_v15 }
   0xf   :  { %796 = vmatpush3.bf16.msra.mxu0 %v922_v4 }
  0x10   :  { %797 = vmatprep.subr.bf16.mxu0 %v923_v5  ;;  %913 = vmatpush3.bf16.msra.mxu1 %v879_v15 }
  0x11   :  { %906 = vmatprep.subr.bf16.mxu1 %v883_v19 }
  0x13   :  { %798 = vmatpush3.bf16.msra.mxu0 %v923_v5 }
  0x14   :  { %872 = vmatprep.subr.bf16.mxu0 %v871_v9  ;;  %914 = vmatpush3.bf16.msra.mxu1 %v883_v19 }
  0x15   :  { %907 = vmatprep.subr.bf16.mxu1 %v887_v23 }
  0x16   :  { %800 = vmatmul.mubr.msk.bf16.vlgmr.msra.gmra.mrb[0].mxu0 %vm124_vm0, %v925_v14 }
  0x17   :  { %803 = vmatprep.mubr.msk.bf16.mxu0 %vm124_vm0, %v926_v16  ;;  %874 = vmatpush3.bf16.msra.mxu0 %v871_v9 }
  0x18   :  { %876 = vmatprep.subr.bf16.mxu0 %v875_v11  ;;  %915 = vmatpush3.bf16.msra.mxu1 %v887_v23 }
  0x19   :  { %908 = vmatprep.subr.bf16.mxu1 %v891_v27 }
  0x1b   :  { %878 = vmatpush3.bf16.msra.mxu0 %v875_v11 }
  0x1c   :  { %880 = vmatprep.subr.bf16.mxu0 %v879_v15  ;;  %916 = vmatpush3.bf16.msra.mxu1 %v891_v27 }
  0x1d   :  { %909 = vmatprep.subr.bf16.mxu1 %v895_v31 }
  0x1e   :  { %804 = vmatmul.mubr.msk.bf16.gmra.mrb[4].mxu0 %vm124_vm0, %v927_v22  ;;  %v1159_v22 = vld [vmem:[%s1318_s4] ss:$0 sm:$0xff] }
  0x1f   :  { %807 = vmatprep.mubr.msk.bf16.mxu0 %vm124_vm0, %v928_v24  ;;  %882 = vmatpush3.bf16.msra.mxu0 %v879_v15 }
  0x20   :  { %884 = vmatprep.subr.bf16.mxu0 %v883_v19  ;;  %917 = vmatpush3.bf16.msra.mxu1 %v895_v31 }
  0x21   :  { %910 = vmatprep.subr.bf16.mxu1 %v899_v36 }
  0x23   :  { %886 = vmatpush3.bf16.msra.mxu0 %v883_v19 }
  0x24   :  { %888 = vmatprep.subr.bf16.mxu0 %v887_v23  ;;  %918 = vmatpush3.bf16.msra.mxu1 %v899_v36 }
  0x26   :  { %808 = vmatmul.mubr.msk.bf16.gmra.mrb[8].mxu0 %vm124_vm0, %v929_v30 }
  0x27   :  { %811 = vmatprep.mubr.msk.bf16.mxu0 %vm124_vm0, %v930_v32  ;;  %890 = vmatpush3.bf16.msra.mxu0 %v887_v23 }
  0x28   :  { %892 = vmatprep.subr.bf16.mxu0 %v891_v27 }
  0x2b   :  { %894 = vmatpush3.bf16.msra.mxu0 %v891_v27 }
  0x2c   :  { %896 = vmatprep.subr.bf16.mxu0 %v895_v31 }
  0x2e   :  { %812 = vmatmul.mubr.msk.bf16.gmra.mrb[12].mxu0 %vm124_vm0, %v931_v33 }
  0x2f   :  { %898 = vmatpush3.bf16.msra.mxu0 %v895_v31 }
  0x30   :  { %900 = vmatprep.subr.bf16.mxu0 %v899_v36 }
  0x33   :  { %902 = vmatpush3.bf16.msra.mxu0 %v899_v36 }
  0xe9   :  { %v801_v38 = vpop.f32.mrb[0].mxu0 }
  0xea   :  { %v1092_v39 = vadd.f32 %v801_v38, %v642_v37  ;;  %v183_v40 = vpop.f32.mrb[1].mxu0 }
  0xeb   :  { %v1094_v41 = vadd.f32 %v642_v37, %v183_v40  ;;  %v802_v42 = vpop.f32.mrb[2].mxu0 }
  0xec   :  { %v1096_v43 = vadd.f32 %v802_v42, %v642_v37  ;;  %v186_v44 = vpop.f32.mrb[3].mxu0  ;;  %v248_v45 = vmul.f32 %v1092_v39, %v1092_v39 }
  0xed   :  { %v246_v46 = vmul.f32 %v1094_v41, %v1094_v41  ;;  %v1102_v47 = vadd.f32 %v642_v37, %v186_v44 }
  0xee   :  { %v249_v48 = vmul.f32 %v1096_v43, %v1096_v43  ;;  %850 = vmatprep.mubr.f32.mxu1 %v248_v45 }
  0xef   :  { %v247_v49 = vmul.f32 %v1102_v47, %v1102_v47  ;;  %847 = vmatprep.mubr.f32.mxu0 %v246_v46 }
  0xf0   :  { %851 = vmatmul.mubr.f32.vlgmr.msra.gmra.mrb[0].mxu1 %v249_v48 }
  0xf1   :  { %v805_v50 = vpop.f32.mrb[4].mxu0  ;;  %848 = vmatmul.mubr.f32.vlgmr.msra.gmra.mrb[16].mxu0 %v247_v49 }
  0xf2   :  { %v199_v51 = vpop.f32.mrb[5].mxu0  ;;  %v1110_v54 = vadd.f32 %v805_v50, %v642_v37 }
  0xf3   :  { %v1108_v52 = vadd.f32 %v642_v37, %v199_v51  ;;  %v806_v53 = vpop.f32.mrb[6].mxu0 }
  0xf4   :  { %v202_v55 = vpop.f32.mrb[7].mxu0  ;;  %v1116_v58 = vadd.f32 %v806_v53, %v642_v37  ;;  %v252_v60 = vmul.f32 %v1110_v54, %v1110_v54 }
  0xf5   :  { %v250_v56 = vmul.f32 %v1108_v52, %v1108_v52  ;;  %v1114_v57 = vadd.f32 %v642_v37, %v202_v55 }
  0xf6   :  { %v253_v63 = vmul.f32 %v1116_v58, %v1116_v58 }
  0xf7   :  { %v251_v59 = vmul.f32 %v1114_v57, %v1114_v57  ;;  %853 = vmatprep.mubr.f32.mxu1 %v250_v56 }
  0xf9   :  { %v809_v61 = vpop.f32.mrb[8].mxu0  ;;  %854 = vmatmul.mubr.f32.gmra.mrb[2].mxu1 %v251_v59 }
  0xfa   :  { %v215_v62 = vpop.f32.mrb[9].mxu0  ;;  %856 = vmatprep.mubr.f32.mxu1 %v252_v60  ;;  %v1126_v2 = vadd.f32 %v809_v61, %v642_v37 }
  0xfb   :  { %v1124_v0 = vadd.f32 %v642_v37, %v215_v62  ;;  %v810_v1 = vpop.f32.mrb[10].mxu0 }
  0xfc   :  { %v218_v3 = vpop.f32.mrb[11].mxu0  ;;  %v1132_v6 = vadd.f32 %v810_v1, %v642_v37  ;;  %v256_v8 = vmul.f32 %v1126_v2, %v1126_v2 }
  0xfd   :  { %v254_v4 = vmul.f32 %v1124_v0, %v1124_v0  ;;  %v1130_v5 = vadd.f32 %v642_v37, %v218_v3  ;;  %857 = vmatmul.mubr.f32.gmra.mrb[4].mxu1 %v253_v63 }
  0xfe   :  { %v257_v11 = vmul.f32 %v1132_v6, %v1132_v6 }
  0xff   :  { %v255_v7 = vmul.f32 %v1130_v5, %v1130_v5  ;;  %859 = vmatprep.mubr.f32.mxu1 %v254_v4 }
 0x101   :  { %v813_v9 = vpop.f32.mrb[12].mxu0  ;;  %860 = vmatmul.mubr.f32.gmra.mrb[6].mxu1 %v255_v7 }
 0x102   :  { %v231_v10 = vpop.f32.mrb[13].mxu0  ;;  %862 = vmatprep.mubr.f32.mxu1 %v256_v8  ;;  %v1142_v14 = vadd.f32 %v813_v9, %v642_v37 }
 0x103   :  { %v1140_v12 = vadd.f32 %v642_v37, %v231_v10  ;;  %v814_v13 = vpop.f32.mrb[14].mxu0 }
 0x104   :  { %v234_v15 = vpop.f32.mrb[15].mxu0  ;;  %v1148_v18 = vadd.f32 %v814_v13, %v642_v37  ;;  %v260_v20 = vmul.f32 %v1142_v14, %v1142_v14 }
 0x105   :  { %v258_v16 = vmul.f32 %v1140_v12, %v1140_v12  ;;  %v1146_v17 = vadd.f32 %v642_v37, %v234_v15  ;;  %863 = vmatmul.mubr.f32.gmra.mrb[8].mxu1 %v257_v11 }
 0x106   :  { %v261_v21 = vmul.f32 %v1148_v18, %v1148_v18 }
 0x107   :  { %v259_v19 = vmul.f32 %v1146_v17, %v1146_v17  ;;  %865 = vmatprep.mubr.f32.mxu1 %v258_v16 }
 0x109   :  { %866 = vmatmul.mubr.f32.gmra.mrb[10].mxu1 %v259_v19 }
 0x10a   :  { %868 = vmatprep.mubr.f32.mxu1 %v260_v20 }
 0x10d   :  { %869 = vmatmul.mubr.f32.gmra.mrb[12].mxu1 %v261_v21 }
 0x1c3   :  { %v852_v23 = vpop.f32.mrb[0].mxu1 }
 0x1c4   :  { %v367_v24 = vadd.f32 %v852_v23, %v1159_v22  ;;  %v849_v25 = vpop.f32.mrb[16].mxu0  ;;  %v361_v26 = vpop.f32.mrb[1].mxu1 }
 0x1c5   :  { %v357_v27 = vadd.f32 %v849_v25, %v1159_v22  ;;  %v362_v28 = vadd.f32 %v1159_v22, %v361_v26  ;;  %v351_v29 = vpop.f32.mrb[17].mxu0 }
 0x1c6   :  { %932 = vrsqrt.f32 %v367_v24  ;;  %v352_v30 = vadd.f32 %v1159_v22, %v351_v29  ;;  %vm453_vm1 = vcmp.eq.f32.partialorder %v367_v24, inf  ;;  %vm455_vm2 = vcmp.eq.f32.partialorder %v367_v24, 0.0 }
 0x1c7   :  { %934 = vrsqrt.f32 %v357_v27  ;;  %v456_v40 = vand.u32 2147483648, %v367_v24  ;;  %vm439_vm3 = vcmp.eq.f32.partialorder %v357_v27, inf  ;;  %vm441_vm4 = vcmp.eq.f32.partialorder %v357_v27, 0.0 }
 0x1c8   :  { %936 = vrsqrt.f32 %v362_v28  ;;  %v442_v48 = vand.u32 2147483648, %v357_v27  ;;  %vm446_vm5 = vcmp.eq.f32.partialorder %v362_v28, inf  ;;  %vm448_vm6 = vcmp.eq.f32.partialorder %v362_v28, 0.0 }
 0x1c9   :  { %938 = vrsqrt.f32 %v352_v30  ;;  %v449_v56 = vand.u32 2147483648, %v362_v28  ;;  %vm432_vm7 = vcmp.eq.f32.partialorder %v352_v30, inf  ;;  %v435_v8 = vand.u32 2147483648, %v352_v30 }
 0x1ca   :  { %vm434_vm8 = vcmp.eq.f32.partialorder %v352_v30, 0.0 }
 0x1cc   :  { %v855_v31 = vpop.f32.mrb[2].mxu1 }
 0x1cd   :  { %v1166_v32 = vadd.f32 %v855_v31, %v1159_v22  ;;  %v371_v33 = vpop.f32.mrb[3].mxu1 }
 0x1ce   :  { %v1169_v34 = vadd.f32 %v1159_v22, %v371_v33 }
 0x1cf   :  { %940 = vrsqrt.f32 %v1166_v32  ;;  %vm467_vm9 = vcmp.eq.f32.partialorder %v1166_v32, inf  ;;  %vm469_vm10 = vcmp.eq.f32.partialorder %v1166_v32, 0.0 }
 0x1d0   :  { %v933_v35 = vpop.eup %932  ;;  %942 = vrsqrt.f32 %v1169_v34  ;;  %v858_v36 = vpop.f32.mrb[4].mxu1  ;;  %vm460_vm11 = vcmp.eq.f32.partialorder %v1169_v34, inf  ;;  %vm462_vm12 = vcmp.eq.f32.partialorder %v1169_v34, 0.0  ;;  %v463_v26 = vand.u32 2147483648, %v1169_v34 }
 0x1d1   :  { %v935_v37 = vpop.eup %934  ;;  %v452_v38 = vmul.f32 %v933_v35, %v367_v24  ;;  %v1174_v42 = vadd.f32 %v858_v36, %v1159_v22  ;;  %v381_v44 = vpop.f32.mrb[5].mxu1 }
 0x1d2   :  { %v937_v45 = vpop.eup %936  ;;  %v438_v46 = vmul.f32 %v935_v37, %v357_v27  ;;  %v1177_v49 = vadd.f32 %v1159_v22, %v381_v44 }
 0x1d3   :  { %v454_v50 = vsel %vm453_vm1, %v367_v24, %v452_v38  ;;  %v445_v51 = vmul.f32 %v937_v45, %v362_v28  ;;  %944 = vrsqrt.f32 %v1174_v42  ;;  %v939_v60 = vpop.eup %938  ;;  %vm481_vm13 = vcmp.eq.f32.partialorder %v1174_v42, inf }
 0x1d4   :  { %v457_v53 = vsel %vm455_vm2, %v456_v40, %v454_v50  ;;  %v440_v55 = vsel %vm439_vm3, %v357_v27, %v438_v46  ;;  %v861_v59 = vpop.f32.mrb[6].mxu1  ;;  %946 = vrsqrt.f32 %v1177_v49  ;;  %v431_v4 = vmul.f32 %v939_v60, %v352_v30 }
 0x1d5   :  { %v545_v61 = vmul.f32 %v457_v53, %v1096_v43  ;;  %v443_v62 = vsel %vm441_vm4, %v442_v48, %v440_v55  ;;  %v447_v63 = vsel %vm446_vm5, %v362_v28, %v445_v51  ;;  %v391_v1 = vpop.f32.mrb[7].mxu1  ;;  %v1185_v9 = vadd.f32 %v861_v59, %v1159_v22 }
 0x1d6   :  { %v450_v3 = vsel %vm448_vm6, %v449_v56, %v447_v63  ;;  %v543_v10 = vmul.f32 %v443_v62, %v1102_v47  ;;  %v433_v11 = vsel %vm432_vm7, %v352_v30, %v431_v4  ;;  %v1189_v43 = vadd.f32 %v1159_v22, %v391_v1 }
 0x1d7   :  { %v544_v7 = vmul.f32 %v450_v3, %v1092_v39  ;;  %v436_v19 = vsel %vm434_vm8, %v435_v8, %v433_v11  ;;  %948 = vrsqrt.f32 %v1185_v9  ;;  %v470_v47 = vand.u32 2147483648, %v1166_v32 }
 0x1d8   :  { %v864_v13 = vpop.f32.mrb[8].mxu1  ;;  %v542_v21 = vmul.f32 %v436_v19, %v1094_v41  ;;  %950 = vrsqrt.f32 %v1189_v43  ;;  %v484_v44 = vand.u32 2147483648, %v1174_v42  ;;  %vm483_vm14 = vcmp.eq.f32.partialorder %v1174_v42, 0.0 }
 0x1d9   :  { %v941_v15 = vpop.eup %940  ;;  %v705_v16 = vpack.c.bf16 %v545_v61, %v544_v7  ;;  %v401_v39 = vpop.f32.mrb[9].mxu1  ;;  %v1207_v27 = vadd.f32 %v864_v13, %v1159_v22  ;;  %vm474_vm15 = vcmp.eq.f32.partialorder %v1177_v49, inf  ;;  %v477_v51 = vand.u32 2147483648, %v1177_v49 }
 0x1da   :  { %v943_v20 = vpop.eup %942  ;;  %v466_v23 = vmul.f32 %v941_v15, %v1166_v32  ;;  %v700_v25 = vpack.c.bf16 %v543_v10, %v542_v21  ;;  %v1211_v33 = vadd.f32 %v1159_v22, %v401_v39  ;;  %vm476_vm0 = vcmp.eq.f32.partialorder %v1177_v49, 0.0 }
 0x1db   :  { %737 = vst [vmem:[%s1319_s5 + $0x8] sm:$0xff] %v705_v16   ;;  %v459_v24 = vmul.f32 %v943_v20, %v1169_v34  ;;  %952 = vrsqrt.f32 %v1207_v27  ;;  %vm495_vm1 = vcmp.eq.f32.partialorder %v1185_v9, inf  ;;  %vm497_vm2 = vcmp.eq.f32.partialorder %v1185_v9, 0.0 }
 0x1dc   :  { %v468_v41 = vsel %vm467_vm9, %v1166_v32, %v466_v23  ;;  %v867_v28 = vpop.f32.mrb[10].mxu1  ;;  %701 = vst [vmem:[%s1319_s5] sm:$0xff] %v700_v25   ;;  %954 = vrsqrt.f32 %v1211_v33  ;;  %v498_v63 = vand.u32 2147483648, %v1185_v9  ;;  %vm488_vm3 = vcmp.eq.f32.partialorder %v1189_v43, inf }
 0x1dd   :  { %v945_v29 = vpop.eup %944  ;;  %v471_v30 = vsel %vm469_vm10, %v470_v47, %v468_v41  ;;  %v461_v31 = vsel %vm460_vm11, %v1169_v34, %v459_v24  ;;  %v1214_v35 = vadd.f32 %v867_v28, %v1159_v22  ;;  %v411_v36 = vpop.f32.mrb[11].mxu1  ;;  %vm490_vm4 = vcmp.eq.f32.partialorder %v1189_v43, 0.0 }
 0x1de   :  { %v547_v32 = vmul.f32 %v471_v30, %v1114_v57  ;;  %v464_v37 = vsel %vm462_vm12, %v463_v26, %v461_v31  ;;  %v480_v38 = vmul.f32 %v945_v29, %v1174_v42  ;;  %v947_v40 = vpop.eup %946  ;;  %v1239_v59 = vadd.f32 %v1159_v22, %v411_v36 }
 0x1df   :  { %v546_v34 = vmul.f32 %v464_v37, %v1108_v52  ;;  %v473_v46 = vmul.f32 %v947_v40, %v1177_v49  ;;  %956 = vrsqrt.f32 %v1214_v35  ;;  %vm509_vm5 = vcmp.eq.f32.partialorder %v1207_v27, inf }
 0x1e0   :  { %v482_v45 = vsel %vm481_vm13, %v1174_v42, %v480_v38  ;;  %v870_v57 = vpop.f32.mrb[12].mxu1  ;;  %958 = vrsqrt.f32 %v1239_v59  ;;  %v512_v16 = vand.u32 2147483648, %v1207_v27  ;;  %vm511_vm6 = vcmp.eq.f32.partialorder %v1207_v27, 0.0 }
 0x1e1   :  { %v710_v48 = vpack.c.bf16 %v547_v32, %v546_v34  ;;  %v485_v50 = vsel %vm483_vm14, %v484_v44, %v482_v45  ;;  %v421_v52 = vpop.f32.mrb[13].mxu1  ;;  %v475_v55 = vsel %vm474_vm15, %v1177_v49, %v473_v46  ;;  %v949_v42 = vpop.eup %948  ;;  %vm502_vm7 = vcmp.eq.f32.partialorder %v1211_v33, inf }
 0x1e2   :  { %v549_v53 = vmul.f32 %v485_v50, %v1116_v58  ;;  %v478_v56 = vsel %vm476_vm0, %v477_v51, %v475_v55  ;;  %v494_v61 = vmul.f32 %v949_v42, %v1185_v9  ;;  %v1244_v58 = vadd.f32 %v870_v57, %v1159_v22  ;;  %v951_v62 = vpop.eup %950 }
 0x1e3   :  { %738 = vst [vmem:[%s1319_s5 + $0x10] sm:$0xff] %v710_v48   ;;  %v548_v60 = vmul.f32 %v478_v56, %v1110_v54  ;;  %v1247_v49 = vadd.f32 %v1159_v22, %v421_v52  ;;  %v487_v3 = vmul.f32 %v951_v62, %v1189_v43  ;;  %v491_v22 = vand.u32 2147483648, %v1189_v43 }
 0x1e4   :  { %v496_v54 = vsel %vm495_vm1, %v1185_v9, %v494_v61  ;;  %960 = vrsqrt.f32 %v1244_v58  ;;  %v505_v21 = vand.u32 2147483648, %v1211_v33  ;;  %vm504_vm8 = vcmp.eq.f32.partialorder %v1211_v33, 0.0 }
 0x1e5   :  { %v715_v1 = vpack.c.bf16 %v549_v53, %v548_v60  ;;  %v499_v4 = vsel %vm497_vm2, %v498_v63, %v496_v54  ;;  %v953_v7 = vpop.eup %952  ;;  %v489_v10 = vsel %vm488_vm3, %v1189_v43, %v487_v3  ;;  %962 = vrsqrt.f32 %v1247_v49 }
 0x1e6   :  { %v551_v8 = vmul.f32 %v499_v4, %v1130_v5  ;;  %v492_v9 = vsel %vm490_vm4, %v491_v22, %v489_v10  ;;  %v508_v11 = vmul.f32 %v953_v7, %v1207_v27  ;;  %v955_v13 = vpop.eup %954  ;;  %vm523_vm9 = vcmp.eq.f32.partialorder %v1214_v35, inf }
 0x1e7   :  { %739 = vst [vmem:[%s1319_s5 + $0x18] sm:$0xff] %v715_v1   ;;  %v550_v15 = vmul.f32 %v492_v9, %v1124_v0  ;;  %v501_v5 = vmul.f32 %v955_v13, %v1211_v33  ;;  %v526_v25 = vand.u32 2147483648, %v1214_v35  ;;  %vm525_vm10 = vcmp.eq.f32.partialorder %v1214_v35, 0.0 }
 0x1e8   :  { %v510_v19 = vsel %vm509_vm5, %v1207_v27, %v508_v11  ;;  %vm516_vm11 = vcmp.eq.f32.partialorder %v1239_v59, inf  ;;  %vm518_vm12 = vcmp.eq.f32.partialorder %v1239_v59, 0.0  ;;  %v519_v31 = vand.u32 2147483648, %v1239_v59 }
 0x1e9   :  { %v957_v39 = vpop.eup %956  ;;  %v720_v43 = vpack.c.bf16 %v551_v8, %v550_v15  ;;  %v513_v20 = vsel %vm511_vm6, %v512_v16, %v510_v19  ;;  %v503_v0 = vsel %vm502_vm7, %v1211_v33, %v501_v5  ;;  %vm537_vm13 = vcmp.eq.f32.partialorder %v1244_v58, inf }
 0x1ea   :  { %v553_v23 = vmul.f32 %v513_v20, %v1132_v6  ;;  %v522_v47 = vmul.f32 %v957_v39, %v1214_v35  ;;  %v506_v24 = vsel %vm504_vm8, %v505_v21, %v503_v0  ;;  %v959_v41 = vpop.eup %958  ;;  %vm539_vm14 = vcmp.eq.f32.partialorder %v1244_v58, 0.0 }
 0x1eb   :  { %740 = vst [vmem:[%s1319_s5 + $0x20] sm:$0xff] %v720_v43   ;;  %v552_v26 = vmul.f32 %v506_v24, %v1126_v2  ;;  %v515_v29 = vmul.f32 %v959_v41, %v1239_v59  ;;  %vm530_vm15 = vcmp.eq.f32.partialorder %v1247_v49, inf  ;;  %v533_v44 = vand.u32 2147483648, %v1247_v49 }
 0x1ec   :  { %v524_v6 = vsel %vm523_vm9, %v1214_v35, %v522_v47  ;;  %v540_v35 = vand.u32 2147483648, %v1244_v58  ;;  %vm532_vm0 = vcmp.eq.f32.partialorder %v1247_v49, 0.0 }
 0x1ed   :  { %v527_v28 = vsel %vm525_vm10, %v526_v25, %v524_v6  ;;  %v725_v30 = vpack.c.bf16 %v553_v23, %v552_v26  ;;  %v517_v32 = vsel %vm516_vm11, %v1239_v59, %v515_v29 }
 0x1ee   :  { %v961_v27 = vpop.eup %960  ;;  %v555_v2 = vmul.f32 %v527_v28, %v1146_v17  ;;  %v520_v37 = vsel %vm518_vm12, %v519_v31, %v517_v32 }
 0x1ef   :  { %v536_v33 = vmul.f32 %v961_v27, %v1244_v58  ;;  %v963_v36 = vpop.eup %962  ;;  %741 = vst [vmem:[%s1319_s5 + $0x28] sm:$0xff] %v725_v30   ;;  %v554_v34 = vmul.f32 %v520_v37, %v1140_v12 }
 0x1f0   :  { %v529_v40 = vmul.f32 %v963_v36, %v1247_v49 }
 0x1f1   :  { %v538_v38 = vsel %vm537_vm13, %v1244_v58, %v536_v33  ;;  %v730_v57 = vpack.c.bf16 %v555_v2, %v554_v34 }
 0x1f2   :  { %v541_v17 = vsel %vm539_vm14, %v540_v35, %v538_v38  ;;  %v531_v46 = vsel %vm530_vm15, %v1247_v49, %v529_v40 }
 0x1f3   :  { %v557_v45 = vmul.f32 %v541_v17, %v1148_v18  ;;  %v534_v48 = vsel %vm532_vm0, %v533_v44, %v531_v46  ;;  %742 = vst [vmem:[%s1319_s5 + $0x30] sm:$0xff] %v730_v57  }
 0x1f4   :  { %v556_v50 = vmul.f32 %v534_v48, %v1142_v14 }
 0x1f6   :  { %v735_v12 = vpack.c.bf16 %v557_v45, %v556_v50 }
 0x1f8   :  { %743 = vst [vmem:[%s1319_s5 + $0x38] sm:$0xff] %v735_v12  }

// kernel: forward.16
= control target key start
LH: loop header
LB: loop body
LE: loop exit
PB: predicated region body
PF: predicated region fallthrough
CT: control target
= control target key end

     0   :  { %vm292_vm0 = vcmask 654336   ;;  %s4350_s1 = inlined_call_operand.vmem [shape: bf16[80,128], index: 1, kind: input, shape index: {}]   ;;  %s4351_s0 = inlined_call_operand.vmem [shape: bf16[512,80], index: 0, kind: input, shape index: {}]   ;;  %s4352_s3 = inlined_call_operand.vmem [shape: f32[128,128], index: 3, kind: input, shape index: {}]   ;;  %s4353_s2 = inlined_call_operand.vmem [shape: f32[1,128], index: 2, kind: input, shape index: {}]   ;;  %s4354_s4 = inlined_call_operand.vmem [shape: f32[1,128], index: 4, kind: input, shape index: {}]   ;;  %s4355_s5 = inlined_call_operand.vmem [shape: bf16[512,128], index: 5, kind: output, shape index: {}]  }
   0x1   :  { %v2743_v0 = vld [vmem:[%s4350_s1] sm:$0xff]   ;;  %v2744_v1 = vld [vmem:[%s4350_s1 + $0x8] sm:$0xff]   ;;  %v2745_v2 = vld [vmem:[%s4350_s1 + $0x10] sm:$0xff]  }
   0x2   :  { %2493 = vmatprep.subr.bf16.mxu0 %v2743_v0  ;;  %v2748_v3 = vld [vmem:[%s4351_s0] sm:$0xff]   ;;  %v2746_v4 = vld [vmem:[%s4350_s1 + $0x18] sm:$0xff]   ;;  %v2749_v6 = vld [vmem:[%s4351_s0 + $0x8] sm:$0xff]  }
   0x3   :  { %2494 = vmatpush3.bf16.msra.mxu0 %v2743_v0  ;;  %2503 = vmatprep.mubr.msk.bf16.mxu0 %vm292_vm0, %v2748_v3  ;;  %v2747_v5 = vld [vmem:[%s4350_s1 + $0x20] sm:$0xff]   ;;  %v2750_v7 = vld [vmem:[%s4351_s0 + $0x10] sm:$0xff]   ;;  %v2751_v8 = vld [vmem:[%s4351_s0 + $0x18] sm:$0xff]  }
   0x4   :  { %2495 = vmatprep.subr.bf16.mxu0 %v2744_v1  ;;  %v2752_v9 = vld [vmem:[%s4351_s0 + $0x20] sm:$0xff]   ;;  %v2753_v10 = vld [vmem:[%s4351_s0 + $0x28] sm:$0xff]   ;;  %v2754_v11 = vld [vmem:[%s4351_s0 + $0x30] sm:$0xff]  }
   0x5   :  { %v742_v12 = vld [vmem:[%s4352_s3] sm:$0xff]  ;;  %v743_v13 = vld [vmem:[%s4352_s3 + $0x8] sm:$0xff]  ;;  %v744_v14 = vld [vmem:[%s4352_s3 + $0x10] sm:$0xff] }
   0x6   :  { %v2695_v15 = vpack.c.bf16 %v743_v13, %v742_v12  ;;  %v745_v16 = vld [vmem:[%s4352_s3 + $0x18] sm:$0xff]  ;;  %v746_v18 = vld [vmem:[%s4352_s3 + $0x20] sm:$0xff]  ;;  %v747_v19 = vld [vmem:[%s4352_s3 + $0x28] sm:$0xff] }
   0x7   :  { %2496 = vmatpush3.bf16.msra.mxu0 %v2744_v1  ;;  %v2699_v17 = vpack.c.bf16 %v745_v16, %v744_v14  ;;  %v2755_v20 = vld [vmem:[%s4351_s0 + $0x38] sm:$0xff]   ;;  %v2703_v21 = vpack.c.bf16 %v747_v19, %v746_v18  ;;  %v2756_v22 = vld [vmem:[%s4351_s0 + $0x40] sm:$0xff]   ;;  %v748_v23 = vld [vmem:[%s4352_s3 + $0x30] sm:$0xff] }
   0x8   :  { %2497 = vmatprep.subr.bf16.mxu0 %v2745_v2  ;;  %2727 = vmatprep.subr.bf16.mxu1 %v2695_v15  ;;  %v749_v24 = vld [vmem:[%s4352_s3 + $0x38] sm:$0xff]  ;;  %v750_v26 = vld [vmem:[%s4352_s3 + $0x40] sm:$0xff]  ;;  %v751_v27 = vld [vmem:[%s4352_s3 + $0x48] sm:$0xff] }
   0x9   :  { %2735 = vmatpush3.bf16.msra.mxu1 %v2695_v15  ;;  %v2707_v25 = vpack.c.bf16 %v749_v24, %v748_v23  ;;  %v2757_v28 = vld [vmem:[%s4351_s0 + $0x48] sm:$0xff]   ;;  %v2711_v29 = vpack.c.bf16 %v751_v27, %v750_v26  ;;  %v2758_v30 = vld [vmem:[%s4351_s0 + $0x50] sm:$0xff]   ;;  %v753_v32 = vld [vmem:[%s4352_s3 + $0x58] sm:$0xff] }
   0xa   :  { %2728 = vmatprep.subr.bf16.mxu1 %v2699_v17  ;;  %v752_v31 = vld [vmem:[%s4352_s3 + $0x50] sm:$0xff]  ;;  %v754_v34 = vld [vmem:[%s4352_s3 + $0x60] sm:$0xff]  ;;  %v755_v35 = vld [vmem:[%s4352_s3 + $0x68] sm:$0xff] }
   0xb   :  { %2498 = vmatpush3.bf16.msra.mxu0 %v2745_v2  ;;  %v2715_v33 = vpack.c.bf16 %v753_v32, %v752_v31  ;;  %v2759_v36 = vld [vmem:[%s4351_s0 + $0x58] sm:$0xff]   ;;  %v2719_v37 = vpack.c.bf16 %v755_v35, %v754_v34  ;;  %v2760_v38 = vld [vmem:[%s4351_s0 + $0x60] sm:$0xff]   ;;  %v2761_v39 = vld [vmem:[%s4351_s0 + $0x68] sm:$0xff]  }
   0xc   :  { %2499 = vmatprep.subr.bf16.mxu0 %v2746_v4  ;;  %v2762_v40 = vld [vmem:[%s4351_s0 + $0x70] sm:$0xff]   ;;  %v2763_v41 = vld [vmem:[%s4351_s0 + $0x78] sm:$0xff]   ;;  %v2764_v42 = vld [vmem:[%s4351_s0 + $0x80] sm:$0xff]  }
   0xd   :  { %2736 = vmatpush3.bf16.msra.mxu1 %v2699_v17  ;;  %v2765_v43 = vld [vmem:[%s4351_s0 + $0x88] sm:$0xff]   ;;  %v2766_v44 = vld [vmem:[%s4351_s0 + $0x90] sm:$0xff]   ;;  %v2767_v45 = vld [vmem:[%s4351_s0 + $0x98] sm:$0xff]  }
   0xe   :  { %2729 = vmatprep.subr.bf16.mxu1 %v2703_v21  ;;  %v2768_v46 = vld [vmem:[%s4351_s0 + $0xa0] sm:$0xff]   ;;  %v2769_v47 = vld [vmem:[%s4351_s0 + $0xa8] sm:$0xff]   ;;  %v2770_v48 = vld [vmem:[%s4351_s0 + $0xb0] sm:$0xff]  }
   0xf   :  { %2500 = vmatpush3.bf16.msra.mxu0 %v2746_v4  ;;  %v756_v49 = vld [vmem:[%s4352_s3 + $0x70] sm:$0xff]  ;;  %v757_v50 = vld [vmem:[%s4352_s3 + $0x78] sm:$0xff]  ;;  %v2772_v53 = vld [vmem:[%s4351_s0 + $0xc0] sm:$0xff]  }
  0x10   :  { %2501 = vmatprep.subr.bf16.mxu0 %v2747_v5  ;;  %v2771_v51 = vld [vmem:[%s4351_s0 + $0xb8] sm:$0xff]   ;;  %v2723_v52 = vpack.c.bf16 %v757_v50, %v756_v49  ;;  %v2773_v54 = vld [vmem:[%s4351_s0 + $0xc8] sm:$0xff]   ;;  %v2774_v55 = vld [vmem:[%s4351_s0 + $0xd0] sm:$0xff]  }
  0x11   :  { %2737 = vmatpush3.bf16.msra.mxu1 %v2703_v21  ;;  %v2775_v56 = vld [vmem:[%s4351_s0 + $0xd8] sm:$0xff]   ;;  %v2776_v57 = vld [vmem:[%s4351_s0 + $0xe0] sm:$0xff]   ;;  %v2777_v58 = vld [vmem:[%s4351_s0 + $0xe8] sm:$0xff]  }
  0x12   :  { %2730 = vmatprep.subr.bf16.mxu1 %v2707_v25  ;;  %v2778_v59 = vld [vmem:[%s4351_s0 + $0xf0] sm:$0xff]   ;;  %v2779_v60 = vld [vmem:[%s4351_s0 + $0xf8] sm:$0xff]   ;;  %v3133_v61 = vld [vmem:[%s4353_s2] ss:$0 sm:$0xff] }
  0x13   :  { %2502 = vmatpush3.bf16.msra.mxu0 %v2747_v5 }
  0x14   :  { %2696 = vmatprep.subr.bf16.mxu0 %v2695_v15 }
  0x15   :  { %2738 = vmatpush3.bf16.msra.mxu1 %v2707_v25 }
  0x16   :  { %2504 = vmatmul.mubr.msk.bf16.vlgmr.msra.gmra.mrb[0].mxu0 %vm292_vm0, %v2749_v6  ;;  %2731 = vmatprep.subr.bf16.mxu1 %v2711_v29 }
  0x17   :  { %2507 = vmatprep.mubr.msk.bf16.mxu0 %vm292_vm0, %v2750_v7  ;;  %2698 = vmatpush3.bf16.msra.mxu0 %v2695_v15 }
  0x18   :  { %2700 = vmatprep.subr.bf16.mxu0 %v2699_v17 }
  0x19   :  { %2739 = vmatpush3.bf16.msra.mxu1 %v2711_v29 }
  0x1a   :  { %2732 = vmatprep.subr.bf16.mxu1 %v2715_v33 }
  0x1b   :  { %2702 = vmatpush3.bf16.msra.mxu0 %v2699_v17 }
  0x1c   :  { %2704 = vmatprep.subr.bf16.mxu0 %v2703_v21 }
  0x1d   :  { %2740 = vmatpush3.bf16.msra.mxu1 %v2715_v33 }
  0x1e   :  { %2508 = vmatmul.mubr.msk.bf16.gmra.mrb[4].mxu0 %vm292_vm0, %v2751_v8  ;;  %2733 = vmatprep.subr.bf16.mxu1 %v2719_v37 }
  0x1f   :  { %2511 = vmatprep.mubr.msk.bf16.mxu0 %vm292_vm0, %v2752_v9  ;;  %2706 = vmatpush3.bf16.msra.mxu0 %v2703_v21 }
  0x20   :  { %2708 = vmatprep.subr.bf16.mxu0 %v2707_v25 }
  0x21   :  { %2741 = vmatpush3.bf16.msra.mxu1 %v2719_v37 }
  0x22   :  { %2734 = vmatprep.subr.bf16.mxu1 %v2723_v52 }
  0x23   :  { %2710 = vmatpush3.bf16.msra.mxu0 %v2707_v25 }
  0x24   :  { %2712 = vmatprep.subr.bf16.mxu0 %v2711_v29 }
  0x25   :  { %2742 = vmatpush3.bf16.msra.mxu1 %v2723_v52 }
  0x26   :  { %2512 = vmatmul.mubr.msk.bf16.gmra.mrb[8].mxu0 %vm292_vm0, %v2753_v10 }
  0x27   :  { %2515 = vmatprep.mubr.msk.bf16.mxu0 %vm292_vm0, %v2754_v11  ;;  %2714 = vmatpush3.bf16.msra.mxu0 %v2711_v29 }
  0x28   :  { %2716 = vmatprep.subr.bf16.mxu0 %v2715_v33 }
  0x2b   :  { %2718 = vmatpush3.bf16.msra.mxu0 %v2715_v33 }
  0x2c   :  { %2720 = vmatprep.subr.bf16.mxu0 %v2719_v37 }
  0x2e   :  { %2516 = vmatmul.mubr.msk.bf16.gmra.mrb[12].mxu0 %vm292_vm0, %v2755_v20 }
  0x2f   :  { %2519 = vmatprep.mubr.msk.bf16.mxu0 %vm292_vm0, %v2756_v22  ;;  %2722 = vmatpush3.bf16.msra.mxu0 %v2719_v37 }
  0x30   :  { %2724 = vmatprep.subr.bf16.mxu0 %v2723_v52 }
  0x33   :  { %2726 = vmatpush3.bf16.msra.mxu0 %v2723_v52 }
  0x36   :  { %2520 = vmatmul.mubr.msk.bf16.gmra.mrb[16].mxu0 %vm292_vm0, %v2757_v28 }
  0x37   :  { %2523 = vmatprep.mubr.msk.bf16.mxu0 %vm292_vm0, %v2758_v30 }
  0x3e   :  { %2524 = vmatmul.mubr.msk.bf16.gmra.mrb[20].mxu0 %vm292_vm0, %v2759_v36 }
  0x3f   :  { %2527 = vmatprep.mubr.msk.bf16.mxu0 %vm292_vm0, %v2760_v38 }
  0x46   :  { %2528 = vmatmul.mubr.msk.bf16.gmra.mrb[24].mxu0 %vm292_vm0, %v2761_v39 }
  0x47   :  { %2531 = vmatprep.mubr.msk.bf16.mxu0 %vm292_vm0, %v2762_v40 }
  0x4e   :  { %2532 = vmatmul.mubr.msk.bf16.gmra.mrb[28].mxu0 %vm292_vm0, %v2763_v41 }
  0x4f   :  { %2535 = vmatprep.mubr.msk.bf16.mxu0 %vm292_vm0, %v2764_v42 }
  0x56   :  { %2536 = vmatmul.mubr.msk.bf16.gmra.mrb[32].mxu0 %vm292_vm0, %v2765_v43 }
  0x57   :  { %2539 = vmatprep.mubr.msk.bf16.mxu0 %vm292_vm0, %v2766_v44 }
  0x5e   :  { %2540 = vmatmul.mubr.msk.bf16.gmra.mrb[36].mxu0 %vm292_vm0, %v2767_v45 }
  0x5f   :  { %2543 = vmatprep.mubr.msk.bf16.mxu0 %vm292_vm0, %v2768_v46 }
  0x66   :  { %2544 = vmatmul.mubr.msk.bf16.gmra.mrb[40].mxu0 %vm292_vm0, %v2769_v47 }
  0x67   :  { %2547 = vmatprep.mubr.msk.bf16.mxu0 %vm292_vm0, %v2770_v48 }
  0x6e   :  { %2548 = vmatmul.mubr.msk.bf16.gmra.mrb[44].mxu0 %vm292_vm0, %v2771_v51 }
  0x6f   :  { %2551 = vmatprep.mubr.msk.bf16.mxu0 %vm292_vm0, %v2772_v53 }
  0x76   :  { %2552 = vmatmul.mubr.msk.bf16.gmra.mrb[48].mxu0 %vm292_vm0, %v2773_v54 }
  0x77   :  { %2555 = vmatprep.mubr.msk.bf16.mxu0 %vm292_vm0, %v2774_v55 }
  0x7e   :  { %2556 = vmatmul.mubr.msk.bf16.gmra.mrb[52].mxu0 %vm292_vm0, %v2775_v56 }
  0x7f   :  { %2559 = vmatprep.mubr.msk.bf16.mxu0 %vm292_vm0, %v2776_v57 }
  0x86   :  { %2560 = vmatmul.mubr.msk.bf16.gmra.mrb[56].mxu0 %vm292_vm0, %v2777_v58 }
  0x87   :  { %2563 = vmatprep.mubr.msk.bf16.mxu0 %vm292_vm0, %v2778_v59 }
  0x8e   :  { %2564 = vmatmul.mubr.msk.bf16.gmra.mrb[60].mxu0 %vm292_vm0, %v2779_v60 }
  0xe9   :  { %v2505_v62 = vpop.f32.mrb[0].mxu0 }
  0xea   :  { %v3136_v63 = vadd.f32 %v2505_v62, %v3133_v61  ;;  %v423_v0 = vpop.f32.mrb[1].mxu0 }
  0xeb   :  { %v3139_v1 = vadd.f32 %v3133_v61, %v423_v0  ;;  %v2506_v2 = vpop.f32.mrb[2].mxu0 }
  0xec   :  { %v3142_v3 = vadd.f32 %v2506_v2, %v3133_v61  ;;  %v426_v4 = vpop.f32.mrb[3].mxu0  ;;  %v680_v5 = vmul.f32 %v3136_v63, %v3136_v63 }
  0xed   :  { %v678_v6 = vmul.f32 %v3139_v1, %v3139_v1  ;;  %v3149_v7 = vadd.f32 %v3133_v61, %v426_v4 }
  0xee   :  { %v681_v8 = vmul.f32 %v3142_v3, %v3142_v3  ;;  %2602 = vmatprep.mubr.f32.mxu1 %v680_v5 }
  0xef   :  { %v679_v9 = vmul.f32 %v3149_v7, %v3149_v7  ;;  %2599 = vmatprep.mubr.f32.mxu0 %v678_v6 }
  0xf0   :  { %2603 = vmatmul.mubr.f32.vlgmr.msra.gmra.mrb[0].mxu1 %v681_v8 }
  0xf1   :  { %v2509_v10 = vpop.f32.mrb[4].mxu0  ;;  %2600 = vmatmul.mubr.f32.vlgmr.msra.gmra.mrb[64].mxu0 %v679_v9 }
  0xf2   :  { %v439_v11 = vpop.f32.mrb[5].mxu0  ;;  %v3159_v14 = vadd.f32 %v2509_v10, %v3133_v61 }
  0xf3   :  { %v3156_v12 = vadd.f32 %v3133_v61, %v439_v11  ;;  %v2510_v13 = vpop.f32.mrb[6].mxu0 }
  0xf4   :  { %v442_v15 = vpop.f32.mrb[7].mxu0  ;;  %v3167_v18 = vadd.f32 %v2510_v13, %v3133_v61  ;;  %v684_v20 = vmul.f32 %v3159_v14, %v3159_v14 }
  0xf5   :  { %v682_v16 = vmul.f32 %v3156_v12, %v3156_v12  ;;  %v3164_v17 = vadd.f32 %v3133_v61, %v442_v15 }
  0xf6   :  { %v685_v23 = vmul.f32 %v3167_v18, %v3167_v18 }
  0xf7   :  { %v683_v19 = vmul.f32 %v3164_v17, %v3164_v17  ;;  %2605 = vmatprep.mubr.f32.mxu1 %v682_v16 }
  0xf9   :  { %v2513_v21 = vpop.f32.mrb[8].mxu0  ;;  %2606 = vmatmul.mubr.f32.gmra.mrb[2].mxu1 %v683_v19 }
  0xfa   :  { %v455_v22 = vpop.f32.mrb[9].mxu0  ;;  %2608 = vmatprep.mubr.f32.mxu1 %v684_v20  ;;  %v3179_v26 = vadd.f32 %v2513_v21, %v3133_v61 }
  0xfb   :  { %v3176_v24 = vadd.f32 %v3133_v61, %v455_v22  ;;  %v2514_v25 = vpop.f32.mrb[10].mxu0 }
  0xfc   :  { %v458_v27 = vpop.f32.mrb[11].mxu0  ;;  %v3187_v30 = vadd.f32 %v2514_v25, %v3133_v61  ;;  %v688_v32 = vmul.f32 %v3179_v26, %v3179_v26 }
  0xfd   :  { %v686_v28 = vmul.f32 %v3176_v24, %v3176_v24  ;;  %v3184_v29 = vadd.f32 %v3133_v61, %v458_v27  ;;  %2609 = vmatmul.mubr.f32.gmra.mrb[4].mxu1 %v685_v23 }
  0xfe   :  { %v689_v35 = vmul.f32 %v3187_v30, %v3187_v30 }
  0xff   :  { %v687_v31 = vmul.f32 %v3184_v29, %v3184_v29  ;;  %2611 = vmatprep.mubr.f32.mxu1 %v686_v28 }
 0x101   :  { %v2517_v33 = vpop.f32.mrb[12].mxu0  ;;  %2612 = vmatmul.mubr.f32.gmra.mrb[6].mxu1 %v687_v31 }
 0x102   :  { %v471_v34 = vpop.f32.mrb[13].mxu0  ;;  %2614 = vmatprep.mubr.f32.mxu1 %v688_v32  ;;  %v3199_v38 = vadd.f32 %v2517_v33, %v3133_v61 }
 0x103   :  { %v3196_v36 = vadd.f32 %v3133_v61, %v471_v34  ;;  %v2518_v37 = vpop.f32.mrb[14].mxu0 }
 0x104   :  { %v474_v39 = vpop.f32.mrb[15].mxu0  ;;  %v3207_v42 = vadd.f32 %v2518_v37, %v3133_v61  ;;  %v692_v44 = vmul.f32 %v3199_v38, %v3199_v38 }
 0x105   :  { %v690_v40 = vmul.f32 %v3196_v36, %v3196_v36  ;;  %v3204_v41 = vadd.f32 %v3133_v61, %v474_v39  ;;  %2615 = vmatmul.mubr.f32.gmra.mrb[8].mxu1 %v689_v35 }
 0x106   :  { %v693_v47 = vmul.f32 %v3207_v42, %v3207_v42 }
 0x107   :  { %v691_v43 = vmul.f32 %v3204_v41, %v3204_v41  ;;  %2617 = vmatprep.mubr.f32.mxu1 %v690_v40 }
 0x109   :  { %v2521_v45 = vpop.f32.mrb[16].mxu0  ;;  %2618 = vmatmul.mubr.f32.gmra.mrb[10].mxu1 %v691_v43 }
 0x10a   :  { %v487_v46 = vpop.f32.mrb[17].mxu0  ;;  %2620 = vmatprep.mubr.f32.mxu1 %v692_v44  ;;  %v3219_v50 = vadd.f32 %v2521_v45, %v3133_v61 }
 0x10b   :  { %v3216_v48 = vadd.f32 %v3133_v61, %v487_v46  ;;  %v2522_v49 = vpop.f32.mrb[18].mxu0 }
 0x10c   :  { %v490_v51 = vpop.f32.mrb[19].mxu0  ;;  %v3227_v54 = vadd.f32 %v2522_v49, %v3133_v61  ;;  %v696_v56 = vmul.f32 %v3219_v50, %v3219_v50 }
 0x10d   :  { %v694_v52 = vmul.f32 %v3216_v48, %v3216_v48  ;;  %v3224_v53 = vadd.f32 %v3133_v61, %v490_v51  ;;  %2621 = vmatmul.mubr.f32.gmra.mrb[12].mxu1 %v693_v47 }
 0x10e   :  { %v697_v59 = vmul.f32 %v3227_v54, %v3227_v54 }
 0x10f   :  { %v695_v55 = vmul.f32 %v3224_v53, %v3224_v53  ;;  %2623 = vmatprep.mubr.f32.mxu1 %v694_v52 }
 0x111   :  { %v2525_v57 = vpop.f32.mrb[20].mxu0  ;;  %2624 = vmatmul.mubr.f32.gmra.mrb[14].mxu1 %v695_v55 }
 0x112   :  { %v503_v58 = vpop.f32.mrb[21].mxu0  ;;  %2626 = vmatprep.mubr.f32.mxu1 %v696_v56  ;;  %v3239_v0 = vadd.f32 %v2525_v57, %v3133_v61 }
 0x113   :  { %v3236_v60 = vadd.f32 %v3133_v61, %v503_v58  ;;  %v2526_v62 = vpop.f32.mrb[22].mxu0 }
 0x114   :  { %v506_v2 = vpop.f32.mrb[23].mxu0  ;;  %v3247_v6 = vadd.f32 %v2526_v62, %v3133_v61  ;;  %v700_v9 = vmul.f32 %v3239_v0, %v3239_v0 }
 0x115   :  { %v698_v4 = vmul.f32 %v3236_v60, %v3236_v60  ;;  %v3244_v5 = vadd.f32 %v3133_v61, %v506_v2  ;;  %2627 = vmatmul.mubr.f32.gmra.mrb[16].mxu1 %v697_v59 }
 0x116   :  { %v701_v13 = vmul.f32 %v3247_v6, %v3247_v6 }
 0x117   :  { %v699_v8 = vmul.f32 %v3244_v5, %v3244_v5  ;;  %2629 = vmatprep.mubr.f32.mxu1 %v698_v4 }
 0x119   :  { %v2529_v10 = vpop.f32.mrb[24].mxu0  ;;  %2630 = vmatmul.mubr.f32.gmra.mrb[18].mxu1 %v699_v8 }
 0x11a   :  { %v519_v11 = vpop.f32.mrb[25].mxu0  ;;  %2632 = vmatprep.mubr.f32.mxu1 %v700_v9  ;;  %v3259_v19 = vadd.f32 %v2529_v10, %v3133_v61 }
 0x11b   :  { %v3256_v15 = vadd.f32 %v3133_v61, %v519_v11  ;;  %v2530_v16 = vpop.f32.mrb[26].mxu0 }
 0x11c   :  { %v522_v20 = vpop.f32.mrb[27].mxu0  ;;  %v3267_v23 = vadd.f32 %v2530_v16, %v3133_v61  ;;  %v704_v27 = vmul.f32 %v3259_v19, %v3259_v19 }
 0x11d   :  { %v702_v21 = vmul.f32 %v3256_v15, %v3256_v15  ;;  %v3264_v22 = vadd.f32 %v3133_v61, %v522_v20  ;;  %2633 = vmatmul.mubr.f32.gmra.mrb[20].mxu1 %v701_v13 }
 0x11e   :  { %v705_v32 = vmul.f32 %v3267_v23, %v3267_v23 }
 0x11f   :  { %v703_v25 = vmul.f32 %v3264_v22, %v3264_v22  ;;  %2635 = vmatprep.mubr.f32.mxu1 %v702_v21 }
 0x121   :  { %v2533_v28 = vpop.f32.mrb[28].mxu0  ;;  %2636 = vmatmul.mubr.f32.gmra.mrb[22].mxu1 %v703_v25 }
 0x122   :  { %v535_v31 = vpop.f32.mrb[29].mxu0  ;;  %2638 = vmatprep.mubr.f32.mxu1 %v704_v27  ;;  %v3279_v35 = vadd.f32 %v2533_v28, %v3133_v61 }
 0x123   :  { %v3276_v33 = vadd.f32 %v3133_v61, %v535_v31  ;;  %v2534_v34 = vpop.f32.mrb[30].mxu0 }
 0x124   :  { %v538_v37 = vpop.f32.mrb[31].mxu0  ;;  %v3287_v43 = vadd.f32 %v2534_v34, %v3133_v61  ;;  %v708_v45 = vmul.f32 %v3279_v35, %v3279_v35 }
 0x125   :  { %v706_v39 = vmul.f32 %v3276_v33, %v3276_v33  ;;  %v3284_v40 = vadd.f32 %v3133_v61, %v538_v37  ;;  %2639 = vmatmul.mubr.f32.gmra.mrb[24].mxu1 %v705_v32 }
 0x126   :  { %v709_v49 = vmul.f32 %v3287_v43, %v3287_v43 }
 0x127   :  { %v707_v44 = vmul.f32 %v3284_v40, %v3284_v40  ;;  %2641 = vmatprep.mubr.f32.mxu1 %v706_v39 }
 0x129   :  { %v2537_v46 = vpop.f32.mrb[32].mxu0  ;;  %2642 = vmatmul.mubr.f32.gmra.mrb[26].mxu1 %v707_v44 }
 0x12a   :  { %v551_v47 = vpop.f32.mrb[33].mxu0  ;;  %2644 = vmatprep.mubr.f32.mxu1 %v708_v45  ;;  %v3299_v55 = vadd.f32 %v2537_v46, %v3133_v61 }
 0x12b   :  { %v3296_v51 = vadd.f32 %v3133_v61, %v551_v47  ;;  %v2538_v52 = vpop.f32.mrb[34].mxu0 }
 0x12c   :  { %v554_v56 = vpop.f32.mrb[35].mxu0  ;;  %v3307_v59 = vadd.f32 %v2538_v52, %v3133_v61  ;;  %v712_v2 = vmul.f32 %v3299_v55, %v3299_v55 }
 0x12d   :  { %v710_v57 = vmul.f32 %v3296_v51, %v3296_v51  ;;  %v3304_v58 = vadd.f32 %v3133_v61, %v554_v56  ;;  %2645 = vmatmul.mubr.f32.gmra.mrb[28].mxu1 %v709_v49 }
 0x12e   :  { %v713_v9 = vmul.f32 %v3307_v59, %v3307_v59 }
 0x12f   :  { %v711_v62 = vmul.f32 %v3304_v58, %v3304_v58  ;;  %2647 = vmatprep.mubr.f32.mxu1 %v710_v57 }
 0x131   :  { %v2541_v4 = vpop.f32.mrb[36].mxu0  ;;  %2648 = vmatmul.mubr.f32.gmra.mrb[30].mxu1 %v711_v62 }
 0x132   :  { %v567_v8 = vpop.f32.mrb[37].mxu0  ;;  %2650 = vmatprep.mubr.f32.mxu1 %v712_v2  ;;  %v3319_v13 = vadd.f32 %v2541_v4, %v3133_v61 }
 0x133   :  { %v3316_v10 = vadd.f32 %v3133_v61, %v567_v8  ;;  %v2542_v11 = vpop.f32.mrb[38].mxu0 }
 0x134   :  { %4384 = vst [vmem:[#allocation3_spill] sm:$0xff] %v3319_v13  ;;  %v570_v16 = vpop.f32.mrb[39].mxu0  ;;  %v3327_v25 = vadd.f32 %v2542_v11, %v3133_v61  ;;  %v716_v28 = vmul.f32 %v3319_v13, %v3319_v13 }
 0x135   :  { %4383 = vst [vmem:[#allocation2_spill] sm:$0xff] %v3316_v10  ;;  %v714_v20 = vmul.f32 %v3316_v10, %v3316_v10  ;;  %v3324_v21 = vadd.f32 %v3133_v61, %v570_v16  ;;  %2651 = vmatmul.mubr.f32.gmra.mrb[32].mxu1 %v713_v9 }
 0x136   :  { %4385 = vst [vmem:[#allocation4_spill] sm:$0xff] %v3327_v25  ;;  %v717_v34 = vmul.f32 %v3327_v25, %v3327_v25 }
 0x137   :  { %v715_v27 = vmul.f32 %v3324_v21, %v3324_v21  ;;  %2653 = vmatprep.mubr.f32.mxu1 %v714_v20 }
 0x139   :  { %v2545_v31 = vpop.f32.mrb[40].mxu0  ;;  %2654 = vmatmul.mubr.f32.gmra.mrb[34].mxu1 %v715_v27 }
 0x13a   :  { %v583_v32 = vpop.f32.mrb[41].mxu0  ;;  %2656 = vmatprep.mubr.f32.mxu1 %v716_v28  ;;  %v3339_v44 = vadd.f32 %v2545_v31, %v3133_v61 }
 0x13b   :  { %v3336_v37 = vadd.f32 %v3133_v61, %v583_v32  ;;  %v2546_v39 = vpop.f32.mrb[42].mxu0 }
 0x13c   :  { %4387 = vst [vmem:[#allocation6_spill] sm:$0xff] %v3339_v44  ;;  %v586_v45 = vpop.f32.mrb[43].mxu0  ;;  %v3347_v49 = vadd.f32 %v2546_v39, %v3133_v61  ;;  %v720_v56 = vmul.f32 %v3339_v44, %v3339_v44 }
 0x13d   :  { %4386 = vst [vmem:[#allocation5_spill] sm:$0xff] %v3336_v37  ;;  %v718_v46 = vmul.f32 %v3336_v37, %v3336_v37  ;;  %v3344_v47 = vadd.f32 %v3133_v61, %v586_v45  ;;  %2657 = vmatmul.mubr.f32.gmra.mrb[36].mxu1 %v717_v34 }
 0x13e   :  { %4389 = vst [vmem:[#allocation8_spill] sm:$0xff] %v3347_v49  ;;  %v721_v2 = vmul.f32 %v3347_v49, %v3347_v49 }
 0x13f   :  { %4388 = vst [vmem:[#allocation7_spill] sm:$0xff] %v3344_v47  ;;  %v719_v52 = vmul.f32 %v3344_v47, %v3344_v47  ;;  %2659 = vmatprep.mubr.f32.mxu1 %v718_v46 }
 0x141   :  { %v2549_v57 = vpop.f32.mrb[44].mxu0  ;;  %2660 = vmatmul.mubr.f32.gmra.mrb[38].mxu1 %v719_v52 }
 0x142   :  { %v599_v62 = vpop.f32.mrb[45].mxu0  ;;  %2662 = vmatprep.mubr.f32.mxu1 %v720_v56  ;;  %v3359_v9 = vadd.f32 %v2549_v57, %v3133_v61 }
 0x143   :  { %v3356_v4 = vadd.f32 %v3133_v61, %v599_v62  ;;  %v2550_v8 = vpop.f32.mrb[46].mxu0 }
 0x144   :  { %4391 = vst [vmem:[#allocation10_spill] sm:$0xff] %v3359_v9  ;;  %v602_v11 = vpop.f32.mrb[47].mxu0  ;;  %v3367_v27 = vadd.f32 %v2550_v8, %v3133_v61  ;;  %v724_v31 = vmul.f32 %v3359_v9, %v3359_v9 }
 0x145   :  { %4390 = vst [vmem:[#allocation9_spill] sm:$0xff] %v3356_v4  ;;  %v722_v16 = vmul.f32 %v3356_v4, %v3356_v4  ;;  %v3364_v20 = vadd.f32 %v3133_v61, %v602_v11  ;;  %2663 = vmatmul.mubr.f32.gmra.mrb[40].mxu1 %v721_v2 }
 0x146   :  { %4393 = vst [vmem:[#allocation12_spill] sm:$0xff] %v3367_v27  ;;  %v725_v39 = vmul.f32 %v3367_v27, %v3367_v27 }
 0x147   :  { %4392 = vst [vmem:[#allocation11_spill] sm:$0xff] %v3364_v20  ;;  %v723_v28 = vmul.f32 %v3364_v20, %v3364_v20  ;;  %2665 = vmatprep.mubr.f32.mxu1 %v722_v16 }
 0x149   :  { %v2553_v32 = vpop.f32.mrb[48].mxu0  ;;  %2666 = vmatmul.mubr.f32.gmra.mrb[42].mxu1 %v723_v28 }
 0x14a   :  { %v615_v34 = vpop.f32.mrb[49].mxu0  ;;  %2668 = vmatprep.mubr.f32.mxu1 %v724_v31  ;;  %v3379_v52 = vadd.f32 %v2553_v32, %v3133_v61 }
 0x14b   :  { %v3376_v45 = vadd.f32 %v3133_v61, %v615_v34  ;;  %v2554_v46 = vpop.f32.mrb[50].mxu0 }
 0x14c   :  { %4395 = vst [vmem:[#allocation14_spill] sm:$0xff] %v3379_v52  ;;  %v618_v56 = vpop.f32.mrb[51].mxu0  ;;  %v3387_v2 = vadd.f32 %v2554_v46, %v3133_v61  ;;  %v728_v11 = vmul.f32 %v3379_v52, %v3379_v52 }
 0x14d   :  { %4394 = vst [vmem:[#allocation13_spill] sm:$0xff] %v3376_v45  ;;  %v726_v57 = vmul.f32 %v3376_v45, %v3376_v45  ;;  %v3384_v62 = vadd.f32 %v3133_v61, %v618_v56  ;;  %2669 = vmatmul.mubr.f32.gmra.mrb[44].mxu1 %v725_v39 }
 0x14e   :  { %4397 = vst [vmem:[#allocation16_spill] sm:$0xff] %v3387_v2  ;;  %v729_v31 = vmul.f32 %v3387_v2, %v3387_v2 }
 0x14f   :  { %4396 = vst [vmem:[#allocation15_spill] sm:$0xff] %v3384_v62  ;;  %v727_v8 = vmul.f32 %v3384_v62, %v3384_v62  ;;  %2671 = vmatprep.mubr.f32.mxu1 %v726_v57 }
 0x151   :  { %v2557_v16 = vpop.f32.mrb[52].mxu0  ;;  %2672 = vmatmul.mubr.f32.gmra.mrb[46].mxu1 %v727_v8 }
 0x152   :  { %v631_v28 = vpop.f32.mrb[53].mxu0  ;;  %2674 = vmatprep.mubr.f32.mxu1 %v728_v11  ;;  %v3399_v39 = vadd.f32 %v2557_v16, %v3133_v61 }
 0x153   :  { %v3396_v32 = vadd.f32 %v3133_v61, %v631_v28  ;;  %v2558_v34 = vpop.f32.mrb[54].mxu0 }
 0x154   :  { %4399 = vst [vmem:[#allocation18_spill] sm:$0xff] %v3399_v39  ;;  %v634_v46 = vpop.f32.mrb[55].mxu0  ;;  %v3407_v8 = vadd.f32 %v2558_v34, %v3133_v61  ;;  %v732_v28 = vmul.f32 %v3399_v39, %v3399_v39 }
 0x155   :  { %4398 = vst [vmem:[#allocation17_spill] sm:$0xff] %v3396_v32  ;;  %v730_v56 = vmul.f32 %v3396_v32, %v3396_v32  ;;  %v3404_v57 = vadd.f32 %v3133_v61, %v634_v46  ;;  %2675 = vmatmul.mubr.f32.gmra.mrb[48].mxu1 %v729_v31 }
 0x156   :  { %4401 = vst [vmem:[#allocation20_spill] sm:$0xff] %v3407_v8  ;;  %v733_v32 = vmul.f32 %v3407_v8, %v3407_v8 }
 0x157   :  { %4400 = vst [vmem:[#allocation19_spill] sm:$0xff] %v3404_v57  ;;  %v731_v11 = vmul.f32 %v3404_v57, %v3404_v57  ;;  %2677 = vmatprep.mubr.f32.mxu1 %v730_v56 }
 0x159   :  { %v2561_v16 = vpop.f32.mrb[56].mxu0  ;;  %2678 = vmatmul.mubr.f32.gmra.mrb[50].mxu1 %v731_v11 }
 0x15a   :  { %v647_v52 = vpop.f32.mrb[57].mxu0  ;;  %2680 = vmatprep.mubr.f32.mxu1 %v732_v28  ;;  %v3419_v34 = vadd.f32 %v2561_v16, %v3133_v61 }
 0x15b   :  { %v3416_v46 = vadd.f32 %v3133_v61, %v647_v52  ;;  %v2562_v31 = vpop.f32.mrb[58].mxu0 }
 0x15c   :  { %4403 = vst [vmem:[#allocation22_spill] sm:$0xff] %v3419_v34  ;;  %v650_v2 = vpop.f32.mrb[59].mxu0  ;;  %v3427_v11 = vadd.f32 %v2562_v31, %v3133_v61  ;;  %v736_v52 = vmul.f32 %v3419_v34, %v3419_v34 }
 0x15d   :  { %4402 = vst [vmem:[#allocation21_spill] sm:$0xff] %v3416_v46  ;;  %v734_v56 = vmul.f32 %v3416_v46, %v3416_v46  ;;  %v3424_v39 = vadd.f32 %v3133_v61, %v650_v2  ;;  %2681 = vmatmul.mubr.f32.gmra.mrb[52].mxu1 %v733_v32 }
 0x15e   :  { %4405 = vst [vmem:[#allocation24_spill] sm:$0xff] %v3427_v11  ;;  %v737_v46 = vmul.f32 %v3427_v11, %v3427_v11 }
 0x15f   :  { %4404 = vst [vmem:[#allocation23_spill] sm:$0xff] %v3424_v39  ;;  %v735_v28 = vmul.f32 %v3424_v39, %v3424_v39  ;;  %2683 = vmatprep.mubr.f32.mxu1 %v734_v56 }
 0x161   :  { %v2565_v16 = vpop.f32.mrb[60].mxu0  ;;  %2684 = vmatmul.mubr.f32.gmra.mrb[54].mxu1 %v735_v28 }
 0x162   :  { %v663_v8 = vpop.f32.mrb[61].mxu0  ;;  %2686 = vmatprep.mubr.f32.mxu1 %v736_v52  ;;  %v3439_v31 = vadd.f32 %v2565_v16, %v3133_v61 }
 0x163   :  { %v3436_v2 = vadd.f32 %v3133_v61, %v663_v8  ;;  %v2566_v32 = vpop.f32.mrb[62].mxu0 }
 0x164   :  { %4407 = vst [vmem:[#allocation26_spill] sm:$0xff] %v3439_v31  ;;  %v666_v57 = vpop.f32.mrb[63].mxu0  ;;  %v3447_v28 = vadd.f32 %v2566_v32, %v3133_v61  ;;  %v740_v8 = vmul.f32 %v3439_v31, %v3439_v31 }
 0x165   :  { %4406 = vst [vmem:[#allocation25_spill] sm:$0xff] %v3436_v2  ;;  %v738_v56 = vmul.f32 %v3436_v2, %v3436_v2  ;;  %v3444_v34 = vadd.f32 %v3133_v61, %v666_v57  ;;  %2687 = vmatmul.mubr.f32.gmra.mrb[56].mxu1 %v737_v46  ;;  %v3458_v57 = vld [vmem:[%s4354_s4] ss:$0 sm:$0xff] }
 0x166   :  { %4409 = vst [vmem:[#allocation28_spill] sm:$0xff] %v3447_v28  ;;  %v741_v16 = vmul.f32 %v3447_v28, %v3447_v28 }
 0x167   :  { %4408 = vst [vmem:[#allocation27_spill] sm:$0xff] %v3444_v34  ;;  %v739_v52 = vmul.f32 %v3444_v34, %v3444_v34  ;;  %2689 = vmatprep.mubr.f32.mxu1 %v738_v56 }
 0x169   :  { %2690 = vmatmul.mubr.f32.gmra.mrb[58].mxu1 %v739_v52 }
 0x16a   :  { %2692 = vmatprep.mubr.f32.mxu1 %v740_v8 }
 0x16d   :  { %2693 = vmatmul.mubr.f32.gmra.mrb[60].mxu1 %v741_v16 }
 0x1c3   :  { %v2604_v61 = vpop.f32.mrb[0].mxu1 }
 0x1c4   :  { %v847_v46 = vadd.f32 %v2604_v61, %v3458_v57  ;;  %v2601_v32 = vpop.f32.mrb[64].mxu0  ;;  %v841_v2 = vpop.f32.mrb[1].mxu1 }
 0x1c5   :  { %v837_v56 = vadd.f32 %v2601_v32, %v3458_v57  ;;  %v842_v31 = vadd.f32 %v3458_v57, %v841_v2  ;;  %v831_v52 = vpop.f32.mrb[65].mxu0 }
 0x1c6   :  { %2780 = vrsqrt.f32 %v847_v46  ;;  %v832_v8 = vadd.f32 %v3458_v57, %v831_v52  ;;  %vm1173_vm1 = vcmp.eq.f32.partialorder %v847_v46, inf  ;;  %vm1175_vm2 = vcmp.eq.f32.partialorder %v847_v46, 0.0 }
 0x1c7   :  { %2782 = vrsqrt.f32 %v837_v56  ;;  %v1176_v52 = vand.u32 2147483648, %v847_v46  ;;  %vm1159_vm3 = vcmp.eq.f32.partialorder %v837_v56, inf  ;;  %vm1161_vm4 = vcmp.eq.f32.partialorder %v837_v56, 0.0 }
 0x1c8   :  { %2784 = vrsqrt.f32 %v842_v31  ;;  %vm1166_vm5 = vcmp.eq.f32.partialorder %v842_v31, inf  ;;  %vm1168_vm6 = vcmp.eq.f32.partialorder %v842_v31, 0.0  ;;  %v1169_v49 = vand.u32 2147483648, %v842_v31 }
 0x1c9   :  { %2786 = vrsqrt.f32 %v832_v8  ;;  %vm1152_vm7 = vcmp.eq.f32.partialorder %v832_v8, inf  ;;  %v1155_v10 = vand.u32 2147483648, %v832_v8  ;;  %vm1154_vm8 = vcmp.eq.f32.partialorder %v832_v8, 0.0 }
 0x1cc   :  { %v2607_v16 = vpop.f32.mrb[2].mxu1 }
 0x1cd   :  { %v3465_v28 = vadd.f32 %v2607_v16, %v3458_v57  ;;  %v851_v34 = vpop.f32.mrb[3].mxu1 }
 0x1ce   :  { %v3468_v61 = vadd.f32 %v3458_v57, %v851_v34  ;;  %v1162_v34 = vand.u32 2147483648, %v837_v56 }
 0x1cf   :  { %2788 = vrsqrt.f32 %v3465_v28  ;;  %vm1187_vm9 = vcmp.eq.f32.partialorder %v3465_v28, inf  ;;  %vm1189_vm10 = vcmp.eq.f32.partialorder %v3465_v28, 0.0 }
 0x1d0   :  { %v2781_v32 = vpop.eup %2780  ;;  %2790 = vrsqrt.f32 %v3468_v61  ;;  %v2610_v2 = vpop.f32.mrb[4].mxu1  ;;  %vm1180_vm11 = vcmp.eq.f32.partialorder %v3468_v61, inf  ;;  %vm1182_vm12 = vcmp.eq.f32.partialorder %v3468_v61, 0.0 }
 0x1d1   :  { %v2783_v11 = vpop.eup %2782  ;;  %v1172_v39 = vmul.f32 %v2781_v32, %v847_v46  ;;  %v3473_v45 = vadd.f32 %v2610_v2, %v3458_v57  ;;  %v861_v16 = vpop.f32.mrb[5].mxu1 }
 0x1d2   :  { %v2785_v62 = vpop.eup %2784  ;;  %v1158_v9 = vmul.f32 %v2783_v11, %v837_v56  ;;  %v3476_v27 = vadd.f32 %v3458_v57, %v861_v16 }
 0x1d3   :  { %v1174_v4 = vsel %vm1173_vm1, %v847_v46, %v1172_v39  ;;  %v1165_v20 = vmul.f32 %v2785_v62, %v842_v31  ;;  %2792 = vrsqrt.f32 %v3473_v45  ;;  %v2787_v37 = vpop.eup %2786  ;;  %vm1201_vm13 = vcmp.eq.f32.partialorder %v3473_v45, inf }
 0x1d4   :  { %v1177_v32 = vsel %vm1175_vm2, %v1176_v52, %v1174_v4  ;;  %v1160_v44 = vsel %vm1159_vm3, %v837_v56, %v1158_v9  ;;  %v2613_v2 = vpop.f32.mrb[6].mxu1  ;;  %2794 = vrsqrt.f32 %v3476_v27  ;;  %v1151_v39 = vmul.f32 %v2787_v37, %v832_v8 }
 0x1d5   :  { %v1601_v47 = vmul.f32 %v1177_v32, %v3142_v3  ;;  %v1163_v11 = vsel %vm1161_vm4, %v1162_v34, %v1160_v44  ;;  %v1167_v13 = vsel %vm1166_vm5, %v842_v31, %v1165_v20  ;;  %v871_v16 = vpop.f32.mrb[7].mxu1  ;;  %v3484_v4 = vadd.f32 %v2613_v2, %v3458_v57 }
 0x1d6   :  { %v1170_v25 = vsel %vm1168_vm6, %v1169_v49, %v1167_v13  ;;  %v1599_v9 = vmul.f32 %v1163_v11, %v3149_v7  ;;  %v1153_v46 = vsel %vm1152_vm7, %v832_v8, %v1151_v39  ;;  %v3488_v3 = vadd.f32 %v3458_v57, %v871_v16 }
 0x1d7   :  { %v1600_v62 = vmul.f32 %v1170_v25, %v3136_v63  ;;  %v1156_v56 = vsel %vm1154_vm8, %v1155_v10, %v1153_v46  ;;  %2796 = vrsqrt.f32 %v3484_v4  ;;  %v1190_v7 = vand.u32 2147483648, %v3465_v28 }
 0x1d8   :  { %v2616_v44 = vpop.f32.mrb[8].mxu1  ;;  %v1598_v25 = vmul.f32 %v1156_v56, %v3139_v1  ;;  %2798 = vrsqrt.f32 %v3488_v3  ;;  %v1183_v49 = vand.u32 2147483648, %v3468_v61  ;;  %vm1203_vm14 = vcmp.eq.f32.partialorder %v3473_v45, 0.0 }
 0x1d9   :  { %v2789_v20 = vpop.eup %2788  ;;  %v2193_v31 = vpack.c.bf16 %v1601_v47, %v1600_v62  ;;  %v881_v63 = vpop.f32.mrb[9].mxu1  ;;  %v3506_v8 = vadd.f32 %v2616_v44, %v3458_v57  ;;  %v1204_v44 = vand.u32 2147483648, %v3473_v45  ;;  %vm1194_vm15 = vcmp.eq.f32.partialorder %v3476_v27, inf }
 0x1da   :  { %v2791_v13 = vpop.eup %2790  ;;  %v1186_v37 = vmul.f32 %v2789_v20, %v3465_v28  ;;  %v2188_v47 = vpack.c.bf16 %v1599_v9, %v1598_v25  ;;  %v3510_v11 = vadd.f32 %v3458_v57, %v881_v63  ;;  %vm1196_vm0 = vcmp.eq.f32.partialorder %v3476_v27, 0.0 }
 0x1db   :  { %2345 = vst [vmem:[%s4355_s5 + $0x8] sm:$0xff] %v2193_v31   ;;  %v1179_v10 = vmul.f32 %v2791_v13, %v3468_v61  ;;  %2800 = vrsqrt.f32 %v3506_v8  ;;  %v1197_v13 = vand.u32 2147483648, %v3476_v27  ;;  %vm1215_vm1 = vcmp.eq.f32.partialorder %v3484_v4, inf }
 0x1dc   :  { %v1188_v1 = vsel %vm1187_vm9, %v3465_v28, %v1186_v37  ;;  %v2619_v52 = vpop.f32.mrb[10].mxu1  ;;  %2189 = vst [vmem:[%s4355_s5] sm:$0xff] %v2188_v47   ;;  %2802 = vrsqrt.f32 %v3510_v11  ;;  %vm1217_vm2 = vcmp.eq.f32.partialorder %v3484_v4, 0.0  ;;  %vm1208_vm3 = vcmp.eq.f32.partialorder %v3488_v3, inf }
 0x1dd   :  { %v2793_v34 = vpop.eup %2792  ;;  %v1191_v32 = vsel %vm1189_vm10, %v1190_v7, %v1188_v1  ;;  %v1181_v2 = vsel %vm1180_vm11, %v3468_v61, %v1179_v10  ;;  %v3513_v16 = vadd.f32 %v2619_v52, %v3458_v57  ;;  %v891_v39 = vpop.f32.mrb[11].mxu1  ;;  %vm1210_vm4 = vcmp.eq.f32.partialorder %v3488_v3, 0.0 }
 0x1de   :  { %v1603_v28 = vmul.f32 %v1191_v32, %v3164_v17  ;;  %v1184_v62 = vsel %vm1182_vm12, %v1183_v49, %v1181_v2  ;;  %v1200_v9 = vmul.f32 %v2793_v34, %v3473_v45  ;;  %v2795_v46 = vpop.eup %2794  ;;  %v3540_v10 = vadd.f32 %v3458_v57, %v891_v39 }
 0x1df   :  { %v1602_v61 = vmul.f32 %v1184_v62, %v3156_v12  ;;  %v1193_v31 = vmul.f32 %v2795_v46, %v3476_v27  ;;  %2804 = vrsqrt.f32 %v3513_v16  ;;  %v1218_v34 = vand.u32 2147483648, %v3484_v4 }
 0x1e0   :  { %v1202_v20 = vsel %vm1201_vm13, %v3473_v45, %v1200_v9  ;;  %v2622_v17 = vpop.f32.mrb[12].mxu1  ;;  %2806 = vrsqrt.f32 %v3540_v10  ;;  %v1211_v62 = vand.u32 2147483648, %v3488_v3  ;;  %vm1229_vm5 = vcmp.eq.f32.partialorder %v3506_v8, inf }
 0x1e1   :  { %v2198_v56 = vpack.c.bf16 %v1603_v28, %v1602_v61  ;;  %v1205_v63 = vsel %vm1203_vm14, %v1204_v44, %v1202_v20  ;;  %v901_v12 = vpop.f32.mrb[13].mxu1  ;;  %v1195_v37 = vsel %vm1194_vm15, %v3476_v27, %v1193_v31  ;;  %v2797_v45 = vpop.eup %2796  ;;  %v3545_v27 = vadd.f32 %v2622_v17, %v3458_v57 }
 0x1e2   :  { %v1605_v25 = vmul.f32 %v1205_v63, %v3167_v18  ;;  %v1198_v7 = vsel %vm1196_vm0, %v1197_v13, %v1195_v37  ;;  %v1214_v47 = vmul.f32 %v2797_v45, %v3484_v4  ;;  %v3548_v1 = vadd.f32 %v3458_v57, %v901_v12  ;;  %v2799_v52 = vpop.eup %2798 }
 0x1e3   :  { %2346 = vst [vmem:[%s4355_s5 + $0x10] sm:$0xff] %v2198_v56   ;;  %v1604_v18 = vmul.f32 %v1198_v7, %v3159_v14  ;;  %v1207_v39 = vmul.f32 %v2799_v52, %v3488_v3  ;;  %2808 = vrsqrt.f32 %v3545_v27  ;;  %vm1231_vm6 = vcmp.eq.f32.partialorder %v3506_v8, 0.0 }
 0x1e4   :  { %v2625_v49 = vpop.f32.mrb[14].mxu1  ;;  %v1216_v2 = vsel %vm1215_vm1, %v3484_v4, %v1214_v47  ;;  %v1232_v44 = vand.u32 2147483648, %v3506_v8  ;;  %2810 = vrsqrt.f32 %v3548_v1  ;;  %vm1222_vm7 = vcmp.eq.f32.partialorder %v3510_v11, inf }
 0x1e5   :  { %v911_v32 = vpop.f32.mrb[15].mxu1  ;;  %v2203_v14 = vpack.c.bf16 %v1605_v25, %v1604_v18  ;;  %v1219_v28 = vsel %vm1217_vm2, %v1218_v34, %v1216_v2  ;;  %v2801_v9 = vpop.eup %2800  ;;  %v1209_v61 = vsel %vm1208_vm3, %v3488_v3, %v1207_v39  ;;  %vm1224_vm8 = vcmp.eq.f32.partialorder %v3510_v11, 0.0 }
 0x1e6   :  { %v1607_v46 = vmul.f32 %v1219_v28, %v3184_v29  ;;  %v1212_v20 = vsel %vm1210_vm4, %v1211_v62, %v1209_v61  ;;  %v1228_v31 = vmul.f32 %v2801_v9, %v3506_v8  ;;  %v2803_v56 = vpop.eup %2802  ;;  %v1225_v63 = vand.u32 2147483648, %v3510_v11 }
 0x1e7   :  { %2347 = vst [vmem:[%s4355_s5 + $0x18] sm:$0xff] %v2203_v14   ;;  %v1606_v29 = vmul.f32 %v1212_v20, %v3176_v24  ;;  %v3577_v13 = vadd.f32 %v2625_v49, %v3458_v57  ;;  %v3580_v12 = vadd.f32 %v3458_v57, %v911_v32  ;;  %v1221_v25 = vmul.f32 %v2803_v56, %v3510_v11 }
 0x1e8   :  { %v2628_v4 = vpop.f32.mrb[16].mxu1  ;;  %v1230_v3 = vsel %vm1229_vm5, %v3506_v8, %v1228_v31  ;;  %vm1243_vm9 = vcmp.eq.f32.partialorder %v3513_v16, inf  ;;  %vm1245_vm10 = vcmp.eq.f32.partialorder %v3513_v16, 0.0  ;;  %v1246_v34 = vand.u32 2147483648, %v3513_v16 }
 0x1e9   :  { %v921_v17 = vpop.f32.mrb[17].mxu1  ;;  %v2805_v37 = vpop.eup %2804  ;;  %v2208_v24 = vpack.c.bf16 %v1607_v46, %v1606_v29  ;;  %v1233_v45 = vsel %vm1231_vm6, %v1232_v44, %v1230_v3  ;;  %2812 = vrsqrt.f32 %v3577_v13  ;;  %v3592_v7 = vadd.f32 %v2628_v4, %v3458_v57 }
 0x1ea   :  { %v1609_v47 = vmul.f32 %v1233_v45, %v3187_v30  ;;  %v1223_v49 = vsel %vm1222_vm7, %v3510_v11, %v1221_v25  ;;  %v1242_v52 = vmul.f32 %v2805_v37, %v3513_v16  ;;  %vm1236_vm11 = vcmp.eq.f32.partialorder %v3540_v10, inf  ;;  %v2807_v14 = vpop.eup %2806 }
 0x1eb   :  { %2348 = vst [vmem:[%s4355_s5 + $0x20] sm:$0xff] %v2208_v24   ;;  %v1226_v8 = vsel %vm1224_vm8, %v1225_v63, %v1223_v49  ;;  %2814 = vrsqrt.f32 %v3580_v12  ;;  %v3608_v30 = vadd.f32 %v3458_v57, %v921_v17  ;;  %vm1238_vm12 = vcmp.eq.f32.partialorder %v3540_v10, 0.0 }
 0x1ec   :  { %v2631_v18 = vpop.f32.mrb[18].mxu1  ;;  %v1608_v2 = vmul.f32 %v1226_v8, %v3179_v26  ;;  %v1244_v39 = vsel %vm1243_vm9, %v3513_v16, %v1242_v52  ;;  %v1239_v28 = vand.u32 2147483648, %v3540_v10  ;;  %v1235_v9 = vmul.f32 %v2807_v14, %v3540_v10 }
 0x1ed   :  { %v931_v32 = vpop.f32.mrb[19].mxu1  ;;  %v2809_v11 = vpop.eup %2808  ;;  %v1247_v62 = vsel %vm1245_vm10, %v1246_v34, %v1244_v39  ;;  %vm1257_vm13 = vcmp.eq.f32.partialorder %v3545_v27, inf  ;;  %2816 = vrsqrt.f32 %v3592_v7  ;;  %vm1259_vm14 = vcmp.eq.f32.partialorder %v3545_v27, 0.0 }
 0x1ee   :  { %v2213_v26 = vpack.c.bf16 %v1609_v47, %v1608_v2  ;;  %v1256_v61 = vmul.f32 %v2809_v11, %v3545_v27  ;;  %v1260_v44 = vand.u32 2147483648, %v3545_v27  ;;  %v2811_v20 = vpop.eup %2810  ;;  %v1611_v31 = vmul.f32 %v1247_v62, %v3204_v41 }
 0x1ef   :  { %v1237_v16 = vsel %vm1236_vm11, %v3540_v10, %v1235_v9  ;;  %vm1250_vm15 = vcmp.eq.f32.partialorder %v3548_v1, inf  ;;  %2818 = vrsqrt.f32 %v3608_v30  ;;  %v1249_v29 = vmul.f32 %v2811_v20, %v3548_v1 }
 0x1f0   :  { %v2634_v46 = vpop.f32.mrb[20].mxu1  ;;  %2349 = vst [vmem:[%s4355_s5 + $0x28] sm:$0xff] %v2213_v26   ;;  %v1240_v17 = vsel %vm1238_vm12, %v1239_v28, %v1237_v16  ;;  %v1258_v56 = vsel %vm1257_vm13, %v3545_v27, %v1256_v61  ;;  %vm1252_vm0 = vcmp.eq.f32.partialorder %v3548_v1, 0.0  ;;  %v1253_v3 = vand.u32 2147483648, %v3548_v1 }
 0x1f1   :  { %v941_v4 = vpop.f32.mrb[21].mxu1  ;;  %v1610_v41 = vmul.f32 %v1240_v17, %v3196_v36  ;;  %v1261_v63 = vsel %vm1259_vm14, %v1260_v44, %v1258_v56  ;;  %v3641_v25 = vadd.f32 %v2631_v18, %v3458_v57  ;;  %v1251_v10 = vsel %vm1250_vm15, %v3548_v1, %v1249_v29 }
 0x1f2   :  { %v1613_v24 = vmul.f32 %v1261_v63, %v3207_v42  ;;  %v3646_v45 = vadd.f32 %v3458_v57, %v931_v32  ;;  %v3649_v27 = vadd.f32 %v2634_v46, %v3458_v57  ;;  %v1254_v52 = vsel %vm1252_vm0, %v1253_v3, %v1251_v10 }
 0x1f3   :  { %v2813_v49 = vpop.eup %2812  ;;  %v2218_v36 = vpack.c.bf16 %v1611_v31, %v1610_v41  ;;  %vm1271_vm1 = vcmp.eq.f32.partialorder %v3577_v13, inf  ;;  %2820 = vrsqrt.f32 %v3641_v25  ;;  %v1612_v18 = vmul.f32 %v1254_v52, %v3199_v38 }
 0x1f4   :  { %v2637_v37 = vpop.f32.mrb[22].mxu1  ;;  %v1270_v42 = vmul.f32 %v2813_v49, %v3577_v13  ;;  %vm1273_vm2 = vcmp.eq.f32.partialorder %v3577_v13, 0.0  ;;  %v1274_v1 = vand.u32 2147483648, %v3577_v13  ;;  %vm1264_vm3 = vcmp.eq.f32.partialorder %v3580_v12, inf }
 0x1f5   :  { %v951_v47 = vpop.f32.mrb[23].mxu1  ;;  %v2815_v34 = vpop.eup %2814  ;;  %2350 = vst [vmem:[%s4355_s5 + $0x30] sm:$0xff] %v2218_v36   ;;  %vm1266_vm4 = vcmp.eq.f32.partialorder %v3580_v12, 0.0  ;;  %v1267_v32 = vand.u32 2147483648, %v3580_v12  ;;  %2822 = vrsqrt.f32 %v3646_v45  ;;  %v2223_v8 = vpack.c.bf16 %v1613_v24, %v1612_v18 }
 0x1f6   :  { %v1272_v14 = vsel %vm1271_vm1, %v3577_v13, %v1270_v42  ;;  %v1263_v2 = vmul.f32 %v2815_v34, %v3580_v12  ;;  %2824 = vrsqrt.f32 %v3649_v27  ;;  %vm1285_vm5 = vcmp.eq.f32.partialorder %v3592_v7, inf }
 0x1f7   :  { %v2817_v28 = vpop.eup %2816  ;;  %v1275_v11 = vsel %vm1273_vm2, %v1274_v1, %v1272_v14  ;;  %vm1287_vm6 = vcmp.eq.f32.partialorder %v3592_v7, 0.0  ;;  %v1288_v62 = vand.u32 2147483648, %v3592_v7  ;;  %2351 = vst [vmem:[%s4355_s5 + $0x38] sm:$0xff] %v2223_v8   ;;  %v3679_v26 = vadd.f32 %v3458_v57, %v941_v4 }
 0x1f8   :  { %v2640_v38 = vpop.f32.mrb[24].mxu1  ;;  %v1615_v9 = vmul.f32 %v1275_v11, %v3224_v53  ;;  %v1265_v13 = vsel %vm1264_vm3, %v3580_v12, %v1263_v2  ;;  %v1284_v46 = vmul.f32 %v2817_v28, %v3592_v7  ;;  %vm1278_vm7 = vcmp.eq.f32.partialorder %v3608_v30, inf }
 0x1f9   :  { %v961_v39 = vpop.f32.mrb[25].mxu1  ;;  %v2819_v61 = vpop.eup %2818  ;;  %v1268_v44 = vsel %vm1266_vm4, %v1267_v32, %v1265_v13  ;;  %v3685_v20 = vadd.f32 %v2637_v37, %v3458_v57  ;;  %v3688_v53 = vadd.f32 %v3458_v57, %v951_v47  ;;  %2826 = vrsqrt.f32 %v3679_v26 }
 0x1fa   :  { %v1614_v16 = vmul.f32 %v1268_v44, %v3216_v48  ;;  %v1286_v17 = vsel %vm1285_vm5, %v3592_v7, %v1284_v46  ;;  %v1277_v4 = vmul.f32 %v2819_v61, %v3608_v30  ;;  %vm1280_vm8 = vcmp.eq.f32.partialorder %v3608_v30, 0.0 }
 0x1fb   :  { %v1289_v12 = vsel %vm1287_vm6, %v1288_v62, %v1286_v17  ;;  %v1281_v29 = vand.u32 2147483648, %v3608_v30  ;;  %v3699_v41 = vadd.f32 %v2640_v38, %v3458_v57  ;;  %2828 = vrsqrt.f32 %v3685_v20 }
 0x1fc   :  { %v2643_v31 = vpop.f32.mrb[26].mxu1  ;;  %v2228_v63 = vpack.c.bf16 %v1615_v9, %v1614_v16  ;;  %v1617_v48 = vmul.f32 %v1289_v12, %v3227_v54  ;;  %v1279_v3 = vsel %vm1278_vm7, %v3608_v30, %v1277_v4  ;;  %vm1299_vm9 = vcmp.eq.f32.partialorder %v3641_v25, inf }
 0x1fd   :  { %v971_v56 = vpop.f32.mrb[27].mxu1  ;;  %v2821_v37 = vpop.eup %2820  ;;  %v1282_v24 = vsel %vm1280_vm8, %v1281_v29, %v1279_v3  ;;  %vm1301_vm10 = vcmp.eq.f32.partialorder %v3641_v25, 0.0  ;;  %v1302_v7 = vand.u32 2147483648, %v3641_v25  ;;  %vm1292_vm11 = vcmp.eq.f32.partialorder %v3646_v45, inf }
 0x1fe   :  { %2352 = vst [vmem:[%s4355_s5 + $0x40] sm:$0xff] %v2228_v63   ;;  %v1616_v47 = vmul.f32 %v1282_v24, %v3219_v50  ;;  %v1298_v54 = vmul.f32 %v2821_v37, %v3641_v25  ;;  %2830 = vrsqrt.f32 %v3688_v53  ;;  %vm1294_vm12 = vcmp.eq.f32.partialorder %v3646_v45, 0.0 }
 0x1ff   :  { %v2823_v49 = vpop.eup %2822  ;;  %v1295_v36 = vand.u32 2147483648, %v3646_v45  ;;  %vm1313_vm13 = vcmp.eq.f32.partialorder %v3649_v27, inf  ;;  %2832 = vrsqrt.f32 %v3699_v41  ;;  %vm1315_vm14 = vcmp.eq.f32.partialorder %v3649_v27, 0.0 }
 0x200   :  { %v2646_v10 = vpop.f32.mrb[28].mxu1  ;;  %v2825_v52 = vpop.eup %2824  ;;  %v2233_v18 = vpack.c.bf16 %v1617_v48, %v1616_v47  ;;  %v1300_v50 = vsel %vm1299_vm9, %v3641_v25, %v1298_v54  ;;  %v1291_v42 = vmul.f32 %v2823_v49, %v3646_v45  ;;  %v1316_v32 = vand.u32 2147483648, %v3649_v27 }
 0x201   :  { %v981_v30 = vpop.f32.mrb[29].mxu1  ;;  %v1303_v1 = vsel %vm1301_vm10, %v1302_v7, %v1300_v50  ;;  %v1312_v34 = vmul.f32 %v2825_v52, %v3649_v27  ;;  %v3728_v38 = vadd.f32 %v3458_v57, %v961_v39  ;;  %v3738_v25 = vadd.f32 %v2643_v31, %v3458_v57 }
 0x202   :  { %2353 = vst [vmem:[%s4355_s5 + $0x48] sm:$0xff] %v2233_v18   ;;  %v1619_v14 = vmul.f32 %v1303_v1, %v3244_v5  ;;  %v1293_v2 = vsel %vm1292_vm11, %v3646_v45, %v1291_v42  ;;  %v3741_v28 = vadd.f32 %v3458_v57, %v971_v56  ;;  %vm1306_vm15 = vcmp.eq.f32.partialorder %v3679_v26, inf }
 0x203   :  { %v1296_v39 = vsel %vm1294_vm12, %v1295_v36, %v1293_v2  ;;  %v1314_v62 = vsel %vm1313_vm13, %v3649_v27, %v1312_v34  ;;  %2834 = vrsqrt.f32 %v3728_v38  ;;  %v2827_v5 = vpop.eup %2826  ;;  %vm1308_vm0 = vcmp.eq.f32.partialorder %v3679_v26, 0.0 }
 0x204   :  { %v2649_v8 = vpop.f32.mrb[30].mxu1  ;;  %v1618_v9 = vmul.f32 %v1296_v39, %v3236_v60  ;;  %v1317_v13 = vsel %vm1315_vm14, %v1316_v32, %v1314_v62  ;;  %v1309_v46 = vand.u32 2147483648, %v3679_v26  ;;  %v1305_v45 = vmul.f32 %v2827_v5, %v3679_v26 }
 0x205   :  { %v3743_v11 = vpop.f32.mrb[31].mxu1  ;;  %vm1327_vm1 = vcmp.eq.f32.partialorder %v3685_v20, inf  ;;  %vm1329_vm2 = vcmp.eq.f32.partialorder %v3685_v20, 0.0  ;;  %2836 = vrsqrt.f32 %v3738_v25  ;;  %v2829_v44 = vpop.eup %2828  ;;  %v1330_v60 = vand.u32 2147483648, %v3685_v20 }
 0x206   :  { %v2238_v31 = vpack.c.bf16 %v1619_v14, %v1618_v9  ;;  %vm1320_vm3 = vcmp.eq.f32.partialorder %v3688_v53, inf  ;;  %2838 = vrsqrt.f32 %v3741_v28  ;;  %v1621_v16 = vmul.f32 %v1317_v13, %v3247_v6 }
 0x207   :  { %v1307_v17 = vsel %vm1306_vm15, %v3679_v26, %v1305_v45  ;;  %v1326_v4 = vmul.f32 %v2829_v44, %v3685_v20  ;;  %vm1322_vm4 = vcmp.eq.f32.partialorder %v3688_v53, 0.0  ;;  %v1323_v29 = vand.u32 2147483648, %v3688_v53 }
 0x208   :  { %v2652_v61 = vpop.f32.mrb[32].mxu1  ;;  %v2831_v56 = vpop.eup %2830  ;;  %2354 = vst [vmem:[%s4355_s5 + $0x50] sm:$0xff] %v2238_v31   ;;  %v1310_v12 = vsel %vm1308_vm0, %v1309_v46, %v1307_v17  ;;  %v3777_v6 = vadd.f32 %v2646_v10, %v3458_v57  ;;  %v3780_v63 = vadd.f32 %v3458_v57, %v981_v30  ;;  %vm1341_vm5 = vcmp.eq.f32.partialorder %v3699_v41, inf }
 0x209   :  { %v1001_v27 = vpop.f32.mrb[33].mxu1  ;;  %v2833_v48 = vpop.eup %2832  ;;  %v1620_v3 = vmul.f32 %v1310_v12, %v3239_v0  ;;  %v1328_v37 = vsel %vm1327_vm1, %v3685_v20, %v1326_v4  ;;  %v1319_v24 = vmul.f32 %v2831_v56, %v3688_v53  ;;  %v3793_v47 = vadd.f32 %v2649_v8, %v3458_v57 }
 0x20a   :  { %v1331_v7 = vsel %vm1329_vm2, %v1330_v60, %v1328_v37  ;;  %v1340_v10 = vmul.f32 %v2833_v48, %v3699_v41  ;;  %2840 = vrsqrt.f32 %v3777_v6  ;;  %v1344_v36 = vand.u32 2147483648, %v3699_v41 }
 0x20b   :  { %v2243_v54 = vpack.c.bf16 %v1621_v16, %v1620_v3  ;;  %v1623_v30 = vmul.f32 %v1331_v7, %v3264_v22  ;;  %v1321_v49 = vsel %vm1320_vm3, %v3688_v53, %v1319_v24  ;;  %vm1343_vm6 = vcmp.eq.f32.partialorder %v3699_v41, 0.0 }
 0x20c   :  { %v2655_v26 = vpop.f32.mrb[34].mxu1  ;;  %v1324_v20 = vsel %vm1322_vm4, %v1323_v29, %v1321_v49  ;;  %v1342_v52 = vsel %vm1341_vm5, %v3699_v41, %v1340_v10  ;;  %2842 = vrsqrt.f32 %v3780_v63  ;;  %vm1334_vm7 = vcmp.eq.f32.partialorder %v3728_v38, inf }
 0x20d   :  { %v3795_v0 = vpop.f32.mrb[35].mxu1  ;;  %v2835_v18 = vpop.eup %2834  ;;  %2355 = vst [vmem:[%s4355_s5 + $0x58] sm:$0xff] %v2243_v54   ;;  %v1622_v22 = vmul.f32 %v1324_v20, %v3256_v15  ;;  %v1345_v50 = vsel %vm1343_vm6, %v1344_v36, %v1342_v52  ;;  %vm1336_vm8 = vcmp.eq.f32.partialorder %v3728_v38, 0.0  ;;  %v1337_v41 = vand.u32 2147483648, %v3728_v38 }
 0x20e   :  { %v1333_v42 = vmul.f32 %v2835_v18, %v3728_v38  ;;  %vm1355_vm9 = vcmp.eq.f32.partialorder %v3738_v25, inf  ;;  %2844 = vrsqrt.f32 %v3793_v47  ;;  %v1625_v15 = vmul.f32 %v1345_v50, %v3267_v23 }
 0x20f   :  { %v2837_v34 = vpop.eup %2836  ;;  %v2248_v32 = vpack.c.bf16 %v1623_v30, %v1622_v22  ;;  %vm1357_vm10 = vcmp.eq.f32.partialorder %v3738_v25, 0.0  ;;  %v1358_v8 = vand.u32 2147483648, %v3738_v25  ;;  %v3828_v62 = vadd.f32 %v3458_v57, %v3743_v11 }
 0x210   :  { %v3813_v53 = vpop.f32.mrb[36].mxu1  ;;  %v2839_v14 = vpop.eup %2838  ;;  %v1335_v2 = vsel %vm1334_vm7, %v3728_v38, %v1333_v42  ;;  %v1354_v39 = vmul.f32 %v2837_v34, %v3738_v25  ;;  %v3831_v5 = vadd.f32 %v2652_v61, %v3458_v57  ;;  %vm1348_vm11 = vcmp.eq.f32.partialorder %v3741_v28, inf }
 0x211   :  { %v3819_v1 = vpop.f32.mrb[37].mxu1  ;;  %2356 = vst [vmem:[%s4355_s5 + $0x60] sm:$0xff] %v2248_v32   ;;  %v1338_v23 = vsel %vm1336_vm8, %v1337_v41, %v1335_v2  ;;  %v1347_v9 = vmul.f32 %v2839_v14, %v3741_v28  ;;  %v1351_v13 = vand.u32 2147483648, %v3741_v28  ;;  %2846 = vrsqrt.f32 %v3828_v62 }
 0x212   :  { %v1624_v11 = vmul.f32 %v1338_v23, %v3259_v19  ;;  %v1356_v45 = vsel %vm1355_vm9, %v3738_v25, %v1354_v39  ;;  %v3847_v61 = vadd.f32 %v3458_v57, %v1001_v27  ;;  %vm1350_vm12 = vcmp.eq.f32.partialorder %v3741_v28, 0.0 }
 0x213   :  { %v1359_v44 = vsel %vm1357_vm10, %v1358_v8, %v1356_v45  ;;  %v1349_v31 = vsel %vm1348_vm11, %v3741_v28, %v1347_v9  ;;  %v3854_v60 = vadd.f32 %v2655_v26, %v3458_v57  ;;  %2848 = vrsqrt.f32 %v3831_v5 }
 0x214   :  { %v2661_v46 = vpop.f32.mrb[38].mxu1  ;;  %v2841_v19 = vpop.eup %2840  ;;  %v2253_v16 = vpack.c.bf16 %v1625_v15, %v1624_v11  ;;  %v1627_v17 = vmul.f32 %v1359_v44, %v3284_v40  ;;  %v1352_v4 = vsel %vm1350_vm12, %v1351_v13, %v1349_v31  ;;  %vm1369_vm13 = vcmp.eq.f32.partialorder %v3777_v6, inf }
 0x215   :  { %v1031_v38 = vpop.f32.mrb[39].mxu1  ;;  %v1626_v27 = vmul.f32 %v1352_v4, %v3276_v33  ;;  %v1368_v56 = vmul.f32 %v2841_v19, %v3777_v6  ;;  %vm1371_vm14 = vcmp.eq.f32.partialorder %v3777_v6, 0.0  ;;  %v1372_v40 = vand.u32 2147483648, %v3777_v6 }
 0x216   :  { %v2843_v28 = vpop.eup %2842  ;;  %2357 = vst [vmem:[%s4355_s5 + $0x68] sm:$0xff] %v2253_v16   ;;  %vm1362_vm15 = vcmp.eq.f32.partialorder %v3780_v63, inf  ;;  %vm1364_vm0 = vcmp.eq.f32.partialorder %v3780_v63, 0.0  ;;  %2850 = vrsqrt.f32 %v3847_v61  ;;  %v1365_v3 = vand.u32 2147483648, %v3780_v63 }
 0x217   :  { %v2258_v12 = vpack.c.bf16 %v1627_v17, %v1626_v27  ;;  %v1370_v29 = vsel %vm1369_vm13, %v3777_v6, %v1368_v56  ;;  %v1361_v48 = vmul.f32 %v2843_v28, %v3780_v63  ;;  %vm1383_vm1 = vcmp.eq.f32.partialorder %v3793_v47, inf }
 0x218   :  { %v3862_v25 = vpop.f32.mrb[40].mxu1  ;;  %v2845_v37 = vpop.eup %2844  ;;  %v1373_v24 = vsel %vm1371_vm14, %v1372_v40, %v1370_v29  ;;  %vm1385_vm2 = vcmp.eq.f32.partialorder %v3793_v47, 0.0  ;;  %2852 = vrsqrt.f32 %v3854_v60  ;;  %v1386_v10 = vand.u32 2147483648, %v3793_v47 }
 0x219   :  { %v3871_v33 = vpop.f32.mrb[41].mxu1  ;;  %2358 = vst [vmem:[%s4355_s5 + $0x70] sm:$0xff] %v2258_v12   ;;  %v1629_v26 = vmul.f32 %v1373_v24, %v3287_v43  ;;  %v1363_v6 = vsel %vm1362_vm15, %v3780_v63, %v1361_v48  ;;  %v1382_v7 = vmul.f32 %v2845_v37, %v3793_v47  ;;  %vm1376_vm3 = vcmp.eq.f32.partialorder %v3828_v62, inf }
 0x21a   :  { %v1366_v30 = vsel %vm1364_vm0, %v1365_v3, %v1363_v6  ;;  %v3893_v49 = vadd.f32 %v3458_v57, %v3795_v0  ;;  %v3897_v43 = vadd.f32 %v3813_v53, %v3458_v57  ;;  %vm1378_vm4 = vcmp.eq.f32.partialorder %v3828_v62, 0.0 }
 0x21b   :  { %v1628_v20 = vmul.f32 %v1366_v30, %v3279_v35  ;;  %v1384_v52 = vsel %vm1383_vm1, %v3793_v47, %v1382_v7  ;;  %v3906_v63 = vadd.f32 %v3458_v57, %v3819_v1  ;;  %v2847_v18 = vpop.eup %2846  ;;  %v1379_v22 = vand.u32 2147483648, %v3828_v62 }
 0x21c   :  { %v3886_v54 = vpop.f32.mrb[42].mxu1  ;;  %v1387_v0 = vsel %vm1385_vm2, %v1386_v10, %v1384_v52  ;;  %2854 = vrsqrt.f32 %v3893_v49  ;;  %v3913_v50 = vadd.f32 %v2661_v46, %v3458_v57  ;;  %v1375_v53 = vmul.f32 %v2847_v18, %v3828_v62 }
 0x21d   :  { %v3899_v36 = vpop.f32.mrb[43].mxu1  ;;  %v2263_v35 = vpack.c.bf16 %v1629_v26, %v1628_v20  ;;  %vm1397_vm5 = vcmp.eq.f32.partialorder %v3831_v5, inf  ;;  %vm1399_vm6 = vcmp.eq.f32.partialorder %v3831_v5, 0.0  ;;  %v2849_v41 = vpop.eup %2848  ;;  %v1400_v47 = vand.u32 2147483648, %v3831_v5 }
 0x21e   :  { %vm1390_vm7 = vcmp.eq.f32.partialorder %v3847_v61, inf  ;;  %2856 = vrsqrt.f32 %v3897_v43  ;;  %v3924_v1 = vadd.f32 %v3458_v57, %v1031_v38  ;;  %v1631_v32 = vmul.f32 %v1387_v0, %v3304_v58 }
 0x21f   :  { %2359 = vst [vmem:[%s4355_s5 + $0x78] sm:$0xff] %v2263_v35   ;;  %v1377_v15 = vsel %vm1376_vm3, %v3828_v62, %v1375_v53  ;;  %v1396_v8 = vmul.f32 %v2849_v41, %v3831_v5  ;;  %2858 = vrsqrt.f32 %v3906_v63  ;;  %vm1392_vm8 = vcmp.eq.f32.partialorder %v3847_v61, 0.0  ;;  %v4411_v53 = vld [vmem:[#allocation4_spill] sm:$0xff] }
 0x220   :  { %v3918_v42 = vpop.f32.mrb[44].mxu1  ;;  %v2851_v14 = vpop.eup %2850  ;;  %v1380_v2 = vsel %vm1378_vm4, %v1379_v22, %v1377_v15  ;;  %v1393_v39 = vand.u32 2147483648, %v3847_v61  ;;  %2860 = vrsqrt.f32 %v3913_v50  ;;  %vm1411_vm9 = vcmp.eq.f32.partialorder %v3854_v60, inf  ;;  %v4412_v15 = vld [vmem:[#allocation3_spill] sm:$0xff] }
 0x221   :  { %v3926_v34 = vpop.f32.mrb[45].mxu1  ;;  %v1630_v58 = vmul.f32 %v1380_v2, %v3296_v51  ;;  %v1398_v23 = vsel %vm1397_vm5, %v3831_v5, %v1396_v8  ;;  %v1389_v9 = vmul.f32 %v2851_v14, %v3847_v61  ;;  %vm1413_vm10 = vcmp.eq.f32.partialorder %v3854_v60, 0.0 }
 0x222   :  { %v2853_v62 = vpop.eup %2852  ;;  %v1401_v46 = vsel %vm1399_vm6, %v1400_v47, %v1398_v23  ;;  %v1414_v11 = vand.u32 2147483648, %v3854_v60  ;;  %2862 = vrsqrt.f32 %v3924_v1  ;;  %vm1404_vm11 = vcmp.eq.f32.partialorder %v3893_v49, inf }
 0x223   :  { %v2268_v45 = vpack.c.bf16 %v1631_v32, %v1630_v58  ;;  %v1633_v38 = vmul.f32 %v1401_v46, %v3307_v59  ;;  %v1391_v44 = vsel %vm1390_vm7, %v3847_v61, %v1389_v9  ;;  %v1410_v31 = vmul.f32 %v2853_v62, %v3854_v60  ;;  %v4065_v62 = vld [vmem:[%s4354_s4] ss:$0 sm:$0xff] }
 0x224   :  { %v3948_v13 = vpop.f32.mrb[46].mxu1  ;;  %v1394_v5 = vsel %vm1392_vm8, %v1393_v39, %v1391_v44  ;;  %vm1406_vm12 = vcmp.eq.f32.partialorder %v3893_v49, 0.0  ;;  %v1407_v19 = vand.u32 2147483648, %v3893_v49  ;;  %v3976_v61 = vadd.f32 %v3862_v25, %v3458_v57 }
 0x225   :  { %v3955_v51 = vpop.f32.mrb[47].mxu1  ;;  %2360 = vst [vmem:[%s4355_s5 + $0x80] sm:$0xff] %v2268_v45   ;;  %v1632_v59 = vmul.f32 %v1394_v5, %v3299_v55  ;;  %v1412_v16 = vsel %vm1411_vm9, %v3854_v60, %v1410_v31  ;;  %v3980_v17 = vadd.f32 %v3458_v57, %v3871_v33  ;;  %vm1425_vm13 = vcmp.eq.f32.partialorder %v3897_v43, inf  ;;  %v4414_v45 = vld [vmem:[#allocation5_spill] sm:$0xff] }
 0x226   :  { %v2855_v27 = vpop.eup %2854  ;;  %v1415_v56 = vsel %vm1413_vm10, %v1414_v11, %v1412_v16  ;;  %vm1427_vm14 = vcmp.eq.f32.partialorder %v3897_v43, 0.0  ;;  %v3990_v55 = vadd.f32 %v3886_v54, %v3458_v57  ;;  %v1428_v33 = vand.u32 2147483648, %v3897_v43  ;;  %v4410_v54 = vld [vmem:[#allocation2_spill] sm:$0xff] }
 0x227   :  { %v2273_v28 = vpack.c.bf16 %v1633_v38, %v1632_v59  ;;  %v1403_v40 = vmul.f32 %v2855_v27, %v3893_v49  ;;  %2864 = vrsqrt.f32 %v3976_v61  ;;  %vm1418_vm15 = vcmp.eq.f32.partialorder %v3906_v63, inf }
 0x228   :  { %v3982_v4 = vpop.f32.mrb[48].mxu1  ;;  %v2857_v12 = vpop.eup %2856  ;;  %vm1420_vm0 = vcmp.eq.f32.partialorder %v3906_v63, 0.0  ;;  %v1421_v60 = vand.u32 2147483648, %v3906_v63  ;;  %2866 = vrsqrt.f32 %v3980_v17  ;;  %v1635_v48 = vmul.f32 %v1415_v56, %v3324_v21 }
 0x229   :  { %v3992_v25 = vpop.f32.mrb[49].mxu1  ;;  %v2859_v29 = vpop.eup %2858  ;;  %2361 = vst [vmem:[%s4355_s5 + $0x88] sm:$0xff] %v2273_v28   ;;  %v1405_v3 = vsel %vm1404_vm11, %v3893_v49, %v1403_v40  ;;  %v1424_v37 = vmul.f32 %v2857_v12, %v3897_v43  ;;  %vm1439_vm1 = vcmp.eq.f32.partialorder %v3913_v50, inf  ;;  %2868 = vrsqrt.f32 %v3990_v55  ;;  %v4415_v12 = vld [vmem:[#allocation8_spill] sm:$0xff] }
 0x22a   :  { %v2861_v26 = vpop.eup %2860  ;;  %v1408_v6 = vsel %vm1406_vm12, %v1407_v19, %v1405_v3  ;;  %v1417_v7 = vmul.f32 %v2859_v29, %v3906_v63  ;;  %v4018_v21 = vadd.f32 %v3458_v57, %v3899_v36  ;;  %vm1441_vm2 = vcmp.eq.f32.partialorder %v3913_v50, 0.0  ;;  %v4416_v3 = vld [vmem:[#allocation6_spill] sm:$0xff] }
 0x22b   :  { %v1634_v30 = vmul.f32 %v1408_v6, %v4410_v54  ;;  %v1426_v20 = vsel %vm1425_vm13, %v3897_v43, %v1424_v37  ;;  %v1438_v52 = vmul.f32 %v2861_v26, %v3913_v50  ;;  %v1442_v0 = vand.u32 2147483648, %v3913_v50 }
 0x22c   :  { %v4010_v24 = vpop.f32.mrb[50].mxu1  ;;  %v2863_v49 = vpop.eup %2862  ;;  %v1429_v18 = vsel %vm1427_vm14, %v1428_v33, %v1426_v20  ;;  %v1419_v36 = vsel %vm1418_vm15, %v3906_v63, %v1417_v7  ;;  %v4036_v22 = vadd.f32 %v3918_v42, %v3458_v57  ;;  %2870 = vrsqrt.f32 %v4018_v21  ;;  %v4413_v42 = vld [vmem:[#allocation7_spill] sm:$0xff] }
 0x22d   :  { %v4020_v10 = vpop.f32.mrb[51].mxu1  ;;  %v2278_v35 = vpack.c.bf16 %v1635_v48, %v1634_v30  ;;  %v1637_v41 = vmul.f32 %v1429_v18, %v4411_v53  ;;  %v1422_v47 = vsel %vm1420_vm0, %v1421_v60, %v1419_v36  ;;  %v1440_v43 = vsel %vm1439_vm1, %v3913_v50, %v1438_v52  ;;  %v4417_v36 = vld [vmem:[#allocation11_spill] sm:$0xff] }
 0x22e   :  { %v1636_v8 = vmul.f32 %v1422_v47, %v4412_v15  ;;  %v1443_v14 = vsel %vm1441_vm2, %v1442_v0, %v1440_v43  ;;  %v1431_v2 = vmul.f32 %v2863_v49, %v3924_v1  ;;  %vm1432_vm3 = vcmp.eq.f32.partialorder %v3924_v1, inf  ;;  %v4418_v43 = vld [vmem:[#allocation9_spill] sm:$0xff] }
 0x22f   :  { %2362 = vst [vmem:[%s4355_s5 + $0x90] sm:$0xff] %v2278_v35   ;;  %vm1434_vm4 = vcmp.eq.f32.partialorder %v3924_v1, 0.0  ;;  %v1435_v63 = vand.u32 2147483648, %v3924_v1  ;;  %v1639_v39 = vmul.f32 %v1443_v14, %v4413_v42  ;;  %2872 = vrsqrt.f32 %v4036_v22 }
 0x230   :  { %v4044_v32 = vpop.f32.mrb[52].mxu1  ;;  %v2283_v50 = vpack.c.bf16 %v1637_v41, %v1636_v8  ;;  %v1433_v58 = vsel %vm1432_vm3, %v3924_v1, %v1431_v2  ;;  %vm1453_vm5 = vcmp.eq.f32.partialorder %v3976_v61, inf  ;;  %vm1455_vm6 = vcmp.eq.f32.partialorder %v3976_v61, 0.0 }
 0x231   :  { %v4049_v57 = vpop.f32.mrb[53].mxu1  ;;  %v2865_v23 = vpop.eup %2864  ;;  %v1436_v9 = vsel %vm1434_vm4, %v1435_v63, %v1433_v58  ;;  %v4069_v46 = vadd.f32 %v4065_v62, %v3926_v34  ;;  %v1456_v31 = vand.u32 2147483648, %v3976_v61  ;;  %v4081_v5 = vadd.f32 %v4065_v62, %v3948_v13 }
 0x232   :  { %v2867_v1 = vpop.eup %2866  ;;  %2363 = vst [vmem:[%s4355_s5 + $0x98] sm:$0xff] %v2283_v50   ;;  %v1638_v38 = vmul.f32 %v1436_v9, %v4414_v45  ;;  %v1452_v44 = vmul.f32 %v2865_v23, %v3976_v61  ;;  %vm1446_vm7 = vcmp.eq.f32.partialorder %v3980_v17, inf  ;;  %v4090_v59 = vadd.f32 %v4065_v62, %v3955_v51  ;;  %v4419_v23 = vld [vmem:[#allocation12_spill] sm:$0xff] }
 0x233   :  { %v1445_v34 = vmul.f32 %v2867_v1, %v3980_v17  ;;  %2874 = vrsqrt.f32 %v4069_v46  ;;  %v2869_v16 = vpop.eup %2868  ;;  %v1449_v13 = vand.u32 2147483648, %v3980_v17  ;;  %vm1448_vm8 = vcmp.eq.f32.partialorder %v3980_v17, 0.0 }
 0x234   :  { %v4071_v11 = vpop.f32.mrb[54].mxu1  ;;  %v2288_v27 = vpack.c.bf16 %v1639_v39, %v1638_v38  ;;  %v1454_v56 = vsel %vm1453_vm5, %v3976_v61, %v1452_v44  ;;  %2876 = vrsqrt.f32 %v4081_v5  ;;  %v1466_v51 = vmul.f32 %v2869_v16, %v3990_v55  ;;  %v4420_v44 = vld [vmem:[#allocation10_spill] sm:$0xff] }
 0x235   :  { %v4083_v19 = vpop.f32.mrb[55].mxu1  ;;  %v1457_v28 = vsel %vm1455_vm6, %v1456_v31, %v1454_v56  ;;  %v1447_v40 = vsel %vm1446_vm7, %v3980_v17, %v1445_v34  ;;  %vm1467_vm9 = vcmp.eq.f32.partialorder %v3990_v55, inf  ;;  %v1470_v61 = vand.u32 2147483648, %v3990_v55 }
 0x236   :  { %2364 = vst [vmem:[%s4355_s5 + $0xa0] sm:$0xff] %v2288_v27   ;;  %v1641_v60 = vmul.f32 %v1457_v28, %v4415_v12  ;;  %v1450_v29 = vsel %vm1448_vm8, %v1449_v13, %v1447_v40  ;;  %v1468_v17 = vsel %vm1467_vm9, %v3990_v55, %v1466_v51  ;;  %vm1469_vm10 = vcmp.eq.f32.partialorder %v3990_v55, 0.0  ;;  %v2871_v26 = vpop.eup %2870  ;;  %v4421_v27 = vld [vmem:[#allocation15_spill] sm:$0xff] }
 0x237   :  { %v1640_v37 = vmul.f32 %v1450_v29, %v4416_v3  ;;  %2878 = vrsqrt.f32 %v4090_v59  ;;  %v1471_v6 = vsel %vm1469_vm10, %v1470_v61, %v1468_v17  ;;  %vm1460_vm11 = vcmp.eq.f32.partialorder %v4018_v21, inf }
 0x238   :  { %v4102_v33 = vpop.f32.mrb[56].mxu1  ;;  %vm1462_vm12 = vcmp.eq.f32.partialorder %v4018_v21, 0.0  ;;  %v4120_v7 = vadd.f32 %v4065_v62, %v3982_v4  ;;  %v1459_v30 = vmul.f32 %v2871_v26, %v4018_v21  ;;  %v1463_v20 = vand.u32 2147483648, %v4018_v21 }
 0x239   :  { %v4110_v48 = vpop.f32.mrb[57].mxu1  ;;  %v2293_v54 = vpack.c.bf16 %v1641_v60, %v1640_v37  ;;  %v4126_v55 = vadd.f32 %v4065_v62, %v3992_v25  ;;  %v2873_v49 = vpop.eup %2872  ;;  %vm1481_vm13 = vcmp.eq.f32.partialorder %v4036_v22, inf  ;;  %vm1483_vm14 = vcmp.eq.f32.partialorder %v4036_v22, 0.0 }
 0x23a   :  { %v1484_v18 = vand.u32 2147483648, %v4036_v22  ;;  %2880 = vrsqrt.f32 %v4120_v7  ;;  %v1643_v25 = vmul.f32 %v1471_v6, %v4417_v36  ;;  %v1461_v0 = vsel %vm1460_vm11, %v4018_v21, %v1459_v30 }
 0x23b   :  { %2365 = vst [vmem:[%s4355_s5 + $0xa8] sm:$0xff] %v2293_v54   ;;  %v1480_v35 = vmul.f32 %v2873_v49, %v4036_v22  ;;  %2882 = vrsqrt.f32 %v4126_v55  ;;  %v1464_v53 = vsel %vm1462_vm12, %v1463_v20, %v1461_v0  ;;  %vm1474_vm15 = vcmp.eq.f32.partialorder %v4069_v46, inf  ;;  %v4423_v20 = vld [vmem:[#allocation16_spill] sm:$0xff] }
 0x23c   :  { %v4128_v52 = vpop.f32.mrb[58].mxu1  ;;  %vm1476_vm0 = vcmp.eq.f32.partialorder %v4069_v46, 0.0  ;;  %v4151_v41 = vadd.f32 %v4065_v62, %v4010_v24  ;;  %v1642_v15 = vmul.f32 %v1464_v53, %v4418_v43  ;;  %v1477_v14 = vand.u32 2147483648, %v4069_v46 }
 0x23d   :  { %v4134_v4 = vpop.f32.mrb[59].mxu1  ;;  %v2875_v47 = vpop.eup %2874  ;;  %v1482_v8 = vsel %vm1481_vm13, %v4036_v22, %v1480_v35  ;;  %v4160_v21 = vadd.f32 %v4065_v62, %v4020_v10  ;;  %v4170_v42 = vadd.f32 %v4065_v62, %v4044_v32  ;;  %vm1495_vm1 = vcmp.eq.f32.partialorder %v4081_v5, inf }
 0x23e   :  { %v2877_v63 = vpop.eup %2876  ;;  %v1485_v24 = vsel %vm1483_vm14, %v1484_v18, %v1482_v8  ;;  %v1473_v50 = vmul.f32 %v2875_v47, %v4069_v46  ;;  %2884 = vrsqrt.f32 %v4151_v41  ;;  %v2298_v58 = vpack.c.bf16 %v1643_v25, %v1642_v15  ;;  %v4425_v8 = vld [vmem:[#allocation19_spill] sm:$0xff] }
 0x23f   :  { %v1494_v10 = vmul.f32 %v2877_v63, %v4081_v5  ;;  %vm1497_vm2 = vcmp.eq.f32.partialorder %v4081_v5, 0.0  ;;  %v1645_v22 = vmul.f32 %v1485_v24, %v4419_v23  ;;  %v1498_v1 = vand.u32 2147483648, %v4081_v5 }
 0x240   :  { %v4162_v2 = vpop.f32.mrb[60].mxu1  ;;  %v1475_v9 = vsel %vm1474_vm15, %v4069_v46, %v1473_v50  ;;  %2886 = vrsqrt.f32 %v4160_v21  ;;  %2366 = vst [vmem:[%s4355_s5 + $0xb0] sm:$0xff] %v2298_v58   ;;  %vm1488_vm3 = vcmp.eq.f32.partialorder %v4090_v59, inf  ;;  %vm1490_vm4 = vcmp.eq.f32.partialorder %v4090_v59, 0.0 }
 0x241   :  { %v4172_v39 = vpop.f32.mrb[61].mxu1  ;;  %v2879_v32 = vpop.eup %2878  ;;  %v1478_v45 = vsel %vm1476_vm0, %v1477_v14, %v1475_v9  ;;  %v1496_v38 = vsel %vm1495_vm1, %v4081_v5, %v1494_v10  ;;  %2888 = vrsqrt.f32 %v4170_v42  ;;  %v1491_v13 = vand.u32 2147483648, %v4090_v59 }
 0x242   :  { %v1644_v31 = vmul.f32 %v1478_v45, %v4420_v44  ;;  %v1499_v34 = vsel %vm1497_vm2, %v1498_v1, %v1496_v38  ;;  %v1487_v16 = vmul.f32 %v2879_v32, %v4090_v59  ;;  %vm1509_vm5 = vcmp.eq.f32.partialorder %v4120_v7, inf  ;;  %v4427_v44 = vld [vmem:[#allocation20_spill] sm:$0xff] }
 0x243   :  { %v1647_v56 = vmul.f32 %v1499_v34, %v4421_v27  ;;  %vm1511_vm6 = vcmp.eq.f32.partialorder %v4120_v7, 0.0  ;;  %v4201_v40 = vadd.f32 %v4065_v62, %v4049_v57  ;;  %v4205_v51 = vadd.f32 %v4065_v62, %v4071_v11 }
 0x244   :  { %v2881_v46 = vpop.eup %2880  ;;  %v2303_v5 = vpack.c.bf16 %v1645_v22, %v1644_v31  ;;  %v1489_v28 = vsel %vm1488_vm3, %v4090_v59, %v1487_v16  ;;  %v1512_v61 = vand.u32 2147483648, %v4120_v7  ;;  %vm1502_vm7 = vcmp.eq.f32.partialorder %v4126_v55, inf  ;;  %v4422_v59 = vld [vmem:[#allocation13_spill] sm:$0xff] }
 0x245   :  { %v2883_v12 = vpop.eup %2882  ;;  %v1492_v60 = vsel %vm1490_vm4, %v1491_v13, %v1489_v28  ;;  %v1508_v29 = vmul.f32 %v2881_v46, %v4120_v7  ;;  %2890 = vrsqrt.f32 %v4201_v40  ;;  %v4218_v11 = vadd.f32 %v4065_v62, %v4083_v19  ;;  %v4428_v13 = vld [vmem:[#allocation18_spill] sm:$0xff] }
 0x246   :  { %2367 = vst [vmem:[%s4355_s5 + $0xb8] sm:$0xff] %v2303_v5   ;;  %v1646_v3 = vmul.f32 %v1492_v60, %v4422_v59  ;;  %v1501_v57 = vmul.f32 %v2883_v12, %v4126_v55  ;;  %vm1504_vm8 = vcmp.eq.f32.partialorder %v4126_v55, 0.0  ;;  %v1505_v17 = vand.u32 2147483648, %v4126_v55  ;;  %v4429_v60 = vld [vmem:[#allocation23_spill] sm:$0xff] }
 0x247   :  { %v1510_v37 = vsel %vm1509_vm5, %v4120_v7, %v1508_v29  ;;  %2892 = vrsqrt.f32 %v4205_v51  ;;  %v4231_v19 = vadd.f32 %v4065_v62, %v4102_v33  ;;  %vm1523_vm9 = vcmp.eq.f32.partialorder %v4151_v41, inf  ;;  %v4424_v7 = vld [vmem:[#allocation14_spill] sm:$0xff] }
 0x248   :  { %v2885_v26 = vpop.eup %2884  ;;  %v2308_v6 = vpack.c.bf16 %v1647_v56, %v1646_v3  ;;  %v1513_v54 = vsel %vm1511_vm6, %v1512_v61, %v1510_v37  ;;  %v1503_v30 = vsel %vm1502_vm7, %v4126_v55, %v1501_v57  ;;  %vm1525_vm10 = vcmp.eq.f32.partialorder %v4151_v41, 0.0 }
 0x249   :  { %v1649_v49 = vmul.f32 %v1513_v54, %v4423_v20  ;;  %v1506_v18 = vsel %vm1504_vm8, %v1505_v17, %v1503_v30  ;;  %v1522_v36 = vmul.f32 %v2885_v26, %v4151_v41  ;;  %v1526_v55 = vand.u32 2147483648, %v4151_v41  ;;  %v4430_v17 = vld [vmem:[#allocation21_spill] sm:$0xff] }
 0x24a   :  { %v2887_v25 = vpop.eup %2886  ;;  %2368 = vst [vmem:[%s4355_s5 + $0xc0] sm:$0xff] %v2308_v6   ;;  %v1648_v0 = vmul.f32 %v1506_v18, %v4424_v7  ;;  %2894 = vrsqrt.f32 %v4218_v11  ;;  %vm1516_vm11 = vcmp.eq.f32.partialorder %v4160_v21, inf  ;;  %vm1518_vm12 = vcmp.eq.f32.partialorder %v4160_v21, 0.0 }
 0x24b   :  { %v1524_v33 = vsel %vm1523_vm9, %v4151_v41, %v1522_v36  ;;  %v1515_v35 = vmul.f32 %v2887_v25, %v4160_v21  ;;  %v2889_v53 = vpop.eup %2888  ;;  %v1519_v15 = vand.u32 2147483648, %v4160_v21  ;;  %2896 = vrsqrt.f32 %v4231_v19 }
 0x24c   :  { %v2313_v47 = vpack.c.bf16 %v1649_v49, %v1648_v0  ;;  %v1527_v43 = vsel %vm1525_vm10, %v1526_v55, %v1524_v33  ;;  %v1536_v24 = vmul.f32 %v2889_v53, %v4170_v42  ;;  %vm1537_vm13 = vcmp.eq.f32.partialorder %v4170_v42, inf }
 0x24d   :  { %v1651_v14 = vmul.f32 %v1527_v43, %v4425_v8  ;;  %v1517_v63 = vsel %vm1516_vm11, %v4160_v21, %v1515_v35  ;;  %v1540_v50 = vand.u32 2147483648, %v4170_v42  ;;  %v4259_v58 = vadd.f32 %v4065_v62, %v4110_v48  ;;  %v4426_v21 = vld [vmem:[#allocation17_spill] sm:$0xff]  ;;  %v4432_v35 = vld [vmem:[#allocation22_spill] sm:$0xff] }
 0x24e   :  { %2369 = vst [vmem:[%s4355_s5 + $0xc8] sm:$0xff] %v2313_v47   ;;  %v1520_v41 = vsel %vm1518_vm12, %v1519_v15, %v1517_v63  ;;  %v4263_v10 = vadd.f32 %v4065_v62, %v4128_v52  ;;  %v1538_v22 = vsel %vm1537_vm13, %v4170_v42, %v1536_v24  ;;  %vm1539_vm14 = vcmp.eq.f32.partialorder %v4170_v42, 0.0  ;;  %v4433_v24 = vld [vmem:[#allocation27_spill] sm:$0xff] }
 0x24f   :  { %v1650_v23 = vmul.f32 %v1520_v41, %v4426_v21  ;;  %v4270_v9 = vadd.f32 %v4065_v62, %v4134_v4  ;;  %v2891_v1 = vpop.eup %2890  ;;  %v1541_v32 = vsel %vm1539_vm14, %v1540_v50, %v1538_v22  ;;  %vm1530_vm15 = vcmp.eq.f32.partialorder %v4201_v40, inf  ;;  %v4434_v21 = vld [vmem:[#allocation25_spill] sm:$0xff] }
 0x250   :  { %2898 = vrsqrt.f32 %v4259_v58  ;;  %v1529_v52 = vmul.f32 %v2891_v1, %v4201_v40  ;;  %vm1532_vm0 = vcmp.eq.f32.partialorder %v4201_v40, 0.0  ;;  %v4278_v38 = vadd.f32 %v4065_v62, %v4162_v2 }
 0x251   :  { %v2893_v48 = vpop.eup %2892  ;;  %v2318_v45 = vpack.c.bf16 %v1651_v14, %v1650_v23  ;;  %v1533_v42 = vand.u32 2147483648, %v4201_v40  ;;  %vm1551_vm1 = vcmp.eq.f32.partialorder %v4205_v51, inf  ;;  %2900 = vrsqrt.f32 %v4263_v10 }
 0x252   :  { %v1550_v4 = vmul.f32 %v2893_v48, %v4205_v51  ;;  %v1653_v31 = vmul.f32 %v1541_v32, %v4427_v44  ;;  %v1531_v34 = vsel %vm1530_vm15, %v4201_v40, %v1529_v52  ;;  %v1554_v16 = vand.u32 2147483648, %v4205_v51 }
 0x253   :  { %2370 = vst [vmem:[%s4355_s5 + $0xd0] sm:$0xff] %v2318_v45   ;;  %2902 = vrsqrt.f32 %v4270_v9  ;;  %v1534_v27 = vsel %vm1532_vm0, %v1533_v42, %v1531_v34  ;;  %vm1553_vm2 = vcmp.eq.f32.partialorder %v4205_v51, 0.0  ;;  %vm1544_vm3 = vcmp.eq.f32.partialorder %v4218_v11, inf  ;;  %v4435_v45 = vld [vmem:[#allocation28_spill] sm:$0xff] }
 0x254   :  { %v2895_v2 = vpop.eup %2894  ;;  %v1552_v56 = vsel %vm1551_vm1, %v4205_v51, %v1550_v4  ;;  %v1652_v46 = vmul.f32 %v1534_v27, %v4428_v13  ;;  %2904 = vrsqrt.f32 %v4278_v38  ;;  %vm1546_vm4 = vcmp.eq.f32.partialorder %v4218_v11, 0.0 }
 0x255   :  { %v1555_v5 = vsel %vm1553_vm2, %v1554_v16, %v1552_v56  ;;  %v1543_v28 = vmul.f32 %v2895_v2, %v4218_v11  ;;  %v2897_v12 = vpop.eup %2896  ;;  %v1547_v29 = vand.u32 2147483648, %v4218_v11  ;;  %v1142_v3 = vadd.f32 %v4065_v62, %v4172_v39 }
 0x256   :  { %v1655_v40 = vmul.f32 %v1555_v5, %v4429_v60  ;;  %v2323_v61 = vpack.c.bf16 %v1653_v31, %v1652_v46  ;;  %v1564_v51 = vmul.f32 %v2897_v12, %v4231_v19  ;;  %vm1565_vm5 = vcmp.eq.f32.partialorder %v4231_v19, inf }
 0x257   :  { %v1545_v59 = vsel %vm1544_vm3, %v4218_v11, %v1543_v28  ;;  %v1568_v37 = vand.u32 2147483648, %v4231_v19  ;;  %vm1567_vm6 = vcmp.eq.f32.partialorder %v4231_v19, 0.0  ;;  %2906 = vrsqrt.f32 %v1142_v3 }
 0x258   :  { %v1548_v57 = vsel %vm1546_vm4, %v1547_v29, %v1545_v59  ;;  %2371 = vst [vmem:[%s4355_s5 + $0xd8] sm:$0xff] %v2323_v61   ;;  %v1566_v6 = vsel %vm1565_vm5, %v4231_v19, %v1564_v51  ;;  %vm1558_vm7 = vcmp.eq.f32.partialorder %v4259_v58, inf  ;;  %vm1560_vm8 = vcmp.eq.f32.partialorder %v4259_v58, 0.0  ;;  %v4431_v19 = vld [vmem:[#allocation24_spill] sm:$0xff] }
 0x259   :  { %v1654_v26 = vmul.f32 %v1548_v57, %v4430_v17  ;;  %v1569_v54 = vsel %vm1567_vm6, %v1568_v37, %v1566_v6  ;;  %v1561_v20 = vand.u32 2147483648, %v4259_v58  ;;  %vm1579_vm9 = vcmp.eq.f32.partialorder %v4263_v10, inf }
 0x25a   :  { %v2899_v11 = vpop.eup %2898  ;;  %v1657_v18 = vmul.f32 %v1569_v54, %v4431_v19  ;;  %vm1581_vm10 = vcmp.eq.f32.partialorder %v4263_v10, 0.0  ;;  %v1582_v0 = vand.u32 2147483648, %v4263_v10  ;;  %vm1572_vm11 = vcmp.eq.f32.partialorder %v4270_v9, inf }
 0x25b   :  { %v2328_v30 = vpack.c.bf16 %v1655_v40, %v1654_v26  ;;  %v1557_v62 = vmul.f32 %v2899_v11, %v4259_v58  ;;  %v2901_v39 = vpop.eup %2900  ;;  %vm1574_vm12 = vcmp.eq.f32.partialorder %v4270_v9, 0.0  ;;  %v1575_v43 = vand.u32 2147483648, %v4270_v9 }
 0x25c   :  { %v1578_v25 = vmul.f32 %v2901_v39, %v4263_v10  ;;  %vm1593_vm13 = vcmp.eq.f32.partialorder %v4278_v38, inf  ;;  %vm1595_vm14 = vcmp.eq.f32.partialorder %v4278_v38, 0.0  ;;  %vm1586_vm15 = vcmp.eq.f32.partialorder %v1142_v3, inf }
 0x25d   :  { %v2903_v49 = vpop.eup %2902  ;;  %2372 = vst [vmem:[%s4355_s5 + $0xe0] sm:$0xff] %v2328_v30   ;;  %v1559_v36 = vsel %vm1558_vm7, %v4259_v58, %v1557_v62  ;;  %v1596_v58 = vand.u32 2147483648, %v4278_v38  ;;  %v1589_v48 = vand.u32 2147483648, %v1142_v3  ;;  %vm1588_vm0 = vcmp.eq.f32.partialorder %v1142_v3, 0.0 }
 0x25e   :  { %v1562_v7 = vsel %vm1560_vm8, %v1561_v20, %v1559_v36  ;;  %v1571_v55 = vmul.f32 %v2903_v49, %v4270_v9  ;;  %v2905_v33 = vpop.eup %2904  ;;  %v1580_v47 = vsel %vm1579_vm9, %v4263_v10, %v1578_v25 }
 0x25f   :  { %v1656_v53 = vmul.f32 %v1562_v7, %v4432_v35  ;;  %v1583_v15 = vsel %vm1581_vm10, %v1582_v0, %v1580_v47  ;;  %v1592_v14 = vmul.f32 %v2905_v33, %v4278_v38 }
 0x260   :  { %v1573_v8 = vsel %vm1572_vm11, %v4270_v9, %v1571_v55  ;;  %v1659_v41 = vmul.f32 %v1583_v15, %v4433_v24 }
 0x261   :  { %v2333_v63 = vpack.c.bf16 %v1657_v18, %v1656_v53  ;;  %v1576_v50 = vsel %vm1574_vm12, %v1575_v43, %v1573_v8  ;;  %v1594_v10 = vsel %vm1593_vm13, %v4278_v38, %v1592_v14  ;;  %v2907_v22 = vpop.eup %2906  ;;  %v4436_v38 = vld [vmem:[#allocation26_spill] sm:$0xff] }
 0x262   :  { %v1658_v23 = vmul.f32 %v1576_v50, %v4434_v21  ;;  %v1597_v9 = vsel %vm1595_vm14, %v1596_v58, %v1594_v10  ;;  %v1585_v32 = vmul.f32 %v2907_v22, %v1142_v3 }
 0x263   :  { %2373 = vst [vmem:[%s4355_s5 + $0xe8] sm:$0xff] %v2333_v63   ;;  %v1661_v52 = vmul.f32 %v1597_v9, %v4435_v45 }
 0x264   :  { %v2338_v1 = vpack.c.bf16 %v1659_v41, %v1658_v23  ;;  %v1587_v42 = vsel %vm1586_vm15, %v1142_v3, %v1585_v32 }
 0x265   :  { %v1590_v4 = vsel %vm1588_vm0, %v1589_v48, %v1587_v42 }
 0x266   :  { %2374 = vst [vmem:[%s4355_s5 + $0xf0] sm:$0xff] %v2338_v1   ;;  %v1660_v44 = vmul.f32 %v1590_v4, %v4436_v38 }
 0x268   :  { %v2343_v31 = vpack.c.bf16 %v1661_v52, %v1660_v44 }
 0x26a   :  { %2375 = vst [vmem:[%s4355_s5 + $0xf8] sm:$0xff] %v2343_v31  }

// kernel: forward.17
= control target key start
LH: loop header
LB: loop body
LE: loop exit
PB: predicated region body
PF: predicated region fallthrough
CT: control target
= control target key end

     0   :  { %s2594_s18 = smov 0   ;;  %s3294_s0 = inlined_call_operand.vmem [shape: bf16[2048,80], index: 0, kind: input, shape index: {}]   ;;  %s3295_s1 = inlined_call_operand.vmem [shape: f32[2048,128], index: 1, kind: input, shape index: {}]   ;;  %s3296_s2 = inlined_call_operand.vmem [shape: bf16[80,128], index: 2, kind: input, shape index: {}]   ;;  %s3297_s3 = inlined_call_operand.vmem [shape: f32[1,128], index: 3, kind: input, shape index: {}]   ;;  %s3298_s4 = inlined_call_operand.vmem [shape: f32[2048,128], index: 4, kind: output, shape index: {0}]   ;;  %s3299_s5 = inlined_call_operand.vmem [shape: f32[2048,128], index: 5, kind: output, shape index: {1}]  }
   0x1 LB: > { %s2112_s19 = sadd.s32 4294967295, %s2562_s18   ;;  %p2116_p0 = scmp.ge.s32.totalorder %s2562_s18, 1  ;;  %s2562_s18 = sphi %s2594_s18, %s16_s18  }
   0x2   : > { %p202_p1 = scmp.lt.s32.totalorder %s2562_s18, 3 }
   0x4   : > { %p203_p2 = pnand %p2116_p0, %p202_p1 }
   0x5   : > { %v2486_v0 = vld [vmem:[%s3296_s2] sm:$0xff] (!%p203_p2)   ;;  %s2117_s22 = sshll.u32 (!%p203_p2), %s2112_s19, 7  ;;  %v2487_v1 = vld [vmem:[%s3296_s2 + $0x8] sm:$0xff] (!%p203_p2)   ;;  %v2488_v2 = vld [vmem:[%s3296_s2 + $0x10] sm:$0xff] (!%p203_p2)   ;;  %vm760_vm0 = vcmask (!%p203_p2), 654336  }
   0x6   : > { %206 = sbr.rel (%p203_p2) target bundleno = 368 (0x170), region = 36  ;;  %p241_p3 = scmp.lt.s32.totalorder (!%p203_p2), %s2117_s22, 255  ;;  %2330 = vmatprep.subr.bf16.mxu0 (!%p203_p2), %v2486_v0  ;;  %2468 = vmatprep.subr.bf16.mxu1 (!%p203_p2), %v2486_v0  ;;  %v2489_v3 = vld [vmem:[%s3296_s2 + $0x18] sm:$0xff] (!%p203_p2)   ;;  %v2490_v6 = vld [vmem:[%s3296_s2 + $0x20] sm:$0xff] (!%p203_p2)  }
   0x7   : > { %2331 = vmatpush3.bf16.msra.mxu0 (!%p203_p2), %v2486_v0  ;;  %2473 = vmatpush3.bf16.msra.mxu1 (!%p203_p2), %v2486_v0 }
   0x8   : > { %2332 = vmatprep.subr.bf16.mxu0 (!%p203_p2), %v2487_v1  ;;  %2469 = vmatprep.subr.bf16.mxu1 (!%p203_p2), %v2487_v1 }
   0xb   : > { %2333 = vmatpush3.bf16.msra.mxu0 (!%p203_p2), %v2487_v1  ;;  %2474 = vmatpush3.bf16.msra.mxu1 (!%p203_p2), %v2487_v1 }
   0xc   : > { %2334 = vmatprep.subr.bf16.mxu0 (!%p203_p2), %v2488_v2  ;;  %2470 = vmatprep.subr.bf16.mxu1 (!%p203_p2), %v2488_v2 }
   0xd   : > { %s3301_s22 = smov (!%p241_p3, %s2117_s22), 255 }
   0xe   : > { %s2118_s27 = sshll.u32 %s3301_s22, 2  ;;  %s2120_s10 = sshll.u32 %s3301_s22, 3 }
   0xf   : > { %s2620_s7 = scalar_lea.vmem %s3294_s0, %s2118_s27  ;;  %2335 = vmatpush3.bf16.msra.mxu0 %v2488_v2  ;;  %2475 = vmatpush3.bf16.msra.mxu1 %v2488_v2  ;;  %s2757_s13 = scalar_lea.vmem %s3295_s1, %s2120_s10 }
  0x10   : > { %v2491_v4 = vld [vmem:[%s2620_s7] sm:$0xff]   ;;  %2336 = vmatprep.subr.bf16.mxu0 %v2489_v3  ;;  %2471 = vmatprep.subr.bf16.mxu1 %v2489_v3  ;;  %v2493_v7 = vld [vmem:[%s2620_s7 + $0x8] sm:$0xff]   ;;  %v2495_v9 = vld [vmem:[%s2620_s7 + $0x10] sm:$0xff]   ;;  %s2767_s19 = scalar_lea.vmem %s3298_s4, %s2120_s10  ;;  %s2778_s22 = scalar_lea.vmem %s3299_s5, %s2120_s10 }
  0x11   : > { %v2492_v5 = vld [vmem:[%s2620_s7 + $0x100] sm:$0xff]   ;;  %2340 = vmatprep.mubr.msk.bf16.mxu0 %vm760_vm0, %v2491_v4  ;;  %v2494_v8 = vld [vmem:[%s2620_s7 + $0x108] sm:$0xff]   ;;  %v2496_v10 = vld [vmem:[%s2620_s7 + $0x110] sm:$0xff]  }
  0x12   : > { %2404 = vmatprep.mubr.msk.bf16.mxu1 %vm760_vm0, %v2492_v5  ;;  %v2497_v11 = vld [vmem:[%s2620_s7 + $0x18] sm:$0xff]   ;;  %v2499_v13 = vld [vmem:[%s2620_s7 + $0x20] sm:$0xff]   ;;  %v2501_v15 = vld [vmem:[%s2620_s7 + $0x28] sm:$0xff]  }
  0x13   : > { %2337 = vmatpush3.bf16.msra.mxu0 %v2489_v3  ;;  %2476 = vmatpush3.bf16.msra.mxu1 %v2489_v3  ;;  %v2498_v12 = vld [vmem:[%s2620_s7 + $0x118] sm:$0xff]   ;;  %v2500_v14 = vld [vmem:[%s2620_s7 + $0x120] sm:$0xff]   ;;  %v2502_v16 = vld [vmem:[%s2620_s7 + $0x128] sm:$0xff]  }
  0x14   : > { %2338 = vmatprep.subr.bf16.mxu0 %v2490_v6  ;;  %2472 = vmatprep.subr.bf16.mxu1 %v2490_v6  ;;  %v2503_v17 = vld [vmem:[%s2620_s7 + $0x30] sm:$0xff]   ;;  %v2505_v19 = vld [vmem:[%s2620_s7 + $0x38] sm:$0xff]   ;;  %v2507_v21 = vld [vmem:[%s2620_s7 + $0x40] sm:$0xff]  }
  0x15   : > { %v2504_v18 = vld [vmem:[%s2620_s7 + $0x130] sm:$0xff]   ;;  %v2506_v20 = vld [vmem:[%s2620_s7 + $0x138] sm:$0xff]   ;;  %v2508_v22 = vld [vmem:[%s2620_s7 + $0x140] sm:$0xff]  }
  0x16   : > { %v2509_v23 = vld [vmem:[%s2620_s7 + $0x48] sm:$0xff]   ;;  %v2511_v25 = vld [vmem:[%s2620_s7 + $0x50] sm:$0xff]   ;;  %v2513_v27 = vld [vmem:[%s2620_s7 + $0x58] sm:$0xff]  }
  0x17   : > { %2339 = vmatpush3.bf16.msra.mxu0 %v2490_v6  ;;  %2477 = vmatpush3.bf16.msra.mxu1 %v2490_v6  ;;  %v2510_v24 = vld [vmem:[%s2620_s7 + $0x148] sm:$0xff]   ;;  %v2512_v26 = vld [vmem:[%s2620_s7 + $0x150] sm:$0xff]   ;;  %v2514_v28 = vld [vmem:[%s2620_s7 + $0x158] sm:$0xff]  }
  0x18   : > { %v2515_v29 = vld [vmem:[%s2620_s7 + $0x60] sm:$0xff]   ;;  %v2517_v31 = vld [vmem:[%s2620_s7 + $0x68] sm:$0xff]   ;;  %v2519_v33 = vld [vmem:[%s2620_s7 + $0x70] sm:$0xff]  }
  0x19   : > { %v2516_v30 = vld [vmem:[%s2620_s7 + $0x160] sm:$0xff]   ;;  %v2518_v32 = vld [vmem:[%s2620_s7 + $0x168] sm:$0xff]   ;;  %v2520_v34 = vld [vmem:[%s2620_s7 + $0x170] sm:$0xff]  }
  0x1a   : > { %2341 = vmatmul.mubr.msk.bf16.vlgmr.msra.gmra.mrb[0].mxu0 %vm760_vm0, %v2493_v7  ;;  %2405 = vmatmul.mubr.msk.bf16.vlgmr.msra.gmra.mrb[0].mxu1 %vm760_vm0, %v2494_v8  ;;  %v2521_v35 = vld [vmem:[%s2620_s7 + $0x78] sm:$0xff]   ;;  %v2523_v37 = vld [vmem:[%s2620_s7 + $0x80] sm:$0xff]   ;;  %v2525_v39 = vld [vmem:[%s2620_s7 + $0x88] sm:$0xff]  }
  0x1b   : > { %2344 = vmatprep.mubr.msk.bf16.mxu0 %vm760_vm0, %v2495_v9  ;;  %2408 = vmatprep.mubr.msk.bf16.mxu1 %vm760_vm0, %v2496_v10  ;;  %v2522_v36 = vld [vmem:[%s2620_s7 + $0x178] sm:$0xff]   ;;  %v2524_v38 = vld [vmem:[%s2620_s7 + $0x180] sm:$0xff]   ;;  %v2526_v40 = vld [vmem:[%s2620_s7 + $0x188] sm:$0xff]  }
  0x1c   : > { %v2527_v41 = vld [vmem:[%s2620_s7 + $0x90] sm:$0xff]   ;;  %v2529_v43 = vld [vmem:[%s2620_s7 + $0x98] sm:$0xff]   ;;  %v2531_v45 = vld [vmem:[%s2620_s7 + $0xa0] sm:$0xff]  }
  0x1d   : > { %v2528_v42 = vld [vmem:[%s2620_s7 + $0x190] sm:$0xff]   ;;  %v2530_v44 = vld [vmem:[%s2620_s7 + $0x198] sm:$0xff]   ;;  %v2532_v46 = vld [vmem:[%s2620_s7 + $0x1a0] sm:$0xff]  }
  0x1e   : > { %v2533_v47 = vld [vmem:[%s2620_s7 + $0xa8] sm:$0xff]   ;;  %v2535_v49 = vld [vmem:[%s2620_s7 + $0xb0] sm:$0xff]   ;;  %v2537_v51 = vld [vmem:[%s2620_s7 + $0xb8] sm:$0xff]  }
  0x1f   : > { %v2534_v48 = vld [vmem:[%s2620_s7 + $0x1a8] sm:$0xff]   ;;  %v2536_v50 = vld [vmem:[%s2620_s7 + $0x1b0] sm:$0xff]   ;;  %v2538_v52 = vld [vmem:[%s2620_s7 + $0x1b8] sm:$0xff]  }
  0x20   : > { %v2539_v53 = vld [vmem:[%s2620_s7 + $0xc0] sm:$0xff]   ;;  %v2541_v55 = vld [vmem:[%s2620_s7 + $0xc8] sm:$0xff]   ;;  %v2543_v57 = vld [vmem:[%s2620_s7 + $0xd0] sm:$0xff]  }
  0x21   : > { %v2540_v54 = vld [vmem:[%s2620_s7 + $0x1c0] sm:$0xff]   ;;  %v2542_v56 = vld [vmem:[%s2620_s7 + $0x1c8] sm:$0xff]   ;;  %v2544_v58 = vld [vmem:[%s2620_s7 + $0x1d0] sm:$0xff]  }
  0x22   : > { %2345 = vmatmul.mubr.msk.bf16.gmra.mrb[4].mxu0 %vm760_vm0, %v2497_v11  ;;  %2409 = vmatmul.mubr.msk.bf16.gmra.mrb[4].mxu1 %vm760_vm0, %v2498_v12  ;;  %v2545_v59 = vld [vmem:[%s2620_s7 + $0xd8] sm:$0xff]   ;;  %v2547_v61 = vld [vmem:[%s2620_s7 + $0xe0] sm:$0xff]   ;;  %v2549_v63 = vld [vmem:[%s2620_s7 + $0xe8] sm:$0xff]  }
  0x23   : > { %2348 = vmatprep.mubr.msk.bf16.mxu0 %vm760_vm0, %v2499_v13  ;;  %2412 = vmatprep.mubr.msk.bf16.mxu1 %vm760_vm0, %v2500_v14  ;;  %v2546_v60 = vld [vmem:[%s2620_s7 + $0x1d8] sm:$0xff]   ;;  %v2548_v62 = vld [vmem:[%s2620_s7 + $0x1e0] sm:$0xff]   ;;  %v2550_v0 = vld [vmem:[%s2620_s7 + $0x1e8] sm:$0xff]  }
  0x24   : > { %v2551_v1 = vld [vmem:[%s2620_s7 + $0xf0] sm:$0xff]   ;;  %v2553_v3 = vld [vmem:[%s2620_s7 + $0xf8] sm:$0xff]   ;;  %v2762_v5 = vld [vmem:[%s3297_s3] ss:$0 sm:$0xff] }
  0x25   : > { %v2552_v2 = vld [vmem:[%s2620_s7 + $0x1f0] sm:$0xff]   ;;  %v2554_v4 = vld [vmem:[%s2620_s7 + $0x1f8] sm:$0xff]   ;;  %v1626_v13 = vld [vmem:[%s2757_s13] sm:$0xff] }
  0x26   : > { %v1628_v7 = vld [vmem:[%s2757_s13 + $0x10] sm:$0xff] }
  0x27   : > { %v1692_v9 = vld [vmem:[%s2757_s13 + $0x210] sm:$0xff] }
  0x2a   : > { %2349 = vmatmul.mubr.msk.bf16.gmra.mrb[8].mxu0 %vm760_vm0, %v2501_v15  ;;  %2413 = vmatmul.mubr.msk.bf16.gmra.mrb[8].mxu1 %vm760_vm0, %v2502_v16  ;;  %v1690_v15 = vld [vmem:[%s2757_s13 + $0x200] sm:$0xff] }
  0x2b   : > { %2352 = vmatprep.mubr.msk.bf16.mxu0 %vm760_vm0, %v2503_v17  ;;  %2416 = vmatprep.mubr.msk.bf16.mxu1 %vm760_vm0, %v2504_v18 }
  0x32   : > { %2353 = vmatmul.mubr.msk.bf16.gmra.mrb[12].mxu0 %vm760_vm0, %v2505_v19  ;;  %2417 = vmatmul.mubr.msk.bf16.gmra.mrb[12].mxu1 %vm760_vm0, %v2506_v20  ;;  %v1629_v19 = vld [vmem:[%s2757_s13 + $0x18] sm:$0xff] }
  0x33   : > { %2356 = vmatprep.mubr.msk.bf16.mxu0 %vm760_vm0, %v2507_v21  ;;  %2420 = vmatprep.mubr.msk.bf16.mxu1 %vm760_vm0, %v2508_v22  ;;  %v1693_v21 = vld [vmem:[%s2757_s13 + $0x218] sm:$0xff] }
  0x3a   : > { %2357 = vmatmul.mubr.msk.bf16.gmra.mrb[16].mxu0 %vm760_vm0, %v2509_v23  ;;  %2421 = vmatmul.mubr.msk.bf16.gmra.mrb[16].mxu1 %vm760_vm0, %v2510_v24 }
  0x3b   : > { %2360 = vmatprep.mubr.msk.bf16.mxu0 %vm760_vm0, %v2511_v25  ;;  %2424 = vmatprep.mubr.msk.bf16.mxu1 %vm760_vm0, %v2512_v26 }
  0x42   : > { %2361 = vmatmul.mubr.msk.bf16.gmra.mrb[20].mxu0 %vm760_vm0, %v2513_v27  ;;  %2425 = vmatmul.mubr.msk.bf16.gmra.mrb[20].mxu1 %vm760_vm0, %v2514_v28  ;;  %v1627_v27 = vld [vmem:[%s2757_s13 + $0x8] sm:$0xff] }
  0x43   : > { %2364 = vmatprep.mubr.msk.bf16.mxu0 %vm760_vm0, %v2515_v29  ;;  %2428 = vmatprep.mubr.msk.bf16.mxu1 %vm760_vm0, %v2516_v30  ;;  %v1691_v29 = vld [vmem:[%s2757_s13 + $0x208] sm:$0xff] }
  0x4a   : > { %2365 = vmatmul.mubr.msk.bf16.gmra.mrb[24].mxu0 %vm760_vm0, %v2517_v31  ;;  %2429 = vmatmul.mubr.msk.bf16.gmra.mrb[24].mxu1 %vm760_vm0, %v2518_v32 }
  0x4b   : > { %2368 = vmatprep.mubr.msk.bf16.mxu0 %vm760_vm0, %v2519_v33  ;;  %2432 = vmatprep.mubr.msk.bf16.mxu1 %vm760_vm0, %v2520_v34 }
  0x52   : > { %2369 = vmatmul.mubr.msk.bf16.gmra.mrb[28].mxu0 %vm760_vm0, %v2521_v35  ;;  %2433 = vmatmul.mubr.msk.bf16.gmra.mrb[28].mxu1 %vm760_vm0, %v2522_v36 }
  0x53   : > { %2372 = vmatprep.mubr.msk.bf16.mxu0 %vm760_vm0, %v2523_v37  ;;  %2436 = vmatprep.mubr.msk.bf16.mxu1 %vm760_vm0, %v2524_v38 }
  0x5a   : > { %2373 = vmatmul.mubr.msk.bf16.gmra.mrb[32].mxu0 %vm760_vm0, %v2525_v39  ;;  %2437 = vmatmul.mubr.msk.bf16.gmra.mrb[32].mxu1 %vm760_vm0, %v2526_v40  ;;  %v1632_v39 = vld [vmem:[%s2757_s13 + $0x30] sm:$0xff] }
  0x5b   : > { %2376 = vmatprep.mubr.msk.bf16.mxu0 %vm760_vm0, %v2527_v41  ;;  %2440 = vmatprep.mubr.msk.bf16.mxu1 %vm760_vm0, %v2528_v42  ;;  %v1696_v41 = vld [vmem:[%s2757_s13 + $0x230] sm:$0xff] }
  0x62   : > { %2377 = vmatmul.mubr.msk.bf16.gmra.mrb[36].mxu0 %vm760_vm0, %v2529_v43  ;;  %2441 = vmatmul.mubr.msk.bf16.gmra.mrb[36].mxu1 %vm760_vm0, %v2530_v44 }
  0x63   : > { %2380 = vmatprep.mubr.msk.bf16.mxu0 %vm760_vm0, %v2531_v45  ;;  %2444 = vmatprep.mubr.msk.bf16.mxu1 %vm760_vm0, %v2532_v46  ;;  %v1630_v45 = vld [vmem:[%s2757_s13 + $0x20] sm:$0xff] }
  0x6a   : > { %2381 = vmatmul.mubr.msk.bf16.gmra.mrb[40].mxu0 %vm760_vm0, %v2533_v47  ;;  %2445 = vmatmul.mubr.msk.bf16.gmra.mrb[40].mxu1 %vm760_vm0, %v2534_v48  ;;  %v1694_v47 = vld [vmem:[%s2757_s13 + $0x220] sm:$0xff] }
  0x6b   : > { %2384 = vmatprep.mubr.msk.bf16.mxu0 %vm760_vm0, %v2535_v49  ;;  %2448 = vmatprep.mubr.msk.bf16.mxu1 %vm760_vm0, %v2536_v50 }
  0x72   : > { %2385 = vmatmul.mubr.msk.bf16.gmra.mrb[44].mxu0 %vm760_vm0, %v2537_v51  ;;  %2449 = vmatmul.mubr.msk.bf16.gmra.mrb[44].mxu1 %vm760_vm0, %v2538_v52  ;;  %v1633_v51 = vld [vmem:[%s2757_s13 + $0x38] sm:$0xff] }
  0x73   : > { %2388 = vmatprep.mubr.msk.bf16.mxu0 %vm760_vm0, %v2539_v53  ;;  %2452 = vmatprep.mubr.msk.bf16.mxu1 %vm760_vm0, %v2540_v54  ;;  %v1697_v53 = vld [vmem:[%s2757_s13 + $0x238] sm:$0xff] }
  0x7a   : > { %2389 = vmatmul.mubr.msk.bf16.gmra.mrb[48].mxu0 %vm760_vm0, %v2541_v55  ;;  %2453 = vmatmul.mubr.msk.bf16.gmra.mrb[48].mxu1 %vm760_vm0, %v2542_v56 }
  0x7b   : > { %2392 = vmatprep.mubr.msk.bf16.mxu0 %vm760_vm0, %v2543_v57  ;;  %2456 = vmatprep.mubr.msk.bf16.mxu1 %vm760_vm0, %v2544_v58 }
  0x82   : > { %2393 = vmatmul.mubr.msk.bf16.gmra.mrb[52].mxu0 %vm760_vm0, %v2545_v59  ;;  %2457 = vmatmul.mubr.msk.bf16.gmra.mrb[52].mxu1 %vm760_vm0, %v2546_v60  ;;  %v1631_v59 = vld [vmem:[%s2757_s13 + $0x28] sm:$0xff] }
  0x83   : > { %2396 = vmatprep.mubr.msk.bf16.mxu0 %vm760_vm0, %v2547_v61  ;;  %2460 = vmatprep.mubr.msk.bf16.mxu1 %vm760_vm0, %v2548_v62  ;;  %v1695_v61 = vld [vmem:[%s2757_s13 + $0x228] sm:$0xff] }
  0x8a   : > { %2397 = vmatmul.mubr.msk.bf16.gmra.mrb[56].mxu0 %vm760_vm0, %v2549_v63  ;;  %2461 = vmatmul.mubr.msk.bf16.gmra.mrb[56].mxu1 %vm760_vm0, %v2550_v0 }
  0x8b   : > { %2400 = vmatprep.mubr.msk.bf16.mxu0 %vm760_vm0, %v2551_v1  ;;  %2464 = vmatprep.mubr.msk.bf16.mxu1 %vm760_vm0, %v2552_v2 }
  0x92   : > { %2401 = vmatmul.mubr.msk.bf16.gmra.mrb[60].mxu0 %vm760_vm0, %v2553_v3  ;;  %2465 = vmatmul.mubr.msk.bf16.gmra.mrb[60].mxu1 %vm760_vm0, %v2554_v4 }
  0xed   : > { %v2342_v6 = vpop.f32.mrb[0].mxu0  ;;  %v2406_v8 = vpop.f32.mrb[0].mxu1 }
  0xee   : > { %v996_v10 = vadd.f32 %v2342_v6, %v2762_v5  ;;  %v1252_v11 = vadd.f32 %v2406_v8, %v2762_v5  ;;  %v987_v12 = vpop.f32.mrb[1].mxu0  ;;  %v1243_v14 = vpop.f32.mrb[1].mxu1  ;;  %v1636_v8 = vld [vmem:[%s2757_s13 + $0x50] sm:$0xff] }
  0xef   : > { %v988_v16 = vadd.f32 %v2762_v5, %v987_v12  ;;  %v1244_v17 = vadd.f32 %v2762_v5, %v1243_v14  ;;  %v2343_v18 = vpop.f32.mrb[2].mxu0  ;;  %v2407_v20 = vpop.f32.mrb[2].mxu1  ;;  %v1634_v14 = vld [vmem:[%s2757_s13 + $0x40] sm:$0xff] }
  0xf0   : > { %1500 = vst [vmem:[%s2767_s19 + $0x10] sm:$0xff] %v996_v10  ;;  %v1756_v22 = vsub.f32 %v1628_v7, %v996_v10  ;;  %1564 = vst [vmem:[%s2767_s19 + $0x210] sm:$0xff] %v1252_v11  ;;  %v1820_v23 = vsub.f32 %v1692_v9, %v1252_v11  ;;  %v999_v24 = vadd.f32 %v2343_v18, %v2762_v5  ;;  %v990_v26 = vpop.f32.mrb[3].mxu0  ;;  %v1246_v28 = vpop.f32.mrb[3].mxu1  ;;  %v1700_v10 = vld [vmem:[%s2757_s13 + $0x250] sm:$0xff] }
  0xf1   : > { %v1255_v25 = vadd.f32 %v2407_v20, %v2762_v5  ;;  %1498 = vst [vmem:[%s2767_s19] sm:$0xff] %v988_v16  ;;  %v1754_v30 = vsub.f32 %v1626_v13, %v988_v16  ;;  %1562 = vst [vmem:[%s2767_s19 + $0x200] sm:$0xff] %v1244_v17  ;;  %v1818_v31 = vsub.f32 %v1690_v15, %v1244_v17  ;;  %v1698_v16 = vld [vmem:[%s2757_s13 + $0x240] sm:$0xff]  ;;  %v1637_v20 = vld [vmem:[%s2757_s13 + $0x58] sm:$0xff] }
  0xf2   : > { %v991_v32 = vadd.f32 %v2762_v5, %v990_v26  ;;  %v1247_v33 = vadd.f32 %v2762_v5, %v1246_v28  ;;  %1884 = vst [vmem:[%s2778_s22 + $0x10] sm:$0xff] %v1756_v22  ;;  %1948 = vst [vmem:[%s2778_s22 + $0x210] sm:$0xff] %v1820_v23  ;;  %v1757_v34 = vsub.f32 %v1629_v19, %v999_v24  ;;  %v1701_v22 = vld [vmem:[%s2757_s13 + $0x258] sm:$0xff]  ;;  %v1635_v28 = vld [vmem:[%s2757_s13 + $0x48] sm:$0xff] }
  0xf3   : > { %1501 = vst [vmem:[%s2767_s19 + $0x18] sm:$0xff] %v999_v24  ;;  %1565 = vst [vmem:[%s2767_s19 + $0x218] sm:$0xff] %v1255_v25  ;;  %v1821_v35 = vsub.f32 %v1693_v21, %v1255_v25 }
  0xf4   : > { %1882 = vst [vmem:[%s2778_s22] sm:$0xff] %v1754_v30  ;;  %1946 = vst [vmem:[%s2778_s22 + $0x200] sm:$0xff] %v1818_v31  ;;  %v1755_v36 = vsub.f32 %v1627_v27, %v991_v32  ;;  %v1819_v37 = vsub.f32 %v1691_v29, %v1247_v33  ;;  %v1699_v30 = vld [vmem:[%s2757_s13 + $0x248] sm:$0xff] }
  0xf5   : > { %1499 = vst [vmem:[%s2767_s19 + $0x8] sm:$0xff] %v991_v32  ;;  %1563 = vst [vmem:[%s2767_s19 + $0x208] sm:$0xff] %v1247_v33  ;;  %v2346_v38 = vpop.f32.mrb[4].mxu0  ;;  %v2410_v40 = vpop.f32.mrb[4].mxu1 }
  0xf6   : > { %1885 = vst [vmem:[%s2778_s22 + $0x18] sm:$0xff] %v1757_v34  ;;  %1949 = vst [vmem:[%s2778_s22 + $0x218] sm:$0xff] %v1821_v35  ;;  %v1012_v42 = vadd.f32 %v2346_v38, %v2762_v5  ;;  %v1268_v43 = vadd.f32 %v2410_v40, %v2762_v5  ;;  %v1003_v44 = vpop.f32.mrb[5].mxu0  ;;  %v1259_v46 = vpop.f32.mrb[5].mxu1  ;;  %v1640_v40 = vld [vmem:[%s2757_s13 + $0x70] sm:$0xff] }
  0xf7   : > { %1883 = vst [vmem:[%s2778_s22 + $0x8] sm:$0xff] %v1755_v36  ;;  %1947 = vst [vmem:[%s2778_s22 + $0x208] sm:$0xff] %v1819_v37  ;;  %v1004_v48 = vadd.f32 %v2762_v5, %v1003_v44  ;;  %v1260_v49 = vadd.f32 %v2762_v5, %v1259_v46  ;;  %v2347_v50 = vpop.f32.mrb[6].mxu0  ;;  %v2411_v52 = vpop.f32.mrb[6].mxu1  ;;  %v1638_v46 = vld [vmem:[%s2757_s13 + $0x60] sm:$0xff] }
  0xf8   : > { %1504 = vst [vmem:[%s2767_s19 + $0x30] sm:$0xff] %v1012_v42  ;;  %v1760_v54 = vsub.f32 %v1632_v39, %v1012_v42  ;;  %1568 = vst [vmem:[%s2767_s19 + $0x230] sm:$0xff] %v1268_v43  ;;  %v1824_v55 = vsub.f32 %v1696_v41, %v1268_v43  ;;  %v1015_v56 = vadd.f32 %v2347_v50, %v2762_v5  ;;  %v1006_v58 = vpop.f32.mrb[7].mxu0  ;;  %v1262_v60 = vpop.f32.mrb[7].mxu1  ;;  %v1704_v42 = vld [vmem:[%s2757_s13 + $0x270] sm:$0xff] }
  0xf9   : > { %v1271_v57 = vadd.f32 %v2411_v52, %v2762_v5  ;;  %1502 = vst [vmem:[%s2767_s19 + $0x20] sm:$0xff] %v1004_v48  ;;  %v1758_v62 = vsub.f32 %v1630_v45, %v1004_v48  ;;  %1566 = vst [vmem:[%s2767_s19 + $0x220] sm:$0xff] %v1260_v49  ;;  %v1822_v63 = vsub.f32 %v1694_v47, %v1260_v49  ;;  %v1702_v48 = vld [vmem:[%s2757_s13 + $0x260] sm:$0xff]  ;;  %v1641_v52 = vld [vmem:[%s2757_s13 + $0x78] sm:$0xff] }
  0xfa   : > { %v1007_v0 = vadd.f32 %v2762_v5, %v1006_v58  ;;  %v1263_v1 = vadd.f32 %v2762_v5, %v1262_v60  ;;  %1888 = vst [vmem:[%s2778_s22 + $0x30] sm:$0xff] %v1760_v54  ;;  %1952 = vst [vmem:[%s2778_s22 + $0x230] sm:$0xff] %v1824_v55  ;;  %v1761_v2 = vsub.f32 %v1633_v51, %v1015_v56  ;;  %v1705_v54 = vld [vmem:[%s2757_s13 + $0x278] sm:$0xff]  ;;  %v1639_v60 = vld [vmem:[%s2757_s13 + $0x68] sm:$0xff] }
  0xfb   : > { %1505 = vst [vmem:[%s2767_s19 + $0x38] sm:$0xff] %v1015_v56  ;;  %1569 = vst [vmem:[%s2767_s19 + $0x238] sm:$0xff] %v1271_v57  ;;  %v1825_v3 = vsub.f32 %v1697_v53, %v1271_v57 }
  0xfc   : > { %1886 = vst [vmem:[%s2778_s22 + $0x20] sm:$0xff] %v1758_v62  ;;  %1950 = vst [vmem:[%s2778_s22 + $0x220] sm:$0xff] %v1822_v63  ;;  %v1759_v4 = vsub.f32 %v1631_v59, %v1007_v0  ;;  %v1823_v6 = vsub.f32 %v1695_v61, %v1263_v1  ;;  %v1703_v62 = vld [vmem:[%s2757_s13 + $0x268] sm:$0xff] }
  0xfd   : > { %1503 = vst [vmem:[%s2767_s19 + $0x28] sm:$0xff] %v1007_v0  ;;  %1567 = vst [vmem:[%s2767_s19 + $0x228] sm:$0xff] %v1263_v1  ;;  %v2350_v7 = vpop.f32.mrb[8].mxu0  ;;  %v2414_v9 = vpop.f32.mrb[8].mxu1 }
  0xfe   : > { %1889 = vst [vmem:[%s2778_s22 + $0x38] sm:$0xff] %v1761_v2  ;;  %1953 = vst [vmem:[%s2778_s22 + $0x238] sm:$0xff] %v1825_v3  ;;  %v1028_v11 = vadd.f32 %v2350_v7, %v2762_v5  ;;  %v1284_v12 = vadd.f32 %v2414_v9, %v2762_v5  ;;  %v1019_v13 = vpop.f32.mrb[9].mxu0  ;;  %v1275_v15 = vpop.f32.mrb[9].mxu1  ;;  %v1644_v9 = vld [vmem:[%s2757_s13 + $0x90] sm:$0xff] }
  0xff   : > { %1887 = vst [vmem:[%s2778_s22 + $0x28] sm:$0xff] %v1759_v4  ;;  %1951 = vst [vmem:[%s2778_s22 + $0x228] sm:$0xff] %v1823_v6  ;;  %v1020_v17 = vadd.f32 %v2762_v5, %v1019_v13  ;;  %v1276_v18 = vadd.f32 %v2762_v5, %v1275_v15  ;;  %v2351_v19 = vpop.f32.mrb[10].mxu0  ;;  %v2415_v21 = vpop.f32.mrb[10].mxu1  ;;  %v1642_v15 = vld [vmem:[%s2757_s13 + $0x80] sm:$0xff] }
 0x100   : > { %1508 = vst [vmem:[%s2767_s19 + $0x50] sm:$0xff] %v1028_v11  ;;  %v1764_v23 = vsub.f32 %v1636_v8, %v1028_v11  ;;  %1572 = vst [vmem:[%s2767_s19 + $0x250] sm:$0xff] %v1284_v12  ;;  %v1828_v24 = vsub.f32 %v1700_v10, %v1284_v12  ;;  %v1031_v25 = vadd.f32 %v2351_v19, %v2762_v5  ;;  %v1022_v27 = vpop.f32.mrb[11].mxu0  ;;  %v1278_v29 = vpop.f32.mrb[11].mxu1  ;;  %v1708_v11 = vld [vmem:[%s2757_s13 + $0x290] sm:$0xff] }
 0x101   : > { %v1287_v26 = vadd.f32 %v2415_v21, %v2762_v5  ;;  %1506 = vst [vmem:[%s2767_s19 + $0x40] sm:$0xff] %v1020_v17  ;;  %v1762_v31 = vsub.f32 %v1634_v14, %v1020_v17  ;;  %1570 = vst [vmem:[%s2767_s19 + $0x240] sm:$0xff] %v1276_v18  ;;  %v1826_v32 = vsub.f32 %v1698_v16, %v1276_v18  ;;  %v1706_v17 = vld [vmem:[%s2757_s13 + $0x280] sm:$0xff]  ;;  %v1645_v21 = vld [vmem:[%s2757_s13 + $0x98] sm:$0xff] }
 0x102   : > { %v1023_v33 = vadd.f32 %v2762_v5, %v1022_v27  ;;  %v1279_v34 = vadd.f32 %v2762_v5, %v1278_v29  ;;  %1892 = vst [vmem:[%s2778_s22 + $0x50] sm:$0xff] %v1764_v23  ;;  %1956 = vst [vmem:[%s2778_s22 + $0x250] sm:$0xff] %v1828_v24  ;;  %v1765_v35 = vsub.f32 %v1637_v20, %v1031_v25  ;;  %v1709_v23 = vld [vmem:[%s2757_s13 + $0x298] sm:$0xff]  ;;  %v1643_v29 = vld [vmem:[%s2757_s13 + $0x88] sm:$0xff] }
 0x103   : > { %1509 = vst [vmem:[%s2767_s19 + $0x58] sm:$0xff] %v1031_v25  ;;  %1573 = vst [vmem:[%s2767_s19 + $0x258] sm:$0xff] %v1287_v26  ;;  %v1829_v36 = vsub.f32 %v1701_v22, %v1287_v26 }
 0x104   : > { %1890 = vst [vmem:[%s2778_s22 + $0x40] sm:$0xff] %v1762_v31  ;;  %1954 = vst [vmem:[%s2778_s22 + $0x240] sm:$0xff] %v1826_v32  ;;  %v1763_v37 = vsub.f32 %v1635_v28, %v1023_v33  ;;  %v1827_v38 = vsub.f32 %v1699_v30, %v1279_v34  ;;  %v1707_v31 = vld [vmem:[%s2757_s13 + $0x288] sm:$0xff] }
 0x105   : > { %1507 = vst [vmem:[%s2767_s19 + $0x48] sm:$0xff] %v1023_v33  ;;  %1571 = vst [vmem:[%s2767_s19 + $0x248] sm:$0xff] %v1279_v34  ;;  %v2354_v39 = vpop.f32.mrb[12].mxu0  ;;  %v2418_v41 = vpop.f32.mrb[12].mxu1 }
 0x106   : > { %1893 = vst [vmem:[%s2778_s22 + $0x58] sm:$0xff] %v1765_v35  ;;  %1957 = vst [vmem:[%s2778_s22 + $0x258] sm:$0xff] %v1829_v36  ;;  %v1044_v43 = vadd.f32 %v2354_v39, %v2762_v5  ;;  %v1300_v44 = vadd.f32 %v2418_v41, %v2762_v5  ;;  %v1035_v45 = vpop.f32.mrb[13].mxu0  ;;  %v1291_v47 = vpop.f32.mrb[13].mxu1  ;;  %v1648_v41 = vld [vmem:[%s2757_s13 + $0xb0] sm:$0xff] }
 0x107   : > { %1891 = vst [vmem:[%s2778_s22 + $0x48] sm:$0xff] %v1763_v37  ;;  %1955 = vst [vmem:[%s2778_s22 + $0x248] sm:$0xff] %v1827_v38  ;;  %v1036_v49 = vadd.f32 %v2762_v5, %v1035_v45  ;;  %v1292_v50 = vadd.f32 %v2762_v5, %v1291_v47  ;;  %v2355_v51 = vpop.f32.mrb[14].mxu0  ;;  %v2419_v53 = vpop.f32.mrb[14].mxu1  ;;  %v1646_v47 = vld [vmem:[%s2757_s13 + $0xa0] sm:$0xff] }
 0x108   : > { %1512 = vst [vmem:[%s2767_s19 + $0x70] sm:$0xff] %v1044_v43  ;;  %v1768_v55 = vsub.f32 %v1640_v40, %v1044_v43  ;;  %1576 = vst [vmem:[%s2767_s19 + $0x270] sm:$0xff] %v1300_v44  ;;  %v1832_v56 = vsub.f32 %v1704_v42, %v1300_v44  ;;  %v1047_v57 = vadd.f32 %v2355_v51, %v2762_v5  ;;  %v1038_v59 = vpop.f32.mrb[15].mxu0  ;;  %v1294_v61 = vpop.f32.mrb[15].mxu1  ;;  %v1712_v43 = vld [vmem:[%s2757_s13 + $0x2b0] sm:$0xff] }
 0x109   : > { %v1303_v58 = vadd.f32 %v2419_v53, %v2762_v5  ;;  %1510 = vst [vmem:[%s2767_s19 + $0x60] sm:$0xff] %v1036_v49  ;;  %v1766_v63 = vsub.f32 %v1638_v46, %v1036_v49  ;;  %1574 = vst [vmem:[%s2767_s19 + $0x260] sm:$0xff] %v1292_v50  ;;  %v1830_v0 = vsub.f32 %v1702_v48, %v1292_v50  ;;  %v1710_v49 = vld [vmem:[%s2757_s13 + $0x2a0] sm:$0xff]  ;;  %v1649_v53 = vld [vmem:[%s2757_s13 + $0xb8] sm:$0xff] }
 0x10a   : > { %v1039_v1 = vadd.f32 %v2762_v5, %v1038_v59  ;;  %v1295_v2 = vadd.f32 %v2762_v5, %v1294_v61  ;;  %1896 = vst [vmem:[%s2778_s22 + $0x70] sm:$0xff] %v1768_v55  ;;  %1960 = vst [vmem:[%s2778_s22 + $0x270] sm:$0xff] %v1832_v56  ;;  %v1769_v3 = vsub.f32 %v1641_v52, %v1047_v57  ;;  %v1713_v55 = vld [vmem:[%s2757_s13 + $0x2b8] sm:$0xff]  ;;  %v1647_v61 = vld [vmem:[%s2757_s13 + $0xa8] sm:$0xff] }
 0x10b   : > { %1513 = vst [vmem:[%s2767_s19 + $0x78] sm:$0xff] %v1047_v57  ;;  %1577 = vst [vmem:[%s2767_s19 + $0x278] sm:$0xff] %v1303_v58  ;;  %v1833_v4 = vsub.f32 %v1705_v54, %v1303_v58 }
 0x10c   : > { %1894 = vst [vmem:[%s2778_s22 + $0x60] sm:$0xff] %v1766_v63  ;;  %1958 = vst [vmem:[%s2778_s22 + $0x260] sm:$0xff] %v1830_v0  ;;  %v1767_v6 = vsub.f32 %v1639_v60, %v1039_v1  ;;  %v1831_v7 = vsub.f32 %v1703_v62, %v1295_v2  ;;  %v1711_v63 = vld [vmem:[%s2757_s13 + $0x2a8] sm:$0xff] }
 0x10d   : > { %1511 = vst [vmem:[%s2767_s19 + $0x68] sm:$0xff] %v1039_v1  ;;  %1575 = vst [vmem:[%s2767_s19 + $0x268] sm:$0xff] %v1295_v2  ;;  %v2358_v8 = vpop.f32.mrb[16].mxu0  ;;  %v2422_v10 = vpop.f32.mrb[16].mxu1 }
 0x10e   : > { %1897 = vst [vmem:[%s2778_s22 + $0x78] sm:$0xff] %v1769_v3  ;;  %1961 = vst [vmem:[%s2778_s22 + $0x278] sm:$0xff] %v1833_v4  ;;  %v1060_v12 = vadd.f32 %v2358_v8, %v2762_v5  ;;  %v1316_v13 = vadd.f32 %v2422_v10, %v2762_v5  ;;  %v1051_v14 = vpop.f32.mrb[17].mxu0  ;;  %v1307_v16 = vpop.f32.mrb[17].mxu1  ;;  %v1652_v10 = vld [vmem:[%s2757_s13 + $0xd0] sm:$0xff] }
 0x10f   : > { %1895 = vst [vmem:[%s2778_s22 + $0x68] sm:$0xff] %v1767_v6  ;;  %1959 = vst [vmem:[%s2778_s22 + $0x268] sm:$0xff] %v1831_v7  ;;  %v1052_v18 = vadd.f32 %v2762_v5, %v1051_v14  ;;  %v1308_v19 = vadd.f32 %v2762_v5, %v1307_v16  ;;  %v2359_v20 = vpop.f32.mrb[18].mxu0  ;;  %v2423_v22 = vpop.f32.mrb[18].mxu1  ;;  %v1650_v16 = vld [vmem:[%s2757_s13 + $0xc0] sm:$0xff] }
 0x110   : > { %1516 = vst [vmem:[%s2767_s19 + $0x90] sm:$0xff] %v1060_v12  ;;  %v1772_v24 = vsub.f32 %v1644_v9, %v1060_v12  ;;  %1580 = vst [vmem:[%s2767_s19 + $0x290] sm:$0xff] %v1316_v13  ;;  %v1836_v25 = vsub.f32 %v1708_v11, %v1316_v13  ;;  %v1063_v26 = vadd.f32 %v2359_v20, %v2762_v5  ;;  %v1054_v28 = vpop.f32.mrb[19].mxu0  ;;  %v1310_v30 = vpop.f32.mrb[19].mxu1  ;;  %v1716_v12 = vld [vmem:[%s2757_s13 + $0x2d0] sm:$0xff] }
 0x111   : > { %v1319_v27 = vadd.f32 %v2423_v22, %v2762_v5  ;;  %1514 = vst [vmem:[%s2767_s19 + $0x80] sm:$0xff] %v1052_v18  ;;  %v1770_v32 = vsub.f32 %v1642_v15, %v1052_v18  ;;  %1578 = vst [vmem:[%s2767_s19 + $0x280] sm:$0xff] %v1308_v19  ;;  %v1834_v33 = vsub.f32 %v1706_v17, %v1308_v19  ;;  %v1714_v18 = vld [vmem:[%s2757_s13 + $0x2c0] sm:$0xff]  ;;  %v1653_v22 = vld [vmem:[%s2757_s13 + $0xd8] sm:$0xff] }
 0x112   : > { %v1055_v34 = vadd.f32 %v2762_v5, %v1054_v28  ;;  %v1311_v35 = vadd.f32 %v2762_v5, %v1310_v30  ;;  %1900 = vst [vmem:[%s2778_s22 + $0x90] sm:$0xff] %v1772_v24  ;;  %1964 = vst [vmem:[%s2778_s22 + $0x290] sm:$0xff] %v1836_v25  ;;  %v1773_v36 = vsub.f32 %v1645_v21, %v1063_v26  ;;  %v1717_v24 = vld [vmem:[%s2757_s13 + $0x2d8] sm:$0xff]  ;;  %v1651_v30 = vld [vmem:[%s2757_s13 + $0xc8] sm:$0xff] }
 0x113   : > { %1517 = vst [vmem:[%s2767_s19 + $0x98] sm:$0xff] %v1063_v26  ;;  %1581 = vst [vmem:[%s2767_s19 + $0x298] sm:$0xff] %v1319_v27  ;;  %v1837_v37 = vsub.f32 %v1709_v23, %v1319_v27 }
 0x114   : > { %1898 = vst [vmem:[%s2778_s22 + $0x80] sm:$0xff] %v1770_v32  ;;  %1962 = vst [vmem:[%s2778_s22 + $0x280] sm:$0xff] %v1834_v33  ;;  %v1771_v38 = vsub.f32 %v1643_v29, %v1055_v34  ;;  %v1835_v39 = vsub.f32 %v1707_v31, %v1311_v35  ;;  %v1715_v32 = vld [vmem:[%s2757_s13 + $0x2c8] sm:$0xff] }
 0x115   : > { %1515 = vst [vmem:[%s2767_s19 + $0x88] sm:$0xff] %v1055_v34  ;;  %1579 = vst [vmem:[%s2767_s19 + $0x288] sm:$0xff] %v1311_v35  ;;  %v2362_v40 = vpop.f32.mrb[20].mxu0  ;;  %v2426_v42 = vpop.f32.mrb[20].mxu1 }
 0x116   : > { %1901 = vst [vmem:[%s2778_s22 + $0x98] sm:$0xff] %v1773_v36  ;;  %1965 = vst [vmem:[%s2778_s22 + $0x298] sm:$0xff] %v1837_v37  ;;  %v1076_v44 = vadd.f32 %v2362_v40, %v2762_v5  ;;  %v1332_v45 = vadd.f32 %v2426_v42, %v2762_v5  ;;  %v1067_v46 = vpop.f32.mrb[21].mxu0  ;;  %v1323_v48 = vpop.f32.mrb[21].mxu1  ;;  %v1656_v42 = vld [vmem:[%s2757_s13 + $0xf0] sm:$0xff] }
 0x117   : > { %1899 = vst [vmem:[%s2778_s22 + $0x88] sm:$0xff] %v1771_v38  ;;  %1963 = vst [vmem:[%s2778_s22 + $0x288] sm:$0xff] %v1835_v39  ;;  %v1068_v50 = vadd.f32 %v2762_v5, %v1067_v46  ;;  %v1324_v51 = vadd.f32 %v2762_v5, %v1323_v48  ;;  %v2363_v52 = vpop.f32.mrb[22].mxu0  ;;  %v2427_v54 = vpop.f32.mrb[22].mxu1  ;;  %v1654_v48 = vld [vmem:[%s2757_s13 + $0xe0] sm:$0xff] }
 0x118   : > { %1520 = vst [vmem:[%s2767_s19 + $0xb0] sm:$0xff] %v1076_v44  ;;  %v1776_v56 = vsub.f32 %v1648_v41, %v1076_v44  ;;  %1584 = vst [vmem:[%s2767_s19 + $0x2b0] sm:$0xff] %v1332_v45  ;;  %v1840_v57 = vsub.f32 %v1712_v43, %v1332_v45  ;;  %v1079_v58 = vadd.f32 %v2363_v52, %v2762_v5  ;;  %v1070_v60 = vpop.f32.mrb[23].mxu0  ;;  %v1326_v62 = vpop.f32.mrb[23].mxu1  ;;  %v1720_v44 = vld [vmem:[%s2757_s13 + $0x2f0] sm:$0xff] }
 0x119   : > { %v1335_v59 = vadd.f32 %v2427_v54, %v2762_v5  ;;  %1518 = vst [vmem:[%s2767_s19 + $0xa0] sm:$0xff] %v1068_v50  ;;  %v1774_v0 = vsub.f32 %v1646_v47, %v1068_v50  ;;  %1582 = vst [vmem:[%s2767_s19 + $0x2a0] sm:$0xff] %v1324_v51  ;;  %v1838_v1 = vsub.f32 %v1710_v49, %v1324_v51  ;;  %v1718_v50 = vld [vmem:[%s2757_s13 + $0x2e0] sm:$0xff]  ;;  %v1657_v54 = vld [vmem:[%s2757_s13 + $0xf8] sm:$0xff] }
 0x11a   : > { %v1071_v2 = vadd.f32 %v2762_v5, %v1070_v60  ;;  %v1327_v3 = vadd.f32 %v2762_v5, %v1326_v62  ;;  %1904 = vst [vmem:[%s2778_s22 + $0xb0] sm:$0xff] %v1776_v56  ;;  %1968 = vst [vmem:[%s2778_s22 + $0x2b0] sm:$0xff] %v1840_v57  ;;  %v1777_v4 = vsub.f32 %v1649_v53, %v1079_v58  ;;  %v1721_v56 = vld [vmem:[%s2757_s13 + $0x2f8] sm:$0xff]  ;;  %v1655_v62 = vld [vmem:[%s2757_s13 + $0xe8] sm:$0xff] }
 0x11b   : > { %1521 = vst [vmem:[%s2767_s19 + $0xb8] sm:$0xff] %v1079_v58  ;;  %1585 = vst [vmem:[%s2767_s19 + $0x2b8] sm:$0xff] %v1335_v59  ;;  %v1841_v6 = vsub.f32 %v1713_v55, %v1335_v59 }
 0x11c   : > { %1902 = vst [vmem:[%s2778_s22 + $0xa0] sm:$0xff] %v1774_v0  ;;  %1966 = vst [vmem:[%s2778_s22 + $0x2a0] sm:$0xff] %v1838_v1  ;;  %v1775_v7 = vsub.f32 %v1647_v61, %v1071_v2  ;;  %v1839_v8 = vsub.f32 %v1711_v63, %v1327_v3  ;;  %v1719_v0 = vld [vmem:[%s2757_s13 + $0x2e8] sm:$0xff] }
 0x11d   : > { %1519 = vst [vmem:[%s2767_s19 + $0xa8] sm:$0xff] %v1071_v2  ;;  %1583 = vst [vmem:[%s2767_s19 + $0x2a8] sm:$0xff] %v1327_v3  ;;  %v2366_v9 = vpop.f32.mrb[24].mxu0  ;;  %v2430_v11 = vpop.f32.mrb[24].mxu1 }
 0x11e   : > { %1905 = vst [vmem:[%s2778_s22 + $0xb8] sm:$0xff] %v1777_v4  ;;  %1969 = vst [vmem:[%s2778_s22 + $0x2b8] sm:$0xff] %v1841_v6  ;;  %v1092_v13 = vadd.f32 %v2366_v9, %v2762_v5  ;;  %v1348_v14 = vadd.f32 %v2430_v11, %v2762_v5  ;;  %v1083_v15 = vpop.f32.mrb[25].mxu0  ;;  %v1339_v17 = vpop.f32.mrb[25].mxu1  ;;  %v1660_v11 = vld [vmem:[%s2757_s13 + $0x110] sm:$0xff] }
 0x11f   : > { %1903 = vst [vmem:[%s2778_s22 + $0xa8] sm:$0xff] %v1775_v7  ;;  %1967 = vst [vmem:[%s2778_s22 + $0x2a8] sm:$0xff] %v1839_v8  ;;  %v1084_v19 = vadd.f32 %v2762_v5, %v1083_v15  ;;  %v1340_v20 = vadd.f32 %v2762_v5, %v1339_v17  ;;  %v2367_v21 = vpop.f32.mrb[26].mxu0  ;;  %v2431_v23 = vpop.f32.mrb[26].mxu1  ;;  %v1658_v17 = vld [vmem:[%s2757_s13 + $0x100] sm:$0xff] }
 0x120   : > { %1524 = vst [vmem:[%s2767_s19 + $0xd0] sm:$0xff] %v1092_v13  ;;  %v1780_v25 = vsub.f32 %v1652_v10, %v1092_v13  ;;  %1588 = vst [vmem:[%s2767_s19 + $0x2d0] sm:$0xff] %v1348_v14  ;;  %v1844_v26 = vsub.f32 %v1716_v12, %v1348_v14  ;;  %v1095_v27 = vadd.f32 %v2367_v21, %v2762_v5  ;;  %v1086_v29 = vpop.f32.mrb[27].mxu0  ;;  %v1342_v31 = vpop.f32.mrb[27].mxu1  ;;  %v1724_v13 = vld [vmem:[%s2757_s13 + $0x310] sm:$0xff] }
 0x121   : > { %v1351_v28 = vadd.f32 %v2431_v23, %v2762_v5  ;;  %1522 = vst [vmem:[%s2767_s19 + $0xc0] sm:$0xff] %v1084_v19  ;;  %v1778_v33 = vsub.f32 %v1650_v16, %v1084_v19  ;;  %1586 = vst [vmem:[%s2767_s19 + $0x2c0] sm:$0xff] %v1340_v20  ;;  %v1842_v34 = vsub.f32 %v1714_v18, %v1340_v20  ;;  %v1722_v19 = vld [vmem:[%s2757_s13 + $0x300] sm:$0xff]  ;;  %v1661_v23 = vld [vmem:[%s2757_s13 + $0x118] sm:$0xff] }
 0x122   : > { %v1087_v35 = vadd.f32 %v2762_v5, %v1086_v29  ;;  %v1343_v36 = vadd.f32 %v2762_v5, %v1342_v31  ;;  %1908 = vst [vmem:[%s2778_s22 + $0xd0] sm:$0xff] %v1780_v25  ;;  %1972 = vst [vmem:[%s2778_s22 + $0x2d0] sm:$0xff] %v1844_v26  ;;  %v1781_v37 = vsub.f32 %v1653_v22, %v1095_v27  ;;  %v1725_v25 = vld [vmem:[%s2757_s13 + $0x318] sm:$0xff]  ;;  %v1659_v31 = vld [vmem:[%s2757_s13 + $0x108] sm:$0xff] }
 0x123   : > { %1525 = vst [vmem:[%s2767_s19 + $0xd8] sm:$0xff] %v1095_v27  ;;  %1589 = vst [vmem:[%s2767_s19 + $0x2d8] sm:$0xff] %v1351_v28  ;;  %v1845_v38 = vsub.f32 %v1717_v24, %v1351_v28 }
 0x124   : > { %1906 = vst [vmem:[%s2778_s22 + $0xc0] sm:$0xff] %v1778_v33  ;;  %1970 = vst [vmem:[%s2778_s22 + $0x2c0] sm:$0xff] %v1842_v34  ;;  %v1779_v39 = vsub.f32 %v1651_v30, %v1087_v35  ;;  %v1843_v40 = vsub.f32 %v1715_v32, %v1343_v36  ;;  %v1723_v33 = vld [vmem:[%s2757_s13 + $0x308] sm:$0xff] }
 0x125   : > { %1523 = vst [vmem:[%s2767_s19 + $0xc8] sm:$0xff] %v1087_v35  ;;  %1587 = vst [vmem:[%s2767_s19 + $0x2c8] sm:$0xff] %v1343_v36  ;;  %v2370_v41 = vpop.f32.mrb[28].mxu0  ;;  %v2434_v43 = vpop.f32.mrb[28].mxu1 }
 0x126   : > { %1909 = vst [vmem:[%s2778_s22 + $0xd8] sm:$0xff] %v1781_v37  ;;  %1973 = vst [vmem:[%s2778_s22 + $0x2d8] sm:$0xff] %v1845_v38  ;;  %v1108_v45 = vadd.f32 %v2370_v41, %v2762_v5  ;;  %v1364_v46 = vadd.f32 %v2434_v43, %v2762_v5  ;;  %v1099_v47 = vpop.f32.mrb[29].mxu0  ;;  %v1355_v49 = vpop.f32.mrb[29].mxu1  ;;  %v1664_v43 = vld [vmem:[%s2757_s13 + $0x130] sm:$0xff] }
 0x127   : > { %1907 = vst [vmem:[%s2778_s22 + $0xc8] sm:$0xff] %v1779_v39  ;;  %1971 = vst [vmem:[%s2778_s22 + $0x2c8] sm:$0xff] %v1843_v40  ;;  %v1100_v51 = vadd.f32 %v2762_v5, %v1099_v47  ;;  %v1356_v52 = vadd.f32 %v2762_v5, %v1355_v49  ;;  %v2371_v53 = vpop.f32.mrb[30].mxu0  ;;  %v2435_v55 = vpop.f32.mrb[30].mxu1  ;;  %v1662_v49 = vld [vmem:[%s2757_s13 + $0x120] sm:$0xff] }
 0x128   : > { %1528 = vst [vmem:[%s2767_s19 + $0xf0] sm:$0xff] %v1108_v45  ;;  %v1784_v57 = vsub.f32 %v1656_v42, %v1108_v45  ;;  %1592 = vst [vmem:[%s2767_s19 + $0x2f0] sm:$0xff] %v1364_v46  ;;  %v1848_v58 = vsub.f32 %v1720_v44, %v1364_v46  ;;  %v1111_v59 = vadd.f32 %v2371_v53, %v2762_v5  ;;  %v1102_v61 = vpop.f32.mrb[31].mxu0  ;;  %v1358_v63 = vpop.f32.mrb[31].mxu1  ;;  %v1728_v45 = vld [vmem:[%s2757_s13 + $0x330] sm:$0xff] }
 0x129   : > { %v1367_v60 = vadd.f32 %v2435_v55, %v2762_v5  ;;  %1526 = vst [vmem:[%s2767_s19 + $0xe0] sm:$0xff] %v1100_v51  ;;  %v1782_v1 = vsub.f32 %v1654_v48, %v1100_v51  ;;  %1590 = vst [vmem:[%s2767_s19 + $0x2e0] sm:$0xff] %v1356_v52  ;;  %v1846_v2 = vsub.f32 %v1718_v50, %v1356_v52  ;;  %v1726_v51 = vld [vmem:[%s2757_s13 + $0x320] sm:$0xff]  ;;  %v1665_v55 = vld [vmem:[%s2757_s13 + $0x138] sm:$0xff] }
 0x12a   : > { %v1103_v3 = vadd.f32 %v2762_v5, %v1102_v61  ;;  %v1359_v4 = vadd.f32 %v2762_v5, %v1358_v63  ;;  %1912 = vst [vmem:[%s2778_s22 + $0xf0] sm:$0xff] %v1784_v57  ;;  %1976 = vst [vmem:[%s2778_s22 + $0x2f0] sm:$0xff] %v1848_v58  ;;  %v1785_v6 = vsub.f32 %v1657_v54, %v1111_v59  ;;  %v1729_v57 = vld [vmem:[%s2757_s13 + $0x338] sm:$0xff]  ;;  %v1663_v63 = vld [vmem:[%s2757_s13 + $0x128] sm:$0xff] }
 0x12b   : > { %1529 = vst [vmem:[%s2767_s19 + $0xf8] sm:$0xff] %v1111_v59  ;;  %1593 = vst [vmem:[%s2767_s19 + $0x2f8] sm:$0xff] %v1367_v60  ;;  %v1849_v7 = vsub.f32 %v1721_v56, %v1367_v60 }
 0x12c   : > { %1910 = vst [vmem:[%s2778_s22 + $0xe0] sm:$0xff] %v1782_v1  ;;  %1974 = vst [vmem:[%s2778_s22 + $0x2e0] sm:$0xff] %v1846_v2  ;;  %v1783_v8 = vsub.f32 %v1655_v62, %v1103_v3  ;;  %v1847_v9 = vsub.f32 %v1719_v0, %v1359_v4  ;;  %v1727_v1 = vld [vmem:[%s2757_s13 + $0x328] sm:$0xff] }
 0x12d   : > { %1527 = vst [vmem:[%s2767_s19 + $0xe8] sm:$0xff] %v1103_v3  ;;  %1591 = vst [vmem:[%s2767_s19 + $0x2e8] sm:$0xff] %v1359_v4  ;;  %v2374_v10 = vpop.f32.mrb[32].mxu0  ;;  %v2438_v12 = vpop.f32.mrb[32].mxu1 }
 0x12e   : > { %1913 = vst [vmem:[%s2778_s22 + $0xf8] sm:$0xff] %v1785_v6  ;;  %1977 = vst [vmem:[%s2778_s22 + $0x2f8] sm:$0xff] %v1849_v7  ;;  %v1124_v14 = vadd.f32 %v2374_v10, %v2762_v5  ;;  %v1380_v15 = vadd.f32 %v2438_v12, %v2762_v5  ;;  %v1115_v16 = vpop.f32.mrb[33].mxu0  ;;  %v1371_v18 = vpop.f32.mrb[33].mxu1  ;;  %v1668_v12 = vld [vmem:[%s2757_s13 + $0x150] sm:$0xff] }
 0x12f   : > { %1911 = vst [vmem:[%s2778_s22 + $0xe8] sm:$0xff] %v1783_v8  ;;  %1975 = vst [vmem:[%s2778_s22 + $0x2e8] sm:$0xff] %v1847_v9  ;;  %v1116_v20 = vadd.f32 %v2762_v5, %v1115_v16  ;;  %v1372_v21 = vadd.f32 %v2762_v5, %v1371_v18  ;;  %v2375_v22 = vpop.f32.mrb[34].mxu0  ;;  %v2439_v24 = vpop.f32.mrb[34].mxu1  ;;  %v1666_v18 = vld [vmem:[%s2757_s13 + $0x140] sm:$0xff] }
 0x130   : > { %1532 = vst [vmem:[%s2767_s19 + $0x110] sm:$0xff] %v1124_v14  ;;  %v1788_v26 = vsub.f32 %v1660_v11, %v1124_v14  ;;  %1596 = vst [vmem:[%s2767_s19 + $0x310] sm:$0xff] %v1380_v15  ;;  %v1852_v27 = vsub.f32 %v1724_v13, %v1380_v15  ;;  %v1127_v28 = vadd.f32 %v2375_v22, %v2762_v5  ;;  %v1118_v30 = vpop.f32.mrb[35].mxu0  ;;  %v1374_v32 = vpop.f32.mrb[35].mxu1  ;;  %v1732_v14 = vld [vmem:[%s2757_s13 + $0x350] sm:$0xff] }
 0x131   : > { %v1383_v29 = vadd.f32 %v2439_v24, %v2762_v5  ;;  %1530 = vst [vmem:[%s2767_s19 + $0x100] sm:$0xff] %v1116_v20  ;;  %v1786_v34 = vsub.f32 %v1658_v17, %v1116_v20  ;;  %1594 = vst [vmem:[%s2767_s19 + $0x300] sm:$0xff] %v1372_v21  ;;  %v1850_v35 = vsub.f32 %v1722_v19, %v1372_v21  ;;  %v1730_v20 = vld [vmem:[%s2757_s13 + $0x340] sm:$0xff]  ;;  %v1669_v24 = vld [vmem:[%s2757_s13 + $0x158] sm:$0xff] }
 0x132   : > { %v1119_v36 = vadd.f32 %v2762_v5, %v1118_v30  ;;  %v1375_v37 = vadd.f32 %v2762_v5, %v1374_v32  ;;  %1916 = vst [vmem:[%s2778_s22 + $0x110] sm:$0xff] %v1788_v26  ;;  %1980 = vst [vmem:[%s2778_s22 + $0x310] sm:$0xff] %v1852_v27  ;;  %v1789_v38 = vsub.f32 %v1661_v23, %v1127_v28  ;;  %v1733_v26 = vld [vmem:[%s2757_s13 + $0x358] sm:$0xff]  ;;  %v1667_v32 = vld [vmem:[%s2757_s13 + $0x148] sm:$0xff] }
 0x133   : > { %1533 = vst [vmem:[%s2767_s19 + $0x118] sm:$0xff] %v1127_v28  ;;  %1597 = vst [vmem:[%s2767_s19 + $0x318] sm:$0xff] %v1383_v29  ;;  %v1853_v39 = vsub.f32 %v1725_v25, %v1383_v29 }
 0x134   : > { %1914 = vst [vmem:[%s2778_s22 + $0x100] sm:$0xff] %v1786_v34  ;;  %1978 = vst [vmem:[%s2778_s22 + $0x300] sm:$0xff] %v1850_v35  ;;  %v1787_v40 = vsub.f32 %v1659_v31, %v1119_v36  ;;  %v1851_v41 = vsub.f32 %v1723_v33, %v1375_v37  ;;  %v1731_v34 = vld [vmem:[%s2757_s13 + $0x348] sm:$0xff] }
 0x135   : > { %1531 = vst [vmem:[%s2767_s19 + $0x108] sm:$0xff] %v1119_v36  ;;  %1595 = vst [vmem:[%s2767_s19 + $0x308] sm:$0xff] %v1375_v37  ;;  %v2378_v42 = vpop.f32.mrb[36].mxu0  ;;  %v2442_v44 = vpop.f32.mrb[36].mxu1  ;;  %v3115_v37 = vld [vmem:[%s3297_s3] ss:$0 sm:$0xff] }
 0x136   : > { %1917 = vst [vmem:[%s2778_s22 + $0x118] sm:$0xff] %v1789_v38  ;;  %1981 = vst [vmem:[%s2778_s22 + $0x318] sm:$0xff] %v1853_v39  ;;  %v1140_v46 = vadd.f32 %v2378_v42, %v2762_v5  ;;  %v1396_v47 = vadd.f32 %v2442_v44, %v2762_v5  ;;  %v1131_v48 = vpop.f32.mrb[37].mxu0  ;;  %v1387_v50 = vpop.f32.mrb[37].mxu1  ;;  %v1672_v44 = vld [vmem:[%s2757_s13 + $0x170] sm:$0xff] }
 0x137   : > { %1915 = vst [vmem:[%s2778_s22 + $0x108] sm:$0xff] %v1787_v40  ;;  %1979 = vst [vmem:[%s2778_s22 + $0x308] sm:$0xff] %v1851_v41  ;;  %v1132_v52 = vadd.f32 %v2762_v5, %v1131_v48  ;;  %v1388_v53 = vadd.f32 %v2762_v5, %v1387_v50  ;;  %v2379_v54 = vpop.f32.mrb[38].mxu0  ;;  %v2443_v56 = vpop.f32.mrb[38].mxu1  ;;  %v1670_v50 = vld [vmem:[%s2757_s13 + $0x160] sm:$0xff] }
 0x138   : > { %1536 = vst [vmem:[%s2767_s19 + $0x130] sm:$0xff] %v1140_v46  ;;  %v1792_v58 = vsub.f32 %v1664_v43, %v1140_v46  ;;  %1600 = vst [vmem:[%s2767_s19 + $0x330] sm:$0xff] %v1396_v47  ;;  %v1856_v59 = vsub.f32 %v1728_v45, %v1396_v47  ;;  %v1143_v60 = vadd.f32 %v2379_v54, %v2762_v5  ;;  %v1134_v62 = vpop.f32.mrb[39].mxu0  ;;  %v1390_v0 = vpop.f32.mrb[39].mxu1  ;;  %v1736_v46 = vld [vmem:[%s2757_s13 + $0x370] sm:$0xff] }
 0x139   : > { %v1399_v61 = vadd.f32 %v2443_v56, %v2762_v5  ;;  %1534 = vst [vmem:[%s2767_s19 + $0x120] sm:$0xff] %v1132_v52  ;;  %v1790_v2 = vsub.f32 %v1662_v49, %v1132_v52  ;;  %1598 = vst [vmem:[%s2767_s19 + $0x320] sm:$0xff] %v1388_v53  ;;  %v1854_v3 = vsub.f32 %v1726_v51, %v1388_v53  ;;  %v1734_v52 = vld [vmem:[%s2757_s13 + $0x360] sm:$0xff]  ;;  %v1673_v56 = vld [vmem:[%s2757_s13 + $0x178] sm:$0xff] }
 0x13a   : > { %v1135_v4 = vadd.f32 %v2762_v5, %v1134_v62  ;;  %v1391_v6 = vadd.f32 %v2762_v5, %v1390_v0  ;;  %1920 = vst [vmem:[%s2778_s22 + $0x130] sm:$0xff] %v1792_v58  ;;  %1984 = vst [vmem:[%s2778_s22 + $0x330] sm:$0xff] %v1856_v59  ;;  %v1793_v7 = vsub.f32 %v1665_v55, %v1143_v60  ;;  %v1737_v58 = vld [vmem:[%s2757_s13 + $0x378] sm:$0xff]  ;;  %v1671_v0 = vld [vmem:[%s2757_s13 + $0x168] sm:$0xff] }
 0x13b   : > { %1537 = vst [vmem:[%s2767_s19 + $0x138] sm:$0xff] %v1143_v60  ;;  %1601 = vst [vmem:[%s2767_s19 + $0x338] sm:$0xff] %v1399_v61  ;;  %v1857_v8 = vsub.f32 %v1729_v57, %v1399_v61 }
 0x13c   : > { %1918 = vst [vmem:[%s2778_s22 + $0x120] sm:$0xff] %v1790_v2  ;;  %1982 = vst [vmem:[%s2778_s22 + $0x320] sm:$0xff] %v1854_v3  ;;  %v1791_v9 = vsub.f32 %v1663_v63, %v1135_v4  ;;  %v1855_v10 = vsub.f32 %v1727_v1, %v1391_v6  ;;  %v1735_v2 = vld [vmem:[%s2757_s13 + $0x368] sm:$0xff] }
 0x13d   : > { %1535 = vst [vmem:[%s2767_s19 + $0x128] sm:$0xff] %v1135_v4  ;;  %1599 = vst [vmem:[%s2767_s19 + $0x328] sm:$0xff] %v1391_v6  ;;  %v2382_v11 = vpop.f32.mrb[40].mxu0  ;;  %v2446_v13 = vpop.f32.mrb[40].mxu1 }
 0x13e   : > { %1921 = vst [vmem:[%s2778_s22 + $0x138] sm:$0xff] %v1793_v7  ;;  %1985 = vst [vmem:[%s2778_s22 + $0x338] sm:$0xff] %v1857_v8  ;;  %v1156_v15 = vadd.f32 %v2382_v11, %v2762_v5  ;;  %v1412_v16 = vadd.f32 %v2446_v13, %v2762_v5  ;;  %v1147_v17 = vpop.f32.mrb[41].mxu0  ;;  %v1403_v19 = vpop.f32.mrb[41].mxu1  ;;  %v1676_v13 = vld [vmem:[%s2757_s13 + $0x190] sm:$0xff] }
 0x13f   : > { %1919 = vst [vmem:[%s2778_s22 + $0x128] sm:$0xff] %v1791_v9  ;;  %1983 = vst [vmem:[%s2778_s22 + $0x328] sm:$0xff] %v1855_v10  ;;  %v1148_v21 = vadd.f32 %v2762_v5, %v1147_v17  ;;  %v1404_v22 = vadd.f32 %v2762_v5, %v1403_v19  ;;  %v2383_v23 = vpop.f32.mrb[42].mxu0  ;;  %v2447_v25 = vpop.f32.mrb[42].mxu1  ;;  %v1674_v19 = vld [vmem:[%s2757_s13 + $0x180] sm:$0xff] }
 0x140   : > { %1540 = vst [vmem:[%s2767_s19 + $0x150] sm:$0xff] %v1156_v15  ;;  %v1796_v27 = vsub.f32 %v1668_v12, %v1156_v15  ;;  %1604 = vst [vmem:[%s2767_s19 + $0x350] sm:$0xff] %v1412_v16  ;;  %v1860_v28 = vsub.f32 %v1732_v14, %v1412_v16  ;;  %v1159_v29 = vadd.f32 %v2383_v23, %v2762_v5  ;;  %v1150_v31 = vpop.f32.mrb[43].mxu0  ;;  %v1406_v33 = vpop.f32.mrb[43].mxu1  ;;  %v1740_v15 = vld [vmem:[%s2757_s13 + $0x390] sm:$0xff] }
 0x141   : > { %v1415_v30 = vadd.f32 %v2447_v25, %v2762_v5  ;;  %1538 = vst [vmem:[%s2767_s19 + $0x140] sm:$0xff] %v1148_v21  ;;  %v1794_v35 = vsub.f32 %v1666_v18, %v1148_v21  ;;  %1602 = vst [vmem:[%s2767_s19 + $0x340] sm:$0xff] %v1404_v22  ;;  %v1858_v36 = vsub.f32 %v1730_v20, %v1404_v22  ;;  %v1738_v21 = vld [vmem:[%s2757_s13 + $0x380] sm:$0xff]  ;;  %v1677_v25 = vld [vmem:[%s2757_s13 + $0x198] sm:$0xff] }
 0x142   : > { %v1151_v5 = vadd.f32 %v3115_v37, %v1150_v31  ;;  %v1407_v38 = vadd.f32 %v3115_v37, %v1406_v33  ;;  %1924 = vst [vmem:[%s2778_s22 + $0x150] sm:$0xff] %v1796_v27  ;;  %1988 = vst [vmem:[%s2778_s22 + $0x350] sm:$0xff] %v1860_v28  ;;  %v1797_v39 = vsub.f32 %v1669_v24, %v1159_v29  ;;  %v1741_v27 = vld [vmem:[%s2757_s13 + $0x398] sm:$0xff]  ;;  %v1675_v33 = vld [vmem:[%s2757_s13 + $0x188] sm:$0xff] }
 0x143   : > { %1541 = vst [vmem:[%s2767_s19 + $0x158] sm:$0xff] %v1159_v29  ;;  %1605 = vst [vmem:[%s2767_s19 + $0x358] sm:$0xff] %v1415_v30  ;;  %v1861_v40 = vsub.f32 %v1733_v26, %v1415_v30 }
 0x144   : > { %1922 = vst [vmem:[%s2778_s22 + $0x140] sm:$0xff] %v1794_v35  ;;  %1986 = vst [vmem:[%s2778_s22 + $0x340] sm:$0xff] %v1858_v36  ;;  %v1795_v41 = vsub.f32 %v1667_v32, %v1151_v5  ;;  %v1859_v42 = vsub.f32 %v1731_v34, %v1407_v38  ;;  %v1739_v35 = vld [vmem:[%s2757_s13 + $0x388] sm:$0xff] }
 0x145   : > { %1539 = vst [vmem:[%s2767_s19 + $0x148] sm:$0xff] %v1151_v5  ;;  %1603 = vst [vmem:[%s2767_s19 + $0x348] sm:$0xff] %v1407_v38  ;;  %v2386_v43 = vpop.f32.mrb[44].mxu0  ;;  %v2450_v45 = vpop.f32.mrb[44].mxu1 }
 0x146   : > { %1925 = vst [vmem:[%s2778_s22 + $0x158] sm:$0xff] %v1797_v39  ;;  %1989 = vst [vmem:[%s2778_s22 + $0x358] sm:$0xff] %v1861_v40  ;;  %v1172_v47 = vadd.f32 %v3115_v37, %v2386_v43  ;;  %v1428_v48 = vadd.f32 %v3115_v37, %v2450_v45  ;;  %v1163_v49 = vpop.f32.mrb[45].mxu0  ;;  %v1419_v51 = vpop.f32.mrb[45].mxu1  ;;  %v1680_v45 = vld [vmem:[%s2757_s13 + $0x1b0] sm:$0xff] }
 0x147   : > { %1923 = vst [vmem:[%s2778_s22 + $0x148] sm:$0xff] %v1795_v41  ;;  %1987 = vst [vmem:[%s2778_s22 + $0x348] sm:$0xff] %v1859_v42  ;;  %v1164_v53 = vadd.f32 %v3115_v37, %v1163_v49  ;;  %v1420_v54 = vadd.f32 %v3115_v37, %v1419_v51  ;;  %v2387_v55 = vpop.f32.mrb[46].mxu0  ;;  %v2451_v57 = vpop.f32.mrb[46].mxu1  ;;  %v1678_v51 = vld [vmem:[%s2757_s13 + $0x1a0] sm:$0xff] }
 0x148   : > { %1544 = vst [vmem:[%s2767_s19 + $0x170] sm:$0xff] %v1172_v47  ;;  %v1800_v59 = vsub.f32 %v1672_v44, %v1172_v47  ;;  %1608 = vst [vmem:[%s2767_s19 + $0x370] sm:$0xff] %v1428_v48  ;;  %v1864_v60 = vsub.f32 %v1736_v46, %v1428_v48  ;;  %v1175_v61 = vadd.f32 %v3115_v37, %v2387_v55  ;;  %v1166_v63 = vpop.f32.mrb[47].mxu0  ;;  %v1422_v1 = vpop.f32.mrb[47].mxu1  ;;  %v1744_v47 = vld [vmem:[%s2757_s13 + $0x3b0] sm:$0xff] }
 0x149   : > { %v1431_v62 = vadd.f32 %v3115_v37, %v2451_v57  ;;  %1542 = vst [vmem:[%s2767_s19 + $0x160] sm:$0xff] %v1164_v53  ;;  %v1798_v3 = vsub.f32 %v1670_v50, %v1164_v53  ;;  %1606 = vst [vmem:[%s2767_s19 + $0x360] sm:$0xff] %v1420_v54  ;;  %v1862_v4 = vsub.f32 %v1734_v52, %v1420_v54  ;;  %v1742_v53 = vld [vmem:[%s2757_s13 + $0x3a0] sm:$0xff]  ;;  %v1681_v57 = vld [vmem:[%s2757_s13 + $0x1b8] sm:$0xff] }
 0x14a   : > { %v1167_v6 = vadd.f32 %v3115_v37, %v1166_v63  ;;  %v1423_v7 = vadd.f32 %v3115_v37, %v1422_v1  ;;  %1928 = vst [vmem:[%s2778_s22 + $0x170] sm:$0xff] %v1800_v59  ;;  %1992 = vst [vmem:[%s2778_s22 + $0x370] sm:$0xff] %v1864_v60  ;;  %v1801_v8 = vsub.f32 %v1673_v56, %v1175_v61  ;;  %v1745_v59 = vld [vmem:[%s2757_s13 + $0x3b8] sm:$0xff]  ;;  %v1679_v1 = vld [vmem:[%s2757_s13 + $0x1a8] sm:$0xff] }
 0x14b   : > { %1545 = vst [vmem:[%s2767_s19 + $0x178] sm:$0xff] %v1175_v61  ;;  %1609 = vst [vmem:[%s2767_s19 + $0x378] sm:$0xff] %v1431_v62  ;;  %v1865_v9 = vsub.f32 %v1737_v58, %v1431_v62 }
 0x14c   : > { %1926 = vst [vmem:[%s2778_s22 + $0x160] sm:$0xff] %v1798_v3  ;;  %1990 = vst [vmem:[%s2778_s22 + $0x360] sm:$0xff] %v1862_v4  ;;  %v1799_v10 = vsub.f32 %v1671_v0, %v1167_v6  ;;  %v1863_v11 = vsub.f32 %v1735_v2, %v1423_v7  ;;  %v1743_v3 = vld [vmem:[%s2757_s13 + $0x3a8] sm:$0xff] }
 0x14d   : > { %1543 = vst [vmem:[%s2767_s19 + $0x168] sm:$0xff] %v1167_v6  ;;  %1607 = vst [vmem:[%s2767_s19 + $0x368] sm:$0xff] %v1423_v7  ;;  %v2390_v12 = vpop.f32.mrb[48].mxu0  ;;  %v2454_v14 = vpop.f32.mrb[48].mxu1 }
 0x14e   : > { %1929 = vst [vmem:[%s2778_s22 + $0x178] sm:$0xff] %v1801_v8  ;;  %1993 = vst [vmem:[%s2778_s22 + $0x378] sm:$0xff] %v1865_v9  ;;  %v1188_v16 = vadd.f32 %v3115_v37, %v2390_v12  ;;  %v1444_v17 = vadd.f32 %v3115_v37, %v2454_v14  ;;  %v1179_v18 = vpop.f32.mrb[49].mxu0  ;;  %v1435_v20 = vpop.f32.mrb[49].mxu1  ;;  %v1684_v14 = vld [vmem:[%s2757_s13 + $0x1d0] sm:$0xff] }
 0x14f   : > { %1927 = vst [vmem:[%s2778_s22 + $0x168] sm:$0xff] %v1799_v10  ;;  %1991 = vst [vmem:[%s2778_s22 + $0x368] sm:$0xff] %v1863_v11  ;;  %v1180_v22 = vadd.f32 %v3115_v37, %v1179_v18  ;;  %v1436_v23 = vadd.f32 %v3115_v37, %v1435_v20  ;;  %v2391_v24 = vpop.f32.mrb[50].mxu0  ;;  %v2455_v26 = vpop.f32.mrb[50].mxu1  ;;  %v1682_v20 = vld [vmem:[%s2757_s13 + $0x1c0] sm:$0xff] }
 0x150   : > { %1548 = vst [vmem:[%s2767_s19 + $0x190] sm:$0xff] %v1188_v16  ;;  %v1804_v28 = vsub.f32 %v1676_v13, %v1188_v16  ;;  %1612 = vst [vmem:[%s2767_s19 + $0x390] sm:$0xff] %v1444_v17  ;;  %v1868_v29 = vsub.f32 %v1740_v15, %v1444_v17  ;;  %v1191_v30 = vadd.f32 %v3115_v37, %v2391_v24  ;;  %v1182_v32 = vpop.f32.mrb[51].mxu0  ;;  %v1438_v34 = vpop.f32.mrb[51].mxu1  ;;  %v1748_v16 = vld [vmem:[%s2757_s13 + $0x3d0] sm:$0xff] }
 0x151   : > { %v1447_v31 = vadd.f32 %v3115_v37, %v2455_v26  ;;  %1546 = vst [vmem:[%s2767_s19 + $0x180] sm:$0xff] %v1180_v22  ;;  %v1802_v36 = vsub.f32 %v1674_v19, %v1180_v22  ;;  %1610 = vst [vmem:[%s2767_s19 + $0x380] sm:$0xff] %v1436_v23  ;;  %v1866_v5 = vsub.f32 %v1738_v21, %v1436_v23  ;;  %v1746_v22 = vld [vmem:[%s2757_s13 + $0x3c0] sm:$0xff]  ;;  %v1685_v26 = vld [vmem:[%s2757_s13 + $0x1d8] sm:$0xff] }
 0x152   : > { %v1183_v38 = vadd.f32 %v3115_v37, %v1182_v32  ;;  %v1439_v39 = vadd.f32 %v3115_v37, %v1438_v34  ;;  %1932 = vst [vmem:[%s2778_s22 + $0x190] sm:$0xff] %v1804_v28  ;;  %1996 = vst [vmem:[%s2778_s22 + $0x390] sm:$0xff] %v1868_v29  ;;  %v1805_v40 = vsub.f32 %v1677_v25, %v1191_v30  ;;  %v1749_v28 = vld [vmem:[%s2757_s13 + $0x3d8] sm:$0xff]  ;;  %v1683_v34 = vld [vmem:[%s2757_s13 + $0x1c8] sm:$0xff] }
 0x153   : > { %1549 = vst [vmem:[%s2767_s19 + $0x198] sm:$0xff] %v1191_v30  ;;  %1613 = vst [vmem:[%s2767_s19 + $0x398] sm:$0xff] %v1447_v31  ;;  %v1869_v41 = vsub.f32 %v1741_v27, %v1447_v31 }
 0x154   : > { %1930 = vst [vmem:[%s2778_s22 + $0x180] sm:$0xff] %v1802_v36  ;;  %1994 = vst [vmem:[%s2778_s22 + $0x380] sm:$0xff] %v1866_v5  ;;  %v1803_v42 = vsub.f32 %v1675_v33, %v1183_v38  ;;  %v1867_v43 = vsub.f32 %v1739_v35, %v1439_v39  ;;  %v1747_v36 = vld [vmem:[%s2757_s13 + $0x3c8] sm:$0xff] }
 0x155   : > { %1547 = vst [vmem:[%s2767_s19 + $0x188] sm:$0xff] %v1183_v38  ;;  %1611 = vst [vmem:[%s2767_s19 + $0x388] sm:$0xff] %v1439_v39  ;;  %v2394_v44 = vpop.f32.mrb[52].mxu0  ;;  %v2458_v46 = vpop.f32.mrb[52].mxu1 }
 0x156   : > { %1933 = vst [vmem:[%s2778_s22 + $0x198] sm:$0xff] %v1805_v40  ;;  %1997 = vst [vmem:[%s2778_s22 + $0x398] sm:$0xff] %v1869_v41  ;;  %v1204_v48 = vadd.f32 %v3115_v37, %v2394_v44  ;;  %v1460_v49 = vadd.f32 %v3115_v37, %v2458_v46  ;;  %v1195_v50 = vpop.f32.mrb[53].mxu0  ;;  %v1451_v52 = vpop.f32.mrb[53].mxu1  ;;  %v1688_v46 = vld [vmem:[%s2757_s13 + $0x1f0] sm:$0xff] }
 0x157   : > { %1931 = vst [vmem:[%s2778_s22 + $0x188] sm:$0xff] %v1803_v42  ;;  %1995 = vst [vmem:[%s2778_s22 + $0x388] sm:$0xff] %v1867_v43  ;;  %v1196_v54 = vadd.f32 %v3115_v37, %v1195_v50  ;;  %v1452_v55 = vadd.f32 %v3115_v37, %v1451_v52  ;;  %v2395_v56 = vpop.f32.mrb[54].mxu0  ;;  %v2459_v58 = vpop.f32.mrb[54].mxu1  ;;  %v1686_v52 = vld [vmem:[%s2757_s13 + $0x1e0] sm:$0xff] }
 0x158   : > { %1552 = vst [vmem:[%s2767_s19 + $0x1b0] sm:$0xff] %v1204_v48  ;;  %v1808_v60 = vsub.f32 %v1680_v45, %v1204_v48  ;;  %1616 = vst [vmem:[%s2767_s19 + $0x3b0] sm:$0xff] %v1460_v49  ;;  %v1872_v61 = vsub.f32 %v1744_v47, %v1460_v49  ;;  %v1207_v62 = vadd.f32 %v3115_v37, %v2395_v56  ;;  %v1198_v0 = vpop.f32.mrb[55].mxu0  ;;  %v1454_v2 = vpop.f32.mrb[55].mxu1  ;;  %v1752_v48 = vld [vmem:[%s2757_s13 + $0x3f0] sm:$0xff] }
 0x159   : > { %v1463_v63 = vadd.f32 %v3115_v37, %v2459_v58  ;;  %1550 = vst [vmem:[%s2767_s19 + $0x1a0] sm:$0xff] %v1196_v54  ;;  %v1806_v4 = vsub.f32 %v1678_v51, %v1196_v54  ;;  %1614 = vst [vmem:[%s2767_s19 + $0x3a0] sm:$0xff] %v1452_v55  ;;  %v1870_v6 = vsub.f32 %v1742_v53, %v1452_v55  ;;  %v1750_v54 = vld [vmem:[%s2757_s13 + $0x3e0] sm:$0xff]  ;;  %v1689_v58 = vld [vmem:[%s2757_s13 + $0x1f8] sm:$0xff] }
 0x15a   : > { %v1199_v7 = vadd.f32 %v3115_v37, %v1198_v0  ;;  %v1455_v8 = vadd.f32 %v3115_v37, %v1454_v2  ;;  %1936 = vst [vmem:[%s2778_s22 + $0x1b0] sm:$0xff] %v1808_v60  ;;  %2000 = vst [vmem:[%s2778_s22 + $0x3b0] sm:$0xff] %v1872_v61  ;;  %v1809_v9 = vsub.f32 %v1681_v57, %v1207_v62  ;;  %v1753_v60 = vld [vmem:[%s2757_s13 + $0x3f8] sm:$0xff]  ;;  %v1687_v2 = vld [vmem:[%s2757_s13 + $0x1e8] sm:$0xff] }
 0x15b   : > { %1553 = vst [vmem:[%s2767_s19 + $0x1b8] sm:$0xff] %v1207_v62  ;;  %1617 = vst [vmem:[%s2767_s19 + $0x3b8] sm:$0xff] %v1463_v63  ;;  %v1873_v10 = vsub.f32 %v1745_v59, %v1463_v63 }
 0x15c   : > { %1934 = vst [vmem:[%s2778_s22 + $0x1a0] sm:$0xff] %v1806_v4  ;;  %1998 = vst [vmem:[%s2778_s22 + $0x3a0] sm:$0xff] %v1870_v6  ;;  %v1807_v11 = vsub.f32 %v1679_v1, %v1199_v7  ;;  %v1871_v12 = vsub.f32 %v1743_v3, %v1455_v8  ;;  %v1751_v4 = vld [vmem:[%s2757_s13 + $0x3e8] sm:$0xff] }
 0x15d   : > { %1551 = vst [vmem:[%s2767_s19 + $0x1a8] sm:$0xff] %v1199_v7  ;;  %1615 = vst [vmem:[%s2767_s19 + $0x3a8] sm:$0xff] %v1455_v8  ;;  %v2398_v13 = vpop.f32.mrb[56].mxu0  ;;  %v2462_v15 = vpop.f32.mrb[56].mxu1 }
 0x15e   : > { %1937 = vst [vmem:[%s2778_s22 + $0x1b8] sm:$0xff] %v1809_v9  ;;  %2001 = vst [vmem:[%s2778_s22 + $0x3b8] sm:$0xff] %v1873_v10  ;;  %v1220_v17 = vadd.f32 %v3115_v37, %v2398_v13  ;;  %v1476_v18 = vadd.f32 %v3115_v37, %v2462_v15  ;;  %v1211_v19 = vpop.f32.mrb[57].mxu0  ;;  %v1467_v21 = vpop.f32.mrb[57].mxu1 }
 0x15f   : > { %1935 = vst [vmem:[%s2778_s22 + $0x1a8] sm:$0xff] %v1807_v11  ;;  %1999 = vst [vmem:[%s2778_s22 + $0x3a8] sm:$0xff] %v1871_v12  ;;  %v1212_v23 = vadd.f32 %v3115_v37, %v1211_v19  ;;  %v1468_v24 = vadd.f32 %v3115_v37, %v1467_v21  ;;  %v2399_v25 = vpop.f32.mrb[58].mxu0  ;;  %v2463_v27 = vpop.f32.mrb[58].mxu1 }
 0x160   : > { %1556 = vst [vmem:[%s2767_s19 + $0x1d0] sm:$0xff] %v1220_v17  ;;  %v1812_v29 = vsub.f32 %v1684_v14, %v1220_v17  ;;  %1620 = vst [vmem:[%s2767_s19 + $0x3d0] sm:$0xff] %v1476_v18  ;;  %v1876_v30 = vsub.f32 %v1748_v16, %v1476_v18  ;;  %v1223_v31 = vadd.f32 %v3115_v37, %v2399_v25  ;;  %v1214_v33 = vpop.f32.mrb[59].mxu0  ;;  %v1470_v35 = vpop.f32.mrb[59].mxu1 }
 0x161   : > { %v1479_v32 = vadd.f32 %v3115_v37, %v2463_v27  ;;  %1554 = vst [vmem:[%s2767_s19 + $0x1c0] sm:$0xff] %v1212_v23  ;;  %v1810_v5 = vsub.f32 %v1682_v20, %v1212_v23  ;;  %1618 = vst [vmem:[%s2767_s19 + $0x3c0] sm:$0xff] %v1468_v24  ;;  %v1874_v38 = vsub.f32 %v1746_v22, %v1468_v24 }
 0x162   : > { %v1215_v39 = vadd.f32 %v3115_v37, %v1214_v33  ;;  %v1471_v40 = vadd.f32 %v3115_v37, %v1470_v35  ;;  %1940 = vst [vmem:[%s2778_s22 + $0x1d0] sm:$0xff] %v1812_v29  ;;  %2004 = vst [vmem:[%s2778_s22 + $0x3d0] sm:$0xff] %v1876_v30  ;;  %v1813_v41 = vsub.f32 %v1685_v26, %v1223_v31 }
 0x163   : > { %1557 = vst [vmem:[%s2767_s19 + $0x1d8] sm:$0xff] %v1223_v31  ;;  %1621 = vst [vmem:[%s2767_s19 + $0x3d8] sm:$0xff] %v1479_v32  ;;  %v1877_v42 = vsub.f32 %v1749_v28, %v1479_v32 }
 0x164   : > { %1938 = vst [vmem:[%s2778_s22 + $0x1c0] sm:$0xff] %v1810_v5  ;;  %2002 = vst [vmem:[%s2778_s22 + $0x3c0] sm:$0xff] %v1874_v38  ;;  %v1811_v43 = vsub.f32 %v1683_v34, %v1215_v39  ;;  %v1875_v44 = vsub.f32 %v1747_v36, %v1471_v40 }
 0x165   : > { %1555 = vst [vmem:[%s2767_s19 + $0x1c8] sm:$0xff] %v1215_v39  ;;  %1619 = vst [vmem:[%s2767_s19 + $0x3c8] sm:$0xff] %v1471_v40  ;;  %v2402_v45 = vpop.f32.mrb[60].mxu0  ;;  %v2466_v47 = vpop.f32.mrb[60].mxu1 }
 0x166   : > { %1941 = vst [vmem:[%s2778_s22 + $0x1d8] sm:$0xff] %v1813_v41  ;;  %2005 = vst [vmem:[%s2778_s22 + $0x3d8] sm:$0xff] %v1877_v42  ;;  %v1236_v49 = vadd.f32 %v3115_v37, %v2402_v45  ;;  %v1492_v50 = vadd.f32 %v3115_v37, %v2466_v47  ;;  %v1227_v51 = vpop.f32.mrb[61].mxu0  ;;  %v1483_v53 = vpop.f32.mrb[61].mxu1 }
 0x167   : > { %1939 = vst [vmem:[%s2778_s22 + $0x1c8] sm:$0xff] %v1811_v43  ;;  %2003 = vst [vmem:[%s2778_s22 + $0x3c8] sm:$0xff] %v1875_v44  ;;  %v1228_v55 = vadd.f32 %v3115_v37, %v1227_v51  ;;  %v1484_v56 = vadd.f32 %v3115_v37, %v1483_v53  ;;  %v2403_v57 = vpop.f32.mrb[62].mxu0  ;;  %v2467_v59 = vpop.f32.mrb[62].mxu1 }
 0x168   : > { %1560 = vst [vmem:[%s2767_s19 + $0x1f0] sm:$0xff] %v1236_v49  ;;  %v1816_v61 = vsub.f32 %v1688_v46, %v1236_v49  ;;  %1624 = vst [vmem:[%s2767_s19 + $0x3f0] sm:$0xff] %v1492_v50  ;;  %v1880_v62 = vsub.f32 %v1752_v48, %v1492_v50  ;;  %v1239_v63 = vadd.f32 %v3115_v37, %v2403_v57  ;;  %v1230_v1 = vpop.f32.mrb[63].mxu0  ;;  %v1486_v3 = vpop.f32.mrb[63].mxu1 }
 0x169   : > { %v1495_v0 = vadd.f32 %v3115_v37, %v2467_v59  ;;  %1558 = vst [vmem:[%s2767_s19 + $0x1e0] sm:$0xff] %v1228_v55  ;;  %v1814_v6 = vsub.f32 %v1686_v52, %v1228_v55  ;;  %1622 = vst [vmem:[%s2767_s19 + $0x3e0] sm:$0xff] %v1484_v56  ;;  %v1878_v7 = vsub.f32 %v1750_v54, %v1484_v56 }
 0x16a   : > { %v1231_v8 = vadd.f32 %v3115_v37, %v1230_v1  ;;  %v1487_v9 = vadd.f32 %v3115_v37, %v1486_v3  ;;  %1944 = vst [vmem:[%s2778_s22 + $0x1f0] sm:$0xff] %v1816_v61  ;;  %2008 = vst [vmem:[%s2778_s22 + $0x3f0] sm:$0xff] %v1880_v62  ;;  %v1817_v10 = vsub.f32 %v1689_v58, %v1239_v63 }
 0x16b   : > { %1561 = vst [vmem:[%s2767_s19 + $0x1f8] sm:$0xff] %v1239_v63  ;;  %1625 = vst [vmem:[%s2767_s19 + $0x3f8] sm:$0xff] %v1495_v0  ;;  %v1881_v11 = vsub.f32 %v1753_v60, %v1495_v0 }
 0x16c   : > { %1942 = vst [vmem:[%s2778_s22 + $0x1e0] sm:$0xff] %v1814_v6  ;;  %2006 = vst [vmem:[%s2778_s22 + $0x3e0] sm:$0xff] %v1878_v7  ;;  %v1815_v12 = vsub.f32 %v1687_v2, %v1231_v8  ;;  %v1879_v13 = vsub.f32 %v1751_v4, %v1487_v9 }
 0x16d   : > { %1559 = vst [vmem:[%s2767_s19 + $0x1e8] sm:$0xff] %v1231_v8  ;;  %1623 = vst [vmem:[%s2767_s19 + $0x3e8] sm:$0xff] %v1487_v9 }
 0x16e   : > { %1945 = vst [vmem:[%s2778_s22 + $0x1f8] sm:$0xff] %v1817_v10  ;;  %2009 = vst [vmem:[%s2778_s22 + $0x3f8] sm:$0xff] %v1881_v11 }
 0x16f   : > { %1943 = vst [vmem:[%s2778_s22 + $0x1e8] sm:$0xff] %v1815_v12  ;;  %2007 = vst [vmem:[%s2778_s22 + $0x3e8] sm:$0xff] %v1879_v13 }
 0x170 PF: > { %s16_s18 = sadd.s32 1, %s2562_s18  }
 0x171   : > { %p13_p4 = scmp.ge.s32.totalorder %s16_s18, 4  }
 0x173   :  { %15 = sbr.rel (!%p13_p4) target bundleno = 1 (0x1), region = 81 }

</bundles_post_ra>
